<compile_context>
chip_gen: v6e
topology: v6e:2x2x1
jax: 0.10.0
libtpu: 0.0.40
codegen_flags: <defaults>
</compile_context>

<pallas_src>
import functools

import jax
import jax.numpy as jnp
from jax.experimental import pallas as pl
from jax.experimental.pallas import tpu as pltpu

H = 16                    # image height == width
HW = H * H                # flattened spatial size (lane axis)
PAD = 128                 # zero border of the shifted-window scratch
SCR_W = HW + 2 * PAD      # 512 lanes = 4 lane-tiles


def _pattern_net_kernel(x_ref, w1t_ref, b1_ref, w2t_ref, b2_ref,
                        w3h_ref, b3_ref, w4t_ref, b4_ref,
                        p4_ref, p3h_ref, p2t_ref, p1t_ref,
                        o_ref, scr_ref, *, only_biggest):
    f32 = jnp.float32

    # Shift scratch: data lives in lanes [PAD, PAD+HW); the borders stay zero
    # so a shifted read past the image boundary is a (finite) zero fill.
    scr_ref[...] = jnp.zeros((16, SCR_W), f32)

    def put(x):
        scr_ref[0:x.shape[0], PAD:PAD + HW] = x

    def shifted(c, d):
        # y[:, p] == last-put(x)[:, p + d]    (zero fill outside [0, HW))
        return scr_ref[0:c, PAD + d:PAD + d + HW]

    # flattened spatial coordinates (shape (1, HW))
    idx = jax.lax.broadcasted_iota(jnp.int32, (1, HW), 1)
    hh = jnp.right_shift(idx, 4)          # row
    ww = jnp.bitwise_and(idx, 15)         # column

    def tap_masks(sigma):
        ms = []
        for kh in range(3):
            for kw in range(3):
                hs = hh + sigma * (kh - 1)
                ws = ww + sigma * (kw - 1)
                ok = (hs >= 0) & (hs < H) & (ws >= 0) & (ws < H)
                ms.append(ok.astype(f32))
        return ms

    masks1 = tap_masks(1)     # stride-1 feature maps
    masks2 = tap_masks(2)     # stride-2 (post-pool1) feature maps

    def conv3x3(x, wt_ref, sigma, masks, bias=None):
        """3x3 / pad-1 conv as 9 shifted-window dot-accumulations.

        x: [Cin, HW] (holes layout at stride `sigma`), wt_ref: [9, Cout, Cin].
        """
        cin = x.shape[0]
        put(x)
        acc = None
        for kh in range(3):
            for kw in range(3):
                t = kh * 3 + kw
                d = sigma * ((kh - 1) * H + (kw - 1))
                xs = shifted(cin, d) * masks[t]
                y = jnp.dot(wt_ref[t], xs, preferred_element_type=f32)
                acc = y if acc is None else acc + y
        return acc if bias is None else acc + bias

    def maxpool2x2(x, sigma):
        """2x2 / stride-2 max pool on the stride-`sigma` grid.

        Returns pooled values (valid on the stride-2*sigma grid) plus four
        first-wins switch indicators (the PatternMaxPool2d switches).
        """
        c = x.shape[0]
        put(x)
        cands = [shifted(c, sigma * (a * H + b))
                 for a in range(2) for b in range(2)]
        pooled = jnp.maximum(jnp.maximum(cands[0], cands[1]),
                             jnp.maximum(cands[2], cands[3]))
        inds, none_before = [], None
        for k in range(4):
            eq = (cands[k] == pooled).astype(f32)
            inds.append(eq if none_before is None else eq * none_before)
            none_before = ((1.0 - eq) if none_before is None
                           else none_before * (1.0 - eq))
        return pooled, inds

    def maxunpool2x2(g, inds, sigma, bit):
        """Scatter g (stride-2*sigma grid) back onto the stride-`sigma` grid."""
        c = g.shape[0]
        oa = jnp.bitwise_and(jnp.right_shift(hh, bit), 1)
        ob = jnp.bitwise_and(jnp.right_shift(ww, bit), 1)
        out = None
        for a in range(2):
            for b in range(2):
                k = a * 2 + b
                d = sigma * (a * H + b)
                put(g * inds[k])
                sel = ((oa == a) & (ob == b)).astype(f32)
                contrib = shifted(c, -d) * sel
                out = contrib if out is None else out + contrib
        return out

    # ---------------- forward_with_extras ----------------
    x = x_ref[0]                                            # [4, 256]

    a1 = conv3x3(x, w1t_ref, 1, masks1, b1_ref[...])        # Conv2d(4,8)
    m1 = (a1 > 0.0).astype(f32)                             # ReLU mask
    r1 = a1 * m1
    p1, ind1 = maxpool2x2(r1, 1)                            # MaxPool2d(2)

    a2 = conv3x3(p1, w2t_ref, 2, masks2, b2_ref[...])       # Conv2d(8,16)
    m2 = (a2 > 0.0).astype(f32)
    r2 = a2 * m2
    p2, ind2 = maxpool2x2(r2, 2)                            # MaxPool2d(2)

    # Linear(256,32): the NCHW flatten is folded into the hole-scattered
    # per-channel weight blocks w3h[c] (zero rows off the stride-4 grid).
    a3 = b3_ref[...]                                        # [1, 32]
    for c in range(16):
        a3 = a3 + jnp.dot(p2[c:c + 1, :], w3h_ref[c],
                          preferred_element_type=f32)
    m3 = (a3 > 0.0).astype(f32)
    r3 = a3 * m3                                            # ReLU

    out10 = (jnp.dot(r3, w4t_ref[...], preferred_element_type=f32)
             + b4_ref[...])                                 # Linear(32,10)

    # ---------------- keep only the biggest logit ----------------
    if only_biggest:
        mx = jnp.max(out10, axis=1, keepdims=True)
        i10 = jax.lax.broadcasted_iota(jnp.int32, (1, 10), 1).astype(f32)
        first = jnp.min(jnp.where(out10 == mx, i10, 1e9),
                        axis=1, keepdims=True)
        y10 = jnp.where(i10 == first, out10, 0.0)
    else:
        y10 = out10

    # ---------------- backward through the pattern layers ----------------
    y32 = jnp.dot(y10, p4_ref[...], preferred_element_type=f32) * m3
    col = jax.lax.broadcasted_iota(jnp.int32, (16, 1), 0)
    y2h = None                   # Linear(256,32) backward + NCHW unflatten
    for c in range(16):
        row = jnp.dot(y32, p3h_ref[c], preferred_element_type=f32)  # [1,256]
        contrib = jnp.where(col == c, row, 0.0)
        y2h = contrib if y2h is None else y2h + contrib

    u2 = maxunpool2x2(y2h, ind2, 2, 1) * m2                 # unpool2 + ReLU
    yb = conv3x3(u2, p2t_ref, 2, masks2)                    # conv2 pattern bwd
    u1 = maxunpool2x2(yb, ind1, 1, 0) * m1                  # unpool1 + ReLU
    sig = conv3x3(u1, p1t_ref, 1, masks1)                   # conv1 pattern bwd

    o_ref[0] = sig


# ---------------- wrapper-side (one-time) weight re-layouts ----------------

def _conv_taps(w):
    # PyTorch conv weight [Cout, Cin, 3, 3] -> per-tap matrices [9, Cout, Cin]
    return jnp.transpose(w, (2, 3, 0, 1)).reshape(9, w.shape[0], w.shape[1])


def _conv_transpose_taps(p):
    # conv_transpose2d(., p, stride=1, pad=1) == conv with flipped/swapped p
    pf = jnp.transpose(jnp.flip(p, axis=(2, 3)), (1, 0, 2, 3))
    return _conv_taps(pf)                                   # [9, Cin, Cout]


def _scatter_w3(w3):
    # Linear(256,32) weight [32,256] -> hole-scattered per-channel blocks
    # [16, 256, 32]: w3h[c, h*16+w, n] = w3[n, c*16 + (h//4)*4 + w//4] on the
    # stride-4 grid, zero elsewhere (folds the NCHW flatten into the weights).
    w3r = jnp.transpose(w3.reshape(32, 16, 4, 4), (1, 2, 3, 0))
    w3h = jnp.zeros((16, H, H, 32), jnp.float32).at[:, ::4, ::4, :].set(w3r)
    return w3h.reshape(16, HW, 32)


def _scatter_p3(p3):
    # Pattern of Linear(256,32) for the backward pass: [16, 32, 256]
    p3r = jnp.transpose(p3.reshape(32, 16, 4, 4), (1, 0, 2, 3))
    p3h = jnp.zeros((16, 32, H, H), jnp.float32).at[:, :, ::4, ::4].set(p3r)
    return p3h.reshape(16, 32, HW)


def pattern_net_forward(x_nchw, params, only_biggest_value=True):
    B = x_nchw.shape[0]
    x = x_nchw.astype(jnp.float32).reshape(B, 4, HW)

    args = (
        x,
        _conv_taps(params['w1'].astype(jnp.float32)),            # [9, 8, 4]
        params['b1'].reshape(8, 1).astype(jnp.float32),
        _conv_taps(params['w2'].astype(jnp.float32)),            # [9, 16, 8]
        params['b2'].reshape(16, 1).astype(jnp.float32),
        _scatter_w3(params['w3'].astype(jnp.float32)),           # [16,256,32]
        params['b3'].reshape(1, 32).astype(jnp.float32),
        params['w4'].T.astype(jnp.float32),                      # [32, 10]
        params['b4'].reshape(1, 10).astype(jnp.float32),
        params['p4'].astype(jnp.float32),                        # [10, 32]
        _scatter_p3(params['p3'].astype(jnp.float32)),           # [16,32,256]
        _conv_transpose_taps(params['p2'].astype(jnp.float32)),  # [9, 8, 16]
        _conv_transpose_taps(params['p1'].astype(jnp.float32)),  # [9, 4, 8]
    )

    def whole(shape):
        if len(shape) == 2:
            return pl.BlockSpec(shape, lambda b: (0, 0))
        return pl.BlockSpec(shape, lambda b: (0, 0, 0))

    in_specs = [pl.BlockSpec((1, 4, HW), lambda b: (b, 0, 0))]
    in_specs += [whole(a.shape) for a in args[1:]]

    out = pl.pallas_call(
        functools.partial(_pattern_net_kernel,
                          only_biggest=bool(only_biggest_value)),
        out_shape=jax.ShapeDtypeStruct((B, 4, HW), jnp.float32),
        grid=(B,),
        in_specs=in_specs,
        out_specs=pl.BlockSpec((1, 4, HW), lambda b: (b, 0, 0)),
        scratch_shapes=[pltpu.VMEM((16, SCR_W), jnp.float32)],
        compiler_params=pltpu.CompilerParams(
            dimension_semantics=("parallel",)),
    )(*args)

    return out.reshape(B, 4, H, H)                               # NCHW signal


def init_params():
    k = jax.random.PRNGKey(42)
    ks = jax.random.split(k, 8)
    w1 = 0.1 * jax.random.normal(ks[0], (8, 4, 3, 3), jnp.float32)
    b1 = 0.1 * jax.random.normal(ks[1], (8,), jnp.float32)
    w2 = 0.1 * jax.random.normal(ks[2], (16, 8, 3, 3), jnp.float32)
    b2 = 0.1 * jax.random.normal(ks[3], (16,), jnp.float32)
    w3 = 0.1 * jax.random.normal(ks[4], (32, 256), jnp.float32)
    b3 = 0.1 * jax.random.normal(ks[5], (32,), jnp.float32)
    w4 = 0.1 * jax.random.normal(ks[6], (10, 32), jnp.float32)
    b4 = 0.1 * jax.random.normal(ks[7], (10,), jnp.float32)
    # Patterns have the same shape as the layer weights; compute_patterns() is
    # never run in this synthetic setup, so patterns := weights (deterministic).
    # TODO(synk): compute_statistics / compute_patterns (pattern fitting) are
    # training-time machinery and are not part of the forward pass.
    return dict(w1=w1, b1=b1, w2=w2, b2=b2, w3=w3, b3=b3, w4=w4, b4=b4,
                p1=w1, p2=w2, p3=w3, p4=w4)


if __name__ == "__main__":
    key = jax.random.PRNGKey(0)
    x = jax.random.normal(key, (2, 4, 16, 16), dtype=jnp.float32)  # NCHW input
    params = init_params()
    signal = jax.jit(pattern_net_forward)(x, params)
    jax.block_until_ready(signal)
    assert signal.shape == (2, 4, 16, 16)
    assert bool(jnp.all(jnp.isfinite(signal)))
    print("KERNEL_OK")
</pallas_src>

<mosaic_0001>
module attributes {stable_mosaic.version = 11 : i64} {
  func.func @_pattern_net_kernel(%arg0: i32, %arg1: memref<1x4x256xf32, #tpu.memory_space<vmem>>, %arg2: memref<9x8x4xf32, #tpu.memory_space<vmem>>, %arg3: memref<8x1xf32, #tpu.memory_space<vmem>>, %arg4: memref<9x16x8xf32, #tpu.memory_space<vmem>>, %arg5: memref<16x1xf32, #tpu.memory_space<vmem>>, %arg6: memref<16x256x32xf32, #tpu.memory_space<vmem>>, %arg7: memref<1x32xf32, #tpu.memory_space<vmem>>, %arg8: memref<32x10xf32, #tpu.memory_space<vmem>>, %arg9: memref<1x10xf32, #tpu.memory_space<vmem>>, %arg10: memref<10x32xf32, #tpu.memory_space<vmem>>, %arg11: memref<16x32x256xf32, #tpu.memory_space<vmem>>, %arg12: memref<9x8x16xf32, #tpu.memory_space<vmem>>, %arg13: memref<9x4x8xf32, #tpu.memory_space<vmem>>, %arg14: memref<1x4x256xf32, #tpu.memory_space<vmem>>, %arg15: memref<16x512xf32, #tpu.memory_space<vmem>>) attributes {dimension_semantics = [#tpu.dimension_semantics<parallel>], iteration_bounds = array<i64: 2>, scalar_prefetch = 0 : i64, scratch_operands = 1 : i64, tpu.core_type = #tpu.core_type<tc>, window_params = [{transform_indices = @transform_0, window_bounds = array<i64: 1, 4, 256>}, {pipeline_mode = #tpu.pipeline_mode<synchronous>, transform_indices = @transform_1, window_bounds = array<i64: 9, 8, 4>}, {pipeline_mode = #tpu.pipeline_mode<synchronous>, transform_indices = @transform_2, window_bounds = array<i64: 8, 1>}, {pipeline_mode = #tpu.pipeline_mode<synchronous>, transform_indices = @transform_3, window_bounds = array<i64: 9, 16, 8>}, {pipeline_mode = #tpu.pipeline_mode<synchronous>, transform_indices = @transform_4, window_bounds = array<i64: 16, 1>}, {pipeline_mode = #tpu.pipeline_mode<synchronous>, transform_indices = @transform_5, window_bounds = array<i64: 16, 256, 32>}, {pipeline_mode = #tpu.pipeline_mode<synchronous>, transform_indices = @transform_6, window_bounds = array<i64: 1, 32>}, {pipeline_mode = #tpu.pipeline_mode<synchronous>, transform_indices = @transform_7, window_bounds = array<i64: 32, 10>}, {pipeline_mode = #tpu.pipeline_mode<synchronous>, transform_indices = @transform_8, window_bounds = array<i64: 1, 10>}, {pipeline_mode = #tpu.pipeline_mode<synchronous>, transform_indices = @transform_9, window_bounds = array<i64: 10, 32>}, {pipeline_mode = #tpu.pipeline_mode<synchronous>, transform_indices = @transform_10, window_bounds = array<i64: 16, 32, 256>}, {pipeline_mode = #tpu.pipeline_mode<synchronous>, transform_indices = @transform_11, window_bounds = array<i64: 9, 8, 16>}, {pipeline_mode = #tpu.pipeline_mode<synchronous>, transform_indices = @transform_12, window_bounds = array<i64: 9, 4, 8>}, {transform_indices = @transform_13, window_bounds = array<i64: 1, 4, 256>}]} {
    %cst = arith.constant 0.000000e+00 : f32
    %0 = vector.broadcast %cst : f32 to vector<16x512xf32>
    %c0 = arith.constant 0 : index
    %c0_0 = arith.constant 0 : index
    %1 = vector.load %arg15[%c0, %c0_0] : memref<16x512xf32, #tpu.memory_space<vmem>>, vector<16x512xf32>
    tpu.vector_store %arg15[%c0, %c0_0], %0 {strides = array<i32>} : memref<16x512xf32, #tpu.memory_space<vmem>>, vector<16x512xf32>,
    %2 = tpu.iota {dimensions = array<i32: 1>} : vector<1x256xi32>
    %c4_i32 = arith.constant 4 : i32
    %3 = vector.broadcast %c4_i32 : i32 to vector<1x256xi32>
    %4 = arith.shrsi %2, %3 : vector<1x256xi32>
    %c15_i32 = arith.constant 15 : i32
    %5 = vector.broadcast %c15_i32 : i32 to vector<1x256xi32>
    %6 = arith.andi %2, %5 : vector<1x256xi32>
    %c-1_i32 = arith.constant -1 : i32
    %7 = vector.broadcast %c-1_i32 : i32 to vector<1x256xi32>
    %8 = arith.addi %4, %7 : vector<1x256xi32>
    %c-1_i32_1 = arith.constant -1 : i32
    %9 = vector.broadcast %c-1_i32_1 : i32 to vector<1x256xi32>
    %10 = arith.addi %6, %9 : vector<1x256xi32>
    %c0_i32 = arith.constant 0 : i32
    %11 = vector.broadcast %c0_i32 : i32 to vector<1x256xi32>
    %12 = arith.cmpi sge, %8, %11 : vector<1x256xi32>
    %c16_i32 = arith.constant 16 : i32
    %13 = vector.broadcast %c16_i32 : i32 to vector<1x256xi32>
    %14 = arith.cmpi slt, %8, %13 : vector<1x256xi32>
    %15 = arith.andi %12, %14 : vector<1x256xi1>
    %c0_i32_2 = arith.constant 0 : i32
    %16 = vector.broadcast %c0_i32_2 : i32 to vector<1x256xi32>
    %17 = arith.cmpi sge, %10, %16 : vector<1x256xi32>
    %18 = arith.andi %15, %17 : vector<1x256xi1>
    %c16_i32_3 = arith.constant 16 : i32
    %19 = vector.broadcast %c16_i32_3 : i32 to vector<1x256xi32>
    %20 = arith.cmpi slt, %10, %19 : vector<1x256xi32>
    %21 = arith.andi %18, %20 : vector<1x256xi1>
    %22 = arith.extui %21 : vector<1x256xi1> to vector<1x256xi32>
    %23 = arith.sitofp %22 : vector<1x256xi32> to vector<1x256xf32>
    %c-1_i32_4 = arith.constant -1 : i32
    %24 = vector.broadcast %c-1_i32_4 : i32 to vector<1x256xi32>
    %25 = arith.addi %4, %24 : vector<1x256xi32>
    %c0_i32_5 = arith.constant 0 : i32
    %26 = vector.broadcast %c0_i32_5 : i32 to vector<1x256xi32>
    %27 = arith.addi %6, %26 : vector<1x256xi32>
    %c0_i32_6 = arith.constant 0 : i32
    %28 = vector.broadcast %c0_i32_6 : i32 to vector<1x256xi32>
    %29 = arith.cmpi sge, %25, %28 : vector<1x256xi32>
    %c16_i32_7 = arith.constant 16 : i32
    %30 = vector.broadcast %c16_i32_7 : i32 to vector<1x256xi32>
    %31 = arith.cmpi slt, %25, %30 : vector<1x256xi32>
    %32 = arith.andi %29, %31 : vector<1x256xi1>
    %c0_i32_8 = arith.constant 0 : i32
    %33 = vector.broadcast %c0_i32_8 : i32 to vector<1x256xi32>
    %34 = arith.cmpi sge, %27, %33 : vector<1x256xi32>
    %35 = arith.andi %32, %34 : vector<1x256xi1>
    %c16_i32_9 = arith.constant 16 : i32
    %36 = vector.broadcast %c16_i32_9 : i32 to vector<1x256xi32>
    %37 = arith.cmpi slt, %27, %36 : vector<1x256xi32>
    %38 = arith.andi %35, %37 : vector<1x256xi1>
    %39 = arith.extui %38 : vector<1x256xi1> to vector<1x256xi32>
    %40 = arith.sitofp %39 : vector<1x256xi32> to vector<1x256xf32>
    %c-1_i32_10 = arith.constant -1 : i32
    %41 = vector.broadcast %c-1_i32_10 : i32 to vector<1x256xi32>
    %42 = arith.addi %4, %41 : vector<1x256xi32>
    %c1_i32 = arith.constant 1 : i32
    %43 = vector.broadcast %c1_i32 : i32 to vector<1x256xi32>
    %44 = arith.addi %6, %43 : vector<1x256xi32>
    %c0_i32_11 = arith.constant 0 : i32
    %45 = vector.broadcast %c0_i32_11 : i32 to vector<1x256xi32>
    %46 = arith.cmpi sge, %42, %45 : vector<1x256xi32>
    %c16_i32_12 = arith.constant 16 : i32
    %47 = vector.broadcast %c16_i32_12 : i32 to vector<1x256xi32>
    %48 = arith.cmpi slt, %42, %47 : vector<1x256xi32>
    %49 = arith.andi %46, %48 : vector<1x256xi1>
    %c0_i32_13 = arith.constant 0 : i32
    %50 = vector.broadcast %c0_i32_13 : i32 to vector<1x256xi32>
    %51 = arith.cmpi sge, %44, %50 : vector<1x256xi32>
    %52 = arith.andi %49, %51 : vector<1x256xi1>
    %c16_i32_14 = arith.constant 16 : i32
    %53 = vector.broadcast %c16_i32_14 : i32 to vector<1x256xi32>
    %54 = arith.cmpi slt, %44, %53 : vector<1x256xi32>
    %55 = arith.andi %52, %54 : vector<1x256xi1>
    %56 = arith.extui %55 : vector<1x256xi1> to vector<1x256xi32>
    %57 = arith.sitofp %56 : vector<1x256xi32> to vector<1x256xf32>
    %c0_i32_15 = arith.constant 0 : i32
    %58 = vector.broadcast %c0_i32_15 : i32 to vector<1x256xi32>
    %59 = arith.addi %4, %58 : vector<1x256xi32>
    %c-1_i32_16 = arith.constant -1 : i32
    %60 = vector.broadcast %c-1_i32_16 : i32 to vector<1x256xi32>
    %61 = arith.addi %6, %60 : vector<1x256xi32>
    %c0_i32_17 = arith.constant 0 : i32
    %62 = vector.broadcast %c0_i32_17 : i32 to vector<1x256xi32>
    %63 = arith.cmpi sge, %59, %62 : vector<1x256xi32>
    %c16_i32_18 = arith.constant 16 : i32
    %64 = vector.broadcast %c16_i32_18 : i32 to vector<1x256xi32>
    %65 = arith.cmpi slt, %59, %64 : vector<1x256xi32>
    %66 = arith.andi %63, %65 : vector<1x256xi1>
    %c0_i32_19 = arith.constant 0 : i32
    %67 = vector.broadcast %c0_i32_19 : i32 to vector<1x256xi32>
    %68 = arith.cmpi sge, %61, %67 : vector<1x256xi32>
    %69 = arith.andi %66, %68 : vector<1x256xi1>
    %c16_i32_20 = arith.constant 16 : i32
    %70 = vector.broadcast %c16_i32_20 : i32 to vector<1x256xi32>
    %71 = arith.cmpi slt, %61, %70 : vector<1x256xi32>
    %72 = arith.andi %69, %71 : vector<1x256xi1>
    %73 = arith.extui %72 : vector<1x256xi1> to vector<1x256xi32>
    %74 = arith.sitofp %73 : vector<1x256xi32> to vector<1x256xf32>
    %c0_i32_21 = arith.constant 0 : i32
    %75 = vector.broadcast %c0_i32_21 : i32 to vector<1x256xi32>
    %76 = arith.addi %4, %75 : vector<1x256xi32>
    %c0_i32_22 = arith.constant 0 : i32
    %77 = vector.broadcast %c0_i32_22 : i32 to vector<1x256xi32>
    %78 = arith.addi %6, %77 : vector<1x256xi32>
    %c0_i32_23 = arith.constant 0 : i32
    %79 = vector.broadcast %c0_i32_23 : i32 to vector<1x256xi32>
    %80 = arith.cmpi sge, %76, %79 : vector<1x256xi32>
    %c16_i32_24 = arith.constant 16 : i32
    %81 = vector.broadcast %c16_i32_24 : i32 to vector<1x256xi32>
    %82 = arith.cmpi slt, %76, %81 : vector<1x256xi32>
    %83 = arith.andi %80, %82 : vector<1x256xi1>
    %c0_i32_25 = arith.constant 0 : i32
    %84 = vector.broadcast %c0_i32_25 : i32 to vector<1x256xi32>
    %85 = arith.cmpi sge, %78, %84 : vector<1x256xi32>
    %86 = arith.andi %83, %85 : vector<1x256xi1>
    %c16_i32_26 = arith.constant 16 : i32
    %87 = vector.broadcast %c16_i32_26 : i32 to vector<1x256xi32>
    %88 = arith.cmpi slt, %78, %87 : vector<1x256xi32>
    %89 = arith.andi %86, %88 : vector<1x256xi1>
    %90 = arith.extui %89 : vector<1x256xi1> to vector<1x256xi32>
    %91 = arith.sitofp %90 : vector<1x256xi32> to vector<1x256xf32>
    %c0_i32_27 = arith.constant 0 : i32
    %92 = vector.broadcast %c0_i32_27 : i32 to vector<1x256xi32>
    %93 = arith.addi %4, %92 : vector<1x256xi32>
    %c1_i32_28 = arith.constant 1 : i32
    %94 = vector.broadcast %c1_i32_28 : i32 to vector<1x256xi32>
    %95 = arith.addi %6, %94 : vector<1x256xi32>
    %c0_i32_29 = arith.constant 0 : i32
    %96 = vector.broadcast %c0_i32_29 : i32 to vector<1x256xi32>
    %97 = arith.cmpi sge, %93, %96 : vector<1x256xi32>
    %c16_i32_30 = arith.constant 16 : i32
    %98 = vector.broadcast %c16_i32_30 : i32 to vector<1x256xi32>
    %99 = arith.cmpi slt, %93, %98 : vector<1x256xi32>
    %100 = arith.andi %97, %99 : vector<1x256xi1>
    %c0_i32_31 = arith.constant 0 : i32
    %101 = vector.broadcast %c0_i32_31 : i32 to vector<1x256xi32>
    %102 = arith.cmpi sge, %95, %101 : vector<1x256xi32>
    %103 = arith.andi %100, %102 : vector<1x256xi1>
    %c16_i32_32 = arith.constant 16 : i32
    %104 = vector.broadcast %c16_i32_32 : i32 to vector<1x256xi32>
    %105 = arith.cmpi slt, %95, %104 : vector<1x256xi32>
    %106 = arith.andi %103, %105 : vector<1x256xi1>
    %107 = arith.extui %106 : vector<1x256xi1> to vector<1x256xi32>
    %108 = arith.sitofp %107 : vector<1x256xi32> to vector<1x256xf32>
    %c1_i32_33 = arith.constant 1 : i32
    %109 = vector.broadcast %c1_i32_33 : i32 to vector<1x256xi32>
    %110 = arith.addi %4, %109 : vector<1x256xi32>
    %c-1_i32_34 = arith.constant -1 : i32
    %111 = vector.broadcast %c-1_i32_34 : i32 to vector<1x256xi32>
    %112 = arith.addi %6, %111 : vector<1x256xi32>
    %c0_i32_35 = arith.constant 0 : i32
    %113 = vector.broadcast %c0_i32_35 : i32 to vector<1x256xi32>
    %114 = arith.cmpi sge, %110, %113 : vector<1x256xi32>
    %c16_i32_36 = arith.constant 16 : i32
    %115 = vector.broadcast %c16_i32_36 : i32 to vector<1x256xi32>
    %116 = arith.cmpi slt, %110, %115 : vector<1x256xi32>
    %117 = arith.andi %114, %116 : vector<1x256xi1>
    %c0_i32_37 = arith.constant 0 : i32
    %118 = vector.broadcast %c0_i32_37 : i32 to vector<1x256xi32>
    %119 = arith.cmpi sge, %112, %118 : vector<1x256xi32>
    %120 = arith.andi %117, %119 : vector<1x256xi1>
    %c16_i32_38 = arith.constant 16 : i32
    %121 = vector.broadcast %c16_i32_38 : i32 to vector<1x256xi32>
    %122 = arith.cmpi slt, %112, %121 : vector<1x256xi32>
    %123 = arith.andi %120, %122 : vector<1x256xi1>
    %124 = arith.extui %123 : vector<1x256xi1> to vector<1x256xi32>
    %125 = arith.sitofp %124 : vector<1x256xi32> to vector<1x256xf32>
    %c1_i32_39 = arith.constant 1 : i32
    %126 = vector.broadcast %c1_i32_39 : i32 to vector<1x256xi32>
    %127 = arith.addi %4, %126 : vector<1x256xi32>
    %c0_i32_40 = arith.constant 0 : i32
    %128 = vector.broadcast %c0_i32_40 : i32 to vector<1x256xi32>
    %129 = arith.addi %6, %128 : vector<1x256xi32>
    %c0_i32_41 = arith.constant 0 : i32
    %130 = vector.broadcast %c0_i32_41 : i32 to vector<1x256xi32>
    %131 = arith.cmpi sge, %127, %130 : vector<1x256xi32>
    %c16_i32_42 = arith.constant 16 : i32
    %132 = vector.broadcast %c16_i32_42 : i32 to vector<1x256xi32>
    %133 = arith.cmpi slt, %127, %132 : vector<1x256xi32>
    %134 = arith.andi %131, %133 : vector<1x256xi1>
    %c0_i32_43 = arith.constant 0 : i32
    %135 = vector.broadcast %c0_i32_43 : i32 to vector<1x256xi32>
    %136 = arith.cmpi sge, %129, %135 : vector<1x256xi32>
    %137 = arith.andi %134, %136 : vector<1x256xi1>
    %c16_i32_44 = arith.constant 16 : i32
    %138 = vector.broadcast %c16_i32_44 : i32 to vector<1x256xi32>
    %139 = arith.cmpi slt, %129, %138 : vector<1x256xi32>
    %140 = arith.andi %137, %139 : vector<1x256xi1>
    %141 = arith.extui %140 : vector<1x256xi1> to vector<1x256xi32>
    %142 = arith.sitofp %141 : vector<1x256xi32> to vector<1x256xf32>
    %c1_i32_45 = arith.constant 1 : i32
    %143 = vector.broadcast %c1_i32_45 : i32 to vector<1x256xi32>
    %144 = arith.addi %4, %143 : vector<1x256xi32>
    %c1_i32_46 = arith.constant 1 : i32
    %145 = vector.broadcast %c1_i32_46 : i32 to vector<1x256xi32>
    %146 = arith.addi %6, %145 : vector<1x256xi32>
    %c0_i32_47 = arith.constant 0 : i32
    %147 = vector.broadcast %c0_i32_47 : i32 to vector<1x256xi32>
    %148 = arith.cmpi sge, %144, %147 : vector<1x256xi32>
    %c16_i32_48 = arith.constant 16 : i32
    %149 = vector.broadcast %c16_i32_48 : i32 to vector<1x256xi32>
    %150 = arith.cmpi slt, %144, %149 : vector<1x256xi32>
    %151 = arith.andi %148, %150 : vector<1x256xi1>
    %c0_i32_49 = arith.constant 0 : i32
    %152 = vector.broadcast %c0_i32_49 : i32 to vector<1x256xi32>
    %153 = arith.cmpi sge, %146, %152 : vector<1x256xi32>
    %154 = arith.andi %151, %153 : vector<1x256xi1>
    %c16_i32_50 = arith.constant 16 : i32
    %155 = vector.broadcast %c16_i32_50 : i32 to vector<1x256xi32>
    %156 = arith.cmpi slt, %146, %155 : vector<1x256xi32>
    %157 = arith.andi %154, %156 : vector<1x256xi1>
    %158 = arith.extui %157 : vector<1x256xi1> to vector<1x256xi32>
    %159 = arith.sitofp %158 : vector<1x256xi32> to vector<1x256xf32>
    %c-2_i32 = arith.constant -2 : i32
    %160 = vector.broadcast %c-2_i32 : i32 to vector<1x256xi32>
    %161 = arith.addi %4, %160 : vector<1x256xi32>
    %c-2_i32_51 = arith.constant -2 : i32
    %162 = vector.broadcast %c-2_i32_51 : i32 to vector<1x256xi32>
    %163 = arith.addi %6, %162 : vector<1x256xi32>
    %c0_i32_52 = arith.constant 0 : i32
    %164 = vector.broadcast %c0_i32_52 : i32 to vector<1x256xi32>
    %165 = arith.cmpi sge, %161, %164 : vector<1x256xi32>
    %c16_i32_53 = arith.constant 16 : i32
    %166 = vector.broadcast %c16_i32_53 : i32 to vector<1x256xi32>
    %167 = arith.cmpi slt, %161, %166 : vector<1x256xi32>
    %168 = arith.andi %165, %167 : vector<1x256xi1>
    %c0_i32_54 = arith.constant 0 : i32
    %169 = vector.broadcast %c0_i32_54 : i32 to vector<1x256xi32>
    %170 = arith.cmpi sge, %163, %169 : vector<1x256xi32>
    %171 = arith.andi %168, %170 : vector<1x256xi1>
    %c16_i32_55 = arith.constant 16 : i32
    %172 = vector.broadcast %c16_i32_55 : i32 to vector<1x256xi32>
    %173 = arith.cmpi slt, %163, %172 : vector<1x256xi32>
    %174 = arith.andi %171, %173 : vector<1x256xi1>
    %175 = arith.extui %174 : vector<1x256xi1> to vector<1x256xi32>
    %176 = arith.sitofp %175 : vector<1x256xi32> to vector<1x256xf32>
    %c-2_i32_56 = arith.constant -2 : i32
    %177 = vector.broadcast %c-2_i32_56 : i32 to vector<1x256xi32>
    %178 = arith.addi %4, %177 : vector<1x256xi32>
    %c0_i32_57 = arith.constant 0 : i32
    %179 = vector.broadcast %c0_i32_57 : i32 to vector<1x256xi32>
    %180 = arith.addi %6, %179 : vector<1x256xi32>
    %c0_i32_58 = arith.constant 0 : i32
    %181 = vector.broadcast %c0_i32_58 : i32 to vector<1x256xi32>
    %182 = arith.cmpi sge, %178, %181 : vector<1x256xi32>
    %c16_i32_59 = arith.constant 16 : i32
    %183 = vector.broadcast %c16_i32_59 : i32 to vector<1x256xi32>
    %184 = arith.cmpi slt, %178, %183 : vector<1x256xi32>
    %185 = arith.andi %182, %184 : vector<1x256xi1>
    %c0_i32_60 = arith.constant 0 : i32
    %186 = vector.broadcast %c0_i32_60 : i32 to vector<1x256xi32>
    %187 = arith.cmpi sge, %180, %186 : vector<1x256xi32>
    %188 = arith.andi %185, %187 : vector<1x256xi1>
    %c16_i32_61 = arith.constant 16 : i32
    %189 = vector.broadcast %c16_i32_61 : i32 to vector<1x256xi32>
    %190 = arith.cmpi slt, %180, %189 : vector<1x256xi32>
    %191 = arith.andi %188, %190 : vector<1x256xi1>
    %192 = arith.extui %191 : vector<1x256xi1> to vector<1x256xi32>
    %193 = arith.sitofp %192 : vector<1x256xi32> to vector<1x256xf32>
    %c-2_i32_62 = arith.constant -2 : i32
    %194 = vector.broadcast %c-2_i32_62 : i32 to vector<1x256xi32>
    %195 = arith.addi %4, %194 : vector<1x256xi32>
    %c2_i32 = arith.constant 2 : i32
    %196 = vector.broadcast %c2_i32 : i32 to vector<1x256xi32>
    %197 = arith.addi %6, %196 : vector<1x256xi32>
    %c0_i32_63 = arith.constant 0 : i32
    %198 = vector.broadcast %c0_i32_63 : i32 to vector<1x256xi32>
    %199 = arith.cmpi sge, %195, %198 : vector<1x256xi32>
    %c16_i32_64 = arith.constant 16 : i32
    %200 = vector.broadcast %c16_i32_64 : i32 to vector<1x256xi32>
    %201 = arith.cmpi slt, %195, %200 : vector<1x256xi32>
    %202 = arith.andi %199, %201 : vector<1x256xi1>
    %c0_i32_65 = arith.constant 0 : i32
    %203 = vector.broadcast %c0_i32_65 : i32 to vector<1x256xi32>
    %204 = arith.cmpi sge, %197, %203 : vector<1x256xi32>
    %205 = arith.andi %202, %204 : vector<1x256xi1>
    %c16_i32_66 = arith.constant 16 : i32
    %206 = vector.broadcast %c16_i32_66 : i32 to vector<1x256xi32>
    %207 = arith.cmpi slt, %197, %206 : vector<1x256xi32>
    %208 = arith.andi %205, %207 : vector<1x256xi1>
    %209 = arith.extui %208 : vector<1x256xi1> to vector<1x256xi32>
    %210 = arith.sitofp %209 : vector<1x256xi32> to vector<1x256xf32>
    %c0_i32_67 = arith.constant 0 : i32
    %211 = vector.broadcast %c0_i32_67 : i32 to vector<1x256xi32>
    %212 = arith.addi %4, %211 : vector<1x256xi32>
    %c-2_i32_68 = arith.constant -2 : i32
    %213 = vector.broadcast %c-2_i32_68 : i32 to vector<1x256xi32>
    %214 = arith.addi %6, %213 : vector<1x256xi32>
    %c0_i32_69 = arith.constant 0 : i32
    %215 = vector.broadcast %c0_i32_69 : i32 to vector<1x256xi32>
    %216 = arith.cmpi sge, %212, %215 : vector<1x256xi32>
    %c16_i32_70 = arith.constant 16 : i32
    %217 = vector.broadcast %c16_i32_70 : i32 to vector<1x256xi32>
    %218 = arith.cmpi slt, %212, %217 : vector<1x256xi32>
    %219 = arith.andi %216, %218 : vector<1x256xi1>
    %c0_i32_71 = arith.constant 0 : i32
    %220 = vector.broadcast %c0_i32_71 : i32 to vector<1x256xi32>
    %221 = arith.cmpi sge, %214, %220 : vector<1x256xi32>
    %222 = arith.andi %219, %221 : vector<1x256xi1>
    %c16_i32_72 = arith.constant 16 : i32
    %223 = vector.broadcast %c16_i32_72 : i32 to vector<1x256xi32>
    %224 = arith.cmpi slt, %214, %223 : vector<1x256xi32>
    %225 = arith.andi %222, %224 : vector<1x256xi1>
    %226 = arith.extui %225 : vector<1x256xi1> to vector<1x256xi32>
    %227 = arith.sitofp %226 : vector<1x256xi32> to vector<1x256xf32>
    %c0_i32_73 = arith.constant 0 : i32
    %228 = vector.broadcast %c0_i32_73 : i32 to vector<1x256xi32>
    %229 = arith.addi %4, %228 : vector<1x256xi32>
    %c0_i32_74 = arith.constant 0 : i32
    %230 = vector.broadcast %c0_i32_74 : i32 to vector<1x256xi32>
    %231 = arith.addi %6, %230 : vector<1x256xi32>
    %c0_i32_75 = arith.constant 0 : i32
    %232 = vector.broadcast %c0_i32_75 : i32 to vector<1x256xi32>
    %233 = arith.cmpi sge, %229, %232 : vector<1x256xi32>
    %c16_i32_76 = arith.constant 16 : i32
    %234 = vector.broadcast %c16_i32_76 : i32 to vector<1x256xi32>
    %235 = arith.cmpi slt, %229, %234 : vector<1x256xi32>
    %236 = arith.andi %233, %235 : vector<1x256xi1>
    %c0_i32_77 = arith.constant 0 : i32
    %237 = vector.broadcast %c0_i32_77 : i32 to vector<1x256xi32>
    %238 = arith.cmpi sge, %231, %237 : vector<1x256xi32>
    %239 = arith.andi %236, %238 : vector<1x256xi1>
    %c16_i32_78 = arith.constant 16 : i32
    %240 = vector.broadcast %c16_i32_78 : i32 to vector<1x256xi32>
    %241 = arith.cmpi slt, %231, %240 : vector<1x256xi32>
    %242 = arith.andi %239, %241 : vector<1x256xi1>
    %243 = arith.extui %242 : vector<1x256xi1> to vector<1x256xi32>
    %244 = arith.sitofp %243 : vector<1x256xi32> to vector<1x256xf32>
    %c0_i32_79 = arith.constant 0 : i32
    %245 = vector.broadcast %c0_i32_79 : i32 to vector<1x256xi32>
    %246 = arith.addi %4, %245 : vector<1x256xi32>
    %c2_i32_80 = arith.constant 2 : i32
    %247 = vector.broadcast %c2_i32_80 : i32 to vector<1x256xi32>
    %248 = arith.addi %6, %247 : vector<1x256xi32>
    %c0_i32_81 = arith.constant 0 : i32
    %249 = vector.broadcast %c0_i32_81 : i32 to vector<1x256xi32>
    %250 = arith.cmpi sge, %246, %249 : vector<1x256xi32>
    %c16_i32_82 = arith.constant 16 : i32
    %251 = vector.broadcast %c16_i32_82 : i32 to vector<1x256xi32>
    %252 = arith.cmpi slt, %246, %251 : vector<1x256xi32>
    %253 = arith.andi %250, %252 : vector<1x256xi1>
    %c0_i32_83 = arith.constant 0 : i32
    %254 = vector.broadcast %c0_i32_83 : i32 to vector<1x256xi32>
    %255 = arith.cmpi sge, %248, %254 : vector<1x256xi32>
    %256 = arith.andi %253, %255 : vector<1x256xi1>
    %c16_i32_84 = arith.constant 16 : i32
    %257 = vector.broadcast %c16_i32_84 : i32 to vector<1x256xi32>
    %258 = arith.cmpi slt, %248, %257 : vector<1x256xi32>
    %259 = arith.andi %256, %258 : vector<1x256xi1>
    %260 = arith.extui %259 : vector<1x256xi1> to vector<1x256xi32>
    %261 = arith.sitofp %260 : vector<1x256xi32> to vector<1x256xf32>
    %c2_i32_85 = arith.constant 2 : i32
    %262 = vector.broadcast %c2_i32_85 : i32 to vector<1x256xi32>
    %263 = arith.addi %4, %262 : vector<1x256xi32>
    %c-2_i32_86 = arith.constant -2 : i32
    %264 = vector.broadcast %c-2_i32_86 : i32 to vector<1x256xi32>
    %265 = arith.addi %6, %264 : vector<1x256xi32>
    %c0_i32_87 = arith.constant 0 : i32
    %266 = vector.broadcast %c0_i32_87 : i32 to vector<1x256xi32>
    %267 = arith.cmpi sge, %263, %266 : vector<1x256xi32>
    %c16_i32_88 = arith.constant 16 : i32
    %268 = vector.broadcast %c16_i32_88 : i32 to vector<1x256xi32>
    %269 = arith.cmpi slt, %263, %268 : vector<1x256xi32>
    %270 = arith.andi %267, %269 : vector<1x256xi1>
    %c0_i32_89 = arith.constant 0 : i32
    %271 = vector.broadcast %c0_i32_89 : i32 to vector<1x256xi32>
    %272 = arith.cmpi sge, %265, %271 : vector<1x256xi32>
    %273 = arith.andi %270, %272 : vector<1x256xi1>
    %c16_i32_90 = arith.constant 16 : i32
    %274 = vector.broadcast %c16_i32_90 : i32 to vector<1x256xi32>
    %275 = arith.cmpi slt, %265, %274 : vector<1x256xi32>
    %276 = arith.andi %273, %275 : vector<1x256xi1>
    %277 = arith.extui %276 : vector<1x256xi1> to vector<1x256xi32>
    %278 = arith.sitofp %277 : vector<1x256xi32> to vector<1x256xf32>
    %c2_i32_91 = arith.constant 2 : i32
    %279 = vector.broadcast %c2_i32_91 : i32 to vector<1x256xi32>
    %280 = arith.addi %4, %279 : vector<1x256xi32>
    %c0_i32_92 = arith.constant 0 : i32
    %281 = vector.broadcast %c0_i32_92 : i32 to vector<1x256xi32>
    %282 = arith.addi %6, %281 : vector<1x256xi32>
    %c0_i32_93 = arith.constant 0 : i32
    %283 = vector.broadcast %c0_i32_93 : i32 to vector<1x256xi32>
    %284 = arith.cmpi sge, %280, %283 : vector<1x256xi32>
    %c16_i32_94 = arith.constant 16 : i32
    %285 = vector.broadcast %c16_i32_94 : i32 to vector<1x256xi32>
    %286 = arith.cmpi slt, %280, %285 : vector<1x256xi32>
    %287 = arith.andi %284, %286 : vector<1x256xi1>
    %c0_i32_95 = arith.constant 0 : i32
    %288 = vector.broadcast %c0_i32_95 : i32 to vector<1x256xi32>
    %289 = arith.cmpi sge, %282, %288 : vector<1x256xi32>
    %290 = arith.andi %287, %289 : vector<1x256xi1>
    %c16_i32_96 = arith.constant 16 : i32
    %291 = vector.broadcast %c16_i32_96 : i32 to vector<1x256xi32>
    %292 = arith.cmpi slt, %282, %291 : vector<1x256xi32>
    %293 = arith.andi %290, %292 : vector<1x256xi1>
    %294 = arith.extui %293 : vector<1x256xi1> to vector<1x256xi32>
    %295 = arith.sitofp %294 : vector<1x256xi32> to vector<1x256xf32>
    %c2_i32_97 = arith.constant 2 : i32
    %296 = vector.broadcast %c2_i32_97 : i32 to vector<1x256xi32>
    %297 = arith.addi %4, %296 : vector<1x256xi32>
    %c2_i32_98 = arith.constant 2 : i32
    %298 = vector.broadcast %c2_i32_98 : i32 to vector<1x256xi32>
    %299 = arith.addi %6, %298 : vector<1x256xi32>
    %c0_i32_99 = arith.constant 0 : i32
    %300 = vector.broadcast %c0_i32_99 : i32 to vector<1x256xi32>
    %301 = arith.cmpi sge, %297, %300 : vector<1x256xi32>
    %c16_i32_100 = arith.constant 16 : i32
    %302 = vector.broadcast %c16_i32_100 : i32 to vector<1x256xi32>
    %303 = arith.cmpi slt, %297, %302 : vector<1x256xi32>
    %304 = arith.andi %301, %303 : vector<1x256xi1>
    %c0_i32_101 = arith.constant 0 : i32
    %305 = vector.broadcast %c0_i32_101 : i32 to vector<1x256xi32>
    %306 = arith.cmpi sge, %299, %305 : vector<1x256xi32>
    %307 = arith.andi %304, %306 : vector<1x256xi1>
    %c16_i32_102 = arith.constant 16 : i32
    %308 = vector.broadcast %c16_i32_102 : i32 to vector<1x256xi32>
    %309 = arith.cmpi slt, %299, %308 : vector<1x256xi32>
    %310 = arith.andi %307, %309 : vector<1x256xi1>
    %311 = arith.extui %310 : vector<1x256xi1> to vector<1x256xi32>
    %312 = arith.sitofp %311 : vector<1x256xi32> to vector<1x256xf32>
    %c0_103 = arith.constant 0 : index
    %c0_104 = arith.constant 0 : index
    %c0_105 = arith.constant 0 : index
    %313 = vector.load %arg1[%c0_103, %c0_104, %c0_105] : memref<1x4x256xf32, #tpu.memory_space<vmem>>, vector<1x4x256xf32>
    %314 = vector.shape_cast %313 : vector<1x4x256xf32> to vector<4x256xf32>
    %c0_106 = arith.constant 0 : index
    %c0_107 = arith.constant 0 : index
    %315 = vector.load %arg3[%c0_106, %c0_107] : memref<8x1xf32, #tpu.memory_space<vmem>>, vector<8x1xf32>
    %c0_108 = arith.constant 0 : index
    %c128 = arith.constant 128 : index
    %316 = vector.load %arg15[%c0_108, %c128] : memref<16x512xf32, #tpu.memory_space<vmem>>, vector<4x256xf32>
    tpu.vector_store %arg15[%c0_108, %c128], %314 {strides = array<i32>} : memref<16x512xf32, #tpu.memory_space<vmem>>, vector<4x256xf32>,
    %c0_109 = arith.constant 0 : index
    %c111 = arith.constant 111 : index
    %317 = vector.load %arg15[%c0_109, %c111] : memref<16x512xf32, #tpu.memory_space<vmem>>, vector<4x256xf32>
    %318 = vector.broadcast %23 : vector<1x256xf32> to vector<4x256xf32>
    %319 = arith.mulf %317, %318 : vector<4x256xf32>
    %c0_110 = arith.constant 0 : index
    %c0_111 = arith.constant 0 : index
    %c0_112 = arith.constant 0 : index
    %320 = vector.load %arg2[%c0_110, %c0_111, %c0_112] : memref<9x8x4xf32, #tpu.memory_space<vmem>>, vector<1x8x4xf32>
    %321 = vector.shape_cast %320 : vector<1x8x4xf32> to vector<8x4xf32>
    %cst_113 = arith.constant dense<0.000000e+00> : vector<8x256xf32>
    %322 = tpu.matmul %321, %319, %cst_113 {dimension_numbers = #tpu.dot_dimension_numbers<[1], [0], [0], [1], [0, 0, 1, 1], [], []>} : vector<8x4xf32>, vector<4x256xf32>, vector<8x256xf32> -> vector<8x256xf32>
    %c0_114 = arith.constant 0 : index
    %c112 = arith.constant 112 : index
    %323 = vector.load %arg15[%c0_114, %c112] : memref<16x512xf32, #tpu.memory_space<vmem>>, vector<4x256xf32>
    %324 = vector.broadcast %40 : vector<1x256xf32> to vector<4x256xf32>
    %325 = arith.mulf %323, %324 : vector<4x256xf32>
    %c1 = arith.constant 1 : index
    %c0_115 = arith.constant 0 : index
    %c0_116 = arith.constant 0 : index
    %326 = vector.load %arg2[%c1, %c0_115, %c0_116] : memref<9x8x4xf32, #tpu.memory_space<vmem>>, vector<1x8x4xf32>
    %327 = vector.shape_cast %326 : vector<1x8x4xf32> to vector<8x4xf32>
    %cst_117 = arith.constant dense<0.000000e+00> : vector<8x256xf32>
    %328 = tpu.matmul %327, %325, %cst_117 {dimension_numbers = #tpu.dot_dimension_numbers<[1], [0], [0], [1], [0, 0, 1, 1], [], []>} : vector<8x4xf32>, vector<4x256xf32>, vector<8x256xf32> -> vector<8x256xf32>
    %329 = arith.addf %322, %328 : vector<8x256xf32>
    %c0_118 = arith.constant 0 : index
    %c113 = arith.constant 113 : index
    %330 = vector.load %arg15[%c0_118, %c113] : memref<16x512xf32, #tpu.memory_space<vmem>>, vector<4x256xf32>
    %331 = vector.broadcast %57 : vector<1x256xf32> to vector<4x256xf32>
    %332 = arith.mulf %330, %331 : vector<4x256xf32>
    %c2 = arith.constant 2 : index
    %c0_119 = arith.constant 0 : index
    %c0_120 = arith.constant 0 : index
    %333 = vector.load %arg2[%c2, %c0_119, %c0_120] : memref<9x8x4xf32, #tpu.memory_space<vmem>>, vector<1x8x4xf32>
    %334 = vector.shape_cast %333 : vector<1x8x4xf32> to vector<8x4xf32>
    %cst_121 = arith.constant dense<0.000000e+00> : vector<8x256xf32>
    %335 = tpu.matmul %334, %332, %cst_121 {dimension_numbers = #tpu.dot_dimension_numbers<[1], [0], [0], [1], [0, 0, 1, 1], [], []>} : vector<8x4xf32>, vector<4x256xf32>, vector<8x256xf32> -> vector<8x256xf32>
    %336 = arith.addf %329, %335 : vector<8x256xf32>
    %c0_122 = arith.constant 0 : index
    %c127 = arith.constant 127 : index
    %337 = vector.load %arg15[%c0_122, %c127] : memref<16x512xf32, #tpu.memory_space<vmem>>, vector<4x256xf32>
    %338 = vector.broadcast %74 : vector<1x256xf32> to vector<4x256xf32>
    %339 = arith.mulf %337, %338 : vector<4x256xf32>
    %c3 = arith.constant 3 : index
    %c0_123 = arith.constant 0 : index
    %c0_124 = arith.constant 0 : index
    %340 = vector.load %arg2[%c3, %c0_123, %c0_124] : memref<9x8x4xf32, #tpu.memory_space<vmem>>, vector<1x8x4xf32>
    %341 = vector.shape_cast %340 : vector<1x8x4xf32> to vector<8x4xf32>
    %cst_125 = arith.constant dense<0.000000e+00> : vector<8x256xf32>
    %342 = tpu.matmul %341, %339, %cst_125 {dimension_numbers = #tpu.dot_dimension_numbers<[1], [0], [0], [1], [0, 0, 1, 1], [], []>} : vector<8x4xf32>, vector<4x256xf32>, vector<8x256xf32> -> vector<8x256xf32>
    %343 = arith.addf %336, %342 : vector<8x256xf32>
    %c0_126 = arith.constant 0 : index
    %c128_127 = arith.constant 128 : index
    %344 = vector.load %arg15[%c0_126, %c128_127] : memref<16x512xf32, #tpu.memory_space<vmem>>, vector<4x256xf32>
    %345 = vector.broadcast %91 : vector<1x256xf32> to vector<4x256xf32>
    %346 = arith.mulf %344, %345 : vector<4x256xf32>
    %c4 = arith.constant 4 : index
    %c0_128 = arith.constant 0 : index
    %c0_129 = arith.constant 0 : index
    %347 = vector.load %arg2[%c4, %c0_128, %c0_129] : memref<9x8x4xf32, #tpu.memory_space<vmem>>, vector<1x8x4xf32>
    %348 = vector.shape_cast %347 : vector<1x8x4xf32> to vector<8x4xf32>
    %cst_130 = arith.constant dense<0.000000e+00> : vector<8x256xf32>
    %349 = tpu.matmul %348, %346, %cst_130 {dimension_numbers = #tpu.dot_dimension_numbers<[1], [0], [0], [1], [0, 0, 1, 1], [], []>} : vector<8x4xf32>, vector<4x256xf32>, vector<8x256xf32> -> vector<8x256xf32>
    %350 = arith.addf %343, %349 : vector<8x256xf32>
    %c0_131 = arith.constant 0 : index
    %c129 = arith.constant 129 : index
    %351 = vector.load %arg15[%c0_131, %c129] : memref<16x512xf32, #tpu.memory_space<vmem>>, vector<4x256xf32>
    %352 = vector.broadcast %108 : vector<1x256xf32> to vector<4x256xf32>
    %353 = arith.mulf %351, %352 : vector<4x256xf32>
    %c5 = arith.constant 5 : index
    %c0_132 = arith.constant 0 : index
    %c0_133 = arith.constant 0 : index
    %354 = vector.load %arg2[%c5, %c0_132, %c0_133] : memref<9x8x4xf32, #tpu.memory_space<vmem>>, vector<1x8x4xf32>
    %355 = vector.shape_cast %354 : vector<1x8x4xf32> to vector<8x4xf32>
    %cst_134 = arith.constant dense<0.000000e+00> : vector<8x256xf32>
    %356 = tpu.matmul %355, %353, %cst_134 {dimension_numbers = #tpu.dot_dimension_numbers<[1], [0], [0], [1], [0, 0, 1, 1], [], []>} : vector<8x4xf32>, vector<4x256xf32>, vector<8x256xf32> -> vector<8x256xf32>
    %357 = arith.addf %350, %356 : vector<8x256xf32>
    %c0_135 = arith.constant 0 : index
    %c143 = arith.constant 143 : index
    %358 = vector.load %arg15[%c0_135, %c143] : memref<16x512xf32, #tpu.memory_space<vmem>>, vector<4x256xf32>
    %359 = vector.broadcast %125 : vector<1x256xf32> to vector<4x256xf32>
    %360 = arith.mulf %358, %359 : vector<4x256xf32>
    %c6 = arith.constant 6 : index
    %c0_136 = arith.constant 0 : index
    %c0_137 = arith.constant 0 : index
    %361 = vector.load %arg2[%c6, %c0_136, %c0_137] : memref<9x8x4xf32, #tpu.memory_space<vmem>>, vector<1x8x4xf32>
    %362 = vector.shape_cast %361 : vector<1x8x4xf32> to vector<8x4xf32>
    %cst_138 = arith.constant dense<0.000000e+00> : vector<8x256xf32>
    %363 = tpu.matmul %362, %360, %cst_138 {dimension_numbers = #tpu.dot_dimension_numbers<[1], [0], [0], [1], [0, 0, 1, 1], [], []>} : vector<8x4xf32>, vector<4x256xf32>, vector<8x256xf32> -> vector<8x256xf32>
    %364 = arith.addf %357, %363 : vector<8x256xf32>
    %c0_139 = arith.constant 0 : index
    %c144 = arith.constant 144 : index
    %365 = vector.load %arg15[%c0_139, %c144] : memref<16x512xf32, #tpu.memory_space<vmem>>, vector<4x256xf32>
    %366 = vector.broadcast %142 : vector<1x256xf32> to vector<4x256xf32>
    %367 = arith.mulf %365, %366 : vector<4x256xf32>
    %c7 = arith.constant 7 : index
    %c0_140 = arith.constant 0 : index
    %c0_141 = arith.constant 0 : index
    %368 = vector.load %arg2[%c7, %c0_140, %c0_141] : memref<9x8x4xf32, #tpu.memory_space<vmem>>, vector<1x8x4xf32>
    %369 = vector.shape_cast %368 : vector<1x8x4xf32> to vector<8x4xf32>
    %cst_142 = arith.constant dense<0.000000e+00> : vector<8x256xf32>
    %370 = tpu.matmul %369, %367, %cst_142 {dimension_numbers = #tpu.dot_dimension_numbers<[1], [0], [0], [1], [0, 0, 1, 1], [], []>} : vector<8x4xf32>, vector<4x256xf32>, vector<8x256xf32> -> vector<8x256xf32>
    %371 = arith.addf %364, %370 : vector<8x256xf32>
    %c0_143 = arith.constant 0 : index
    %c145 = arith.constant 145 : index
    %372 = vector.load %arg15[%c0_143, %c145] : memref<16x512xf32, #tpu.memory_space<vmem>>, vector<4x256xf32>
    %373 = vector.broadcast %159 : vector<1x256xf32> to vector<4x256xf32>
    %374 = arith.mulf %372, %373 : vector<4x256xf32>
    %c8 = arith.constant 8 : index
    %c0_144 = arith.constant 0 : index
    %c0_145 = arith.constant 0 : index
    %375 = vector.load %arg2[%c8, %c0_144, %c0_145] : memref<9x8x4xf32, #tpu.memory_space<vmem>>, vector<1x8x4xf32>
    %376 = vector.shape_cast %375 : vector<1x8x4xf32> to vector<8x4xf32>
    %cst_146 = arith.constant dense<0.000000e+00> : vector<8x256xf32>
    %377 = tpu.matmul %376, %374, %cst_146 {dimension_numbers = #tpu.dot_dimension_numbers<[1], [0], [0], [1], [0, 0, 1, 1], [], []>} : vector<8x4xf32>, vector<4x256xf32>, vector<8x256xf32> -> vector<8x256xf32>
    %378 = arith.addf %371, %377 : vector<8x256xf32>
    %379 = vector.broadcast %315 : vector<8x1xf32> to vector<8x256xf32>
    %380 = arith.addf %378, %379 : vector<8x256xf32>
    %cst_147 = arith.constant 0.000000e+00 : f32
    %381 = vector.broadcast %cst_147 : f32 to vector<8x256xf32>
    %382 = arith.cmpf ogt, %380, %381 : vector<8x256xf32>
    %383 = arith.extui %382 : vector<8x256xi1> to vector<8x256xi32>
    %384 = arith.sitofp %383 : vector<8x256xi32> to vector<8x256xf32>
    %385 = arith.mulf %380, %384 : vector<8x256xf32>
    %c0_148 = arith.constant 0 : index
    %c128_149 = arith.constant 128 : index
    %386 = vector.load %arg15[%c0_148, %c128_149] : memref<16x512xf32, #tpu.memory_space<vmem>>, vector<8x256xf32>
    tpu.vector_store %arg15[%c0_148, %c128_149], %385 {strides = array<i32>} : memref<16x512xf32, #tpu.memory_space<vmem>>, vector<8x256xf32>,
    %c0_150 = arith.constant 0 : index
    %c128_151 = arith.constant 128 : index
    %387 = vector.load %arg15[%c0_150, %c128_151] : memref<16x512xf32, #tpu.memory_space<vmem>>, vector<8x256xf32>
    %c0_152 = arith.constant 0 : index
    %c129_153 = arith.constant 129 : index
    %388 = vector.load %arg15[%c0_152, %c129_153] : memref<16x512xf32, #tpu.memory_space<vmem>>, vector<8x256xf32>
    %c0_154 = arith.constant 0 : index
    %c144_155 = arith.constant 144 : index
    %389 = vector.load %arg15[%c0_154, %c144_155] : memref<16x512xf32, #tpu.memory_space<vmem>>, vector<8x256xf32>
    %c0_156 = arith.constant 0 : index
    %c145_157 = arith.constant 145 : index
    %390 = vector.load %arg15[%c0_156, %c145_157] : memref<16x512xf32, #tpu.memory_space<vmem>>, vector<8x256xf32>
    %391 = arith.maximumf %387, %388 : vector<8x256xf32>
    %392 = arith.maximumf %389, %390 : vector<8x256xf32>
    %393 = arith.maximumf %391, %392 : vector<8x256xf32>
    %394 = arith.cmpf oeq, %387, %393 : vector<8x256xf32>
    %395 = arith.extui %394 : vector<8x256xi1> to vector<8x256xi32>
    %396 = arith.sitofp %395 : vector<8x256xi32> to vector<8x256xf32>
    %cst_158 = arith.constant 1.000000e+00 : f32
    %397 = vector.broadcast %cst_158 : f32 to vector<8x256xf32>
    %398 = arith.subf %397, %396 : vector<8x256xf32>
    %399 = arith.cmpf oeq, %388, %393 : vector<8x256xf32>
    %400 = arith.extui %399 : vector<8x256xi1> to vector<8x256xi32>
    %401 = arith.sitofp %400 : vector<8x256xi32> to vector<8x256xf32>
    %402 = arith.mulf %401, %398 : vector<8x256xf32>
    %cst_159 = arith.constant 1.000000e+00 : f32
    %403 = vector.broadcast %cst_159 : f32 to vector<8x256xf32>
    %404 = arith.subf %403, %401 : vector<8x256xf32>
    %405 = arith.mulf %398, %404 : vector<8x256xf32>
    %406 = arith.cmpf oeq, %389, %393 : vector<8x256xf32>
    %407 = arith.extui %406 : vector<8x256xi1> to vector<8x256xi32>
    %408 = arith.sitofp %407 : vector<8x256xi32> to vector<8x256xf32>
    %409 = arith.mulf %408, %405 : vector<8x256xf32>
    %cst_160 = arith.constant 1.000000e+00 : f32
    %410 = vector.broadcast %cst_160 : f32 to vector<8x256xf32>
    %411 = arith.subf %410, %408 : vector<8x256xf32>
    %412 = arith.mulf %405, %411 : vector<8x256xf32>
    %413 = arith.cmpf oeq, %390, %393 : vector<8x256xf32>
    %414 = arith.extui %413 : vector<8x256xi1> to vector<8x256xi32>
    %415 = arith.sitofp %414 : vector<8x256xi32> to vector<8x256xf32>
    %416 = arith.mulf %415, %412 : vector<8x256xf32>
    %c0_161 = arith.constant 0 : index
    %c0_162 = arith.constant 0 : index
    %417 = vector.load %arg5[%c0_161, %c0_162] : memref<16x1xf32, #tpu.memory_space<vmem>>, vector<16x1xf32>
    %c0_163 = arith.constant 0 : index
    %c128_164 = arith.constant 128 : index
    %418 = vector.load %arg15[%c0_163, %c128_164] : memref<16x512xf32, #tpu.memory_space<vmem>>, vector<8x256xf32>
    tpu.vector_store %arg15[%c0_163, %c128_164], %393 {strides = array<i32>} : memref<16x512xf32, #tpu.memory_space<vmem>>, vector<8x256xf32>,
    %c0_165 = arith.constant 0 : index
    %c94 = arith.constant 94 : index
    %419 = vector.load %arg15[%c0_165, %c94] : memref<16x512xf32, #tpu.memory_space<vmem>>, vector<8x256xf32>
    %420 = vector.broadcast %176 : vector<1x256xf32> to vector<8x256xf32>
    %421 = arith.mulf %419, %420 : vector<8x256xf32>
    %c0_166 = arith.constant 0 : index
    %c0_167 = arith.constant 0 : index
    %c0_168 = arith.constant 0 : index
    %422 = vector.load %arg4[%c0_166, %c0_167, %c0_168] : memref<9x16x8xf32, #tpu.memory_space<vmem>>, vector<1x16x8xf32>
    %423 = vector.shape_cast %422 : vector<1x16x8xf32> to vector<16x8xf32>
    %cst_169 = arith.constant dense<0.000000e+00> : vector<16x256xf32>
    %424 = tpu.matmul %423, %421, %cst_169 {dimension_numbers = #tpu.dot_dimension_numbers<[1], [0], [0], [1], [0, 0, 1, 1], [], []>} : vector<16x8xf32>, vector<8x256xf32>, vector<16x256xf32> -> vector<16x256xf32>
    %c0_170 = arith.constant 0 : index
    %c96 = arith.constant 96 : index
    %425 = vector.load %arg15[%c0_170, %c96] : memref<16x512xf32, #tpu.memory_space<vmem>>, vector<8x256xf32>
    %426 = vector.broadcast %193 : vector<1x256xf32> to vector<8x256xf32>
    %427 = arith.mulf %425, %426 : vector<8x256xf32>
    %c1_171 = arith.constant 1 : index
    %c0_172 = arith.constant 0 : index
    %c0_173 = arith.constant 0 : index
    %428 = vector.load %arg4[%c1_171, %c0_172, %c0_173] : memref<9x16x8xf32, #tpu.memory_space<vmem>>, vector<1x16x8xf32>
    %429 = vector.shape_cast %428 : vector<1x16x8xf32> to vector<16x8xf32>
    %cst_174 = arith.constant dense<0.000000e+00> : vector<16x256xf32>
    %430 = tpu.matmul %429, %427, %cst_174 {dimension_numbers = #tpu.dot_dimension_numbers<[1], [0], [0], [1], [0, 0, 1, 1], [], []>} : vector<16x8xf32>, vector<8x256xf32>, vector<16x256xf32> -> vector<16x256xf32>
    %431 = arith.addf %424, %430 : vector<16x256xf32>
    %c0_175 = arith.constant 0 : index
    %c98 = arith.constant 98 : index
    %432 = vector.load %arg15[%c0_175, %c98] : memref<16x512xf32, #tpu.memory_space<vmem>>, vector<8x256xf32>
    %433 = vector.broadcast %210 : vector<1x256xf32> to vector<8x256xf32>
    %434 = arith.mulf %432, %433 : vector<8x256xf32>
    %c2_176 = arith.constant 2 : index
    %c0_177 = arith.constant 0 : index
    %c0_178 = arith.constant 0 : index
    %435 = vector.load %arg4[%c2_176, %c0_177, %c0_178] : memref<9x16x8xf32, #tpu.memory_space<vmem>>, vector<1x16x8xf32>
    %436 = vector.shape_cast %435 : vector<1x16x8xf32> to vector<16x8xf32>
    %cst_179 = arith.constant dense<0.000000e+00> : vector<16x256xf32>
    %437 = tpu.matmul %436, %434, %cst_179 {dimension_numbers = #tpu.dot_dimension_numbers<[1], [0], [0], [1], [0, 0, 1, 1], [], []>} : vector<16x8xf32>, vector<8x256xf32>, vector<16x256xf32> -> vector<16x256xf32>
    %438 = arith.addf %431, %437 : vector<16x256xf32>
    %c0_180 = arith.constant 0 : index
    %c126 = arith.constant 126 : index
    %439 = vector.load %arg15[%c0_180, %c126] : memref<16x512xf32, #tpu.memory_space<vmem>>, vector<8x256xf32>
    %440 = vector.broadcast %227 : vector<1x256xf32> to vector<8x256xf32>
    %441 = arith.mulf %439, %440 : vector<8x256xf32>
    %c3_181 = arith.constant 3 : index
    %c0_182 = arith.constant 0 : index
    %c0_183 = arith.constant 0 : index
    %442 = vector.load %arg4[%c3_181, %c0_182, %c0_183] : memref<9x16x8xf32, #tpu.memory_space<vmem>>, vector<1x16x8xf32>
    %443 = vector.shape_cast %442 : vector<1x16x8xf32> to vector<16x8xf32>
    %cst_184 = arith.constant dense<0.000000e+00> : vector<16x256xf32>
    %444 = tpu.matmul %443, %441, %cst_184 {dimension_numbers = #tpu.dot_dimension_numbers<[1], [0], [0], [1], [0, 0, 1, 1], [], []>} : vector<16x8xf32>, vector<8x256xf32>, vector<16x256xf32> -> vector<16x256xf32>
    %445 = arith.addf %438, %444 : vector<16x256xf32>
    %c0_185 = arith.constant 0 : index
    %c128_186 = arith.constant 128 : index
    %446 = vector.load %arg15[%c0_185, %c128_186] : memref<16x512xf32, #tpu.memory_space<vmem>>, vector<8x256xf32>
    %447 = vector.broadcast %244 : vector<1x256xf32> to vector<8x256xf32>
    %448 = arith.mulf %446, %447 : vector<8x256xf32>
    %c4_187 = arith.constant 4 : index
    %c0_188 = arith.constant 0 : index
    %c0_189 = arith.constant 0 : index
    %449 = vector.load %arg4[%c4_187, %c0_188, %c0_189] : memref<9x16x8xf32, #tpu.memory_space<vmem>>, vector<1x16x8xf32>
    %450 = vector.shape_cast %449 : vector<1x16x8xf32> to vector<16x8xf32>
    %cst_190 = arith.constant dense<0.000000e+00> : vector<16x256xf32>
    %451 = tpu.matmul %450, %448, %cst_190 {dimension_numbers = #tpu.dot_dimension_numbers<[1], [0], [0], [1], [0, 0, 1, 1], [], []>} : vector<16x8xf32>, vector<8x256xf32>, vector<16x256xf32> -> vector<16x256xf32>
    %452 = arith.addf %445, %451 : vector<16x256xf32>
    %c0_191 = arith.constant 0 : index
    %c130 = arith.constant 130 : index
    %453 = vector.load %arg15[%c0_191, %c130] : memref<16x512xf32, #tpu.memory_space<vmem>>, vector<8x256xf32>
    %454 = vector.broadcast %261 : vector<1x256xf32> to vector<8x256xf32>
    %455 = arith.mulf %453, %454 : vector<8x256xf32>
    %c5_192 = arith.constant 5 : index
    %c0_193 = arith.constant 0 : index
    %c0_194 = arith.constant 0 : index
    %456 = vector.load %arg4[%c5_192, %c0_193, %c0_194] : memref<9x16x8xf32, #tpu.memory_space<vmem>>, vector<1x16x8xf32>
    %457 = vector.shape_cast %456 : vector<1x16x8xf32> to vector<16x8xf32>
    %cst_195 = arith.constant dense<0.000000e+00> : vector<16x256xf32>
    %458 = tpu.matmul %457, %455, %cst_195 {dimension_numbers = #tpu.dot_dimension_numbers<[1], [0], [0], [1], [0, 0, 1, 1], [], []>} : vector<16x8xf32>, vector<8x256xf32>, vector<16x256xf32> -> vector<16x256xf32>
    %459 = arith.addf %452, %458 : vector<16x256xf32>
    %c0_196 = arith.constant 0 : index
    %c158 = arith.constant 158 : index
    %460 = vector.load %arg15[%c0_196, %c158] : memref<16x512xf32, #tpu.memory_space<vmem>>, vector<8x256xf32>
    %461 = vector.broadcast %278 : vector<1x256xf32> to vector<8x256xf32>
    %462 = arith.mulf %460, %461 : vector<8x256xf32>
    %c6_197 = arith.constant 6 : index
    %c0_198 = arith.constant 0 : index
    %c0_199 = arith.constant 0 : index
    %463 = vector.load %arg4[%c6_197, %c0_198, %c0_199] : memref<9x16x8xf32, #tpu.memory_space<vmem>>, vector<1x16x8xf32>
    %464 = vector.shape_cast %463 : vector<1x16x8xf32> to vector<16x8xf32>
    %cst_200 = arith.constant dense<0.000000e+00> : vector<16x256xf32>
    %465 = tpu.matmul %464, %462, %cst_200 {dimension_numbers = #tpu.dot_dimension_numbers<[1], [0], [0], [1], [0, 0, 1, 1], [], []>} : vector<16x8xf32>, vector<8x256xf32>, vector<16x256xf32> -> vector<16x256xf32>
    %466 = arith.addf %459, %465 : vector<16x256xf32>
    %c0_201 = arith.constant 0 : index
    %c160 = arith.constant 160 : index
    %467 = vector.load %arg15[%c0_201, %c160] : memref<16x512xf32, #tpu.memory_space<vmem>>, vector<8x256xf32>
    %468 = vector.broadcast %295 : vector<1x256xf32> to vector<8x256xf32>
    %469 = arith.mulf %467, %468 : vector<8x256xf32>
    %c7_202 = arith.constant 7 : index
    %c0_203 = arith.constant 0 : index
    %c0_204 = arith.constant 0 : index
    %470 = vector.load %arg4[%c7_202, %c0_203, %c0_204] : memref<9x16x8xf32, #tpu.memory_space<vmem>>, vector<1x16x8xf32>
    %471 = vector.shape_cast %470 : vector<1x16x8xf32> to vector<16x8xf32>
    %cst_205 = arith.constant dense<0.000000e+00> : vector<16x256xf32>
    %472 = tpu.matmul %471, %469, %cst_205 {dimension_numbers = #tpu.dot_dimension_numbers<[1], [0], [0], [1], [0, 0, 1, 1], [], []>} : vector<16x8xf32>, vector<8x256xf32>, vector<16x256xf32> -> vector<16x256xf32>
    %473 = arith.addf %466, %472 : vector<16x256xf32>
    %c0_206 = arith.constant 0 : index
    %c162 = arith.constant 162 : index
    %474 = vector.load %arg15[%c0_206, %c162] : memref<16x512xf32, #tpu.memory_space<vmem>>, vector<8x256xf32>
    %475 = vector.broadcast %312 : vector<1x256xf32> to vector<8x256xf32>
    %476 = arith.mulf %474, %475 : vector<8x256xf32>
    %c8_207 = arith.constant 8 : index
    %c0_208 = arith.constant 0 : index
    %c0_209 = arith.constant 0 : index
    %477 = vector.load %arg4[%c8_207, %c0_208, %c0_209] : memref<9x16x8xf32, #tpu.memory_space<vmem>>, vector<1x16x8xf32>
    %478 = vector.shape_cast %477 : vector<1x16x8xf32> to vector<16x8xf32>
    %cst_210 = arith.constant dense<0.000000e+00> : vector<16x256xf32>
    %479 = tpu.matmul %478, %476, %cst_210 {dimension_numbers = #tpu.dot_dimension_numbers<[1], [0], [0], [1], [0, 0, 1, 1], [], []>} : vector<16x8xf32>, vector<8x256xf32>, vector<16x256xf32> -> vector<16x256xf32>
    %480 = arith.addf %473, %479 : vector<16x256xf32>
    %481 = vector.broadcast %417 : vector<16x1xf32> to vector<16x256xf32>
    %482 = arith.addf %480, %481 : vector<16x256xf32>
    %cst_211 = arith.constant 0.000000e+00 : f32
    %483 = vector.broadcast %cst_211 : f32 to vector<16x256xf32>
    %484 = arith.cmpf ogt, %482, %483 : vector<16x256xf32>
    %485 = arith.extui %484 : vector<16x256xi1> to vector<16x256xi32>
    %486 = arith.sitofp %485 : vector<16x256xi32> to vector<16x256xf32>
    %487 = arith.mulf %482, %486 : vector<16x256xf32>
    %c0_212 = arith.constant 0 : index
    %c128_213 = arith.constant 128 : index
    %488 = vector.load %arg15[%c0_212, %c128_213] : memref<16x512xf32, #tpu.memory_space<vmem>>, vector<16x256xf32>
    tpu.vector_store %arg15[%c0_212, %c128_213], %487 {strides = array<i32>} : memref<16x512xf32, #tpu.memory_space<vmem>>, vector<16x256xf32>,
    %c0_214 = arith.constant 0 : index
    %c128_215 = arith.constant 128 : index
    %489 = vector.load %arg15[%c0_214, %c128_215] : memref<16x512xf32, #tpu.memory_space<vmem>>, vector<16x256xf32>
    %c0_216 = arith.constant 0 : index
    %c130_217 = arith.constant 130 : index
    %490 = vector.load %arg15[%c0_216, %c130_217] : memref<16x512xf32, #tpu.memory_space<vmem>>, vector<16x256xf32>
    %c0_218 = arith.constant 0 : index
    %c160_219 = arith.constant 160 : index
    %491 = vector.load %arg15[%c0_218, %c160_219] : memref<16x512xf32, #tpu.memory_space<vmem>>, vector<16x256xf32>
    %c0_220 = arith.constant 0 : index
    %c162_221 = arith.constant 162 : index
    %492 = vector.load %arg15[%c0_220, %c162_221] : memref<16x512xf32, #tpu.memory_space<vmem>>, vector<16x256xf32>
    %493 = arith.maximumf %489, %490 : vector<16x256xf32>
    %494 = arith.maximumf %491, %492 : vector<16x256xf32>
    %495 = arith.maximumf %493, %494 : vector<16x256xf32>
    %496 = arith.cmpf oeq, %489, %495 : vector<16x256xf32>
    %497 = arith.extui %496 : vector<16x256xi1> to vector<16x256xi32>
    %498 = arith.sitofp %497 : vector<16x256xi32> to vector<16x256xf32>
    %cst_222 = arith.constant 1.000000e+00 : f32
    %499 = vector.broadcast %cst_222 : f32 to vector<16x256xf32>
    %500 = arith.subf %499, %498 : vector<16x256xf32>
    %501 = arith.cmpf oeq, %490, %495 : vector<16x256xf32>
    %502 = arith.extui %501 : vector<16x256xi1> to vector<16x256xi32>
    %503 = arith.sitofp %502 : vector<16x256xi32> to vector<16x256xf32>
    %504 = arith.mulf %503, %500 : vector<16x256xf32>
    %cst_223 = arith.constant 1.000000e+00 : f32
    %505 = vector.broadcast %cst_223 : f32 to vector<16x256xf32>
    %506 = arith.subf %505, %503 : vector<16x256xf32>
    %507 = arith.mulf %500, %506 : vector<16x256xf32>
    %508 = arith.cmpf oeq, %491, %495 : vector<16x256xf32>
    %509 = arith.extui %508 : vector<16x256xi1> to vector<16x256xi32>
    %510 = arith.sitofp %509 : vector<16x256xi32> to vector<16x256xf32>
    %511 = arith.mulf %510, %507 : vector<16x256xf32>
    %cst_224 = arith.constant 1.000000e+00 : f32
    %512 = vector.broadcast %cst_224 : f32 to vector<16x256xf32>
    %513 = arith.subf %512, %510 : vector<16x256xf32>
    %514 = arith.mulf %507, %513 : vector<16x256xf32>
    %515 = arith.cmpf oeq, %492, %495 : vector<16x256xf32>
    %516 = arith.extui %515 : vector<16x256xi1> to vector<16x256xi32>
    %517 = arith.sitofp %516 : vector<16x256xi32> to vector<16x256xf32>
    %518 = arith.mulf %517, %514 : vector<16x256xf32>
    %c0_225 = arith.constant 0 : index
    %c0_226 = arith.constant 0 : index
    %519 = vector.load %arg7[%c0_225, %c0_226] : memref<1x32xf32, #tpu.memory_space<vmem>>, vector<1x32xf32>
    %520 = vector.extract_strided_slice %495 {offsets = [0, 0], sizes = [1, 256], strides = [1, 1]} : vector<16x256xf32> to vector<1x256xf32>
    %c0_227 = arith.constant 0 : index
    %c0_228 = arith.constant 0 : index
    %c0_229 = arith.constant 0 : index
    %521 = vector.load %arg6[%c0_227, %c0_228, %c0_229] : memref<16x256x32xf32, #tpu.memory_space<vmem>>, vector<1x256x32xf32>
    %522 = vector.shape_cast %521 : vector<1x256x32xf32> to vector<256x32xf32>
    %cst_230 = arith.constant dense<0.000000e+00> : vector<1x32xf32>
    %523 = tpu.matmul %520, %522, %cst_230 {dimension_numbers = #tpu.dot_dimension_numbers<[1], [0], [0], [1], [0, 0, 1, 1], [], []>} : vector<1x256xf32>, vector<256x32xf32>, vector<1x32xf32> -> vector<1x32xf32>
    %524 = arith.addf %519, %523 : vector<1x32xf32>
    %525 = vector.extract_strided_slice %495 {offsets = [1, 0], sizes = [1, 256], strides = [1, 1]} : vector<16x256xf32> to vector<1x256xf32>
    %c1_231 = arith.constant 1 : index
    %c0_232 = arith.constant 0 : index
    %c0_233 = arith.constant 0 : index
    %526 = vector.load %arg6[%c1_231, %c0_232, %c0_233] : memref<16x256x32xf32, #tpu.memory_space<vmem>>, vector<1x256x32xf32>
    %527 = vector.shape_cast %526 : vector<1x256x32xf32> to vector<256x32xf32>
    %cst_234 = arith.constant dense<0.000000e+00> : vector<1x32xf32>
    %528 = tpu.matmul %525, %527, %cst_234 {dimension_numbers = #tpu.dot_dimension_numbers<[1], [0], [0], [1], [0, 0, 1, 1], [], []>} : vector<1x256xf32>, vector<256x32xf32>, vector<1x32xf32> -> vector<1x32xf32>
    %529 = arith.addf %524, %528 : vector<1x32xf32>
    %530 = vector.extract_strided_slice %495 {offsets = [2, 0], sizes = [1, 256], strides = [1, 1]} : vector<16x256xf32> to vector<1x256xf32>
    %c2_235 = arith.constant 2 : index
    %c0_236 = arith.constant 0 : index
    %c0_237 = arith.constant 0 : index
    %531 = vector.load %arg6[%c2_235, %c0_236, %c0_237] : memref<16x256x32xf32, #tpu.memory_space<vmem>>, vector<1x256x32xf32>
    %532 = vector.shape_cast %531 : vector<1x256x32xf32> to vector<256x32xf32>
    %cst_238 = arith.constant dense<0.000000e+00> : vector<1x32xf32>
    %533 = tpu.matmul %530, %532, %cst_238 {dimension_numbers = #tpu.dot_dimension_numbers<[1], [0], [0], [1], [0, 0, 1, 1], [], []>} : vector<1x256xf32>, vector<256x32xf32>, vector<1x32xf32> -> vector<1x32xf32>
    %534 = arith.addf %529, %533 : vector<1x32xf32>
    %535 = vector.extract_strided_slice %495 {offsets = [3, 0], sizes = [1, 256], strides = [1, 1]} : vector<16x256xf32> to vector<1x256xf32>
    %c3_239 = arith.constant 3 : index
    %c0_240 = arith.constant 0 : index
    %c0_241 = arith.constant 0 : index
    %536 = vector.load %arg6[%c3_239, %c0_240, %c0_241] : memref<16x256x32xf32, #tpu.memory_space<vmem>>, vector<1x256x32xf32>
    %537 = vector.shape_cast %536 : vector<1x256x32xf32> to vector<256x32xf32>
    %cst_242 = arith.constant dense<0.000000e+00> : vector<1x32xf32>
    %538 = tpu.matmul %535, %537, %cst_242 {dimension_numbers = #tpu.dot_dimension_numbers<[1], [0], [0], [1], [0, 0, 1, 1], [], []>} : vector<1x256xf32>, vector<256x32xf32>, vector<1x32xf32> -> vector<1x32xf32>
    %539 = arith.addf %534, %538 : vector<1x32xf32>
    %540 = vector.extract_strided_slice %495 {offsets = [4, 0], sizes = [1, 256], strides = [1, 1]} : vector<16x256xf32> to vector<1x256xf32>
    %c4_243 = arith.constant 4 : index
    %c0_244 = arith.constant 0 : index
    %c0_245 = arith.constant 0 : index
    %541 = vector.load %arg6[%c4_243, %c0_244, %c0_245] : memref<16x256x32xf32, #tpu.memory_space<vmem>>, vector<1x256x32xf32>
    %542 = vector.shape_cast %541 : vector<1x256x32xf32> to vector<256x32xf32>
    %cst_246 = arith.constant dense<0.000000e+00> : vector<1x32xf32>
    %543 = tpu.matmul %540, %542, %cst_246 {dimension_numbers = #tpu.dot_dimension_numbers<[1], [0], [0], [1], [0, 0, 1, 1], [], []>} : vector<1x256xf32>, vector<256x32xf32>, vector<1x32xf32> -> vector<1x32xf32>
    %544 = arith.addf %539, %543 : vector<1x32xf32>
    %545 = vector.extract_strided_slice %495 {offsets = [5, 0], sizes = [1, 256], strides = [1, 1]} : vector<16x256xf32> to vector<1x256xf32>
    %c5_247 = arith.constant 5 : index
    %c0_248 = arith.constant 0 : index
    %c0_249 = arith.constant 0 : index
    %546 = vector.load %arg6[%c5_247, %c0_248, %c0_249] : memref<16x256x32xf32, #tpu.memory_space<vmem>>, vector<1x256x32xf32>
    %547 = vector.shape_cast %546 : vector<1x256x32xf32> to vector<256x32xf32>
    %cst_250 = arith.constant dense<0.000000e+00> : vector<1x32xf32>
    %548 = tpu.matmul %545, %547, %cst_250 {dimension_numbers = #tpu.dot_dimension_numbers<[1], [0], [0], [1], [0, 0, 1, 1], [], []>} : vector<1x256xf32>, vector<256x32xf32>, vector<1x32xf32> -> vector<1x32xf32>
    %549 = arith.addf %544, %548 : vector<1x32xf32>
    %550 = vector.extract_strided_slice %495 {offsets = [6, 0], sizes = [1, 256], strides = [1, 1]} : vector<16x256xf32> to vector<1x256xf32>
    %c6_251 = arith.constant 6 : index
    %c0_252 = arith.constant 0 : index
    %c0_253 = arith.constant 0 : index
    %551 = vector.load %arg6[%c6_251, %c0_252, %c0_253] : memref<16x256x32xf32, #tpu.memory_space<vmem>>, vector<1x256x32xf32>
    %552 = vector.shape_cast %551 : vector<1x256x32xf32> to vector<256x32xf32>
    %cst_254 = arith.constant dense<0.000000e+00> : vector<1x32xf32>
    %553 = tpu.matmul %550, %552, %cst_254 {dimension_numbers = #tpu.dot_dimension_numbers<[1], [0], [0], [1], [0, 0, 1, 1], [], []>} : vector<1x256xf32>, vector<256x32xf32>, vector<1x32xf32> -> vector<1x32xf32>
    %554 = arith.addf %549, %553 : vector<1x32xf32>
    %555 = vector.extract_strided_slice %495 {offsets = [7, 0], sizes = [1, 256], strides = [1, 1]} : vector<16x256xf32> to vector<1x256xf32>
    %c7_255 = arith.constant 7 : index
    %c0_256 = arith.constant 0 : index
    %c0_257 = arith.constant 0 : index
    %556 = vector.load %arg6[%c7_255, %c0_256, %c0_257] : memref<16x256x32xf32, #tpu.memory_space<vmem>>, vector<1x256x32xf32>
    %557 = vector.shape_cast %556 : vector<1x256x32xf32> to vector<256x32xf32>
    %cst_258 = arith.constant dense<0.000000e+00> : vector<1x32xf32>
    %558 = tpu.matmul %555, %557, %cst_258 {dimension_numbers = #tpu.dot_dimension_numbers<[1], [0], [0], [1], [0, 0, 1, 1], [], []>} : vector<1x256xf32>, vector<256x32xf32>, vector<1x32xf32> -> vector<1x32xf32>
    %559 = arith.addf %554, %558 : vector<1x32xf32>
    %560 = vector.extract_strided_slice %495 {offsets = [8, 0], sizes = [1, 256], strides = [1, 1]} : vector<16x256xf32> to vector<1x256xf32>
    %c8_259 = arith.constant 8 : index
    %c0_260 = arith.constant 0 : index
    %c0_261 = arith.constant 0 : index
    %561 = vector.load %arg6[%c8_259, %c0_260, %c0_261] : memref<16x256x32xf32, #tpu.memory_space<vmem>>, vector<1x256x32xf32>
    %562 = vector.shape_cast %561 : vector<1x256x32xf32> to vector<256x32xf32>
    %cst_262 = arith.constant dense<0.000000e+00> : vector<1x32xf32>
    %563 = tpu.matmul %560, %562, %cst_262 {dimension_numbers = #tpu.dot_dimension_numbers<[1], [0], [0], [1], [0, 0, 1, 1], [], []>} : vector<1x256xf32>, vector<256x32xf32>, vector<1x32xf32> -> vector<1x32xf32>
    %564 = arith.addf %559, %563 : vector<1x32xf32>
    %565 = vector.extract_strided_slice %495 {offsets = [9, 0], sizes = [1, 256], strides = [1, 1]} : vector<16x256xf32> to vector<1x256xf32>
    %c9 = arith.constant 9 : index
    %c0_263 = arith.constant 0 : index
    %c0_264 = arith.constant 0 : index
    %566 = vector.load %arg6[%c9, %c0_263, %c0_264] : memref<16x256x32xf32, #tpu.memory_space<vmem>>, vector<1x256x32xf32>
    %567 = vector.shape_cast %566 : vector<1x256x32xf32> to vector<256x32xf32>
    %cst_265 = arith.constant dense<0.000000e+00> : vector<1x32xf32>
    %568 = tpu.matmul %565, %567, %cst_265 {dimension_numbers = #tpu.dot_dimension_numbers<[1], [0], [0], [1], [0, 0, 1, 1], [], []>} : vector<1x256xf32>, vector<256x32xf32>, vector<1x32xf32> -> vector<1x32xf32>
    %569 = arith.addf %564, %568 : vector<1x32xf32>
    %570 = vector.extract_strided_slice %495 {offsets = [10, 0], sizes = [1, 256], strides = [1, 1]} : vector<16x256xf32> to vector<1x256xf32>
    %c10 = arith.constant 10 : index
    %c0_266 = arith.constant 0 : index
    %c0_267 = arith.constant 0 : index
    %571 = vector.load %arg6[%c10, %c0_266, %c0_267] : memref<16x256x32xf32, #tpu.memory_space<vmem>>, vector<1x256x32xf32>
    %572 = vector.shape_cast %571 : vector<1x256x32xf32> to vector<256x32xf32>
    %cst_268 = arith.constant dense<0.000000e+00> : vector<1x32xf32>
    %573 = tpu.matmul %570, %572, %cst_268 {dimension_numbers = #tpu.dot_dimension_numbers<[1], [0], [0], [1], [0, 0, 1, 1], [], []>} : vector<1x256xf32>, vector<256x32xf32>, vector<1x32xf32> -> vector<1x32xf32>
    %574 = arith.addf %569, %573 : vector<1x32xf32>
    %575 = vector.extract_strided_slice %495 {offsets = [11, 0], sizes = [1, 256], strides = [1, 1]} : vector<16x256xf32> to vector<1x256xf32>
    %c11 = arith.constant 11 : index
    %c0_269 = arith.constant 0 : index
    %c0_270 = arith.constant 0 : index
    %576 = vector.load %arg6[%c11, %c0_269, %c0_270] : memref<16x256x32xf32, #tpu.memory_space<vmem>>, vector<1x256x32xf32>
    %577 = vector.shape_cast %576 : vector<1x256x32xf32> to vector<256x32xf32>
    %cst_271 = arith.constant dense<0.000000e+00> : vector<1x32xf32>
    %578 = tpu.matmul %575, %577, %cst_271 {dimension_numbers = #tpu.dot_dimension_numbers<[1], [0], [0], [1], [0, 0, 1, 1], [], []>} : vector<1x256xf32>, vector<256x32xf32>, vector<1x32xf32> -> vector<1x32xf32>
    %579 = arith.addf %574, %578 : vector<1x32xf32>
    %580 = vector.extract_strided_slice %495 {offsets = [12, 0], sizes = [1, 256], strides = [1, 1]} : vector<16x256xf32> to vector<1x256xf32>
    %c12 = arith.constant 12 : index
    %c0_272 = arith.constant 0 : index
    %c0_273 = arith.constant 0 : index
    %581 = vector.load %arg6[%c12, %c0_272, %c0_273] : memref<16x256x32xf32, #tpu.memory_space<vmem>>, vector<1x256x32xf32>
    %582 = vector.shape_cast %581 : vector<1x256x32xf32> to vector<256x32xf32>
    %cst_274 = arith.constant dense<0.000000e+00> : vector<1x32xf32>
    %583 = tpu.matmul %580, %582, %cst_274 {dimension_numbers = #tpu.dot_dimension_numbers<[1], [0], [0], [1], [0, 0, 1, 1], [], []>} : vector<1x256xf32>, vector<256x32xf32>, vector<1x32xf32> -> vector<1x32xf32>
    %584 = arith.addf %579, %583 : vector<1x32xf32>
    %585 = vector.extract_strided_slice %495 {offsets = [13, 0], sizes = [1, 256], strides = [1, 1]} : vector<16x256xf32> to vector<1x256xf32>
    %c13 = arith.constant 13 : index
    %c0_275 = arith.constant 0 : index
    %c0_276 = arith.constant 0 : index
    %586 = vector.load %arg6[%c13, %c0_275, %c0_276] : memref<16x256x32xf32, #tpu.memory_space<vmem>>, vector<1x256x32xf32>
    %587 = vector.shape_cast %586 : vector<1x256x32xf32> to vector<256x32xf32>
    %cst_277 = arith.constant dense<0.000000e+00> : vector<1x32xf32>
    %588 = tpu.matmul %585, %587, %cst_277 {dimension_numbers = #tpu.dot_dimension_numbers<[1], [0], [0], [1], [0, 0, 1, 1], [], []>} : vector<1x256xf32>, vector<256x32xf32>, vector<1x32xf32> -> vector<1x32xf32>
    %589 = arith.addf %584, %588 : vector<1x32xf32>
    %590 = vector.extract_strided_slice %495 {offsets = [14, 0], sizes = [1, 256], strides = [1, 1]} : vector<16x256xf32> to vector<1x256xf32>
    %c14 = arith.constant 14 : index
    %c0_278 = arith.constant 0 : index
    %c0_279 = arith.constant 0 : index
    %591 = vector.load %arg6[%c14, %c0_278, %c0_279] : memref<16x256x32xf32, #tpu.memory_space<vmem>>, vector<1x256x32xf32>
    %592 = vector.shape_cast %591 : vector<1x256x32xf32> to vector<256x32xf32>
    %cst_280 = arith.constant dense<0.000000e+00> : vector<1x32xf32>
    %593 = tpu.matmul %590, %592, %cst_280 {dimension_numbers = #tpu.dot_dimension_numbers<[1], [0], [0], [1], [0, 0, 1, 1], [], []>} : vector<1x256xf32>, vector<256x32xf32>, vector<1x32xf32> -> vector<1x32xf32>
    %594 = arith.addf %589, %593 : vector<1x32xf32>
    %595 = vector.extract_strided_slice %495 {offsets = [15, 0], sizes = [1, 256], strides = [1, 1]} : vector<16x256xf32> to vector<1x256xf32>
    %c15 = arith.constant 15 : index
    %c0_281 = arith.constant 0 : index
    %c0_282 = arith.constant 0 : index
    %596 = vector.load %arg6[%c15, %c0_281, %c0_282] : memref<16x256x32xf32, #tpu.memory_space<vmem>>, vector<1x256x32xf32>
    %597 = vector.shape_cast %596 : vector<1x256x32xf32> to vector<256x32xf32>
    %cst_283 = arith.constant dense<0.000000e+00> : vector<1x32xf32>
    %598 = tpu.matmul %595, %597, %cst_283 {dimension_numbers = #tpu.dot_dimension_numbers<[1], [0], [0], [1], [0, 0, 1, 1], [], []>} : vector<1x256xf32>, vector<256x32xf32>, vector<1x32xf32> -> vector<1x32xf32>
    %599 = arith.addf %594, %598 : vector<1x32xf32>
    %cst_284 = arith.constant 0.000000e+00 : f32
    %600 = vector.broadcast %cst_284 : f32 to vector<1x32xf32>
    %601 = arith.cmpf ogt, %599, %600 : vector<1x32xf32>
    %602 = arith.extui %601 : vector<1x32xi1> to vector<1x32xi32>
    %603 = arith.sitofp %602 : vector<1x32xi32> to vector<1x32xf32>
    %604 = arith.mulf %599, %603 : vector<1x32xf32>
    %c0_285 = arith.constant 0 : index
    %c0_286 = arith.constant 0 : index
    %605 = vector.load %arg8[%c0_285, %c0_286] : memref<32x10xf32, #tpu.memory_space<vmem>>, vector<32x10xf32>
    %cst_287 = arith.constant dense<0.000000e+00> : vector<1x10xf32>
    %606 = tpu.matmul %604, %605, %cst_287 {dimension_numbers = #tpu.dot_dimension_numbers<[1], [0], [0], [1], [0, 0, 1, 1], [], []>} : vector<1x32xf32>, vector<32x10xf32>, vector<1x10xf32> -> vector<1x10xf32>
    %c0_288 = arith.constant 0 : index
    %c0_289 = arith.constant 0 : index
    %607 = vector.load %arg9[%c0_288, %c0_289] : memref<1x10xf32, #tpu.memory_space<vmem>>, vector<1x10xf32>
    %608 = arith.addf %606, %607 : vector<1x10xf32>
    %cst_290 = arith.constant dense<0xFF800000> : vector<1xf32>
    %609 = vector.multi_reduction <maximumf>, %608, %cst_290 [1] : vector<1x10xf32> to vector<1xf32>
    %610 = vector.shape_cast %609 : vector<1xf32> to vector<1x1xf32>
    %611 = tpu.iota {dimensions = array<i32: 1>} : vector<1x10xi32>
    %612 = arith.sitofp %611 : vector<1x10xi32> to vector<1x10xf32>
    %613 = vector.broadcast %610 : vector<1x1xf32> to vector<1x10xf32>
    %614 = arith.cmpf oeq, %608, %613 : vector<1x10xf32>
    %cst_291 = arith.constant 1.000000e+09 : f32
    %615 = vector.broadcast %cst_291 : f32 to vector<1x10xf32>
    %616 = arith.select %614, %612, %615 : vector<1x10xi1>, vector<1x10xf32>
    %cst_292 = arith.constant dense<0x7F800000> : vector<1xf32>
    %617 = vector.multi_reduction <minimumf>, %616, %cst_292 [1] : vector<1x10xf32> to vector<1xf32>
    %618 = vector.shape_cast %617 : vector<1xf32> to vector<1x1xf32>
    %619 = vector.broadcast %618 : vector<1x1xf32> to vector<1x10xf32>
    %620 = arith.cmpf oeq, %612, %619 : vector<1x10xf32>
    %cst_293 = arith.constant 0.000000e+00 : f32
    %621 = vector.broadcast %cst_293 : f32 to vector<1x10xf32>
    %622 = arith.select %620, %608, %621 : vector<1x10xi1>, vector<1x10xf32>
    %c0_294 = arith.constant 0 : index
    %c0_295 = arith.constant 0 : index
    %623 = vector.load %arg10[%c0_294, %c0_295] : memref<10x32xf32, #tpu.memory_space<vmem>>, vector<10x32xf32>
    %cst_296 = arith.constant dense<0.000000e+00> : vector<1x32xf32>
    %624 = tpu.matmul %622, %623, %cst_296 {dimension_numbers = #tpu.dot_dimension_numbers<[1], [0], [0], [1], [0, 0, 1, 1], [], []>} : vector<1x10xf32>, vector<10x32xf32>, vector<1x32xf32> -> vector<1x32xf32>
    %625 = arith.mulf %624, %603 : vector<1x32xf32>
    %626 = tpu.iota {dimensions = array<i32: 0>} : vector<16x1xi32>
    %c0_297 = arith.constant 0 : index
    %c0_298 = arith.constant 0 : index
    %c0_299 = arith.constant 0 : index
    %627 = vector.load %arg11[%c0_297, %c0_298, %c0_299] : memref<16x32x256xf32, #tpu.memory_space<vmem>>, vector<1x32x256xf32>
    %628 = vector.shape_cast %627 : vector<1x32x256xf32> to vector<32x256xf32>
    %cst_300 = arith.constant dense<0.000000e+00> : vector<1x256xf32>
    %629 = tpu.matmul %625, %628, %cst_300 {dimension_numbers = #tpu.dot_dimension_numbers<[1], [0], [0], [1], [0, 0, 1, 1], [], []>} : vector<1x32xf32>, vector<32x256xf32>, vector<1x256xf32> -> vector<1x256xf32>
    %c0_i32_301 = arith.constant 0 : i32
    %630 = vector.broadcast %c0_i32_301 : i32 to vector<16x1xi32>
    %631 = arith.cmpi eq, %626, %630 : vector<16x1xi32>
    %cst_302 = arith.constant 0.000000e+00 : f32
    %632 = vector.shape_cast %631 : vector<16x1xi1> to vector<16x1xi1>
    %633 = vector.broadcast %632 : vector<16x1xi1> to vector<16x256xi1>
    %634 = vector.shape_cast %629 : vector<1x256xf32> to vector<1x256xf32>
    %635 = vector.broadcast %634 : vector<1x256xf32> to vector<16x256xf32>
    %636 = vector.broadcast %cst_302 : f32 to vector<16x256xf32>
    %637 = arith.select %633, %635, %636 : vector<16x256xi1>, vector<16x256xf32>
    %c1_303 = arith.constant 1 : index
    %c0_304 = arith.constant 0 : index
    %c0_305 = arith.constant 0 : index
    %638 = vector.load %arg11[%c1_303, %c0_304, %c0_305] : memref<16x32x256xf32, #tpu.memory_space<vmem>>, vector<1x32x256xf32>
    %639 = vector.shape_cast %638 : vector<1x32x256xf32> to vector<32x256xf32>
    %cst_306 = arith.constant dense<0.000000e+00> : vector<1x256xf32>
    %640 = tpu.matmul %625, %639, %cst_306 {dimension_numbers = #tpu.dot_dimension_numbers<[1], [0], [0], [1], [0, 0, 1, 1], [], []>} : vector<1x32xf32>, vector<32x256xf32>, vector<1x256xf32> -> vector<1x256xf32>
    %c1_i32_307 = arith.constant 1 : i32
    %641 = vector.broadcast %c1_i32_307 : i32 to vector<16x1xi32>
    %642 = arith.cmpi eq, %626, %641 : vector<16x1xi32>
    %cst_308 = arith.constant 0.000000e+00 : f32
    %643 = vector.shape_cast %642 : vector<16x1xi1> to vector<16x1xi1>
    %644 = vector.broadcast %643 : vector<16x1xi1> to vector<16x256xi1>
    %645 = vector.shape_cast %640 : vector<1x256xf32> to vector<1x256xf32>
    %646 = vector.broadcast %645 : vector<1x256xf32> to vector<16x256xf32>
    %647 = vector.broadcast %cst_308 : f32 to vector<16x256xf32>
    %648 = arith.select %644, %646, %647 : vector<16x256xi1>, vector<16x256xf32>
    %649 = arith.addf %637, %648 : vector<16x256xf32>
    %c2_309 = arith.constant 2 : index
    %c0_310 = arith.constant 0 : index
    %c0_311 = arith.constant 0 : index
    %650 = vector.load %arg11[%c2_309, %c0_310, %c0_311] : memref<16x32x256xf32, #tpu.memory_space<vmem>>, vector<1x32x256xf32>
    %651 = vector.shape_cast %650 : vector<1x32x256xf32> to vector<32x256xf32>
    %cst_312 = arith.constant dense<0.000000e+00> : vector<1x256xf32>
    %652 = tpu.matmul %625, %651, %cst_312 {dimension_numbers = #tpu.dot_dimension_numbers<[1], [0], [0], [1], [0, 0, 1, 1], [], []>} : vector<1x32xf32>, vector<32x256xf32>, vector<1x256xf32> -> vector<1x256xf32>
    %c2_i32_313 = arith.constant 2 : i32
    %653 = vector.broadcast %c2_i32_313 : i32 to vector<16x1xi32>
    %654 = arith.cmpi eq, %626, %653 : vector<16x1xi32>
    %cst_314 = arith.constant 0.000000e+00 : f32
    %655 = vector.shape_cast %654 : vector<16x1xi1> to vector<16x1xi1>
    %656 = vector.broadcast %655 : vector<16x1xi1> to vector<16x256xi1>
    %657 = vector.shape_cast %652 : vector<1x256xf32> to vector<1x256xf32>
    %658 = vector.broadcast %657 : vector<1x256xf32> to vector<16x256xf32>
    %659 = vector.broadcast %cst_314 : f32 to vector<16x256xf32>
    %660 = arith.select %656, %658, %659 : vector<16x256xi1>, vector<16x256xf32>
    %661 = arith.addf %649, %660 : vector<16x256xf32>
    %c3_315 = arith.constant 3 : index
    %c0_316 = arith.constant 0 : index
    %c0_317 = arith.constant 0 : index
    %662 = vector.load %arg11[%c3_315, %c0_316, %c0_317] : memref<16x32x256xf32, #tpu.memory_space<vmem>>, vector<1x32x256xf32>
    %663 = vector.shape_cast %662 : vector<1x32x256xf32> to vector<32x256xf32>
    %cst_318 = arith.constant dense<0.000000e+00> : vector<1x256xf32>
    %664 = tpu.matmul %625, %663, %cst_318 {dimension_numbers = #tpu.dot_dimension_numbers<[1], [0], [0], [1], [0, 0, 1, 1], [], []>} : vector<1x32xf32>, vector<32x256xf32>, vector<1x256xf32> -> vector<1x256xf32>
    %c3_i32 = arith.constant 3 : i32
    %665 = vector.broadcast %c3_i32 : i32 to vector<16x1xi32>
    %666 = arith.cmpi eq, %626, %665 : vector<16x1xi32>
    %cst_319 = arith.constant 0.000000e+00 : f32
    %667 = vector.shape_cast %666 : vector<16x1xi1> to vector<16x1xi1>
    %668 = vector.broadcast %667 : vector<16x1xi1> to vector<16x256xi1>
    %669 = vector.shape_cast %664 : vector<1x256xf32> to vector<1x256xf32>
    %670 = vector.broadcast %669 : vector<1x256xf32> to vector<16x256xf32>
    %671 = vector.broadcast %cst_319 : f32 to vector<16x256xf32>
    %672 = arith.select %668, %670, %671 : vector<16x256xi1>, vector<16x256xf32>
    %673 = arith.addf %661, %672 : vector<16x256xf32>
    %c4_320 = arith.constant 4 : index
    %c0_321 = arith.constant 0 : index
    %c0_322 = arith.constant 0 : index
    %674 = vector.load %arg11[%c4_320, %c0_321, %c0_322] : memref<16x32x256xf32, #tpu.memory_space<vmem>>, vector<1x32x256xf32>
    %675 = vector.shape_cast %674 : vector<1x32x256xf32> to vector<32x256xf32>
    %cst_323 = arith.constant dense<0.000000e+00> : vector<1x256xf32>
    %676 = tpu.matmul %625, %675, %cst_323 {dimension_numbers = #tpu.dot_dimension_numbers<[1], [0], [0], [1], [0, 0, 1, 1], [], []>} : vector<1x32xf32>, vector<32x256xf32>, vector<1x256xf32> -> vector<1x256xf32>
    %c4_i32_324 = arith.constant 4 : i32
    %677 = vector.broadcast %c4_i32_324 : i32 to vector<16x1xi32>
    %678 = arith.cmpi eq, %626, %677 : vector<16x1xi32>
    %cst_325 = arith.constant 0.000000e+00 : f32
    %679 = vector.shape_cast %678 : vector<16x1xi1> to vector<16x1xi1>
    %680 = vector.broadcast %679 : vector<16x1xi1> to vector<16x256xi1>
    %681 = vector.shape_cast %676 : vector<1x256xf32> to vector<1x256xf32>
    %682 = vector.broadcast %681 : vector<1x256xf32> to vector<16x256xf32>
    %683 = vector.broadcast %cst_325 : f32 to vector<16x256xf32>
    %684 = arith.select %680, %682, %683 : vector<16x256xi1>, vector<16x256xf32>
    %685 = arith.addf %673, %684 : vector<16x256xf32>
    %c5_326 = arith.constant 5 : index
    %c0_327 = arith.constant 0 : index
    %c0_328 = arith.constant 0 : index
    %686 = vector.load %arg11[%c5_326, %c0_327, %c0_328] : memref<16x32x256xf32, #tpu.memory_space<vmem>>, vector<1x32x256xf32>
    %687 = vector.shape_cast %686 : vector<1x32x256xf32> to vector<32x256xf32>
    %cst_329 = arith.constant dense<0.000000e+00> : vector<1x256xf32>
    %688 = tpu.matmul %625, %687, %cst_329 {dimension_numbers = #tpu.dot_dimension_numbers<[1], [0], [0], [1], [0, 0, 1, 1], [], []>} : vector<1x32xf32>, vector<32x256xf32>, vector<1x256xf32> -> vector<1x256xf32>
    %c5_i32 = arith.constant 5 : i32
    %689 = vector.broadcast %c5_i32 : i32 to vector<16x1xi32>
    %690 = arith.cmpi eq, %626, %689 : vector<16x1xi32>
    %cst_330 = arith.constant 0.000000e+00 : f32
    %691 = vector.shape_cast %690 : vector<16x1xi1> to vector<16x1xi1>
    %692 = vector.broadcast %691 : vector<16x1xi1> to vector<16x256xi1>
    %693 = vector.shape_cast %688 : vector<1x256xf32> to vector<1x256xf32>
    %694 = vector.broadcast %693 : vector<1x256xf32> to vector<16x256xf32>
    %695 = vector.broadcast %cst_330 : f32 to vector<16x256xf32>
    %696 = arith.select %692, %694, %695 : vector<16x256xi1>, vector<16x256xf32>
    %697 = arith.addf %685, %696 : vector<16x256xf32>
    %c6_331 = arith.constant 6 : index
    %c0_332 = arith.constant 0 : index
    %c0_333 = arith.constant 0 : index
    %698 = vector.load %arg11[%c6_331, %c0_332, %c0_333] : memref<16x32x256xf32, #tpu.memory_space<vmem>>, vector<1x32x256xf32>
    %699 = vector.shape_cast %698 : vector<1x32x256xf32> to vector<32x256xf32>
    %cst_334 = arith.constant dense<0.000000e+00> : vector<1x256xf32>
    %700 = tpu.matmul %625, %699, %cst_334 {dimension_numbers = #tpu.dot_dimension_numbers<[1], [0], [0], [1], [0, 0, 1, 1], [], []>} : vector<1x32xf32>, vector<32x256xf32>, vector<1x256xf32> -> vector<1x256xf32>
    %c6_i32 = arith.constant 6 : i32
    %701 = vector.broadcast %c6_i32 : i32 to vector<16x1xi32>
    %702 = arith.cmpi eq, %626, %701 : vector<16x1xi32>
    %cst_335 = arith.constant 0.000000e+00 : f32
    %703 = vector.shape_cast %702 : vector<16x1xi1> to vector<16x1xi1>
    %704 = vector.broadcast %703 : vector<16x1xi1> to vector<16x256xi1>
    %705 = vector.shape_cast %700 : vector<1x256xf32> to vector<1x256xf32>
    %706 = vector.broadcast %705 : vector<1x256xf32> to vector<16x256xf32>
    %707 = vector.broadcast %cst_335 : f32 to vector<16x256xf32>
    %708 = arith.select %704, %706, %707 : vector<16x256xi1>, vector<16x256xf32>
    %709 = arith.addf %697, %708 : vector<16x256xf32>
    %c7_336 = arith.constant 7 : index
    %c0_337 = arith.constant 0 : index
    %c0_338 = arith.constant 0 : index
    %710 = vector.load %arg11[%c7_336, %c0_337, %c0_338] : memref<16x32x256xf32, #tpu.memory_space<vmem>>, vector<1x32x256xf32>
    %711 = vector.shape_cast %710 : vector<1x32x256xf32> to vector<32x256xf32>
    %cst_339 = arith.constant dense<0.000000e+00> : vector<1x256xf32>
    %712 = tpu.matmul %625, %711, %cst_339 {dimension_numbers = #tpu.dot_dimension_numbers<[1], [0], [0], [1], [0, 0, 1, 1], [], []>} : vector<1x32xf32>, vector<32x256xf32>, vector<1x256xf32> -> vector<1x256xf32>
    %c7_i32 = arith.constant 7 : i32
    %713 = vector.broadcast %c7_i32 : i32 to vector<16x1xi32>
    %714 = arith.cmpi eq, %626, %713 : vector<16x1xi32>
    %cst_340 = arith.constant 0.000000e+00 : f32
    %715 = vector.shape_cast %714 : vector<16x1xi1> to vector<16x1xi1>
    %716 = vector.broadcast %715 : vector<16x1xi1> to vector<16x256xi1>
    %717 = vector.shape_cast %712 : vector<1x256xf32> to vector<1x256xf32>
    %718 = vector.broadcast %717 : vector<1x256xf32> to vector<16x256xf32>
    %719 = vector.broadcast %cst_340 : f32 to vector<16x256xf32>
    %720 = arith.select %716, %718, %719 : vector<16x256xi1>, vector<16x256xf32>
    %721 = arith.addf %709, %720 : vector<16x256xf32>
    %c8_341 = arith.constant 8 : index
    %c0_342 = arith.constant 0 : index
    %c0_343 = arith.constant 0 : index
    %722 = vector.load %arg11[%c8_341, %c0_342, %c0_343] : memref<16x32x256xf32, #tpu.memory_space<vmem>>, vector<1x32x256xf32>
    %723 = vector.shape_cast %722 : vector<1x32x256xf32> to vector<32x256xf32>
    %cst_344 = arith.constant dense<0.000000e+00> : vector<1x256xf32>
    %724 = tpu.matmul %625, %723, %cst_344 {dimension_numbers = #tpu.dot_dimension_numbers<[1], [0], [0], [1], [0, 0, 1, 1], [], []>} : vector<1x32xf32>, vector<32x256xf32>, vector<1x256xf32> -> vector<1x256xf32>
    %c8_i32 = arith.constant 8 : i32
    %725 = vector.broadcast %c8_i32 : i32 to vector<16x1xi32>
    %726 = arith.cmpi eq, %626, %725 : vector<16x1xi32>
    %cst_345 = arith.constant 0.000000e+00 : f32
    %727 = vector.shape_cast %726 : vector<16x1xi1> to vector<16x1xi1>
    %728 = vector.broadcast %727 : vector<16x1xi1> to vector<16x256xi1>
    %729 = vector.shape_cast %724 : vector<1x256xf32> to vector<1x256xf32>
    %730 = vector.broadcast %729 : vector<1x256xf32> to vector<16x256xf32>
    %731 = vector.broadcast %cst_345 : f32 to vector<16x256xf32>
    %732 = arith.select %728, %730, %731 : vector<16x256xi1>, vector<16x256xf32>
    %733 = arith.addf %721, %732 : vector<16x256xf32>
    %c9_346 = arith.constant 9 : index
    %c0_347 = arith.constant 0 : index
    %c0_348 = arith.constant 0 : index
    %734 = vector.load %arg11[%c9_346, %c0_347, %c0_348] : memref<16x32x256xf32, #tpu.memory_space<vmem>>, vector<1x32x256xf32>
    %735 = vector.shape_cast %734 : vector<1x32x256xf32> to vector<32x256xf32>
    %cst_349 = arith.constant dense<0.000000e+00> : vector<1x256xf32>
    %736 = tpu.matmul %625, %735, %cst_349 {dimension_numbers = #tpu.dot_dimension_numbers<[1], [0], [0], [1], [0, 0, 1, 1], [], []>} : vector<1x32xf32>, vector<32x256xf32>, vector<1x256xf32> -> vector<1x256xf32>
    %c9_i32 = arith.constant 9 : i32
    %737 = vector.broadcast %c9_i32 : i32 to vector<16x1xi32>
    %738 = arith.cmpi eq, %626, %737 : vector<16x1xi32>
    %cst_350 = arith.constant 0.000000e+00 : f32
    %739 = vector.shape_cast %738 : vector<16x1xi1> to vector<16x1xi1>
    %740 = vector.broadcast %739 : vector<16x1xi1> to vector<16x256xi1>
    %741 = vector.shape_cast %736 : vector<1x256xf32> to vector<1x256xf32>
    %742 = vector.broadcast %741 : vector<1x256xf32> to vector<16x256xf32>
    %743 = vector.broadcast %cst_350 : f32 to vector<16x256xf32>
    %744 = arith.select %740, %742, %743 : vector<16x256xi1>, vector<16x256xf32>
    %745 = arith.addf %733, %744 : vector<16x256xf32>
    %c10_351 = arith.constant 10 : index
    %c0_352 = arith.constant 0 : index
    %c0_353 = arith.constant 0 : index
    %746 = vector.load %arg11[%c10_351, %c0_352, %c0_353] : memref<16x32x256xf32, #tpu.memory_space<vmem>>, vector<1x32x256xf32>
    %747 = vector.shape_cast %746 : vector<1x32x256xf32> to vector<32x256xf32>
    %cst_354 = arith.constant dense<0.000000e+00> : vector<1x256xf32>
    %748 = tpu.matmul %625, %747, %cst_354 {dimension_numbers = #tpu.dot_dimension_numbers<[1], [0], [0], [1], [0, 0, 1, 1], [], []>} : vector<1x32xf32>, vector<32x256xf32>, vector<1x256xf32> -> vector<1x256xf32>
    %c10_i32 = arith.constant 10 : i32
    %749 = vector.broadcast %c10_i32 : i32 to vector<16x1xi32>
    %750 = arith.cmpi eq, %626, %749 : vector<16x1xi32>
    %cst_355 = arith.constant 0.000000e+00 : f32
    %751 = vector.shape_cast %750 : vector<16x1xi1> to vector<16x1xi1>
    %752 = vector.broadcast %751 : vector<16x1xi1> to vector<16x256xi1>
    %753 = vector.shape_cast %748 : vector<1x256xf32> to vector<1x256xf32>
    %754 = vector.broadcast %753 : vector<1x256xf32> to vector<16x256xf32>
    %755 = vector.broadcast %cst_355 : f32 to vector<16x256xf32>
    %756 = arith.select %752, %754, %755 : vector<16x256xi1>, vector<16x256xf32>
    %757 = arith.addf %745, %756 : vector<16x256xf32>
    %c11_356 = arith.constant 11 : index
    %c0_357 = arith.constant 0 : index
    %c0_358 = arith.constant 0 : index
    %758 = vector.load %arg11[%c11_356, %c0_357, %c0_358] : memref<16x32x256xf32, #tpu.memory_space<vmem>>, vector<1x32x256xf32>
    %759 = vector.shape_cast %758 : vector<1x32x256xf32> to vector<32x256xf32>
    %cst_359 = arith.constant dense<0.000000e+00> : vector<1x256xf32>
    %760 = tpu.matmul %625, %759, %cst_359 {dimension_numbers = #tpu.dot_dimension_numbers<[1], [0], [0], [1], [0, 0, 1, 1], [], []>} : vector<1x32xf32>, vector<32x256xf32>, vector<1x256xf32> -> vector<1x256xf32>
    %c11_i32 = arith.constant 11 : i32
    %761 = vector.broadcast %c11_i32 : i32 to vector<16x1xi32>
    %762 = arith.cmpi eq, %626, %761 : vector<16x1xi32>
    %cst_360 = arith.constant 0.000000e+00 : f32
    %763 = vector.shape_cast %762 : vector<16x1xi1> to vector<16x1xi1>
    %764 = vector.broadcast %763 : vector<16x1xi1> to vector<16x256xi1>
    %765 = vector.shape_cast %760 : vector<1x256xf32> to vector<1x256xf32>
    %766 = vector.broadcast %765 : vector<1x256xf32> to vector<16x256xf32>
    %767 = vector.broadcast %cst_360 : f32 to vector<16x256xf32>
    %768 = arith.select %764, %766, %767 : vector<16x256xi1>, vector<16x256xf32>
    %769 = arith.addf %757, %768 : vector<16x256xf32>
    %c12_361 = arith.constant 12 : index
    %c0_362 = arith.constant 0 : index
    %c0_363 = arith.constant 0 : index
    %770 = vector.load %arg11[%c12_361, %c0_362, %c0_363] : memref<16x32x256xf32, #tpu.memory_space<vmem>>, vector<1x32x256xf32>
    %771 = vector.shape_cast %770 : vector<1x32x256xf32> to vector<32x256xf32>
    %cst_364 = arith.constant dense<0.000000e+00> : vector<1x256xf32>
    %772 = tpu.matmul %625, %771, %cst_364 {dimension_numbers = #tpu.dot_dimension_numbers<[1], [0], [0], [1], [0, 0, 1, 1], [], []>} : vector<1x32xf32>, vector<32x256xf32>, vector<1x256xf32> -> vector<1x256xf32>
    %c12_i32 = arith.constant 12 : i32
    %773 = vector.broadcast %c12_i32 : i32 to vector<16x1xi32>
    %774 = arith.cmpi eq, %626, %773 : vector<16x1xi32>
    %cst_365 = arith.constant 0.000000e+00 : f32
    %775 = vector.shape_cast %774 : vector<16x1xi1> to vector<16x1xi1>
    %776 = vector.broadcast %775 : vector<16x1xi1> to vector<16x256xi1>
    %777 = vector.shape_cast %772 : vector<1x256xf32> to vector<1x256xf32>
    %778 = vector.broadcast %777 : vector<1x256xf32> to vector<16x256xf32>
    %779 = vector.broadcast %cst_365 : f32 to vector<16x256xf32>
    %780 = arith.select %776, %778, %779 : vector<16x256xi1>, vector<16x256xf32>
    %781 = arith.addf %769, %780 : vector<16x256xf32>
    %c13_366 = arith.constant 13 : index
    %c0_367 = arith.constant 0 : index
    %c0_368 = arith.constant 0 : index
    %782 = vector.load %arg11[%c13_366, %c0_367, %c0_368] : memref<16x32x256xf32, #tpu.memory_space<vmem>>, vector<1x32x256xf32>
    %783 = vector.shape_cast %782 : vector<1x32x256xf32> to vector<32x256xf32>
    %cst_369 = arith.constant dense<0.000000e+00> : vector<1x256xf32>
    %784 = tpu.matmul %625, %783, %cst_369 {dimension_numbers = #tpu.dot_dimension_numbers<[1], [0], [0], [1], [0, 0, 1, 1], [], []>} : vector<1x32xf32>, vector<32x256xf32>, vector<1x256xf32> -> vector<1x256xf32>
    %c13_i32 = arith.constant 13 : i32
    %785 = vector.broadcast %c13_i32 : i32 to vector<16x1xi32>
    %786 = arith.cmpi eq, %626, %785 : vector<16x1xi32>
    %cst_370 = arith.constant 0.000000e+00 : f32
    %787 = vector.shape_cast %786 : vector<16x1xi1> to vector<16x1xi1>
    %788 = vector.broadcast %787 : vector<16x1xi1> to vector<16x256xi1>
    %789 = vector.shape_cast %784 : vector<1x256xf32> to vector<1x256xf32>
    %790 = vector.broadcast %789 : vector<1x256xf32> to vector<16x256xf32>
    %791 = vector.broadcast %cst_370 : f32 to vector<16x256xf32>
    %792 = arith.select %788, %790, %791 : vector<16x256xi1>, vector<16x256xf32>
    %793 = arith.addf %781, %792 : vector<16x256xf32>
    %c14_371 = arith.constant 14 : index
    %c0_372 = arith.constant 0 : index
    %c0_373 = arith.constant 0 : index
    %794 = vector.load %arg11[%c14_371, %c0_372, %c0_373] : memref<16x32x256xf32, #tpu.memory_space<vmem>>, vector<1x32x256xf32>
    %795 = vector.shape_cast %794 : vector<1x32x256xf32> to vector<32x256xf32>
    %cst_374 = arith.constant dense<0.000000e+00> : vector<1x256xf32>
    %796 = tpu.matmul %625, %795, %cst_374 {dimension_numbers = #tpu.dot_dimension_numbers<[1], [0], [0], [1], [0, 0, 1, 1], [], []>} : vector<1x32xf32>, vector<32x256xf32>, vector<1x256xf32> -> vector<1x256xf32>
    %c14_i32 = arith.constant 14 : i32
    %797 = vector.broadcast %c14_i32 : i32 to vector<16x1xi32>
    %798 = arith.cmpi eq, %626, %797 : vector<16x1xi32>
    %cst_375 = arith.constant 0.000000e+00 : f32
    %799 = vector.shape_cast %798 : vector<16x1xi1> to vector<16x1xi1>
    %800 = vector.broadcast %799 : vector<16x1xi1> to vector<16x256xi1>
    %801 = vector.shape_cast %796 : vector<1x256xf32> to vector<1x256xf32>
    %802 = vector.broadcast %801 : vector<1x256xf32> to vector<16x256xf32>
    %803 = vector.broadcast %cst_375 : f32 to vector<16x256xf32>
    %804 = arith.select %800, %802, %803 : vector<16x256xi1>, vector<16x256xf32>
    %805 = arith.addf %793, %804 : vector<16x256xf32>
    %c15_376 = arith.constant 15 : index
    %c0_377 = arith.constant 0 : index
    %c0_378 = arith.constant 0 : index
    %806 = vector.load %arg11[%c15_376, %c0_377, %c0_378] : memref<16x32x256xf32, #tpu.memory_space<vmem>>, vector<1x32x256xf32>
    %807 = vector.shape_cast %806 : vector<1x32x256xf32> to vector<32x256xf32>
    %cst_379 = arith.constant dense<0.000000e+00> : vector<1x256xf32>
    %808 = tpu.matmul %625, %807, %cst_379 {dimension_numbers = #tpu.dot_dimension_numbers<[1], [0], [0], [1], [0, 0, 1, 1], [], []>} : vector<1x32xf32>, vector<32x256xf32>, vector<1x256xf32> -> vector<1x256xf32>
    %c15_i32_380 = arith.constant 15 : i32
    %809 = vector.broadcast %c15_i32_380 : i32 to vector<16x1xi32>
    %810 = arith.cmpi eq, %626, %809 : vector<16x1xi32>
    %cst_381 = arith.constant 0.000000e+00 : f32
    %811 = vector.shape_cast %810 : vector<16x1xi1> to vector<16x1xi1>
    %812 = vector.broadcast %811 : vector<16x1xi1> to vector<16x256xi1>
    %813 = vector.shape_cast %808 : vector<1x256xf32> to vector<1x256xf32>
    %814 = vector.broadcast %813 : vector<1x256xf32> to vector<16x256xf32>
    %815 = vector.broadcast %cst_381 : f32 to vector<16x256xf32>
    %816 = arith.select %812, %814, %815 : vector<16x256xi1>, vector<16x256xf32>
    %817 = arith.addf %805, %816 : vector<16x256xf32>
    %c1_i32_382 = arith.constant 1 : i32
    %818 = vector.broadcast %c1_i32_382 : i32 to vector<1x256xi32>
    %819 = arith.shrsi %4, %818 : vector<1x256xi32>
    %c1_i32_383 = arith.constant 1 : i32
    %820 = vector.broadcast %c1_i32_383 : i32 to vector<1x256xi32>
    %821 = arith.andi %819, %820 : vector<1x256xi32>
    %c1_i32_384 = arith.constant 1 : i32
    %822 = vector.broadcast %c1_i32_384 : i32 to vector<1x256xi32>
    %823 = arith.shrsi %6, %822 : vector<1x256xi32>
    %c1_i32_385 = arith.constant 1 : i32
    %824 = vector.broadcast %c1_i32_385 : i32 to vector<1x256xi32>
    %825 = arith.andi %823, %824 : vector<1x256xi32>
    %826 = arith.mulf %817, %498 : vector<16x256xf32>
    %c0_386 = arith.constant 0 : index
    %c128_387 = arith.constant 128 : index
    %827 = vector.load %arg15[%c0_386, %c128_387] : memref<16x512xf32, #tpu.memory_space<vmem>>, vector<16x256xf32>
    tpu.vector_store %arg15[%c0_386, %c128_387], %826 {strides = array<i32>} : memref<16x512xf32, #tpu.memory_space<vmem>>, vector<16x256xf32>,
    %c0_i32_388 = arith.constant 0 : i32
    %828 = vector.broadcast %c0_i32_388 : i32 to vector<1x256xi32>
    %829 = arith.cmpi eq, %821, %828 : vector<1x256xi32>
    %c0_i32_389 = arith.constant 0 : i32
    %830 = vector.broadcast %c0_i32_389 : i32 to vector<1x256xi32>
    %831 = arith.cmpi eq, %825, %830 : vector<1x256xi32>
    %832 = arith.andi %829, %831 : vector<1x256xi1>
    %833 = arith.extui %832 : vector<1x256xi1> to vector<1x256xi32>
    %834 = arith.sitofp %833 : vector<1x256xi32> to vector<1x256xf32>
    %c0_390 = arith.constant 0 : index
    %c128_391 = arith.constant 128 : index
    %835 = vector.load %arg15[%c0_390, %c128_391] : memref<16x512xf32, #tpu.memory_space<vmem>>, vector<16x256xf32>
    %836 = vector.broadcast %834 : vector<1x256xf32> to vector<16x256xf32>
    %837 = arith.mulf %835, %836 : vector<16x256xf32>
    %838 = arith.mulf %817, %504 : vector<16x256xf32>
    %c0_392 = arith.constant 0 : index
    %c128_393 = arith.constant 128 : index
    %839 = vector.load %arg15[%c0_392, %c128_393] : memref<16x512xf32, #tpu.memory_space<vmem>>, vector<16x256xf32>
    tpu.vector_store %arg15[%c0_392, %c128_393], %838 {strides = array<i32>} : memref<16x512xf32, #tpu.memory_space<vmem>>, vector<16x256xf32>,
    %c0_i32_394 = arith.constant 0 : i32
    %840 = vector.broadcast %c0_i32_394 : i32 to vector<1x256xi32>
    %841 = arith.cmpi eq, %821, %840 : vector<1x256xi32>
    %c1_i32_395 = arith.constant 1 : i32
    %842 = vector.broadcast %c1_i32_395 : i32 to vector<1x256xi32>
    %843 = arith.cmpi eq, %825, %842 : vector<1x256xi32>
    %844 = arith.andi %841, %843 : vector<1x256xi1>
    %845 = arith.extui %844 : vector<1x256xi1> to vector<1x256xi32>
    %846 = arith.sitofp %845 : vector<1x256xi32> to vector<1x256xf32>
    %c0_396 = arith.constant 0 : index
    %c126_397 = arith.constant 126 : index
    %847 = vector.load %arg15[%c0_396, %c126_397] : memref<16x512xf32, #tpu.memory_space<vmem>>, vector<16x256xf32>
    %848 = vector.broadcast %846 : vector<1x256xf32> to vector<16x256xf32>
    %849 = arith.mulf %847, %848 : vector<16x256xf32>
    %850 = arith.addf %837, %849 : vector<16x256xf32>
    %851 = arith.mulf %817, %511 : vector<16x256xf32>
    %c0_398 = arith.constant 0 : index
    %c128_399 = arith.constant 128 : index
    %852 = vector.load %arg15[%c0_398, %c128_399] : memref<16x512xf32, #tpu.memory_space<vmem>>, vector<16x256xf32>
    tpu.vector_store %arg15[%c0_398, %c128_399], %851 {strides = array<i32>} : memref<16x512xf32, #tpu.memory_space<vmem>>, vector<16x256xf32>,
    %c1_i32_400 = arith.constant 1 : i32
    %853 = vector.broadcast %c1_i32_400 : i32 to vector<1x256xi32>
    %854 = arith.cmpi eq, %821, %853 : vector<1x256xi32>
    %c0_i32_401 = arith.constant 0 : i32
    %855 = vector.broadcast %c0_i32_401 : i32 to vector<1x256xi32>
    %856 = arith.cmpi eq, %825, %855 : vector<1x256xi32>
    %857 = arith.andi %854, %856 : vector<1x256xi1>
    %858 = arith.extui %857 : vector<1x256xi1> to vector<1x256xi32>
    %859 = arith.sitofp %858 : vector<1x256xi32> to vector<1x256xf32>
    %c0_402 = arith.constant 0 : index
    %c96_403 = arith.constant 96 : index
    %860 = vector.load %arg15[%c0_402, %c96_403] : memref<16x512xf32, #tpu.memory_space<vmem>>, vector<16x256xf32>
    %861 = vector.broadcast %859 : vector<1x256xf32> to vector<16x256xf32>
    %862 = arith.mulf %860, %861 : vector<16x256xf32>
    %863 = arith.addf %850, %862 : vector<16x256xf32>
    %864 = arith.mulf %817, %518 : vector<16x256xf32>
    %c0_404 = arith.constant 0 : index
    %c128_405 = arith.constant 128 : index
    %865 = vector.load %arg15[%c0_404, %c128_405] : memref<16x512xf32, #tpu.memory_space<vmem>>, vector<16x256xf32>
    tpu.vector_store %arg15[%c0_404, %c128_405], %864 {strides = array<i32>} : memref<16x512xf32, #tpu.memory_space<vmem>>, vector<16x256xf32>,
    %c1_i32_406 = arith.constant 1 : i32
    %866 = vector.broadcast %c1_i32_406 : i32 to vector<1x256xi32>
    %867 = arith.cmpi eq, %821, %866 : vector<1x256xi32>
    %c1_i32_407 = arith.constant 1 : i32
    %868 = vector.broadcast %c1_i32_407 : i32 to vector<1x256xi32>
    %869 = arith.cmpi eq, %825, %868 : vector<1x256xi32>
    %870 = arith.andi %867, %869 : vector<1x256xi1>
    %871 = arith.extui %870 : vector<1x256xi1> to vector<1x256xi32>
    %872 = arith.sitofp %871 : vector<1x256xi32> to vector<1x256xf32>
    %c0_408 = arith.constant 0 : index
    %c94_409 = arith.constant 94 : index
    %873 = vector.load %arg15[%c0_408, %c94_409] : memref<16x512xf32, #tpu.memory_space<vmem>>, vector<16x256xf32>
    %874 = vector.broadcast %872 : vector<1x256xf32> to vector<16x256xf32>
    %875 = arith.mulf %873, %874 : vector<16x256xf32>
    %876 = arith.addf %863, %875 : vector<16x256xf32>
    %877 = arith.mulf %876, %486 : vector<16x256xf32>
    %c0_410 = arith.constant 0 : index
    %c128_411 = arith.constant 128 : index
    %878 = vector.load %arg15[%c0_410, %c128_411] : memref<16x512xf32, #tpu.memory_space<vmem>>, vector<16x256xf32>
    tpu.vector_store %arg15[%c0_410, %c128_411], %877 {strides = array<i32>} : memref<16x512xf32, #tpu.memory_space<vmem>>, vector<16x256xf32>,
    %c0_412 = arith.constant 0 : index
    %c94_413 = arith.constant 94 : index
    %879 = vector.load %arg15[%c0_412, %c94_413] : memref<16x512xf32, #tpu.memory_space<vmem>>, vector<16x256xf32>
    %880 = vector.broadcast %176 : vector<1x256xf32> to vector<16x256xf32>
    %881 = arith.mulf %879, %880 : vector<16x256xf32>
    %c0_414 = arith.constant 0 : index
    %c0_415 = arith.constant 0 : index
    %c0_416 = arith.constant 0 : index
    %882 = vector.load %arg12[%c0_414, %c0_415, %c0_416] : memref<9x8x16xf32, #tpu.memory_space<vmem>>, vector<1x8x16xf32>
    %883 = vector.shape_cast %882 : vector<1x8x16xf32> to vector<8x16xf32>
    %cst_417 = arith.constant dense<0.000000e+00> : vector<8x256xf32>
    %884 = tpu.matmul %883, %881, %cst_417 {dimension_numbers = #tpu.dot_dimension_numbers<[1], [0], [0], [1], [0, 0, 1, 1], [], []>} : vector<8x16xf32>, vector<16x256xf32>, vector<8x256xf32> -> vector<8x256xf32>
    %c0_418 = arith.constant 0 : index
    %c96_419 = arith.constant 96 : index
    %885 = vector.load %arg15[%c0_418, %c96_419] : memref<16x512xf32, #tpu.memory_space<vmem>>, vector<16x256xf32>
    %886 = vector.broadcast %193 : vector<1x256xf32> to vector<16x256xf32>
    %887 = arith.mulf %885, %886 : vector<16x256xf32>
    %c1_420 = arith.constant 1 : index
    %c0_421 = arith.constant 0 : index
    %c0_422 = arith.constant 0 : index
    %888 = vector.load %arg12[%c1_420, %c0_421, %c0_422] : memref<9x8x16xf32, #tpu.memory_space<vmem>>, vector<1x8x16xf32>
    %889 = vector.shape_cast %888 : vector<1x8x16xf32> to vector<8x16xf32>
    %cst_423 = arith.constant dense<0.000000e+00> : vector<8x256xf32>
    %890 = tpu.matmul %889, %887, %cst_423 {dimension_numbers = #tpu.dot_dimension_numbers<[1], [0], [0], [1], [0, 0, 1, 1], [], []>} : vector<8x16xf32>, vector<16x256xf32>, vector<8x256xf32> -> vector<8x256xf32>
    %891 = arith.addf %884, %890 : vector<8x256xf32>
    %c0_424 = arith.constant 0 : index
    %c98_425 = arith.constant 98 : index
    %892 = vector.load %arg15[%c0_424, %c98_425] : memref<16x512xf32, #tpu.memory_space<vmem>>, vector<16x256xf32>
    %893 = vector.broadcast %210 : vector<1x256xf32> to vector<16x256xf32>
    %894 = arith.mulf %892, %893 : vector<16x256xf32>
    %c2_426 = arith.constant 2 : index
    %c0_427 = arith.constant 0 : index
    %c0_428 = arith.constant 0 : index
    %895 = vector.load %arg12[%c2_426, %c0_427, %c0_428] : memref<9x8x16xf32, #tpu.memory_space<vmem>>, vector<1x8x16xf32>
    %896 = vector.shape_cast %895 : vector<1x8x16xf32> to vector<8x16xf32>
    %cst_429 = arith.constant dense<0.000000e+00> : vector<8x256xf32>
    %897 = tpu.matmul %896, %894, %cst_429 {dimension_numbers = #tpu.dot_dimension_numbers<[1], [0], [0], [1], [0, 0, 1, 1], [], []>} : vector<8x16xf32>, vector<16x256xf32>, vector<8x256xf32> -> vector<8x256xf32>
    %898 = arith.addf %891, %897 : vector<8x256xf32>
    %c0_430 = arith.constant 0 : index
    %c126_431 = arith.constant 126 : index
    %899 = vector.load %arg15[%c0_430, %c126_431] : memref<16x512xf32, #tpu.memory_space<vmem>>, vector<16x256xf32>
    %900 = vector.broadcast %227 : vector<1x256xf32> to vector<16x256xf32>
    %901 = arith.mulf %899, %900 : vector<16x256xf32>
    %c3_432 = arith.constant 3 : index
    %c0_433 = arith.constant 0 : index
    %c0_434 = arith.constant 0 : index
    %902 = vector.load %arg12[%c3_432, %c0_433, %c0_434] : memref<9x8x16xf32, #tpu.memory_space<vmem>>, vector<1x8x16xf32>
    %903 = vector.shape_cast %902 : vector<1x8x16xf32> to vector<8x16xf32>
    %cst_435 = arith.constant dense<0.000000e+00> : vector<8x256xf32>
    %904 = tpu.matmul %903, %901, %cst_435 {dimension_numbers = #tpu.dot_dimension_numbers<[1], [0], [0], [1], [0, 0, 1, 1], [], []>} : vector<8x16xf32>, vector<16x256xf32>, vector<8x256xf32> -> vector<8x256xf32>
    %905 = arith.addf %898, %904 : vector<8x256xf32>
    %c0_436 = arith.constant 0 : index
    %c128_437 = arith.constant 128 : index
    %906 = vector.load %arg15[%c0_436, %c128_437] : memref<16x512xf32, #tpu.memory_space<vmem>>, vector<16x256xf32>
    %907 = vector.broadcast %244 : vector<1x256xf32> to vector<16x256xf32>
    %908 = arith.mulf %906, %907 : vector<16x256xf32>
    %c4_438 = arith.constant 4 : index
    %c0_439 = arith.constant 0 : index
    %c0_440 = arith.constant 0 : index
    %909 = vector.load %arg12[%c4_438, %c0_439, %c0_440] : memref<9x8x16xf32, #tpu.memory_space<vmem>>, vector<1x8x16xf32>
    %910 = vector.shape_cast %909 : vector<1x8x16xf32> to vector<8x16xf32>
    %cst_441 = arith.constant dense<0.000000e+00> : vector<8x256xf32>
    %911 = tpu.matmul %910, %908, %cst_441 {dimension_numbers = #tpu.dot_dimension_numbers<[1], [0], [0], [1], [0, 0, 1, 1], [], []>} : vector<8x16xf32>, vector<16x256xf32>, vector<8x256xf32> -> vector<8x256xf32>
    %912 = arith.addf %905, %911 : vector<8x256xf32>
    %c0_442 = arith.constant 0 : index
    %c130_443 = arith.constant 130 : index
    %913 = vector.load %arg15[%c0_442, %c130_443] : memref<16x512xf32, #tpu.memory_space<vmem>>, vector<16x256xf32>
    %914 = vector.broadcast %261 : vector<1x256xf32> to vector<16x256xf32>
    %915 = arith.mulf %913, %914 : vector<16x256xf32>
    %c5_444 = arith.constant 5 : index
    %c0_445 = arith.constant 0 : index
    %c0_446 = arith.constant 0 : index
    %916 = vector.load %arg12[%c5_444, %c0_445, %c0_446] : memref<9x8x16xf32, #tpu.memory_space<vmem>>, vector<1x8x16xf32>
    %917 = vector.shape_cast %916 : vector<1x8x16xf32> to vector<8x16xf32>
    %cst_447 = arith.constant dense<0.000000e+00> : vector<8x256xf32>
    %918 = tpu.matmul %917, %915, %cst_447 {dimension_numbers = #tpu.dot_dimension_numbers<[1], [0], [0], [1], [0, 0, 1, 1], [], []>} : vector<8x16xf32>, vector<16x256xf32>, vector<8x256xf32> -> vector<8x256xf32>
    %919 = arith.addf %912, %918 : vector<8x256xf32>
    %c0_448 = arith.constant 0 : index
    %c158_449 = arith.constant 158 : index
    %920 = vector.load %arg15[%c0_448, %c158_449] : memref<16x512xf32, #tpu.memory_space<vmem>>, vector<16x256xf32>
    %921 = vector.broadcast %278 : vector<1x256xf32> to vector<16x256xf32>
    %922 = arith.mulf %920, %921 : vector<16x256xf32>
    %c6_450 = arith.constant 6 : index
    %c0_451 = arith.constant 0 : index
    %c0_452 = arith.constant 0 : index
    %923 = vector.load %arg12[%c6_450, %c0_451, %c0_452] : memref<9x8x16xf32, #tpu.memory_space<vmem>>, vector<1x8x16xf32>
    %924 = vector.shape_cast %923 : vector<1x8x16xf32> to vector<8x16xf32>
    %cst_453 = arith.constant dense<0.000000e+00> : vector<8x256xf32>
    %925 = tpu.matmul %924, %922, %cst_453 {dimension_numbers = #tpu.dot_dimension_numbers<[1], [0], [0], [1], [0, 0, 1, 1], [], []>} : vector<8x16xf32>, vector<16x256xf32>, vector<8x256xf32> -> vector<8x256xf32>
    %926 = arith.addf %919, %925 : vector<8x256xf32>
    %c0_454 = arith.constant 0 : index
    %c160_455 = arith.constant 160 : index
    %927 = vector.load %arg15[%c0_454, %c160_455] : memref<16x512xf32, #tpu.memory_space<vmem>>, vector<16x256xf32>
    %928 = vector.broadcast %295 : vector<1x256xf32> to vector<16x256xf32>
    %929 = arith.mulf %927, %928 : vector<16x256xf32>
    %c7_456 = arith.constant 7 : index
    %c0_457 = arith.constant 0 : index
    %c0_458 = arith.constant 0 : index
    %930 = vector.load %arg12[%c7_456, %c0_457, %c0_458] : memref<9x8x16xf32, #tpu.memory_space<vmem>>, vector<1x8x16xf32>
    %931 = vector.shape_cast %930 : vector<1x8x16xf32> to vector<8x16xf32>
    %cst_459 = arith.constant dense<0.000000e+00> : vector<8x256xf32>
    %932 = tpu.matmul %931, %929, %cst_459 {dimension_numbers = #tpu.dot_dimension_numbers<[1], [0], [0], [1], [0, 0, 1, 1], [], []>} : vector<8x16xf32>, vector<16x256xf32>, vector<8x256xf32> -> vector<8x256xf32>
    %933 = arith.addf %926, %932 : vector<8x256xf32>
    %c0_460 = arith.constant 0 : index
    %c162_461 = arith.constant 162 : index
    %934 = vector.load %arg15[%c0_460, %c162_461] : memref<16x512xf32, #tpu.memory_space<vmem>>, vector<16x256xf32>
    %935 = vector.broadcast %312 : vector<1x256xf32> to vector<16x256xf32>
    %936 = arith.mulf %934, %935 : vector<16x256xf32>
    %c8_462 = arith.constant 8 : index
    %c0_463 = arith.constant 0 : index
    %c0_464 = arith.constant 0 : index
    %937 = vector.load %arg12[%c8_462, %c0_463, %c0_464] : memref<9x8x16xf32, #tpu.memory_space<vmem>>, vector<1x8x16xf32>
    %938 = vector.shape_cast %937 : vector<1x8x16xf32> to vector<8x16xf32>
    %cst_465 = arith.constant dense<0.000000e+00> : vector<8x256xf32>
    %939 = tpu.matmul %938, %936, %cst_465 {dimension_numbers = #tpu.dot_dimension_numbers<[1], [0], [0], [1], [0, 0, 1, 1], [], []>} : vector<8x16xf32>, vector<16x256xf32>, vector<8x256xf32> -> vector<8x256xf32>
    %940 = arith.addf %933, %939 : vector<8x256xf32>
    %c0_i32_466 = arith.constant 0 : i32
    %941 = vector.broadcast %c0_i32_466 : i32 to vector<1x256xi32>
    %942 = arith.shrsi %4, %941 : vector<1x256xi32>
    %c1_i32_467 = arith.constant 1 : i32
    %943 = vector.broadcast %c1_i32_467 : i32 to vector<1x256xi32>
    %944 = arith.andi %942, %943 : vector<1x256xi32>
    %c0_i32_468 = arith.constant 0 : i32
    %945 = vector.broadcast %c0_i32_468 : i32 to vector<1x256xi32>
    %946 = arith.shrsi %6, %945 : vector<1x256xi32>
    %c1_i32_469 = arith.constant 1 : i32
    %947 = vector.broadcast %c1_i32_469 : i32 to vector<1x256xi32>
    %948 = arith.andi %946, %947 : vector<1x256xi32>
    %949 = arith.mulf %940, %396 : vector<8x256xf32>
    %c0_470 = arith.constant 0 : index
    %c128_471 = arith.constant 128 : index
    %950 = vector.load %arg15[%c0_470, %c128_471] : memref<16x512xf32, #tpu.memory_space<vmem>>, vector<8x256xf32>
    tpu.vector_store %arg15[%c0_470, %c128_471], %949 {strides = array<i32>} : memref<16x512xf32, #tpu.memory_space<vmem>>, vector<8x256xf32>,
    %c0_i32_472 = arith.constant 0 : i32
    %951 = vector.broadcast %c0_i32_472 : i32 to vector<1x256xi32>
    %952 = arith.cmpi eq, %944, %951 : vector<1x256xi32>
    %c0_i32_473 = arith.constant 0 : i32
    %953 = vector.broadcast %c0_i32_473 : i32 to vector<1x256xi32>
    %954 = arith.cmpi eq, %948, %953 : vector<1x256xi32>
    %955 = arith.andi %952, %954 : vector<1x256xi1>
    %956 = arith.extui %955 : vector<1x256xi1> to vector<1x256xi32>
    %957 = arith.sitofp %956 : vector<1x256xi32> to vector<1x256xf32>
    %c0_474 = arith.constant 0 : index
    %c128_475 = arith.constant 128 : index
    %958 = vector.load %arg15[%c0_474, %c128_475] : memref<16x512xf32, #tpu.memory_space<vmem>>, vector<8x256xf32>
    %959 = vector.broadcast %957 : vector<1x256xf32> to vector<8x256xf32>
    %960 = arith.mulf %958, %959 : vector<8x256xf32>
    %961 = arith.mulf %940, %402 : vector<8x256xf32>
    %c0_476 = arith.constant 0 : index
    %c128_477 = arith.constant 128 : index
    %962 = vector.load %arg15[%c0_476, %c128_477] : memref<16x512xf32, #tpu.memory_space<vmem>>, vector<8x256xf32>
    tpu.vector_store %arg15[%c0_476, %c128_477], %961 {strides = array<i32>} : memref<16x512xf32, #tpu.memory_space<vmem>>, vector<8x256xf32>,
    %c0_i32_478 = arith.constant 0 : i32
    %963 = vector.broadcast %c0_i32_478 : i32 to vector<1x256xi32>
    %964 = arith.cmpi eq, %944, %963 : vector<1x256xi32>
    %c1_i32_479 = arith.constant 1 : i32
    %965 = vector.broadcast %c1_i32_479 : i32 to vector<1x256xi32>
    %966 = arith.cmpi eq, %948, %965 : vector<1x256xi32>
    %967 = arith.andi %964, %966 : vector<1x256xi1>
    %968 = arith.extui %967 : vector<1x256xi1> to vector<1x256xi32>
    %969 = arith.sitofp %968 : vector<1x256xi32> to vector<1x256xf32>
    %c0_480 = arith.constant 0 : index
    %c127_481 = arith.constant 127 : index
    %970 = vector.load %arg15[%c0_480, %c127_481] : memref<16x512xf32, #tpu.memory_space<vmem>>, vector<8x256xf32>
    %971 = vector.broadcast %969 : vector<1x256xf32> to vector<8x256xf32>
    %972 = arith.mulf %970, %971 : vector<8x256xf32>
    %973 = arith.addf %960, %972 : vector<8x256xf32>
    %974 = arith.mulf %940, %409 : vector<8x256xf32>
    %c0_482 = arith.constant 0 : index
    %c128_483 = arith.constant 128 : index
    %975 = vector.load %arg15[%c0_482, %c128_483] : memref<16x512xf32, #tpu.memory_space<vmem>>, vector<8x256xf32>
    tpu.vector_store %arg15[%c0_482, %c128_483], %974 {strides = array<i32>} : memref<16x512xf32, #tpu.memory_space<vmem>>, vector<8x256xf32>,
    %c1_i32_484 = arith.constant 1 : i32
    %976 = vector.broadcast %c1_i32_484 : i32 to vector<1x256xi32>
    %977 = arith.cmpi eq, %944, %976 : vector<1x256xi32>
    %c0_i32_485 = arith.constant 0 : i32
    %978 = vector.broadcast %c0_i32_485 : i32 to vector<1x256xi32>
    %979 = arith.cmpi eq, %948, %978 : vector<1x256xi32>
    %980 = arith.andi %977, %979 : vector<1x256xi1>
    %981 = arith.extui %980 : vector<1x256xi1> to vector<1x256xi32>
    %982 = arith.sitofp %981 : vector<1x256xi32> to vector<1x256xf32>
    %c0_486 = arith.constant 0 : index
    %c112_487 = arith.constant 112 : index
    %983 = vector.load %arg15[%c0_486, %c112_487] : memref<16x512xf32, #tpu.memory_space<vmem>>, vector<8x256xf32>
    %984 = vector.broadcast %982 : vector<1x256xf32> to vector<8x256xf32>
    %985 = arith.mulf %983, %984 : vector<8x256xf32>
    %986 = arith.addf %973, %985 : vector<8x256xf32>
    %987 = arith.mulf %940, %416 : vector<8x256xf32>
    %c0_488 = arith.constant 0 : index
    %c128_489 = arith.constant 128 : index
    %988 = vector.load %arg15[%c0_488, %c128_489] : memref<16x512xf32, #tpu.memory_space<vmem>>, vector<8x256xf32>
    tpu.vector_store %arg15[%c0_488, %c128_489], %987 {strides = array<i32>} : memref<16x512xf32, #tpu.memory_space<vmem>>, vector<8x256xf32>,
    %c1_i32_490 = arith.constant 1 : i32
    %989 = vector.broadcast %c1_i32_490 : i32 to vector<1x256xi32>
    %990 = arith.cmpi eq, %944, %989 : vector<1x256xi32>
    %c1_i32_491 = arith.constant 1 : i32
    %991 = vector.broadcast %c1_i32_491 : i32 to vector<1x256xi32>
    %992 = arith.cmpi eq, %948, %991 : vector<1x256xi32>
    %993 = arith.andi %990, %992 : vector<1x256xi1>
    %994 = arith.extui %993 : vector<1x256xi1> to vector<1x256xi32>
    %995 = arith.sitofp %994 : vector<1x256xi32> to vector<1x256xf32>
    %c0_492 = arith.constant 0 : index
    %c111_493 = arith.constant 111 : index
    %996 = vector.load %arg15[%c0_492, %c111_493] : memref<16x512xf32, #tpu.memory_space<vmem>>, vector<8x256xf32>
    %997 = vector.broadcast %995 : vector<1x256xf32> to vector<8x256xf32>
    %998 = arith.mulf %996, %997 : vector<8x256xf32>
    %999 = arith.addf %986, %998 : vector<8x256xf32>
    %1000 = arith.mulf %999, %384 : vector<8x256xf32>
    %c0_494 = arith.constant 0 : index
    %c128_495 = arith.constant 128 : index
    %1001 = vector.load %arg15[%c0_494, %c128_495] : memref<16x512xf32, #tpu.memory_space<vmem>>, vector<8x256xf32>
    tpu.vector_store %arg15[%c0_494, %c128_495], %1000 {strides = array<i32>} : memref<16x512xf32, #tpu.memory_space<vmem>>, vector<8x256xf32>,
    %c0_496 = arith.constant 0 : index
    %c111_497 = arith.constant 111 : index
    %1002 = vector.load %arg15[%c0_496, %c111_497] : memref<16x512xf32, #tpu.memory_space<vmem>>, vector<8x256xf32>
    %1003 = vector.broadcast %23 : vector<1x256xf32> to vector<8x256xf32>
    %1004 = arith.mulf %1002, %1003 : vector<8x256xf32>
    %c0_498 = arith.constant 0 : index
    %c0_499 = arith.constant 0 : index
    %c0_500 = arith.constant 0 : index
    %1005 = vector.load %arg13[%c0_498, %c0_499, %c0_500] : memref<9x4x8xf32, #tpu.memory_space<vmem>>, vector<1x4x8xf32>
    %1006 = vector.shape_cast %1005 : vector<1x4x8xf32> to vector<4x8xf32>
    %cst_501 = arith.constant dense<0.000000e+00> : vector<4x256xf32>
    %1007 = tpu.matmul %1006, %1004, %cst_501 {dimension_numbers = #tpu.dot_dimension_numbers<[1], [0], [0], [1], [0, 0, 1, 1], [], []>} : vector<4x8xf32>, vector<8x256xf32>, vector<4x256xf32> -> vector<4x256xf32>
    %c0_502 = arith.constant 0 : index
    %c112_503 = arith.constant 112 : index
    %1008 = vector.load %arg15[%c0_502, %c112_503] : memref<16x512xf32, #tpu.memory_space<vmem>>, vector<8x256xf32>
    %1009 = vector.broadcast %40 : vector<1x256xf32> to vector<8x256xf32>
    %1010 = arith.mulf %1008, %1009 : vector<8x256xf32>
    %c1_504 = arith.constant 1 : index
    %c0_505 = arith.constant 0 : index
    %c0_506 = arith.constant 0 : index
    %1011 = vector.load %arg13[%c1_504, %c0_505, %c0_506] : memref<9x4x8xf32, #tpu.memory_space<vmem>>, vector<1x4x8xf32>
    %1012 = vector.shape_cast %1011 : vector<1x4x8xf32> to vector<4x8xf32>
    %cst_507 = arith.constant dense<0.000000e+00> : vector<4x256xf32>
    %1013 = tpu.matmul %1012, %1010, %cst_507 {dimension_numbers = #tpu.dot_dimension_numbers<[1], [0], [0], [1], [0, 0, 1, 1], [], []>} : vector<4x8xf32>, vector<8x256xf32>, vector<4x256xf32> -> vector<4x256xf32>
    %1014 = arith.addf %1007, %1013 : vector<4x256xf32>
    %c0_508 = arith.constant 0 : index
    %c113_509 = arith.constant 113 : index
    %1015 = vector.load %arg15[%c0_508, %c113_509] : memref<16x512xf32, #tpu.memory_space<vmem>>, vector<8x256xf32>
    %1016 = vector.broadcast %57 : vector<1x256xf32> to vector<8x256xf32>
    %1017 = arith.mulf %1015, %1016 : vector<8x256xf32>
    %c2_510 = arith.constant 2 : index
    %c0_511 = arith.constant 0 : index
    %c0_512 = arith.constant 0 : index
    %1018 = vector.load %arg13[%c2_510, %c0_511, %c0_512] : memref<9x4x8xf32, #tpu.memory_space<vmem>>, vector<1x4x8xf32>
    %1019 = vector.shape_cast %1018 : vector<1x4x8xf32> to vector<4x8xf32>
    %cst_513 = arith.constant dense<0.000000e+00> : vector<4x256xf32>
    %1020 = tpu.matmul %1019, %1017, %cst_513 {dimension_numbers = #tpu.dot_dimension_numbers<[1], [0], [0], [1], [0, 0, 1, 1], [], []>} : vector<4x8xf32>, vector<8x256xf32>, vector<4x256xf32> -> vector<4x256xf32>
    %1021 = arith.addf %1014, %1020 : vector<4x256xf32>
    %c0_514 = arith.constant 0 : index
    %c127_515 = arith.constant 127 : index
    %1022 = vector.load %arg15[%c0_514, %c127_515] : memref<16x512xf32, #tpu.memory_space<vmem>>, vector<8x256xf32>
    %1023 = vector.broadcast %74 : vector<1x256xf32> to vector<8x256xf32>
    %1024 = arith.mulf %1022, %1023 : vector<8x256xf32>
    %c3_516 = arith.constant 3 : index
    %c0_517 = arith.constant 0 : index
    %c0_518 = arith.constant 0 : index
    %1025 = vector.load %arg13[%c3_516, %c0_517, %c0_518] : memref<9x4x8xf32, #tpu.memory_space<vmem>>, vector<1x4x8xf32>
    %1026 = vector.shape_cast %1025 : vector<1x4x8xf32> to vector<4x8xf32>
    %cst_519 = arith.constant dense<0.000000e+00> : vector<4x256xf32>
    %1027 = tpu.matmul %1026, %1024, %cst_519 {dimension_numbers = #tpu.dot_dimension_numbers<[1], [0], [0], [1], [0, 0, 1, 1], [], []>} : vector<4x8xf32>, vector<8x256xf32>, vector<4x256xf32> -> vector<4x256xf32>
    %1028 = arith.addf %1021, %1027 : vector<4x256xf32>
    %c0_520 = arith.constant 0 : index
    %c128_521 = arith.constant 128 : index
    %1029 = vector.load %arg15[%c0_520, %c128_521] : memref<16x512xf32, #tpu.memory_space<vmem>>, vector<8x256xf32>
    %1030 = vector.broadcast %91 : vector<1x256xf32> to vector<8x256xf32>
    %1031 = arith.mulf %1029, %1030 : vector<8x256xf32>
    %c4_522 = arith.constant 4 : index
    %c0_523 = arith.constant 0 : index
    %c0_524 = arith.constant 0 : index
    %1032 = vector.load %arg13[%c4_522, %c0_523, %c0_524] : memref<9x4x8xf32, #tpu.memory_space<vmem>>, vector<1x4x8xf32>
    %1033 = vector.shape_cast %1032 : vector<1x4x8xf32> to vector<4x8xf32>
    %cst_525 = arith.constant dense<0.000000e+00> : vector<4x256xf32>
    %1034 = tpu.matmul %1033, %1031, %cst_525 {dimension_numbers = #tpu.dot_dimension_numbers<[1], [0], [0], [1], [0, 0, 1, 1], [], []>} : vector<4x8xf32>, vector<8x256xf32>, vector<4x256xf32> -> vector<4x256xf32>
    %1035 = arith.addf %1028, %1034 : vector<4x256xf32>
    %c0_526 = arith.constant 0 : index
    %c129_527 = arith.constant 129 : index
    %1036 = vector.load %arg15[%c0_526, %c129_527] : memref<16x512xf32, #tpu.memory_space<vmem>>, vector<8x256xf32>
    %1037 = vector.broadcast %108 : vector<1x256xf32> to vector<8x256xf32>
    %1038 = arith.mulf %1036, %1037 : vector<8x256xf32>
    %c5_528 = arith.constant 5 : index
    %c0_529 = arith.constant 0 : index
    %c0_530 = arith.constant 0 : index
    %1039 = vector.load %arg13[%c5_528, %c0_529, %c0_530] : memref<9x4x8xf32, #tpu.memory_space<vmem>>, vector<1x4x8xf32>
    %1040 = vector.shape_cast %1039 : vector<1x4x8xf32> to vector<4x8xf32>
    %cst_531 = arith.constant dense<0.000000e+00> : vector<4x256xf32>
    %1041 = tpu.matmul %1040, %1038, %cst_531 {dimension_numbers = #tpu.dot_dimension_numbers<[1], [0], [0], [1], [0, 0, 1, 1], [], []>} : vector<4x8xf32>, vector<8x256xf32>, vector<4x256xf32> -> vector<4x256xf32>
    %1042 = arith.addf %1035, %1041 : vector<4x256xf32>
    %c0_532 = arith.constant 0 : index
    %c143_533 = arith.constant 143 : index
    %1043 = vector.load %arg15[%c0_532, %c143_533] : memref<16x512xf32, #tpu.memory_space<vmem>>, vector<8x256xf32>
    %1044 = vector.broadcast %125 : vector<1x256xf32> to vector<8x256xf32>
    %1045 = arith.mulf %1043, %1044 : vector<8x256xf32>
    %c6_534 = arith.constant 6 : index
    %c0_535 = arith.constant 0 : index
    %c0_536 = arith.constant 0 : index
    %1046 = vector.load %arg13[%c6_534, %c0_535, %c0_536] : memref<9x4x8xf32, #tpu.memory_space<vmem>>, vector<1x4x8xf32>
    %1047 = vector.shape_cast %1046 : vector<1x4x8xf32> to vector<4x8xf32>
    %cst_537 = arith.constant dense<0.000000e+00> : vector<4x256xf32>
    %1048 = tpu.matmul %1047, %1045, %cst_537 {dimension_numbers = #tpu.dot_dimension_numbers<[1], [0], [0], [1], [0, 0, 1, 1], [], []>} : vector<4x8xf32>, vector<8x256xf32>, vector<4x256xf32> -> vector<4x256xf32>
    %1049 = arith.addf %1042, %1048 : vector<4x256xf32>
    %c0_538 = arith.constant 0 : index
    %c144_539 = arith.constant 144 : index
    %1050 = vector.load %arg15[%c0_538, %c144_539] : memref<16x512xf32, #tpu.memory_space<vmem>>, vector<8x256xf32>
    %1051 = vector.broadcast %142 : vector<1x256xf32> to vector<8x256xf32>
    %1052 = arith.mulf %1050, %1051 : vector<8x256xf32>
    %c7_540 = arith.constant 7 : index
    %c0_541 = arith.constant 0 : index
    %c0_542 = arith.constant 0 : index
    %1053 = vector.load %arg13[%c7_540, %c0_541, %c0_542] : memref<9x4x8xf32, #tpu.memory_space<vmem>>, vector<1x4x8xf32>
    %1054 = vector.shape_cast %1053 : vector<1x4x8xf32> to vector<4x8xf32>
    %cst_543 = arith.constant dense<0.000000e+00> : vector<4x256xf32>
    %1055 = tpu.matmul %1054, %1052, %cst_543 {dimension_numbers = #tpu.dot_dimension_numbers<[1], [0], [0], [1], [0, 0, 1, 1], [], []>} : vector<4x8xf32>, vector<8x256xf32>, vector<4x256xf32> -> vector<4x256xf32>
    %1056 = arith.addf %1049, %1055 : vector<4x256xf32>
    %c0_544 = arith.constant 0 : index
    %c145_545 = arith.constant 145 : index
    %1057 = vector.load %arg15[%c0_544, %c145_545] : memref<16x512xf32, #tpu.memory_space<vmem>>, vector<8x256xf32>
    %1058 = vector.broadcast %159 : vector<1x256xf32> to vector<8x256xf32>
    %1059 = arith.mulf %1057, %1058 : vector<8x256xf32>
    %c8_546 = arith.constant 8 : index
    %c0_547 = arith.constant 0 : index
    %c0_548 = arith.constant 0 : index
    %1060 = vector.load %arg13[%c8_546, %c0_547, %c0_548] : memref<9x4x8xf32, #tpu.memory_space<vmem>>, vector<1x4x8xf32>
    %1061 = vector.shape_cast %1060 : vector<1x4x8xf32> to vector<4x8xf32>
    %cst_549 = arith.constant dense<0.000000e+00> : vector<4x256xf32>
    %1062 = tpu.matmul %1061, %1059, %cst_549 {dimension_numbers = #tpu.dot_dimension_numbers<[1], [0], [0], [1], [0, 0, 1, 1], [], []>} : vector<4x8xf32>, vector<8x256xf32>, vector<4x256xf32> -> vector<4x256xf32>
    %1063 = arith.addf %1056, %1062 : vector<4x256xf32>
    %c0_550 = arith.constant 0 : index
    %c0_551 = arith.constant 0 : index
    %c0_552 = arith.constant 0 : index
    %1064 = vector.load %arg14[%c0_550, %c0_551, %c0_552] : memref<1x4x256xf32, #tpu.memory_space<vmem>>, vector<1x4x256xf32>
    %1065 = vector.shape_cast %1064 : vector<1x4x256xf32> to vector<4x256xf32>
    %1066 = vector.shape_cast %1063 : vector<4x256xf32> to vector<1x4x256xf32>
    tpu.vector_store %arg14[%c0_550, %c0_551, %c0_552], %1066 {strides = array<i32>} : memref<1x4x256xf32, #tpu.memory_space<vmem>>, vector<1x4x256xf32>,
    return
  }
  func.func @transform_0(%arg0: i32) -> (i32, i32, i32) {
    %c0_i32 = arith.constant 0 : i32
    %c0_i32_0 = arith.constant 0 : i32
    %c0_i32_1 = arith.constant 0 : i32
    return %arg0, %c0_i32, %c0_i32_0 : i32, i32, i32
  }
  func.func @transform_1(%arg0: i32) -> (i32, i32, i32) {
    %c0_i32 = arith.constant 0 : i32
    %c0_i32_0 = arith.constant 0 : i32
    %c0_i32_1 = arith.constant 0 : i32
    %c0_i32_2 = arith.constant 0 : i32
    return %c0_i32, %c0_i32_0, %c0_i32_1 : i32, i32, i32
  }
  func.func @transform_2(%arg0: i32) -> (i32, i32) {
    %c0_i32 = arith.constant 0 : i32
    %c0_i32_0 = arith.constant 0 : i32
    %c0_i32_1 = arith.constant 0 : i32
    return %c0_i32, %c0_i32_0 : i32, i32
  }
  func.func @transform_3(%arg0: i32) -> (i32, i32, i32) {
    %c0_i32 = arith.constant 0 : i32
    %c0_i32_0 = arith.constant 0 : i32
    %c0_i32_1 = arith.constant 0 : i32
    %c0_i32_2 = arith.constant 0 : i32
    return %c0_i32, %c0_i32_0, %c0_i32_1 : i32, i32, i32
  }
  func.func @transform_4(%arg0: i32) -> (i32, i32) {
    %c0_i32 = arith.constant 0 : i32
    %c0_i32_0 = arith.constant 0 : i32
    %c0_i32_1 = arith.constant 0 : i32
    return %c0_i32, %c0_i32_0 : i32, i32
  }
  func.func @transform_5(%arg0: i32) -> (i32, i32, i32) {
    %c0_i32 = arith.constant 0 : i32
    %c0_i32_0 = arith.constant 0 : i32
    %c0_i32_1 = arith.constant 0 : i32
    %c0_i32_2 = arith.constant 0 : i32
    return %c0_i32, %c0_i32_0, %c0_i32_1 : i32, i32, i32
  }
  func.func @transform_6(%arg0: i32) -> (i32, i32) {
    %c0_i32 = arith.constant 0 : i32
    %c0_i32_0 = arith.constant 0 : i32
    %c0_i32_1 = arith.constant 0 : i32
    return %c0_i32, %c0_i32_0 : i32, i32
  }
  func.func @transform_7(%arg0: i32) -> (i32, i32) {
    %c0_i32 = arith.constant 0 : i32
    %c0_i32_0 = arith.constant 0 : i32
    %c0_i32_1 = arith.constant 0 : i32
    return %c0_i32, %c0_i32_0 : i32, i32
  }
  func.func @transform_8(%arg0: i32) -> (i32, i32) {
    %c0_i32 = arith.constant 0 : i32
    %c0_i32_0 = arith.constant 0 : i32
    %c0_i32_1 = arith.constant 0 : i32
    return %c0_i32, %c0_i32_0 : i32, i32
  }
  func.func @transform_9(%arg0: i32) -> (i32, i32) {
    %c0_i32 = arith.constant 0 : i32
    %c0_i32_0 = arith.constant 0 : i32
    %c0_i32_1 = arith.constant 0 : i32
    return %c0_i32, %c0_i32_0 : i32, i32
  }
  func.func @transform_10(%arg0: i32) -> (i32, i32, i32) {
    %c0_i32 = arith.constant 0 : i32
    %c0_i32_0 = arith.constant 0 : i32
    %c0_i32_1 = arith.constant 0 : i32
    %c0_i32_2 = arith.constant 0 : i32
    return %c0_i32, %c0_i32_0, %c0_i32_1 : i32, i32, i32
  }
  func.func @transform_11(%arg0: i32) -> (i32, i32, i32) {
    %c0_i32 = arith.constant 0 : i32
    %c0_i32_0 = arith.constant 0 : i32
    %c0_i32_1 = arith.constant 0 : i32
    %c0_i32_2 = arith.constant 0 : i32
    return %c0_i32, %c0_i32_0, %c0_i32_1 : i32, i32, i32
  }
  func.func @transform_12(%arg0: i32) -> (i32, i32, i32) {
    %c0_i32 = arith.constant 0 : i32
    %c0_i32_0 = arith.constant 0 : i32
    %c0_i32_1 = arith.constant 0 : i32
    %c0_i32_2 = arith.constant 0 : i32
    return %c0_i32, %c0_i32_0, %c0_i32_1 : i32, i32, i32
  }
  func.func @transform_13(%arg0: i32) -> (i32, i32, i32) {
    %c0_i32 = arith.constant 0 : i32
    %c0_i32_0 = arith.constant 0 : i32
    %c0_i32_1 = arith.constant 0 : i32
    return %arg0, %c0_i32, %c0_i32_0 : i32, i32, i32
  }
}

</mosaic_0001>

<bundles_post_ra>
// kernel: pattern_net_forward.1
= control target key start
LH: loop header
LB: loop body
LE: loop exit
PB: predicated region body
PF: predicated region fallthrough
CT: control target
= control target key end

     0   :  { %s10767_s25 = smov 0   ;;  %s14938_s0 = inlined_call_operand.vmem [shape: f32[2,4,256], index: 0, kind: input, shape index: {}]   ;;  %s14939_s1 = inlined_call_operand.vmem [shape: f32[9,8,4], index: 1, kind: input, shape index: {}]   ;;  %s14940_s2 = inlined_call_operand.vmem [shape: f32[8,1], index: 2, kind: input, shape index: {}]   ;;  %s14941_s3 = inlined_call_operand.vmem [shape: f32[9,16,8], index: 3, kind: input, shape index: {}]   ;;  %s14942_s4 = inlined_call_operand.vmem [shape: f32[16,1], index: 4, kind: input, shape index: {}]   ;;  %s14943_s5 = inlined_call_operand.vmem [shape: f32[16,256,32], index: 5, kind: input, shape index: {}]   ;;  %s14944_s6 = inlined_call_operand.vmem [shape: f32[1,32], index: 6, kind: input, shape index: {}]   ;;  %s14945_s7 = inlined_call_operand.vmem [shape: f32[32,10], index: 7, kind: input, shape index: {}]   ;;  %s14946_s8 = inlined_call_operand.vmem [shape: f32[1,10], index: 8, kind: input, shape index: {}]   ;;  %s14947_s9 = inlined_call_operand.vmem [shape: f32[10,32], index: 9, kind: input, shape index: {}]   ;;  %s14948_s10 = inlined_call_operand.vmem [shape: f32[16,32,256], index: 10, kind: input, shape index: {}]   ;;  %s14949_s11 = inlined_call_operand.vmem [shape: f32[9,8,16], index: 11, kind: input, shape index: {}]   ;;  %s14950_s12 = inlined_call_operand.vmem [shape: f32[9,4,8], index: 12, kind: input, shape index: {}]   ;;  %s14951_s13 = inlined_call_operand.vmem [shape: f32[2,4,256], index: 13, kind: output, shape index: {}]  }
   0x1 LB: > { %s9116_s26 = sadd.s32 4294967295, %s10676_s25   ;;  %p9120_p0 = scmp.ge.s32.totalorder %s10676_s25, 1  ;;  %s10676_s25 = sphi %s10767_s25, %s23_s25  }
   0x2   : > { %p387_p1 = scmp.lt.s32.totalorder %s10676_s25, 3 }
   0x4   : > { %p388_p2 = pnand %p9120_p0, %p387_p1 }
   0x6   : > { %391 = sbr.rel (%p388_p2) target bundleno = 3903 (0xf3f), region = 72 }
   0xb   : > { %v14965_v0 = vlaneseq  ;;  %v10678_v1 = vmov 0.0   ;;  %p431_p3 = scmp.lt.s32.totalorder %s9116_s26, 1  ;;  %s14975_s14 = smov 112  }
   0xc   : > { %441 = vst [vmem:[#allocation2 + $0x30] sm:$0xff] %v10678_v1  ;;  %442 = vst [vmem:[#allocation2] sm:$0xff] %v10678_v1  ;;  %784 = vmatprep.mubr.f32.mxu0 %v10678_v1  ;;  %874 = vmatprep.mubr.f32.mxu1 %v10678_v1  ;;  %s14963_s15 = smov 113   ;;  %s14970_s16 = smov 111  }
   0xd   : > { %443 = vst [vmem:[#allocation2 + $0x18] sm:$0xff] %v10678_v1  ;;  %444 = vst [vmem:[#allocation2 + $0x10] sm:$0xff] %v10678_v1  ;;  %v10782_v2 = vand.u32 127, %v14965_v0  ;;  %s15339_s26 = smov (!%p431_p3, %s9116_s26), 1  ;;  %s14986_s17 = smov 127  }
   0xe   : > { %s14962_s27 = sshll.u32 %s15339_s26, 3  ;;  %s15020_s18 = smov 1  }
   0xf   : > { %v451_v3 = vadd.s32 128, %v10782_v2  ;;  %v10786_v4 = vshra.s32 %v10782_v2, 4  ;;  %v10789_v5 = vand.u32 15, %v10782_v2  ;;  %s435_s30 = scalar_lea.vmem %s14938_s0, %s14962_s27  ;;  %s14968_s19 = smov 15  }
  0x10   : > { %v658_v19 = vld [vmem:[%s435_s30] sm:$0xff]  ;;  %s14988_s20 = smov 16   ;;  %s14973_s21 = smov 17  }
  0x11   : > { %15067 = vst [vmem:[#allocation3_spill] sm:$0xff] %v10786_v4  ;;  %15068 = vst [vmem:[#allocation4_spill] sm:$0xff] %v10789_v5  ;;  %v10791_v6 = vshra.s32 %v451_v3, 4  ;;  %v456_v7 = vadd.s32 4294967295, %v10786_v4  ;;  %v10794_v8 = vand.u32 15, %v451_v3  ;;  %v10797_v9 = vadd.s32 1, %v10789_v5 }
  0x12   : > { %v10802_v10 = vadd.s32 4294967295, %v10789_v5  ;;  %vm504_vm0 = vcmp.ge.s32.totalorder %v10786_v4, 0  ;;  %vm506_vm1 = vcmp.lt.s32.totalorder %v10786_v4, 16  ;;  %663 = vst [vmem:[#allocation2] sm:$0xf] %v658_v19  ;;  %v661_v21 = vcombine.high %v658_v19, %v658_v19  ;;  %s10688_s24 = smov 96  }
  0x13   : > { %15069 = vst [vmem:[#allocation5_spill] sm:$0xff] %v10791_v6  ;;  %15070 = vst [vmem:[#allocation6_spill] sm:$0xff] %v10794_v8  ;;  %v457_v11 = vadd.s32 4294967295, %v10791_v6  ;;  %vm460_vm2 = vcmp.ge.s32.totalorder %v456_v7, 0  ;;  %vm462_vm3 = vcmp.lt.s32.totalorder %v456_v7, 16  ;;  %v10808_v12 = vadd.s32 1, %v10794_v8 }
  0x14   : > { %vm10810_vm4 = vmand %vm504_vm0, %vm506_vm1  ;;  %vm496_vm6 = vcmp.lt.s32.totalorder %v10797_v9, 16  ;;  %v459_v15 = vadd.s32 4294967295, %v10794_v8  ;;  %vm466_vm7 = vcmp.ge.s32.totalorder %v10802_v10, 0  ;;  %vm505_vm15 = vcmp.ge.s32.totalorder %v10791_v6, 0  ;;  %664 = vst [vmem:[#allocation2 + $0x18] sm:$0xf] %v661_v21 }
  0x15   : > { %vm10814_vm5 = vmand %vm460_vm2, %vm462_vm3  ;;  %vm461_vm8 = vcmp.ge.s32.totalorder %v457_v11, 0  ;;  %vm463_vm9 = vcmp.lt.s32.totalorder %v457_v11, 16  ;;  %vm497_vm10 = vcmp.lt.s32.totalorder %v10808_v12, 16  ;;  %vm507_vm0 = vcmp.lt.s32.totalorder %v10791_v6, 16  ;;  %v665_v47 = vld [vmem:[#allocation2 + $0x30] sm:$0xf] }
  0x16   : > { %v9127_v16 = vsel %vm10814_vm5, 1.0, %v10678_v1  ;;  %vm498_vm11 = vmand %vm10814_vm5, %vm496_vm6  ;;  %vm467_vm13 = vcmp.ge.s32.totalorder %v459_v15, 0  ;;  %v534_v24 = vadd.s32 1, %v10786_v4  ;;  %v535_v27 = vadd.s32 1, %v10791_v6  ;;  %s15026_s28 = smov 94   ;;  %s15022_s29 = smov 98  }
  0x17   : > { %vm10835_vm12 = vmand %vm461_vm8, %vm463_vm9  ;;  %v9129_v18 = vsel %vm498_vm11, 1.0, %v10678_v1  ;;  %s10691_s30 = smov 126   ;;  %s10692_s22 = smov 2  }
  0x18   : > { %v9128_v20 = vsel %vm10835_vm12, 1.0, %v10678_v1  ;;  %vm499_vm14 = vmand %vm10835_vm12, %vm497_vm10  ;;  %vm536_vm9 = vcmp.ge.s32.totalorder %v534_v24, 0  ;;  %vm538_vm11 = vcmp.lt.s32.totalorder %v534_v24, 16  ;;  %s15024_s23 = smov 30   ;;  %s10694_s27 = smov 32  }
  0x19   : > { %v10554_v22 = vpack.i.bf16 %v9128_v20, %v9127_v16  ;;  %v9130_v23 = vsel %vm499_vm14, 1.0, %v10678_v1  ;;  %vm468_vm1 = vmand %vm10814_vm5, %vm466_vm7  ;;  %vm537_vm14 = vcmp.ge.s32.totalorder %v535_v27, 0  ;;  %v10915_v55 = vld [vmem:[#allocation2] sm:$0xf] }
  0x1a   : > { %v10564_v25 = vpack.i.bf16 %v9130_v23, %v9129_v18  ;;  %vm469_vm2 = vmand %vm10835_vm12, %vm467_vm13  ;;  %v9125_v26 = vsel %vm468_vm1, 1.0, %v10678_v1  ;;  %v10945_v14 = vld [vmem:[#allocation2] sm:$0xf]  ;;  %v1185_v18 = vld [vmem:[#allocation2 + $0x10] sm:$0xf] }
  0x1b   : > { %10555 = vrot.lane.b32.xlu0 %v10554_v22, %s14975_s14  ;;  %v9126_v28 = vsel %vm469_vm2, 1.0, %v10678_v1  ;;  %vm10866_vm3 = vmand %vm505_vm15, %vm507_vm0  ;;  %vm539_vm15 = vcmp.lt.s32.totalorder %v535_v27, 16  ;;  %v10940_v11 = vld [vmem:[#allocation2 + $0x18] sm:$0xf] }
  0x1c   : > { %10565 = vrot.lane.b32.xlu1 %v10564_v25, %s14963_s15  ;;  %v10559_v30 = vpack.i.bf16 %v9126_v28, %v9125_v26  ;;  %vm510_vm5 = vmand %vm10810_vm4, %vm466_vm7  ;;  %v1184_v24 = vld [vmem:[#allocation2 + $0x18] sm:$0xf] }
  0x1d   : > { %vm511_vm8 = vmand %vm10866_vm3, %vm467_vm13  ;;  %v9131_v31 = vsel %vm510_vm5, 1.0, %v10678_v1 }
  0x1e   : > { %v9132_v32 = vsel %vm511_vm8, 1.0, %v10678_v1  ;;  %vm528_vm12 = vmand %vm10810_vm4, %vm496_vm6 }
  0x1f   : > { %10560 = vrot.lane.b32.xlu0 %v10559_v30, %s14970_s16  ;;  %v10569_v33 = vpack.i.bf16 %v9132_v32, %v9131_v31  ;;  %vm529_vm0 = vmand %vm10866_vm3, %vm497_vm10  ;;  %v9135_v34 = vsel %vm528_vm12, 1.0, %v10678_v1  ;;  %vm14952_vm12 = vcmask 924672  }
  0x20   : > { %v9136_v35 = vsel %vm529_vm0, 1.0, %v10678_v1  ;;  %vm540_vm1 = vmand %vm536_vm9, %vm538_vm11  ;;  %vm14955_vm0 = vcmask 138240  }
  0x21   : > { %10570 = vrot.lane.b32.xlu1 %v10569_v33, %s14986_s17  ;;  %v10574_v36 = vpack.i.bf16 %v9136_v35, %v9135_v34  ;;  %vm541_vm2 = vmand %vm537_vm14, %vm539_vm15  ;;  %v9139_v37 = vsel %vm540_vm1, 1.0, %v10678_v1  ;;  %vm14957_vm14 = vcmask 130048   ;;  %vm14953_vm15 = vcmask 121856  }
  0x22   : > { %vm542_vm5 = vmand %vm540_vm1, %vm466_vm7  ;;  %v9140_v38 = vsel %vm541_vm2, 1.0, %v10678_v1  ;;  %vm14956_vm7 = vcmask 7168  }
  0x23   : > { %10575 = vrot.lane.b32.xlu0 %v10574_v36, %s15020_s18  ;;  %vm543_vm8 = vmand %vm541_vm2, %vm467_vm13  ;;  %v9137_v39 = vsel %vm542_vm5, 1.0, %v10678_v1  ;;  %v10579_v40 = vpack.i.bf16 %v9140_v38, %v9139_v37  ;;  %vm14954_vm13 = vcmask 908288  }
  0x24   : > { %v9138_v41 = vsel %vm543_vm8, 1.0, %v10678_v1  ;;  %vm560_vm9 = vmand %vm540_vm1, %vm496_vm6  ;;  %vm14959_vm6 = vcmask 916480   ;;  %vm715_vm1 = vcmask 1043456  }
  0x25   : > { %v10584_v42 = vpack.i.bf16 %v9138_v41, %v9137_v39  ;;  %vm561_vm11 = vmand %vm541_vm2, %vm497_vm10  ;;  %v9141_v43 = vsel %vm560_vm9, 1.0, %v10678_v1  ;;  %vm14958_vm10 = vcmask 1039360   ;;  %vm711_vm2 = vcmask 31744  }
  0x26   : > { %v9142_v44 = vsel %vm561_vm11, 1.0, %v10678_v1 }
  0x27   : > { %10585 = vrot.lane.b32.xlu1 %v10584_v42, %s14968_s19  ;;  %10580 = vrot.lane.b32.xlu0 %v10579_v40, %s14988_s20  ;;  %v10589_v45 = vpack.i.bf16 %v9142_v44, %v9141_v43 }
  0x2b   : > { %10590 = vrot.lane.b32.xlu1 %v10589_v45, %s14973_s21 }
  0x8d   : > { %v10556_v46 = vpop.permute.xlu0 %10555 }
  0x8e   : > { %v10909_v48 = vunpack.i.l.bf16 %v10556_v46  ;;  %v10566_v49 = vpop.permute.xlu1 %10565  ;;  %v10937_v10 = vunpack.i.h.bf16 %v10556_v46 }
  0x8f   : > { %v10922_v59 = vunpack.i.l.bf16 %v10566_v49  ;;  %v10962_v21 = vunpack.i.h.bf16 %v10566_v49 }
  0x90   : > { %15079 = vst [vmem:[#allocation7_spill] sm:$0xff] %v10909_v48  ;;  %v694_v50 = vmul.f32 %v10909_v48, %v665_v47  ;;  %15086 = vst [vmem:[#allocation14_spill] sm:$0xff] %v10937_v10  ;;  %v10950_v15 = vsel %vm14959_vm6, %v10909_v48, %v10937_v10  ;;  %v696_v17 = vmul.f32 %v10937_v10, %v10940_v11 }
  0x91   : > { %v10561_v51 = vpop.permute.xlu0 %10560  ;;  %15083 = vst [vmem:[#allocation11_spill] sm:$0xff] %v10922_v59  ;;  %v892_v7 = vmul.f32 %v10922_v59, %v665_v47  ;;  %15087 = vst [vmem:[#allocation15_spill] sm:$0xff] %v10950_v15  ;;  %v695_v20 = vmul.f32 %v10950_v15, %v10945_v14  ;;  %v894_v26 = vmul.f32 %v10962_v21, %v10940_v11 }
  0x92   : > { %702 = vrot.lane.b32.xlu0 %v694_v50, %s14988_s20  ;;  %v10917_v56 = vunpack.i.l.bf16 %v10561_v51  ;;  %v10957_v19 = vunpack.i.h.bf16 %v10561_v51  ;;  %15090 = vst [vmem:[#allocation18_spill] sm:$0xff] %v10962_v21  ;;  %v11003_v37 = vsel %vm14952_vm12, %v10922_v59, %v10962_v21  ;;  %v10687_v50 = vmov 0  }
  0x93   : > { %v10571_v52 = vpop.permute.xlu1 %10570  ;;  %15097 = vst [vmem:[#allocation25_spill] sm:$0xff] %v11003_v37  ;;  %v893_v40 = vmul.f32 %v11003_v37, %v10945_v14  ;;  %10594 = vset.pattern.permute.xlu0 %v10687_v50 }
  0x94   : > { %v10913_v53 = vunpack.i.l.bf16 %v10571_v52  ;;  %15081 = vst [vmem:[#allocation9_spill] sm:$0xff] %v10917_v56  ;;  %v679_v63 = vmul.f32 %v10917_v56, %v665_v47  ;;  %v10931_v3 = vunpack.i.h.bf16 %v10571_v52  ;;  %15089 = vst [vmem:[#allocation17_spill] sm:$0xff] %v10957_v19  ;;  %v681_v23 = vmul.f32 %v10957_v19, %v10940_v11 }
  0x95   : > { %v10576_v54 = vpop.permute.xlu0 %10575  ;;  %v10992_v33 = vsel %vm14954_vm13, %v10917_v56, %v10957_v19 }
  0x96   : > { %15080 = vst [vmem:[#allocation8_spill] sm:$0xff] %v10913_v53  ;;  %v10919_v57 = vunpack.i.l.bf16 %v10576_v54  ;;  %v1000_v58 = vmul.f32 %v10913_v53, %v665_v47  ;;  %15085 = vst [vmem:[#allocation13_spill] sm:$0xff] %v10931_v3  ;;  %v1002_v12 = vmul.f32 %v10931_v3, %v10940_v11  ;;  %v10952_v16 = vunpack.i.h.bf16 %v10576_v54 }
  0x97   : > { %v10980_v27 = vsel %vm14958_vm10, %v10913_v53, %v10931_v3  ;;  %15094 = vst [vmem:[#allocation22_spill] sm:$0xff] %v10992_v33  ;;  %v680_v38 = vmul.f32 %v10992_v33, %v10945_v14 }
  0x98   : > { %15082 = vst [vmem:[#allocation10_spill] sm:$0xff] %v10919_v57  ;;  %1008 = vrot.lane.b32.xlu1 %v1000_v58, %s15020_s18  ;;  %v1196_v60 = vmul.f32 %v10919_v57, %v10915_v55  ;;  %15088 = vst [vmem:[#allocation16_spill] sm:$0xff] %v10952_v16  ;;  %v1198_v22 = vmul.f32 %v10952_v16, %v1185_v18  ;;  %v10972_v25 = vsel %vm14956_vm7, %v10919_v57, %v10952_v16 }
  0x99   : > { %v10586_v61 = vpop.permute.xlu1 %10585  ;;  %15091 = vst [vmem:[#allocation19_spill] sm:$0xff] %v10972_v25  ;;  %15092 = vst [vmem:[#allocation20_spill] sm:$0xff] %v10980_v27  ;;  %v1197_v30 = vmul.f32 %v10972_v25, %v1184_v24  ;;  %v10581_v31 = vpop.permute.xlu0 %10580  ;;  %v1001_v32 = vmul.f32 %v10980_v27, %v10945_v14 }
  0x9a   : > { %v10927_v62 = vunpack.i.l.bf16 %v10586_v61  ;;  %1204 = vrot.lane.b32.xlu0 %v1196_v60, %s14986_s17  ;;  %v10982_v28 = vunpack.i.h.bf16 %v10586_v61  ;;  %v10995_v34 = vunpack.i.h.bf16 %v10581_v31  ;;  %v10998_v36 = vunpack.i.l.bf16 %v10581_v31  ;;  %v659_v60 = vld [vmem:[%s14940_s2] sm:$0xff] }
  0x9c   : > { %15084 = vst [vmem:[#allocation12_spill] sm:$0xff] %v10927_v62  ;;  %794 = vrot.lane.b32.xlu1 %v679_v63, %s14973_s21  ;;  %v1302_v9 = vmul.f32 %v10927_v62, %v10915_v55  ;;  %15093 = vst [vmem:[#allocation21_spill] sm:$0xff] %v10982_v28  ;;  %v1304_v35 = vmul.f32 %v10982_v28, %v1185_v18  ;;  %v1410_v41 = vmul.f32 %v10995_v34, %v1185_v18 }
  0x9d   : > { %15095 = vst [vmem:[#allocation23_spill] sm:$0xff] %v10995_v34  ;;  %15096 = vst [vmem:[#allocation24_spill] sm:$0xff] %v10998_v36  ;;  %v10591_v39 = vpop.permute.xlu1 %10590  ;;  %v11019_v44 = vsel %vm14957_vm14, %v10998_v36, %v10995_v34  ;;  %v11025_v45 = vsel %vm14953_vm15, %v10927_v62, %v10982_v28  ;;  %v1408_v51 = vmul.f32 %v10998_v36, %v10915_v55 }
  0x9e   : > { %900 = vrot.lane.b32.xlu0 %v892_v7, %s14968_s19  ;;  %v11012_v42 = vunpack.i.h.bf16 %v10591_v39  ;;  %v11014_v43 = vunpack.i.l.bf16 %v10591_v39  ;;  %15100 = vst [vmem:[#allocation28_spill] sm:$0xff] %v11019_v44  ;;  %15101 = vst [vmem:[#allocation29_spill] sm:$0xff] %v11025_v45  ;;  %v1409_v46 = vmul.f32 %v11019_v44, %v1184_v24  ;;  %v1303_v49 = vmul.f32 %v11025_v45, %v1184_v24  ;;  %v1798_v44 = vld [vmem:[%s14942_s4] sm:$0xff] }
  0xa0   : > { %1310 = vrot.lane.b32.xlu1 %v1302_v9, %s14963_s15  ;;  %15098 = vst [vmem:[#allocation26_spill] sm:$0xff] %v11012_v42  ;;  %15099 = vst [vmem:[#allocation27_spill] sm:$0xff] %v11014_v43  ;;  %v11032_v47 = vsel %vm14955_vm0, %v11014_v43, %v11012_v42  ;;  %v1516_v54 = vmul.f32 %v11012_v42, %v1185_v18  ;;  %v1514_v58 = vmul.f32 %v11014_v43, %v10915_v55 }
  0xa1   : > { %15102 = vst [vmem:[#allocation30_spill] sm:$0xff] %v11032_v47  ;;  %v1515_v52 = vmul.f32 %v11032_v47, %v1184_v24  ;;  %v9159_v24 = vld [vmem:[%s14939_s1 + $0x8] sm:$0xff] }
  0xa2   : > { %1012 = vrot.lane.b32.xlu0 %v1002_v12, %s15020_s18 }
  0xa4   : > { %706 = vrot.lane.b32.xlu1 %v696_v17, %s14988_s20 }
  0xa6   : > { %704 = vrot.lane.b32.xlu0 %v695_v20, %s14988_s20  ;;  %s15235_s20 = smov 127  }
  0xa8   : > { %1208 = vrot.lane.b32.xlu1 %v1198_v22, %s14986_s17 }
  0xaa   : > { %798 = vrot.lane.b32.xlu0 %v681_v23, %s14973_s21 }
  0xac   : > { %904 = vrot.lane.b32.xlu1 %v894_v26, %s14968_s19 }
  0xae   : > { %1206 = vrot.lane.b32.xlu0 %v1197_v30, %s14986_s17 }
  0xb0   : > { %1010 = vrot.lane.b32.xlu1 %v1001_v32, %s15020_s18  ;;  %s15266_s18 = smov 111  }
  0xb2   : > { %1314 = vrot.lane.b32.xlu0 %v1304_v35, %s14963_s15 }
  0xb4   : > { %796 = vrot.lane.b32.xlu1 %v680_v38, %s14973_s21  ;;  %s15253_s21 = smov 17  }
  0xb6   : > { %902 = vrot.lane.b32.xlu0 %v893_v40, %s14968_s19 }
  0xb8   : > { %1420 = vrot.lane.b32.xlu1 %v1410_v41, %s14975_s14 }
  0xba   : > { %1418 = vrot.lane.b32.xlu0 %v1409_v46, %s14975_s14  ;;  %v682_v46 = vld [vmem:[%s14939_s1] sm:$0xff] }
  0xbc   : > { %1312 = vrot.lane.b32.xlu1 %v1303_v49, %s14963_s15  ;;  %v11069_v49 = vsel %vm10866_vm3, 1.0, %v10678_v1  ;;  %s10695_s15 = smov 34  }
  0xbd   : > { %15103 = vst [vmem:[#allocation31_spill] sm:$0xff] %v11069_v49 }
  0xbe   : > { %1416 = vrot.lane.b32.xlu0 %v1408_v51, %s14975_s14  ;;  %v11075_v51 = vsel %vm10810_vm4, 1.0, %v10678_v1 }
  0xbf   : > { %15104 = vst [vmem:[#allocation32_spill] sm:$0xff] %v11075_v51 }
  0xc0   : > { %1524 = vrot.lane.b32.xlu1 %v1515_v52, %s14970_s16 }
  0xc2   : > { %1526 = vrot.lane.b32.xlu0 %v1516_v54, %s14970_s16 }
  0xc4   : > { %1522 = vrot.lane.b32.xlu1 %v1514_v58, %s14970_s16  ;;  %s15170_s16 = smov 98  }
  0xc6   : > { %1612 = vperm.xlu0 %10594, %v659_v60  }
  0xca   : > { %1637 = vrot.lane.b32.xlu0 %v10678_v1, %s14986_s17 }
 0x104   : > { %v703_v61 = vpop.permute.xlu0 %702 }
 0x10a   : > { %v1009_v63 = vpop.permute.xlu1 %1008 }
 0x10c   : > { %v1205_v7 = vpop.permute.xlu0 %1204 }
 0x10e   : > { %v795_v9 = vpop.permute.xlu1 %794 }
 0x110   : > { %v901_v12 = vpop.permute.xlu0 %900 }
 0x112   : > { %v1311_v17 = vpop.permute.xlu1 %1310 }
 0x114   : > { %v1013_v18 = vpop.permute.xlu0 %1012 }
 0x116   : > { %v707_v20 = vpop.permute.xlu1 %706 }
 0x118   : > { %v705_v55 = vpop.permute.xlu0 %704 }
 0x119   : > { %v710_v22 = vsel %vm14957_vm14, %v705_v55, %v707_v20  ;;  %v709_v23 = vsel %vm14957_vm14, %v703_v61, %v705_v55  ;;  %v1098_v20 = vmul.f32 %v11069_v49, %v10940_v11 }
 0x11a   : > { %v1209_v26 = vpop.permute.xlu1 %1208  ;;  %9160 = vmatprep.subr.msk.mxu0 %vm715_vm1, %v710_v22 }
 0x11b   : > { %9161 = vmatpush1.msk.msra.mxu0 %vm715_vm1, %v709_v23 }
 0x11c   : > { %v799_v30 = vpop.permute.xlu0 %798  ;;  %9162 = vmatmul.mubr.msk.f32.vlgmr.msra.gmra.mxu0 %vm711_vm2, %v9159_v24 }
 0x11d   : > { %980 = vmatprep.mubr.f32.mxu0 %v10678_v1 }
 0x11e   : > { %v905_v31 = vpop.permute.xlu1 %904 }
 0x120   : > { %v1207_v32 = vpop.permute.xlu0 %1206 }
 0x121   : > { %v1210_v22 = vsel %vm14958_vm10, %v1205_v7, %v1207_v32 }
 0x122   : > { %v1011_v35 = vpop.permute.xlu1 %1010 }
 0x123   : > { %v1016_v54 = vsel %vm14956_vm7, %v1011_v35, %v1013_v18  ;;  %v1015_v60 = vsel %vm14956_vm7, %v1009_v63, %v1011_v35  ;;  %v9170_v63 = vld [vmem:[%s14939_s1 + $0x18] sm:$0xff]  ;;  %v1097_v18 = vmul.f32 %v11075_v51, %v10945_v14  ;;  %v9174_v14 = vld [vmem:[%s14939_s1 + $0x20] sm:$0xff] }
 0x124   : > { %v1315_v38 = vpop.permute.xlu0 %1314 }
 0x126   : > { %v797_v39 = vpop.permute.xlu1 %796 }
 0x127   : > { %v802_v40 = vsel %vm14955_vm0, %v797_v39, %v799_v30  ;;  %v801_v41 = vsel %vm14955_vm0, %v795_v9, %v797_v39  ;;  %v9166_v9 = vld [vmem:[%s14939_s1 + $0x10] sm:$0xff]  ;;  %v9178_v30 = vld [vmem:[%s14939_s1 + $0x28] sm:$0xff] }
 0x128   : > { %9163 = vmatprep.subr.msk.mxu1 %vm715_vm1, %v802_v40  ;;  %v903_v50 = vpop.permute.xlu0 %902 }
 0x129   : > { %9164 = vmatpush1.msk.msra.mxu1 %vm715_vm1, %v801_v41  ;;  %v907_v52 = vsel %vm14953_vm15, %v901_v12, %v903_v50  ;;  %v908_v58 = vsel %vm14953_vm15, %v903_v50, %v905_v31  ;;  %v1211_v12 = vsel %vm14958_vm10, %v1207_v32, %v1209_v26  ;;  %v9182_v32 = vld [vmem:[%s14939_s1 + $0x30] sm:$0xff]  ;;  %v9190_v41 = vld [vmem:[%s14939_s1 + $0x40] sm:$0xff] }
 0x12a   : > { %v1421_v61 = vpop.permute.xlu1 %1420  ;;  %9165 = vmatmul.mubr.msk.f32.vlgmr.msra.gmra.mxu1 %vm711_vm2, %v682_v46  ;;  %9171 = vmatprep.subr.msk.mxu1 %vm715_vm1, %v1016_v54 }
 0x12b   : > { %9167 = vmatprep.subr.msk.mxu0 %vm715_vm1, %v908_v58  ;;  %9172 = vmatpush1.msk.msra.mxu1 %vm715_vm1, %v1015_v60 }
 0x12c   : > { %9168 = vmatpush1.msk.msra.mxu0 %vm715_vm1, %v907_v52  ;;  %9179 = vmatprep.subr.msk.mxu1 %vm715_vm1, %v1211_v12  ;;  %v1419_v55 = vpop.permute.xlu0 %1418 }
 0x12d   : > { %9169 = vmatmul.mubr.msk.f32.vlgmr.msra.gmra.mxu0 %vm711_vm2, %v9166_v9  ;;  %1088 = vmatprep.mubr.f32.mxu1 %v10678_v1  ;;  %v1423_v11 = vsel %vm14959_vm6, %v1419_v55, %v1421_v61 }
 0x12e   : > { %v1313_v23 = vpop.permute.xlu1 %1312  ;;  %9173 = vmatmul.mubr.msk.f32.vlgmr.msra.gmra.mxu1 %vm711_vm2, %v9170_v63  ;;  %9175 = vmatprep.subr.msk.mxu0 %vm715_vm1, %v1098_v20 }
 0x12f   : > { %v1316_v24 = vsel %vm14952_vm12, %v1311_v17, %v1313_v23  ;;  %9180 = vmatpush1.msk.msra.mxu1 %vm715_vm1, %v1210_v22  ;;  %9176 = vmatpush1.msk.msra.mxu0 %vm715_vm1, %v1097_v18  ;;  %v1317_v26 = vsel %vm14952_vm12, %v1313_v23, %v1315_v38  ;;  %v9186_v38 = vld [vmem:[%s14939_s1 + $0x38] sm:$0xff] }
 0x130   : > { %9187 = vmatprep.subr.msk.mxu1 %vm715_vm1, %v1423_v11  ;;  %1174 = vmatprep.mubr.f32.mxu0 %v10678_v1  ;;  %v1417_v7 = vpop.permute.xlu0 %1416 }
 0x131   : > { %9183 = vmatprep.subr.msk.mxu0 %vm715_vm1, %v1317_v26  ;;  %9177 = vmatmul.mubr.msk.f32.vlgmr.msra.gmra.mxu0 %vm711_vm2, %v9174_v14  ;;  %v1422_v17 = vsel %vm14959_vm6, %v1417_v7, %v1419_v55 }
 0x132   : > { %1283 = vmatprep.mubr.f32.mxu1 %v10678_v1  ;;  %9184 = vmatpush1.msk.msra.mxu0 %vm715_vm1, %v1316_v24  ;;  %v1525_v31 = vpop.permute.xlu1 %1524 }
 0x133   : > { %9181 = vmatmul.mubr.msk.f32.vlgmr.msra.gmra.mxu1 %vm711_vm2, %v9178_v30  ;;  %1389 = vmatprep.mubr.f32.mxu0 %v10678_v1 }
 0x134   : > { %9188 = vmatpush1.msk.msra.mxu1 %vm715_vm1, %v1422_v17  ;;  %1495 = vmatprep.mubr.f32.mxu1 %v10678_v1  ;;  %v1527_v35 = vpop.permute.xlu0 %1526 }
 0x135   : > { %9185 = vmatmul.mubr.msk.f32.vlgmr.msra.gmra.mxu0 %vm711_vm2, %v9182_v32  ;;  %v1529_v39 = vsel %vm14954_vm13, %v1525_v31, %v1527_v35 }
 0x136   : > { %v1523_v40 = vpop.permute.xlu1 %1522  ;;  %9191 = vmatprep.subr.msk.mxu0 %vm715_vm1, %v1529_v39  ;;  %1601 = vmatprep.mubr.f32.mxu0 %v10678_v1 }
 0x137   : > { %v1528_v46 = vsel %vm14954_vm13, %v1523_v40, %v1525_v31  ;;  %9189 = vmatmul.mubr.msk.f32.vlgmr.msra.gmra.mxu1 %vm711_vm2, %v9186_v38 }
 0x138   : > { %9192 = vmatpush1.msk.msra.mxu0 %vm715_vm1, %v1528_v46  ;;  %1923 = vmatprep.mubr.f32.mxu1 %v10678_v1 }
 0x139   : > { %9193 = vmatmul.mubr.msk.f32.vlgmr.msra.gmra.mxu0 %vm711_vm2, %v9190_v41 }
 0x13a   : > { %2020 = vmatprep.mubr.f32.mxu0 %v10678_v1 }
 0x141   : > { %v1613_v46 = vpop.permute.xlu0 %1612 }
 0x1dc   : > { %v786_v50 = vpop.f32.mrf.mxu0 }
 0x1de   : > { %v788_v54 = vpop.f32.mrf.mxu0 }
 0x1ea   : > { %v876_v52 = vpop.f32.mrf.mxu1 }
 0x1eb   : > { %v877_v58 = vadd.f32 %v876_v52, %v786_v50 }
 0x1ec   : > { %v878_v60 = vpop.f32.mrf.mxu1 }
 0x1ed   : > { %v879_v61 = vadd.f32 %v878_v60, %v788_v54  ;;  %v982_v9 = vpop.f32.mrf.mxu0 }
 0x1ee   : > { %v987_v20 = vadd.f32 %v982_v9, %v877_v58  ;;  %v1090_v12 = vpop.f32.mrf.mxu1 }
 0x1ef   : > { %v984_v63 = vpop.f32.mrf.mxu0 }
 0x1f0   : > { %v1095_v18 = vadd.f32 %v1090_v12, %v987_v20  ;;  %v988_v55 = vadd.f32 %v984_v63, %v879_v61  ;;  %v1092_v11 = vpop.f32.mrf.mxu1 }
 0x1f1   : > { %v1176_v22 = vpop.f32.mrf.mxu0 }
 0x1f2   : > { %v1096_v23 = vadd.f32 %v1092_v11, %v988_v55  ;;  %v1181_v14 = vadd.f32 %v1176_v22, %v1095_v18  ;;  %v566_v11 = vadd.s32 4294967294, %v10786_v4  ;;  %v567_v22 = vadd.s32 4294967294, %v10791_v6 }
 0x1f3   : > { %v1285_v24 = vpop.f32.mrf.mxu1  ;;  %v1178_v26 = vpop.f32.mrf.mxu0 }
 0x1f4   : > { %v1290_v7 = vadd.f32 %v1285_v24, %v1181_v14  ;;  %v1182_v30 = vadd.f32 %v1178_v26, %v1096_v23  ;;  %v568_v23 = vadd.s32 4294967294, %v10789_v5  ;;  %v569_v14 = vadd.s32 4294967294, %v10794_v8 }
 0x1f5   : > { %v1287_v17 = vpop.f32.mrf.mxu1  ;;  %v1391_v31 = vpop.f32.mrf.mxu0  ;;  %vm570_vm9 = vcmp.ge.s32.totalorder %v566_v11, 0  ;;  %vm572_vm11 = vcmp.lt.s32.totalorder %v566_v11, 16  ;;  %v11166_v24 = vadd.s32 2, %v10789_v5  ;;  %vm571_vm1 = vcmp.ge.s32.totalorder %v567_v22, 0 }
 0x1f6   : > { %v1291_v32 = vadd.f32 %v1287_v17, %v1182_v30  ;;  %v1396_v35 = vadd.f32 %v1391_v31, %v1290_v7  ;;  %vm573_vm2 = vcmp.lt.s32.totalorder %v567_v22, 16  ;;  %v597_v26 = vadd.s32 2, %v10794_v8  ;;  %v1638_v30 = vpop.permute.xlu0 %1637 }
 0x1f7   : > { %v1497_v38 = vpop.f32.mrf.mxu1  ;;  %v1393_v39 = vpop.f32.mrf.mxu0  ;;  %vm14960_vm12 = vcmp.ge.s32.totalorder %v569_v14, 0  ;;  %vm575_vm15 = vmand %vm571_vm1, %vm573_vm2  ;;  %vm14961_vm13 = vcmp.lt.s32.totalorder %v11166_v24, 16 }
 0x1f8   : > { %v1502_v40 = vadd.f32 %v1497_v38, %v1396_v35  ;;  %v1397_v41 = vadd.f32 %v1393_v39, %v1291_v32  ;;  %vm603_vm7 = vcmp.lt.s32.totalorder %v597_v26, 16  ;;  %vm11176_vm14 = vmand %vm575_vm15, %vm14960_vm12  ;;  %v626_v32 = vadd.s32 2, %v10786_v4 }
 0x1f9   : > { %v1499_v50 = vpop.f32.mrf.mxu1  ;;  %v1603_v52 = vpop.f32.mrf.mxu0  ;;  %v627_v39 = vadd.s32 2, %v10791_v6  ;;  %v9144_v22 = vsel %vm11176_vm14, 1.0, %v10678_v1 }
 0x1fa   : > { %v1503_v54 = vadd.f32 %v1499_v50, %v1397_v41  ;;  %v1608_v58 = vadd.f32 %v1603_v52, %v1502_v40  ;;  %v9146_v50 = vsel %vm575_vm15, 1.0, %v10678_v1  ;;  %vm628_vm2 = vcmp.ge.s32.totalorder %v626_v32, 0 }
 0x1fb   : > { %v1605_v60 = vpop.f32.mrf.mxu0  ;;  %vm629_vm6 = vcmp.ge.s32.totalorder %v627_v39, 0 }
 0x1fc   : > { %v1609_v61 = vadd.f32 %v1605_v60, %v1503_v54  ;;  %v1615_v9 = vadd.f32 %v1613_v46, %v1608_v58 }
 0x1fe   : > { %v1616_v20 = vadd.f32 %v1613_v46, %v1609_v61  ;;  %vm1617_vm5 = vcmp.gt.f32.partialorder %v1615_v9, 0.0 }
 0x1ff   : > { %v11146_v12 = vsel %vm1617_vm5, 1.0, %v10678_v1  ;;  %vm576_vm5 = vcmp.ge.s32.totalorder %v568_v23, 0 }
 0x200   : > { %15105 = vst [vmem:[#allocation33_spill] sm:$0xff] %v11146_v12  ;;  %vm1618_vm8 = vcmp.gt.f32.partialorder %v1616_v20, 0.0  ;;  %v11149_v63 = vmul.f32 %v11146_v12, %v1615_v9  ;;  %vm11206_vm1 = vmand %vm10810_vm4, %vm576_vm5 }
 0x201   : > { %v11152_v18 = vsel %vm1618_vm8, 1.0, %v10678_v1  ;;  %vm574_vm8 = vmand %vm570_vm9, %vm572_vm11  ;;  %v9149_v29 = vsel %vm11206_vm1, 1.0, %v10678_v1  ;;  %vm15047_vm1 = vcmask 801792  }
 0x202   : > { %15106 = vst [vmem:[#allocation34_spill] sm:$0xff] %v11149_v63  ;;  %15107 = vst [vmem:[#allocation35_spill] sm:$0xff] %v11152_v18  ;;  %1633 = vrot.lane.b32.xlu1 %v11149_v63, %s14986_s17  ;;  %v11157_v55 = vmul.f32 %v11152_v18, %v1616_v20  ;;  %v9145_v46 = vsel %vm574_vm8, 1.0, %v10678_v1 }
 0x203   : > { %vm11171_vm0 = vmand %vm574_vm8, %vm576_vm5  ;;  %v10595_v9 = vpack.i.bf16 %v9146_v50, %v9145_v46 }
 0x204   : > { %15108 = vst [vmem:[#allocation36_spill] sm:$0xff] %v11157_v55  ;;  %vm11183_vm9 = vmand %vm574_vm8, %vm14961_vm13  ;;  %vm630_vm8 = vcmp.lt.s32.totalorder %v626_v32, 16  ;;  %v9143_v11 = vsel %vm11171_vm0, 1.0, %v10678_v1  ;;  %v1646_v32 = vmax.f32 %v1638_v30, 0.0 }
 0x205   : > { %vm11193_vm11 = vmand %vm575_vm15, %vm603_vm7 }
 0x206   : > { %1635 = vrot.lane.b32.xlu1 %v11157_v55, %s14986_s17  ;;  %vm11213_vm15 = vmand %vm10866_vm3, %vm14960_vm12  ;;  %vm631_vm12 = vcmp.lt.s32.totalorder %v627_v39, 16  ;;  %v9148_v13 = vsel %vm11193_vm11, 1.0, %v10678_v1  ;;  %vm15052_vm11 = vcmask 769024  }
 0x207   : > { %vm11248_vm0 = vmand %vm629_vm6, %vm631_vm12  ;;  %vm15127_vm6 = vcmp.ge.s32.totalorder %v569_v14, 0 }
 0x208   : > { %vm635_vm12 = vmand %vm11248_vm0, %vm15127_vm6  ;;  %v9156_v14 = vsel %vm11248_vm0, 1.0, %v10678_v1 }
 0x209   : > { %v9154_v52 = vsel %vm635_vm12, 1.0, %v10678_v1 }
 0x274   : > { %v1634_v7 = vpop.permute.xlu1 %1633 }
 0x278   : > { %v1636_v35 = vpop.permute.xlu1 %1635 }
 0x279   : > { %v1639_v40 = vsel %vm14958_vm10, %v1634_v7, %v1636_v35  ;;  %v1640_v41 = vsel %vm14958_vm10, %v1636_v35, %v1638_v30  ;;  %vm11225_vm10 = vmand %vm10810_vm4, %vm14961_vm13  ;;  %v9147_v7 = vsel %vm11183_vm9, 1.0, %v10678_v1  ;;  %v10600_v35 = vpack.i.bf16 %v9144_v22, %v9143_v11 }
 0x27a   : > { %v11198_v54 = vmax.f32 %v11149_v63, %v1639_v40  ;;  %v11201_v58 = vmax.f32 %v11157_v55, %v1640_v41  ;;  %vm621_vm4 = vmand %vm10866_vm3, %vm603_vm7  ;;  %v10605_v38 = vpack.i.bf16 %v9148_v13, %v9147_v7  ;;  %v9150_v30 = vsel %vm11213_vm15, 1.0, %v10678_v1 }
 0x27b   : > { %vm11244_vm13 = vmand %vm628_vm2, %vm630_vm8  ;;  %v9151_v39 = vsel %vm11225_vm10, 1.0, %v10678_v1  ;;  %v9152_v40 = vsel %vm621_vm4, 1.0, %v10678_v1  ;;  %v10610_v41 = vpack.i.bf16 %v9150_v30, %v9149_v29  ;;  %vm15128_vm10 = vcmp.lt.s32.totalorder %v11166_v24, 16 }
 0x27c   : > { %1650 = vrot.lane.b32.xlu1 %v11198_v54, %s14975_s14  ;;  %1652 = vrot.lane.b32.xlu0 %v11201_v58, %s14975_s14  ;;  %vm634_vm3 = vmand %vm11244_vm13, %vm576_vm5  ;;  %v10615_v46 = vpack.i.bf16 %v9152_v40, %v9151_v39  ;;  %v9155_v23 = vsel %vm11244_vm13, 1.0, %v10678_v1  ;;  %vm2157_vm15 = vcmask 1031168   ;;  %vm15050_vm2 = vcmask 15360  }
 0x27d   : > { %v9153_v50 = vsel %vm634_vm3, 1.0, %v10678_v1  ;;  %vm652_vm14 = vmand %vm11244_vm13, %vm15128_vm10  ;;  %v10625_v61 = vpack.i.bf16 %v9156_v14, %v9155_v23  ;;  %vm15129_vm13 = vcmask 916480   ;;  %vm15048_vm8 = vcmask 244736  }
 0x27e   : > { %vm653_vm5 = vmand %vm11248_vm0, %vm603_vm7  ;;  %v10620_v60 = vpack.i.bf16 %v9154_v52, %v9153_v50  ;;  %vm1827_vm7 = vcmask 785408   ;;  %vm15049_vm4 = vcmask 261120   ;;  %vm1945_vm0 = vcmask 277504  }
 0x27f   : > { %v9158_v20 = vsel %vm653_vm5, 1.0, %v10678_v1  ;;  %vm15130_vm9 = vmmov %vm15129_vm13  ;;  %vm15046_vm3 = vcmask 64512   ;;  %vm10696_vm5 = vmmov 0  }
 0x280   : > { %1654 = vrot.lane.b32.xlu1 %v1646_v32, %s14975_s14  ;;  %10596 = vrot.lane.b32.xlu0 %v10595_v9, %s10688_s24  ;;  %v9157_v9 = vsel %vm652_vm14, 1.0, %v10678_v1  ;;  %s15237_s14 = smov 112  }
 0x281   : > { %v10630_v24 = vpack.i.bf16 %v9158_v20, %v9157_v9 }
 0x284   : > { %10601 = vrot.lane.b32.xlu1 %v10600_v35, %s15026_s28  ;;  %10606 = vrot.lane.b32.xlu0 %v10605_v38, %s15022_s29 }
 0x288   : > { %10611 = vrot.lane.b32.xlu1 %v10610_v41, %s10691_s30  ;;  %10616 = vrot.lane.b32.xlu0 %v10615_v46, %s10692_s22 }
 0x28c   : > { %10621 = vrot.lane.b32.xlu1 %v10620_v60, %s15024_s23  ;;  %10626 = vrot.lane.b32.xlu0 %v10625_v61, %s10694_s27 }
 0x290   : > { %10631 = vrot.lane.b32.xlu1 %v10630_v24, %s10695_s15 }
 0x2ee   : > { %v1651_v26 = vpop.permute.xlu1 %1650  ;;  %v1653_v11 = vpop.permute.xlu0 %1652 }
 0x2ef   : > { %v1656_v29 = vsel %vm15129_vm13, %v1651_v26, %v1653_v11 }
 0x2f0   : > { %v11314_v50 = vmax.f32 %v11198_v54, %v1656_v29 }
 0x2f2   : > { %v1655_v22 = vpop.permute.xlu1 %1654  ;;  %v10597_v7 = vpop.permute.xlu0 %10596  ;;  %15131 = vst [vmem:[#allocation37_spill] sm:$0xff] %v11314_v50 }
 0x2f3   : > { %v11294_v13 = vunpack.i.l.bf16 %v10597_v7  ;;  %v11297_v17 = vunpack.i.h.bf16 %v10597_v7  ;;  %v1657_v40 = vsel %vm15130_vm9, %v1653_v11, %v1655_v22  ;;  %vm5014_vm9 = vcmask 73728  }
 0x2f4   : > { %v11321_v23 = vmax.f32 %v11201_v58, %v1657_v40 }
 0x2f5   : > { %v1832_v32 = vmul.f32 0.0, %v11294_v13  ;;  %v11311_v46 = vsel %vm1827_vm7, %v11294_v13, %v11297_v17 }
 0x2f6   : > { %v10602_v1 = vpop.permute.xlu1 %10601  ;;  %v10607_v31 = vpop.permute.xlu0 %10606  ;;  %15132 = vst [vmem:[#allocation38_spill] sm:$0xff] %v11321_v23  ;;  %v1833_v61 = vmul.f32 %v11311_v46, %v11314_v50  ;;  %v1834_v54 = vmul.f32 %v11297_v17, %v11321_v23 }
 0x2f7   : > { %v11299_v35 = vunpack.i.l.bf16 %v10602_v1  ;;  %v11301_v38 = vunpack.i.l.bf16 %v10607_v31  ;;  %1841 = vrot.lane.b32.xlu0 %v1832_v32, %s10694_s27  ;;  %v11323_v14 = vunpack.i.h.bf16 %v10602_v1  ;;  %v11328_v9 = vunpack.i.h.bf16 %v10607_v31 }
 0x2f9   : > { %v1816_v30 = vmul.f32 0.0, %v11299_v35  ;;  %v2044_v39 = vmul.f32 0.0, %v11301_v38  ;;  %15133 = vst [vmem:[#allocation39_spill] sm:$0xff] %v11323_v14  ;;  %15134 = vst [vmem:[#allocation40_spill] sm:$0xff] %v11328_v9  ;;  %v1818_v58 = vmul.f32 %v11323_v14, %v11321_v23  ;;  %v11339_v24 = vsel %vm15052_vm11, %v11299_v35, %v11323_v14 }
 0x2fa   : > { %v10612_v41 = vpop.permute.xlu1 %10611  ;;  %v11344_v26 = vsel %vm15047_vm1, %v11301_v38, %v11328_v9  ;;  %v1817_v22 = vmul.f32 %v11339_v24, %v11314_v50  ;;  %v10617_v32 = vpop.permute.xlu0 %10616 }
 0x2fb   : > { %v11316_v52 = vunpack.i.l.bf16 %v10612_v41  ;;  %1939 = vrot.lane.b32.xlu1 %v1816_v30, %s10695_s15  ;;  %2053 = vrot.lane.b32.xlu0 %v2044_v39, %s15024_s23  ;;  %15135 = vst [vmem:[#allocation41_spill] sm:$0xff] %v11344_v26  ;;  %v2045_v7 = vmul.f32 %v11344_v26, %v11314_v50  ;;  %v11357_v31 = vunpack.i.h.bf16 %v10612_v41  ;;  %v11359_v29 = vunpack.i.h.bf16 %v10617_v32 }
 0x2fc   : > { %v2046_v30 = vmul.f32 %v11328_v9, %v11321_v23  ;;  %v11363_v39 = vunpack.i.l.bf16 %v10617_v32 }
 0x2fd   : > { %v2162_v60 = vmul.f32 0.0, %v11316_v52  ;;  %15136 = vst [vmem:[#allocation42_spill] sm:$0xff] %v11357_v31  ;;  %v2376_v40 = vmul.f32 0.0, %v11359_v29 }
 0x2fe   : > { %v10622_v20 = vpop.permute.xlu1 %10621  ;;  %15137 = vst [vmem:[#allocation43_spill] sm:$0xff] %v11363_v39  ;;  %v10627_v41 = vpop.permute.xlu0 %10626 }
 0x2ff   : > { %2171 = vrot.lane.b32.xlu1 %v2162_v60, %s10692_s22  ;;  %1843 = vrot.lane.b32.xlu0 %v1833_v61, %s10694_s27  ;;  %v11348_v11 = vunpack.i.h.bf16 %v10622_v20  ;;  %v2164_v60 = vmul.f32 %v11357_v31, %v11321_v23  ;;  %v11373_v61 = vsel %vm2157_vm15, %v11316_v52, %v11357_v31  ;;  %v11388_v32 = vunpack.i.l.bf16 %v10622_v20 }
 0x300   : > { %15138 = vst [vmem:[#allocation44_spill] sm:$0xff] %v11373_v61 }
 0x301   : > { %v2492_v1 = vmul.f32 0.0, %v11348_v11  ;;  %15140 = vst [vmem:[#allocation46_spill] sm:$0xff] %v11388_v32 }
 0x303   : > { %1845 = vrot.lane.b32.xlu1 %v1834_v54, %s10694_s27  ;;  %1943 = vrot.lane.b32.xlu0 %v1818_v58, %s10695_s15  ;;  %v11378_v54 = vsel %vm15050_vm2, %v11363_v39, %v11359_v29  ;;  %v11382_v58 = vunpack.i.h.bf16 %v10627_v41 }
 0x304   : > { %15139 = vst [vmem:[#allocation45_spill] sm:$0xff] %v11378_v54 }
 0x307   : > { %1941 = vrot.lane.b32.xlu1 %v1817_v22, %s10695_s15  ;;  %2055 = vrot.lane.b32.xlu0 %v2045_v7, %s15024_s23  ;;  %v2163_v22 = vmul.f32 %v11373_v61, %v11314_v50  ;;  %v2375_v7 = vmul.f32 %v11378_v54, %v11321_v23 }
 0x30b   : > { %2057 = vrot.lane.b32.xlu1 %v2046_v30, %s15024_s23  ;;  %2503 = vrot.lane.b32.xlu0 %v2492_v1, %s15022_s29  ;;  %v11390_v1 = vunpack.i.l.bf16 %v10627_v41  ;;  %v2608_v30 = vmul.f32 0.0, %v11382_v58  ;;  %v10632_v41 = vpop.permute.xlu1 %10631  ;;  %s15169_s23 = smov 30  }
 0x30c   : > { %v11413_v0 = vunpack.i.h.bf16 %v10632_v41  ;;  %v11415_v42 = vunpack.i.l.bf16 %v10632_v41  ;;  %v11430_v41 = vld [vmem:[#allocation2 + $0x30] sm:$0xff] }
 0x30d   : > { %15141 = vst [vmem:[#allocation47_spill] sm:$0xff] %v11390_v1  ;;  %v11405_v20 = vsel %vm15049_vm4, %v11390_v1, %v11382_v58 }
 0x30e   : > { %15143 = vst [vmem:[#allocation49_spill] sm:$0xff] %v11405_v20  ;;  %15144 = vst [vmem:[#allocation50_spill] sm:$0xff] %v11415_v42  ;;  %v11426_v43 = vsel %vm1945_vm0, %v11415_v42, %v11413_v0 }
 0x30f   : > { %2387 = vrot.lane.b32.xlu1 %v2376_v40, %s10691_s30  ;;  %2175 = vrot.lane.b32.xlu0 %v2164_v60, %s10692_s22  ;;  %v2374_v40 = vmul.f32 %v11363_v39, %v11314_v50  ;;  %v11400_v60 = vsel %vm15048_vm8, %v11388_v32, %v11348_v11  ;;  %15145 = vst [vmem:[#allocation51_spill] sm:$0xff] %v11426_v43 }
 0x310   : > { %15142 = vst [vmem:[#allocation48_spill] sm:$0xff] %v11400_v60 }
 0x313   : > { %2173 = vrot.lane.b32.xlu1 %v2163_v22, %s10692_s22  ;;  %2385 = vrot.lane.b32.xlu0 %v2375_v7, %s10691_s30  ;;  %v2491_v22 = vmul.f32 %v11400_v60, %v11321_v23  ;;  %v2607_v7 = vmul.f32 %v11405_v20, %v11321_v23  ;;  %v9755_v60 = vld [vmem:[%s14948_s10 + $0x58] sm:$0xff] }
 0x317   : > { %2619 = vrot.lane.b32.xlu1 %v2608_v30, %s10688_s24  ;;  %2383 = vrot.lane.b32.xlu0 %v2374_v40, %s10691_s30  ;;  %v2490_v30 = vmul.f32 %v11388_v32, %v11314_v50  ;;  %v2606_v40 = vmul.f32 %v11390_v1, %v11314_v50 }
 0x31b   : > { %2501 = vrot.lane.b32.xlu1 %v2491_v22, %s15022_s29  ;;  %2617 = vrot.lane.b32.xlu0 %v2607_v7, %s10688_s24  ;;  %v2724_v22 = vmul.f32 %v11430_v41, %v11413_v0  ;;  %v2723_v7 = vmul.f32 %v11426_v43, %v11321_v23 }
 0x31f   : > { %2499 = vrot.lane.b32.xlu1 %v2490_v30, %s15022_s29  ;;  %2615 = vrot.lane.b32.xlu0 %v2606_v40, %s10688_s24  ;;  %v2722_v30 = vmul.f32 %v11415_v42, %v11314_v50  ;;  %v1799_v40 = vld [vmem:[%s14942_s4 + $0x8] sm:$0xff]  ;;  %s15280_s29 = smov 15  }
 0x323   : > { %2733 = vrot.lane.b32.xlu1 %v2723_v7, %s15026_s28  ;;  %2735 = vrot.lane.b32.xlu0 %v2724_v22, %s15026_s28 }
 0x327   : > { %2731 = vrot.lane.b32.xlu1 %v2722_v30, %s15026_s28  ;;  %2830 = vperm.xlu0 %10594, %v1798_v44   ;;  %v9207_v44 = vld [vmem:[%s14941_s3 + $0x10] sm:$0xff]  ;;  %s15152_s28 = smov 94  }
 0x32b   : > { %2882 = vrot.lane.b32.xlu0 %v11430_v41, %s10691_s30 }
 0x32f   : > { %2835 = vperm.xlu0 %10594, %v1799_v40  }
 0x369   : > { %v1842_v7 = vpop.permute.xlu0 %1841 }
 0x36d   : > { %v1940_v22 = vpop.permute.xlu1 %1939  ;;  %v2054_v47 = vpop.permute.xlu0 %2053 }
 0x371   : > { %v2172_v25 = vpop.permute.xlu1 %2171  ;;  %v1844_v45 = vpop.permute.xlu0 %1843 }
 0x372   : > { %v1848_v30 = vsel %vm15049_vm4, %v1842_v7, %v1844_v45 }
 0x375   : > { %v1846_v3 = vpop.permute.xlu1 %1845  ;;  %v1944_v34 = vpop.permute.xlu0 %1943 }
 0x376   : > { %v1849_v36 = vsel %vm15049_vm4, %v1844_v45, %v1846_v3  ;;  %v9208_v3 = vld [vmem:[%s14941_s3 + $0x18] sm:$0xff] }
 0x377   : > { %1889 = vmatprep.subr.mxu1 %v1849_v36  ;;  %v1819_v36 = vld [vmem:[%s14941_s3] sm:$0xff] }
 0x378   : > { %1890 = vmatpush1.msra.mxu1 %v1848_v30 }
 0x379   : > { %v1942_v21 = vpop.permute.xlu1 %1941  ;;  %9209 = vmatmul.mubr.msk.f32.vlgmr.msra.gmra.mxu1 %vm15046_vm3, %v9207_v44  ;;  %v2056_v40 = vpop.permute.xlu0 %2055  ;;  %v2269_v44 = vmul.f32 %v11075_v51, %v11314_v50 }
 0x37a   : > { %v1947_v19 = vsel %vm1945_vm0, %v1942_v21, %v1944_v34  ;;  %1929 = vmatprep.mubr.f32.mxu1 %v11430_v41  ;;  %v1946_v10 = vsel %vm1945_vm0, %v1940_v22, %v1942_v21  ;;  %v9213_v21 = vld [vmem:[%s14941_s3 + $0x20] sm:$0xff]  ;;  %v1820_v22 = vld [vmem:[%s14941_s3 + $0x8] sm:$0xff] }
 0x37b   : > { %1986 = vmatprep.subr.mxu0 %v1947_v19  ;;  %v2060_v19 = vsel %vm15048_vm8, %v2054_v47, %v2056_v40  ;;  %v9214_v47 = vld [vmem:[%s14941_s3 + $0x28] sm:$0xff] }
 0x37c   : > { %1987 = vmatpush1.msra.mxu0 %v1946_v10  ;;  %v2270_v10 = vmul.f32 %v11069_v49, %v11321_v23 }
 0x37d   : > { %v2058_v45 = vpop.permute.xlu1 %2057  ;;  %9210 = vmatmul.mubr.msk.f32.gmra.mxu1 %vm15046_vm3, %v9208_v3  ;;  %v2504_v7 = vpop.permute.xlu0 %2503  ;;  %9211 = vmatmul.mubr.msk.f32.vlgmr.msra.gmra.mxu0 %vm15046_vm3, %v1819_v36 }
 0x37e   : > { %v2061_v34 = vsel %vm15048_vm8, %v2056_v40, %v2058_v45  ;;  %2134 = vmatprep.mubr.f32.mxu1 %v11430_v41  ;;  %2026 = vmatprep.mubr.f32.mxu0 %v11430_v41 }
 0x37f   : > { %2100 = vmatprep.subr.mxu1 %v2061_v34 }
 0x380   : > { %2101 = vmatpush1.msra.mxu1 %v2060_v19  ;;  %v9221_v19 = vld [vmem:[%s14941_s3 + $0x40] sm:$0xff] }
 0x381   : > { %v2388_v30 = vpop.permute.xlu1 %2387  ;;  %9215 = vmatmul.mubr.msk.f32.vlgmr.msra.gmra.mxu1 %vm15046_vm3, %v9213_v21  ;;  %2310 = vmatprep.subr.mxu1 %v2270_v10  ;;  %v2176_v3 = vpop.permute.xlu0 %2175  ;;  %v9217_v21 = vld [vmem:[%s14941_s3 + $0x30] sm:$0xff] }
 0x382   : > { %9212 = vmatmul.mubr.msk.f32.gmra.mxu0 %vm15046_vm3, %v1820_v22  ;;  %2311 = vmatpush1.msra.mxu1 %v2269_v44 }
 0x383   : > { %2140 = vmatprep.mubr.f32.mxu1 %v11430_v41  ;;  %2252 = vmatprep.mubr.f32.mxu0 %v11430_v41 }
 0x385   : > { %v2174_v40 = vpop.permute.xlu1 %2173  ;;  %9216 = vmatmul.mubr.msk.f32.gmra.mxu1 %vm15046_vm3, %v9214_v47  ;;  %v2386_v36 = vpop.permute.xlu0 %2385 }
 0x386   : > { %v2179_v45 = vsel %vm15050_vm2, %v2174_v40, %v2176_v3  ;;  %v2178_v34 = vsel %vm15050_vm2, %v2172_v25, %v2174_v40  ;;  %2344 = vmatprep.mubr.f32.mxu1 %v11430_v41  ;;  %v2390_v10 = vsel %vm2157_vm15, %v2386_v36, %v2388_v30  ;;  %v9218_v3 = vld [vmem:[%s14941_s3 + $0x38] sm:$0xff]  ;;  %v9222_v30 = vld [vmem:[%s14941_s3 + $0x48] sm:$0xff] }
 0x387   : > { %2218 = vmatprep.subr.mxu0 %v2179_v45 }
 0x388   : > { %2219 = vmatpush1.msra.mxu0 %v2178_v34  ;;  %v9225_v34 = vld [vmem:[%s14941_s3 + $0x50] sm:$0xff] }
 0x389   : > { %v2620_v22 = vpop.permute.xlu1 %2619  ;;  %9219 = vmatmul.mubr.msk.f32.vlgmr.msra.gmra.mxu0 %vm15046_vm3, %v9217_v21  ;;  %2429 = vmatprep.subr.mxu0 %v2390_v10  ;;  %v2384_v44 = vpop.permute.xlu0 %2383 }
 0x38a   : > { %v2389_v25 = vsel %vm2157_vm15, %v2384_v44, %v2386_v36  ;;  %9223 = vmatmul.mubr.msk.f32.vlgmr.msra.gmra.mxu1 %vm15046_vm3, %v9221_v19  ;;  %2258 = vmatprep.mubr.f32.mxu0 %v11430_v41  ;;  %v9226_v44 = vld [vmem:[%s14941_s3 + $0x58] sm:$0xff] }
 0x38b   : > { %2430 = vmatpush1.msra.mxu0 %v2389_v25  ;;  %2350 = vmatprep.mubr.f32.mxu1 %v11430_v41 }
 0x38d   : > { %v2502_v47 = vpop.permute.xlu1 %2501  ;;  %9220 = vmatmul.mubr.msk.f32.gmra.mxu0 %vm15046_vm3, %v9218_v3  ;;  %v2618_v40 = vpop.permute.xlu0 %2617 }
 0x38e   : > { %9224 = vmatmul.mubr.msk.f32.gmra.mxu1 %vm15046_vm3, %v9222_v30  ;;  %v2506_v36 = vsel %vm15047_vm1, %v2502_v47, %v2504_v7  ;;  %v2622_v45 = vsel %vm1827_vm7, %v2618_v40, %v2620_v22  ;;  %2463 = vmatprep.mubr.f32.mxu0 %v11430_v41  ;;  %v9229_v7 = vld [vmem:[%s14941_s3 + $0x60] sm:$0xff]  ;;  %v9230_v30 = vld [vmem:[%s14941_s3 + $0x68] sm:$0xff] }
 0x38f   : > { %2545 = vmatprep.subr.mxu1 %v2506_v36  ;;  %2661 = vmatprep.subr.mxu0 %v2622_v45  ;;  %v9237_v45 = vld [vmem:[%s14941_s3 + $0x80] sm:$0xff] }
 0x390   : > { %2579 = vmatprep.mubr.f32.mxu1 %v11430_v41 }
 0x391   : > { %v2500_v21 = vpop.permute.xlu1 %2499  ;;  %9227 = vmatmul.mubr.msk.f32.vlgmr.msra.gmra.mxu0 %vm15046_vm3, %v9225_v34  ;;  %v2616_v19 = vpop.permute.xlu0 %2615 }
 0x392   : > { %v2505_v10 = vsel %vm15047_vm1, %v2500_v21, %v2502_v47  ;;  %v2621_v22 = vsel %vm1827_vm7, %v2616_v19, %v2618_v40  ;;  %2469 = vmatprep.mubr.f32.mxu0 %v11430_v41  ;;  %v9233_v40 = vld [vmem:[%s14941_s3 + $0x70] sm:$0xff]  ;;  %v9234_v21 = vld [vmem:[%s14941_s3 + $0x78] sm:$0xff]  ;;  %v9238_v19 = vld [vmem:[%s14941_s3 + $0x88] sm:$0xff] }
 0x393   : > { %2546 = vmatpush1.msra.mxu1 %v2505_v10  ;;  %2662 = vmatpush1.msra.mxu0 %v2621_v22 }
 0x394   : > { %9231 = vmatmul.mubr.msk.f32.vlgmr.msra.gmra.mxu1 %vm15046_vm3, %v9229_v7 }
 0x395   : > { %v2734_v25 = vpop.permute.xlu1 %2733  ;;  %9228 = vmatmul.mubr.msk.f32.gmra.mxu0 %vm15046_vm3, %v9226_v44  ;;  %v2736_v3 = vpop.permute.xlu0 %2735  ;;  %2585 = vmatprep.mubr.f32.mxu1 %v11430_v41 }
 0x396   : > { %v2738_v47 = vsel %vm15052_vm11, %v2734_v25, %v2736_v3  ;;  %2695 = vmatprep.mubr.f32.mxu0 %v11430_v41 }
 0x397   : > { %2777 = vmatprep.subr.mxu1 %v2738_v47 }
 0x398   : > { %9232 = vmatmul.mubr.msk.f32.gmra.mxu1 %vm15046_vm3, %v9230_v30 }
 0x399   : > { %v2732_v36 = vpop.permute.xlu1 %2731  ;;  %9235 = vmatmul.mubr.msk.f32.vlgmr.msra.gmra.mxu0 %vm15046_vm3, %v9233_v40  ;;  %2811 = vmatprep.mubr.f32.mxu1 %v11430_v41 }
 0x39a   : > { %v2737_v34 = vsel %vm15052_vm11, %v2732_v36, %v2734_v25  ;;  %2701 = vmatprep.mubr.f32.mxu0 %v11430_v41 }
 0x39b   : > { %2778 = vmatpush1.msra.mxu1 %v2737_v34 }
 0x39c   : > { %9239 = vmatmul.mubr.msk.f32.vlgmr.msra.gmra.mxu1 %vm15046_vm3, %v9237_v45 }
 0x39d   : > { %9236 = vmatmul.mubr.msk.f32.gmra.mxu0 %vm15046_vm3, %v9234_v21  ;;  %2817 = vmatprep.mubr.f32.mxu1 %v11430_v41 }
 0x3a0   : > { %9240 = vmatmul.mubr.msk.f32.gmra.mxu1 %vm15046_vm3, %v9238_v19 }
 0x3a2   : > { %v11557_v7 = vpop.permute.xlu0 %2830 }
 0x3a6   : > { %v11559_v10 = vpop.permute.xlu0 %2882 }
 0x3a7   : > { %v2906_v22 = vmax.f32 %v11430_v41, %v11559_v10 }
 0x3a9   : > { %2920 = vrot.lane.b32.xlu0 %v2906_v22, %s10688_s24 }
 0x439   : > { %v1925_v44 = vpop.f32.mrf.mxu1 }
 0x43b   : > { %v1927_v25 = vpop.f32.mrf.mxu1 }
 0x43d   : > { %v1931_v3 = vpop.f32.mrf.mxu1  ;;  %v2022_v30 = vpop.f32.mrf.mxu0 }
 0x43e   : > { %v2023_v27 = vadd.f32 %v2022_v30, %v1925_v44 }
 0x43f   : > { %v1933_v47 = vpop.f32.mrf.mxu1  ;;  %v2024_v40 = vpop.f32.mrf.mxu0 }
 0x440   : > { %v2025_v15 = vadd.f32 %v2024_v40, %v1927_v25 }
 0x441   : > { %v2136_v36 = vpop.f32.mrf.mxu1 }
 0x442   : > { %v2028_v45 = vpop.f32.mrf.mxu0  ;;  %v2147_v18 = vadd.f32 %v2136_v36, %v2023_v27 }
 0x443   : > { %v2138_v34 = vpop.f32.mrf.mxu1  ;;  %v2029_v16 = vadd.f32 %v2028_v45, %v1931_v3 }
 0x444   : > { %v2030_v19 = vpop.f32.mrf.mxu0  ;;  %v2148_v28 = vadd.f32 %v2138_v34, %v2025_v15 }
 0x445   : > { %v2142_v21 = vpop.f32.mrf.mxu1  ;;  %v2031_v48 = vadd.f32 %v2030_v19, %v1933_v47 }
 0x446   : > { %v2149_v55 = vadd.f32 %v2142_v21, %v2029_v16 }
 0x447   : > { %v2144_v62 = vpop.f32.mrf.mxu1 }
 0x448   : > { %v2150_v49 = vadd.f32 %v2144_v62, %v2031_v48 }
 0x449   : > { %v2254_v57 = vpop.f32.mrf.mxu0 }
 0x44a   : > { %v2346_v37 = vpop.f32.mrf.mxu1  ;;  %v2265_v53 = vadd.f32 %v2254_v57, %v2147_v18 }
 0x44b   : > { %v2256_v33 = vpop.f32.mrf.mxu0 }
 0x44c   : > { %v2348_v12 = vpop.f32.mrf.mxu1  ;;  %v2266_v63 = vadd.f32 %v2256_v33, %v2148_v28  ;;  %v2357_v50 = vadd.f32 %v2346_v37, %v2265_v53 }
 0x44d   : > { %v2260_v22 = vpop.f32.mrf.mxu0 }
 0x44e   : > { %v2352_v59 = vpop.f32.mrf.mxu1  ;;  %v2267_v23 = vadd.f32 %v2260_v22, %v2149_v55  ;;  %v2358_v30 = vadd.f32 %v2348_v12, %v2266_v63 }
 0x44f   : > { %v2262_v56 = vpop.f32.mrf.mxu0 }
 0x450   : > { %v2354_v42 = vpop.f32.mrf.mxu1  ;;  %v2268_v43 = vadd.f32 %v2262_v56, %v2150_v49  ;;  %v2359_v36 = vadd.f32 %v2352_v59, %v2267_v23 }
 0x451   : > { %v2465_v51 = vpop.f32.mrf.mxu0 }
 0x452   : > { %v2476_v25 = vadd.f32 %v2465_v51, %v2357_v50  ;;  %v2360_v18 = vadd.f32 %v2354_v42, %v2268_v43 }
 0x453   : > { %v2467_v44 = vpop.f32.mrf.mxu0 }
 0x454   : > { %v2581_v27 = vpop.f32.mrf.mxu1  ;;  %v2477_v3 = vadd.f32 %v2467_v44, %v2358_v30  ;;  %v2836_v44 = vpop.permute.xlu0 %2835 }
 0x455   : > { %v2471_v40 = vpop.f32.mrf.mxu0  ;;  %v2592_v45 = vadd.f32 %v2581_v27, %v2476_v25 }
 0x456   : > { %v2583_v15 = vpop.f32.mrf.mxu1  ;;  %v2478_v47 = vadd.f32 %v2471_v40, %v2359_v36 }
 0x457   : > { %v2473_v57 = vpop.f32.mrf.mxu0  ;;  %v2593_v33 = vadd.f32 %v2583_v15, %v2477_v3  ;;  %v3244_v15 = vld [vmem:[%s14943_s5 + $0xf8] sm:$0xff] }
 0x458   : > { %v2587_v16 = vpop.f32.mrf.mxu1  ;;  %v2479_v48 = vadd.f32 %v2473_v57, %v2360_v18  ;;  %v3243_v57 = vld [vmem:[%s14943_s5 + $0xf0] sm:$0xff]  ;;  %9941 = vmatprep.subr.mxu0 %v3244_v15  ;;  %v9292_v15 = vld [vmem:[%s14943_s5 + $0x1c8] sm:$0xff] }
 0x459   : > { %v2697_v28 = vpop.f32.mrf.mxu0  ;;  %v2594_v55 = vadd.f32 %v2587_v16, %v2478_v47  ;;  %v3227_v47 = vld [vmem:[%s14943_s5 + $0x70] sm:$0xff]  ;;  %v9282_v16 = vld [vmem:[%s14943_s5 + $0x178] sm:$0xff] }
 0x45a   : > { %v2708_v53 = vadd.f32 %v2697_v28, %v2592_v45  ;;  %v2589_v62 = vpop.f32.mrf.mxu1  ;;  %v9298_v45 = vld [vmem:[%s14943_s5 + $0x1f8] sm:$0xff]  ;;  %v3242_v28 = vld [vmem:[%s14943_s5 + $0xe8] sm:$0xff] }
 0x45b   : > { %v2699_v37 = vpop.f32.mrf.mxu0  ;;  %v2595_v63 = vadd.f32 %v2589_v62, %v2479_v48  ;;  %9976 = vmatprep.subr.mxu1 %v9298_v45  ;;  %v3236_v45 = vld [vmem:[%s14943_s5 + $0xb8] sm:$0xff] }
 0x45c   : > { %v2709_v12 = vadd.f32 %v2699_v37, %v2593_v33  ;;  %v2813_v56 = vpop.f32.mrf.mxu1  ;;  %v9297_v33 = vld [vmem:[%s14943_s5 + $0x1f0] sm:$0xff]  ;;  %9977 = vmatpush3.msra.mxu1 %v9282_v16  ;;  %v3226_v37 = vld [vmem:[%s14943_s5 + $0x68] sm:$0xff]  ;;  %v3220_v16 = vld [vmem:[%s14943_s5 + $0x38] sm:$0xff] }
 0x45d   : > { %v2824_v49 = vadd.f32 %v2813_v56, %v2708_v53  ;;  %v2703_v51 = vpop.f32.mrf.mxu0  ;;  %9978 = vmatprep.subr.mxu1 %v9297_v33  ;;  %v3241_v56 = vld [vmem:[%s14943_s5 + $0xe0] sm:$0xff]  ;;  %v3235_v33 = vld [vmem:[%s14943_s5 + $0xb0] sm:$0xff] }
 0x45e   : > { %v2710_v59 = vadd.f32 %v2703_v51, %v2594_v55  ;;  %v2815_v50 = vpop.f32.mrf.mxu1  ;;  %v9281_v55 = vld [vmem:[%s14943_s5 + $0x170] sm:$0xff]  ;;  %v3225_v51 = vld [vmem:[%s14943_s5 + $0x60] sm:$0xff] }
 0x45f   : > { %v2838_v23 = vadd.f32 %v11557_v7, %v2824_v49  ;;  %v2825_v42 = vadd.f32 %v2815_v50, %v2709_v12  ;;  %v2705_v43 = vpop.f32.mrf.mxu0  ;;  %v9296_v49 = vld [vmem:[%s14943_s5 + $0x1e8] sm:$0xff]  ;;  %9979 = vmatpush3.msra.mxu1 %v9281_v55  ;;  %v3219_v55 = vld [vmem:[%s14943_s5 + $0x30] sm:$0xff] }
 0x460   : > { %v2711_v34 = vadd.f32 %v2705_v43, %v2595_v63  ;;  %v2819_v21 = vpop.f32.mrf.mxu1  ;;  %v9280_v63 = vld [vmem:[%s14943_s5 + $0x168] sm:$0xff]  ;;  %9980 = vmatprep.subr.mxu1 %v9296_v49  ;;  %v9279_v43 = vld [vmem:[%s14943_s5 + $0x160] sm:$0xff] }
 0x461   : > { %v2839_v19 = vadd.f32 %v11557_v7, %v2825_v42  ;;  %v2826_v22 = vadd.f32 %v2819_v21, %v2710_v59  ;;  %vm2842_vm6 = vcmp.gt.f32.partialorder %v2838_v23, 0.0  ;;  %v3228_v7 = vld [vmem:[%s14943_s5 + $0x78] sm:$0xff]  ;;  %9981 = vmatpush3.msra.mxu1 %v9280_v63  ;;  %v3234_v49 = vld [vmem:[%s14943_s5 + $0xa8] sm:$0xff] }
 0x462   : > { %v2821_v30 = vpop.f32.mrf.mxu1  ;;  %v11582_v18 = vsel %vm2842_vm6, 1.0, %v11430_v41  ;;  %9942 = vmatpush3.msra.mxu0 %v3228_v7  ;;  %v3240_v59 = vld [vmem:[%s14943_s5 + $0xd8] sm:$0xff]  ;;  %v3221_v7 = vld [vmem:[%s14943_s5 + $0x40] sm:$0xff]  ;;  %v3218_v63 = vld [vmem:[%s14943_s5 + $0x28] sm:$0xff]  ;;  %vm5032_vm6 = vcmask 1041408  }
 0x463   : > { %vm2843_vm12 = vcmp.gt.f32.partialorder %v2839_v19, 0.0  ;;  %v2840_v25 = vadd.f32 %v2836_v44, %v2826_v22  ;;  %v2827_v27 = vadd.f32 %v2821_v30, %v2711_v34  ;;  %9943 = vmatprep.subr.mxu0 %v3243_v57  ;;  %v11605_v53 = vmul.f32 %v11582_v18, %v2838_v23  ;;  %v9295_v23 = vld [vmem:[%s14943_s5 + $0x1e0] sm:$0xff]  ;;  %v3224_v42 = vld [vmem:[%s14943_s5 + $0x58] sm:$0xff]  ;;  %v3239_v34 = vld [vmem:[%s14943_s5 + $0xd0] sm:$0xff] }
 0x464   : > { %v11567_v40 = vsel %vm2843_vm12, 1.0, %v11430_v41  ;;  %9944 = vmatpush3.msra.mxu0 %v3227_v47  ;;  %v9294_v21 = vld [vmem:[%s14943_s5 + $0x1d8] sm:$0xff]  ;;  %9982 = vmatprep.subr.mxu1 %v9295_v23  ;;  %v9293_v30 = vld [vmem:[%s14943_s5 + $0x1d0] sm:$0xff]  ;;  %v9276_v57 = vld [vmem:[%s14943_s5 + $0x148] sm:$0xff] }
 0x465   : > { %v11570_v36 = vmul.f32 %v11567_v40, %v2839_v19  ;;  %v2841_v3 = vadd.f32 %v2836_v44, %v2827_v27  ;;  %vm2844_vm10 = vcmp.gt.f32.partialorder %v2840_v25, 0.0  ;;  %9945 = vmatprep.subr.mxu0 %v3242_v28  ;;  %v3223_v19 = vld [vmem:[%s14943_s5 + $0x50] sm:$0xff]  ;;  %v9278_v22 = vld [vmem:[%s14943_s5 + $0x158] sm:$0xff]  ;;  %v3238_v44 = vld [vmem:[%s14943_s5 + $0xc8] sm:$0xff]  ;;  %9983 = vmatpush3.msra.mxu1 %v9279_v43 }
 0x466   : > { %v11617_v12 = vsel %vm2844_vm10, 1.0, %v11430_v41  ;;  %9946 = vmatpush3.msra.mxu0 %v3226_v37  ;;  %9984 = vmatprep.subr.mxu1 %v9294_v21  ;;  %v9277_v27 = vld [vmem:[%s14943_s5 + $0x150] sm:$0xff]  ;;  %v9291_v47 = vld [vmem:[%s14943_s5 + $0x1c0] sm:$0xff]  ;;  %v9290_v37 = vld [vmem:[%s14943_s5 + $0x1b8] sm:$0xff] }
 0x467   : > { %vm2845_vm14 = vcmp.gt.f32.partialorder %v2841_v3, 0.0  ;;  %2880 = vrot.lane.b32.xlu1 %v11570_v36, %s10691_s30  ;;  %15147 = vst [vmem:[#allocation53_spill] sm:$0xff] %v11617_v12  ;;  %v11639_v50 = vmul.f32 %v11617_v12, %v2840_v25  ;;  %9947 = vmatprep.subr.mxu0 %v3241_v56  ;;  %v3222_v25 = vld [vmem:[%s14943_s5 + $0x48] sm:$0xff]  ;;  %v9275_v28 = vld [vmem:[%s14943_s5 + $0x140] sm:$0xff]  ;;  %v9274_v56 = vld [vmem:[%s14943_s5 + $0x138] sm:$0xff] }
 0x468   : > { %v11602_v48 = vsel %vm2845_vm14, 1.0, %v11430_v41  ;;  %9948 = vmatpush3.msra.mxu0 %v3225_v51  ;;  %9985 = vmatpush3.msra.mxu1 %v9278_v22  ;;  %v9289_v51 = vld [vmem:[%s14943_s5 + $0x1b0] sm:$0xff]  ;;  %v3233_v23 = vld [vmem:[%s14943_s5 + $0xa0] sm:$0xff]  ;;  %v3232_v21 = vld [vmem:[%s14943_s5 + $0x98] sm:$0xff]  ;;  %vm5028_vm14 = vcmask 80896  }
 0x469   : > { %15146 = vst [vmem:[#allocation52_spill] sm:$0xff] %v11602_v48  ;;  %v11608_v62 = vmul.f32 %v11602_v48, %v2841_v3  ;;  %9949 = vmatprep.subr.mxu0 %v3240_v59  ;;  %v3237_v3 = vld [vmem:[%s14943_s5 + $0xc0] sm:$0xff]  ;;  %9986 = vmatprep.subr.mxu1 %v9293_v30  ;;  %v9273_v59 = vld [vmem:[%s14943_s5 + $0x130] sm:$0xff]  ;;  %v3216_v22 = vld [vmem:[%s14943_s5 + $0x18] sm:$0xff] }
 0x46a   : > { %9950 = vmatpush3.msra.mxu0 %v3224_v42  ;;  %9987 = vmatpush3.msra.mxu1 %v9277_v27  ;;  %v9288_v42 = vld [vmem:[%s14943_s5 + $0x1a8] sm:$0xff]  ;;  %v3217_v43 = vld [vmem:[%s14943_s5 + $0x20] sm:$0xff]  ;;  %v3231_v30 = vld [vmem:[%s14943_s5 + $0x90] sm:$0xff] }
 0x46b   : > { %2878 = vrot.lane.b32.xlu1 %v11605_v53, %s10691_s30  ;;  %2886 = vrot.lane.b32.xlu0 %v11608_v62, %s10691_s30  ;;  %v3215_v27 = vld [vmem:[%s14943_s5 + $0x10] sm:$0xff] }
 0x46c   : > { %9951 = vmatprep.subr.mxu0 %v3239_v34  ;;  %9988 = vmatprep.subr.mxu1 %v9292_v15  ;;  %v9272_v34 = vld [vmem:[%s14943_s5 + $0x128] sm:$0xff] }
 0x46d   : > { %9952 = vmatpush3.msra.mxu0 %v3223_v19  ;;  %9989 = vmatpush3.msra.mxu1 %v9276_v57  ;;  %v9287_v19 = vld [vmem:[%s14943_s5 + $0x1a0] sm:$0xff]  ;;  %v3230_v15 = vld [vmem:[%s14943_s5 + $0x88] sm:$0xff] }
 0x46e   : > { %9953 = vmatprep.subr.mxu0 %v3238_v44  ;;  %9990 = vmatprep.subr.mxu1 %v9291_v47  ;;  %v9271_v44 = vld [vmem:[%s14943_s5 + $0x120] sm:$0xff]  ;;  %v3214_v57 = vld [vmem:[%s14943_s5 + $0x8] sm:$0xff] }
 0x46f   : > { %2884 = vrot.lane.b32.xlu0 %v11639_v50, %s10691_s30  ;;  %9954 = vmatpush3.msra.mxu0 %v3222_v25  ;;  %v9286_v25 = vld [vmem:[%s14943_s5 + $0x198] sm:$0xff]  ;;  %v3229_v47 = vld [vmem:[%s14943_s5 + $0x80] sm:$0xff] }
 0x470   : > { %9955 = vmatprep.subr.mxu0 %v3237_v3  ;;  %9991 = vmatpush3.msra.mxu1 %v9275_v28  ;;  %v9270_v3 = vld [vmem:[%s14943_s5 + $0x118] sm:$0xff]  ;;  %v3213_v28 = vld [vmem:[%s14943_s5] sm:$0xff] }
 0x471   : > { %9956 = vmatpush3.msra.mxu0 %v3221_v7  ;;  %9992 = vmatprep.subr.mxu1 %v9290_v37  ;;  %v9285_v7 = vld [vmem:[%s14943_s5 + $0x190] sm:$0xff]  ;;  %v9283_v37 = vld [vmem:[%s14943_s5 + $0x180] sm:$0xff] }
 0x472   : > { %9957 = vmatprep.subr.mxu0 %v3236_v45  ;;  %9993 = vmatpush3.msra.mxu1 %v9274_v56  ;;  %v9269_v45 = vld [vmem:[%s14943_s5 + $0x110] sm:$0xff]  ;;  %v9267_v56 = vld [vmem:[%s14943_s5 + $0x100] sm:$0xff] }
 0x473   : > { %9958 = vmatpush3.msra.mxu0 %v3220_v16  ;;  %9994 = vmatprep.subr.mxu1 %v9289_v51  ;;  %v9284_v16 = vld [vmem:[%s14943_s5 + $0x188] sm:$0xff]  ;;  %v9362_v51 = vld [vmem:[%s14943_s5 + $0x3f8] sm:$0xff] }
 0x474   : > { %9959 = vmatprep.subr.mxu0 %v3235_v33  ;;  %9995 = vmatpush3.msra.mxu1 %v9273_v59  ;;  %v9268_v33 = vld [vmem:[%s14943_s5 + $0x108] sm:$0xff] }
 0x475   : > { %9960 = vmatpush3.msra.mxu0 %v3219_v55  ;;  %9996 = vmatprep.subr.mxu1 %v9288_v42  ;;  %v9330_v55 = vld [vmem:[%s14943_s5 + $0x2f8] sm:$0xff] }
 0x476   : > { %9961 = vmatprep.subr.mxu0 %v3234_v49  ;;  %9997 = vmatpush3.msra.mxu1 %v9272_v34  ;;  %v2921_v34 = vpop.permute.xlu0 %2920 }
 0x477   : > { %9962 = vmatpush3.msra.mxu0 %v3218_v63  ;;  %9998 = vmatprep.subr.mxu1 %v9287_v19 }
 0x478   : > { %9963 = vmatprep.subr.mxu0 %v3233_v23  ;;  %9999 = vmatpush3.msra.mxu1 %v9271_v44 }
 0x479   : > { %9964 = vmatpush3.msra.mxu0 %v3217_v43  ;;  %10000 = vmatprep.subr.mxu1 %v9286_v25 }
 0x47a   : > { %9965 = vmatprep.subr.mxu0 %v3232_v21  ;;  %10001 = vmatpush3.msra.mxu1 %v9270_v3  ;;  %v9314_v3 = vld [vmem:[%s14943_s5 + $0x278] sm:$0xff] }
 0x47b   : > { %9966 = vmatpush3.msra.mxu0 %v3216_v22  ;;  %10002 = vmatprep.subr.mxu1 %v9285_v7 }
 0x47c   : > { %9967 = vmatprep.subr.mxu0 %v3231_v30  ;;  %10003 = vmatpush3.msra.mxu1 %v9269_v45 }
 0x47d   : > { %9968 = vmatpush3.msra.mxu0 %v3215_v27  ;;  %10004 = vmatprep.subr.mxu1 %v9284_v16  ;;  %v9346_v16 = vld [vmem:[%s14943_s5 + $0x378] sm:$0xff] }
 0x47e   : > { %9969 = vmatprep.subr.mxu0 %v3230_v15  ;;  %10005 = vmatpush3.msra.mxu1 %v9268_v33  ;;  %v9329_v15 = vld [vmem:[%s14943_s5 + $0x2f0] sm:$0xff] }
 0x47f   : > { %9970 = vmatpush3.msra.mxu0 %v3214_v57  ;;  %10006 = vmatprep.subr.mxu1 %v9283_v37  ;;  %v9328_v37 = vld [vmem:[%s14943_s5 + $0x2e8] sm:$0xff] }
 0x480   : > { %9971 = vmatprep.subr.mxu0 %v3229_v47  ;;  %10007 = vmatpush3.msra.mxu1 %v9267_v56  ;;  %v9313_v47 = vld [vmem:[%s14943_s5 + $0x270] sm:$0xff] }
 0x481   : > { %9972 = vmatpush3.msra.mxu0 %v3213_v28  ;;  %10046 = vmatprep.subr.mxu1 %v9362_v51  ;;  %v9312_v51 = vld [vmem:[%s14943_s5 + $0x268] sm:$0xff] }
 0x482   : > { %10011 = vmatprep.subr.mxu0 %v9330_v55  ;;  %v9361_v55 = vld [vmem:[%s14943_s5 + $0x3f0] sm:$0xff] }
 0x4d9   : > { %v2881_v49 = vpop.permute.xlu1 %2880 }
 0x4da   : > { %v2891_v63 = vsel %vm2157_vm15, %v2881_v49, %v11559_v10 }
 0x4db   : > { %v2899_v59 = vmax.f32 %v11570_v36, %v2891_v63  ;;  %v9345_v63 = vld [vmem:[%s14943_s5 + $0x370] sm:$0xff] }
 0x4dd   : > { %v2879_v23 = vpop.permute.xlu1 %2878  ;;  %2918 = vrot.lane.b32.xlu1 %v2899_v59, %s10688_s24  ;;  %v2887_v30 = vpop.permute.xlu0 %2886 }
 0x4de   : > { %v2890_v42 = vsel %vm2157_vm15, %v2879_v23, %v2881_v49  ;;  %v9360_v23 = vld [vmem:[%s14943_s5 + $0x3e8] sm:$0xff] }
 0x4df   : > { %v2898_v43 = vmax.f32 %v11605_v53, %v2890_v42  ;;  %v9311_v42 = vld [vmem:[%s14943_s5 + $0x260] sm:$0xff] }
 0x4e1   : > { %2916 = vrot.lane.b32.xlu1 %v2898_v43, %s10688_s24  ;;  %v2885_v56 = vpop.permute.xlu0 %2884 }
 0x4e5   : > { %2888 = vrot.lane.b32.xlu1 %v11430_v41, %s10691_s30 }
 0x54f   : > { %v2919_v21 = vpop.permute.xlu1 %2918 }
 0x550   : > { %v2929_v19 = vsel %vm1827_vm7, %v2919_v21, %v2921_v34  ;;  %v9344_v34 = vld [vmem:[%s14943_s5 + $0x368] sm:$0xff] }
 0x551   : > { %v11806_v10 = vmax.f32 %v2899_v59, %v2929_v19  ;;  %v9327_v59 = vld [vmem:[%s14943_s5 + $0x2e0] sm:$0xff] }
 0x552   : > { %v9359_v19 = vld [vmem:[%s14943_s5 + $0x3e0] sm:$0xff] }
 0x553   : > { %v2917_v22 = vpop.permute.xlu1 %2916  ;;  %3309 = vmatprep.mubr.f32.mxu0 %v11806_v10  ;;  %v3350_v44 = vrot.slane %v11806_v10, 1  ;;  %v3458_v7 = vrot.slane %v11806_v10, 2 }
 0x554   : > { %v2928_v25 = vsel %vm1827_vm7, %v2917_v22, %v2919_v21  ;;  %v9326_v21 = vld [vmem:[%s14943_s5 + $0x2d8] sm:$0xff] }
 0x555   : > { %v11811_v27 = vmax.f32 %v2898_v43, %v2928_v25  ;;  %3417 = vmatprep.mubr.f32.mxu1 %v3350_v44  ;;  %v2892_v43 = vsel %vm2157_vm15, %v2885_v56, %v2887_v30  ;;  %v9310_v22 = vld [vmem:[%s14943_s5 + $0x258] sm:$0xff]  ;;  %v9343_v44 = vld [vmem:[%s14943_s5 + $0x360] sm:$0xff]  ;;  %v9325_v25 = vld [vmem:[%s14943_s5 + $0x2d0] sm:$0xff] }
 0x556   : > { %v9322_v56 = vld [vmem:[%s14943_s5 + $0x2b8] sm:$0xff] }
 0x557   : > { %v2889_v57 = vpop.permute.xlu1 %2888  ;;  %3310 = vmatmul.mubr.f32.vlgmr.msra.gmra.mxu0 %v11811_v27  ;;  %v3349_v45 = vrot.slane %v11811_v27, 1 }
 0x558   : > { %v2893_v28 = vsel %vm2157_vm15, %v2887_v30, %v2889_v57  ;;  %v2909_v33 = vmax.f32 %v11430_v41, %v2889_v57  ;;  %10012 = vmatpush3.msra.mxu0 %v9314_v3  ;;  %3525 = vmatprep.mubr.f32.mxu0 %v3458_v7  ;;  %v3566_v41 = vrot.slane %v11806_v10, 3  ;;  %v11875_v30 = vmax.f32 %v11639_v50, %v2892_v43  ;;  %v9358_v3 = vld [vmem:[%s14943_s5 + $0x3d8] sm:$0xff]  ;;  %v9324_v57 = vld [vmem:[%s14943_s5 + $0x2c8] sm:$0xff] }
 0x559   : > { %10013 = vmatprep.subr.mxu0 %v9329_v15  ;;  %3418 = vmatmul.mubr.f32.vlgmr.msra.gmra.mxu1 %v3349_v45  ;;  %v11837_v49 = vmax.f32 %v11608_v62, %v2893_v28  ;;  %v9309_v15 = vld [vmem:[%s14943_s5 + $0x250] sm:$0xff]  ;;  %v9342_v7 = vld [vmem:[%s14943_s5 + $0x358] sm:$0xff]  ;;  %v9323_v28 = vld [vmem:[%s14943_s5 + $0x2c0] sm:$0xff] }
 0x55a   : > { %10014 = vmatpush3.msra.mxu0 %v9313_v47  ;;  %10047 = vmatpush3.msra.mxu1 %v9346_v16  ;;  %v9357_v45 = vld [vmem:[%s14943_s5 + $0x3d0] sm:$0xff]  ;;  %v9308_v47 = vld [vmem:[%s14943_s5 + $0x248] sm:$0xff]  ;;  %v9338_v43 = vld [vmem:[%s14943_s5 + $0x338] sm:$0xff] }
 0x55b   : > { %10015 = vmatprep.subr.mxu0 %v9328_v37  ;;  %10048 = vmatprep.subr.mxu1 %v9361_v55  ;;  %v9341_v16 = vld [vmem:[%s14943_s5 + $0x350] sm:$0xff]  ;;  %v9307_v37 = vld [vmem:[%s14943_s5 + $0x240] sm:$0xff]  ;;  %v9340_v55 = vld [vmem:[%s14943_s5 + $0x348] sm:$0xff] }
 0x55c   : > { %3633 = vmatprep.mubr.f32.mxu1 %v3566_v41  ;;  %2926 = vrot.lane.b32.xlu0 %v2909_v33, %s10688_s24  ;;  %v9356_v33 = vld [vmem:[%s14943_s5 + $0x3c8] sm:$0xff]  ;;  %v9355_v41 = vld [vmem:[%s14943_s5 + $0x3c0] sm:$0xff] }
 0x55d   : > { %10016 = vmatpush3.msra.mxu0 %v9312_v51  ;;  %10049 = vmatpush3.msra.mxu1 %v9345_v63  ;;  %v9306_v51 = vld [vmem:[%s14943_s5 + $0x238] sm:$0xff]  ;;  %v9339_v63 = vld [vmem:[%s14943_s5 + $0x340] sm:$0xff] }
 0x55e   : > { %2924 = vrot.lane.b32.xlu1 %v11837_v49, %s10688_s24  ;;  %10017 = vmatprep.subr.mxu0 %v9327_v59  ;;  %v9321_v59 = vld [vmem:[%s14943_s5 + $0x2b0] sm:$0xff] }
 0x55f   : > { %10050 = vmatprep.subr.mxu1 %v9360_v23  ;;  %10018 = vmatpush3.msra.mxu0 %v9311_v42  ;;  %v9354_v23 = vld [vmem:[%s14943_s5 + $0x3b8] sm:$0xff]  ;;  %v9305_v42 = vld [vmem:[%s14943_s5 + $0x230] sm:$0xff] }
 0x560   : > { %10051 = vmatpush3.msra.mxu1 %v9344_v34  ;;  %10019 = vmatprep.subr.mxu0 %v9326_v21  ;;  %v9320_v34 = vld [vmem:[%s14943_s5 + $0x2a8] sm:$0xff]  ;;  %v9353_v21 = vld [vmem:[%s14943_s5 + $0x3b0] sm:$0xff] }
 0x561   : > { %10052 = vmatprep.subr.mxu1 %v9359_v19  ;;  %10020 = vmatpush3.msra.mxu0 %v9310_v22  ;;  %v9304_v19 = vld [vmem:[%s14943_s5 + $0x228] sm:$0xff]  ;;  %v9337_v22 = vld [vmem:[%s14943_s5 + $0x330] sm:$0xff] }
 0x562   : > { %10053 = vmatpush3.msra.mxu1 %v9343_v44  ;;  %2922 = vrot.lane.b32.xlu1 %v11875_v30, %s10688_s24  ;;  %v9319_v44 = vld [vmem:[%s14943_s5 + $0x2a0] sm:$0xff] }
 0x563   : > { %10021 = vmatprep.subr.mxu0 %v9325_v25  ;;  %10054 = vmatprep.subr.mxu1 %v9358_v3  ;;  %v9352_v25 = vld [vmem:[%s14943_s5 + $0x3a8] sm:$0xff]  ;;  %v9303_v3 = vld [vmem:[%s14943_s5 + $0x220] sm:$0xff] }
 0x564   : > { %10022 = vmatpush3.msra.mxu0 %v9309_v15  ;;  %10055 = vmatpush3.msra.mxu1 %v9342_v7  ;;  %v9336_v15 = vld [vmem:[%s14943_s5 + $0x328] sm:$0xff]  ;;  %v9318_v7 = vld [vmem:[%s14943_s5 + $0x298] sm:$0xff] }
 0x565   : > { %10023 = vmatprep.subr.mxu0 %v9324_v57  ;;  %10056 = vmatprep.subr.mxu1 %v9357_v45  ;;  %v9351_v57 = vld [vmem:[%s14943_s5 + $0x3a0] sm:$0xff]  ;;  %v9302_v45 = vld [vmem:[%s14943_s5 + $0x218] sm:$0xff] }
 0x566   : > { %10024 = vmatpush3.msra.mxu0 %v9308_v47  ;;  %10057 = vmatpush3.msra.mxu1 %v9341_v16  ;;  %v9335_v47 = vld [vmem:[%s14943_s5 + $0x320] sm:$0xff]  ;;  %v9317_v16 = vld [vmem:[%s14943_s5 + $0x290] sm:$0xff] }
 0x567   : > { %10025 = vmatprep.subr.mxu0 %v9323_v28  ;;  %10058 = vmatprep.subr.mxu1 %v9356_v33  ;;  %v9350_v28 = vld [vmem:[%s14943_s5 + $0x398] sm:$0xff]  ;;  %v9301_v33 = vld [vmem:[%s14943_s5 + $0x210] sm:$0xff] }
 0x568   : > { %10026 = vmatpush3.msra.mxu0 %v9307_v37  ;;  %10059 = vmatpush3.msra.mxu1 %v9340_v55  ;;  %v9334_v37 = vld [vmem:[%s14943_s5 + $0x318] sm:$0xff]  ;;  %v9316_v55 = vld [vmem:[%s14943_s5 + $0x288] sm:$0xff] }
 0x569   : > { %10027 = vmatprep.subr.mxu0 %v9322_v56  ;;  %10060 = vmatprep.subr.mxu1 %v9355_v41  ;;  %v9349_v56 = vld [vmem:[%s14943_s5 + $0x390] sm:$0xff]  ;;  %v9300_v41 = vld [vmem:[%s14943_s5 + $0x208] sm:$0xff] }
 0x56a   : > { %10028 = vmatpush3.msra.mxu0 %v9306_v51  ;;  %10061 = vmatpush3.msra.mxu1 %v9339_v63  ;;  %v9333_v51 = vld [vmem:[%s14943_s5 + $0x310] sm:$0xff]  ;;  %v9315_v63 = vld [vmem:[%s14943_s5 + $0x280] sm:$0xff] }
 0x56b   : > { %10029 = vmatprep.subr.mxu0 %v9321_v59  ;;  %10062 = vmatprep.subr.mxu1 %v9354_v23  ;;  %v9348_v59 = vld [vmem:[%s14943_s5 + $0x388] sm:$0xff]  ;;  %v9299_v23 = vld [vmem:[%s14943_s5 + $0x200] sm:$0xff] }
 0x56c   : > { %10030 = vmatpush3.msra.mxu0 %v9305_v42  ;;  %10063 = vmatpush3.msra.mxu1 %v9338_v43  ;;  %v9332_v42 = vld [vmem:[%s14943_s5 + $0x308] sm:$0xff]  ;;  %v9347_v43 = vld [vmem:[%s14943_s5 + $0x380] sm:$0xff] }
 0x56d   : > { %10031 = vmatprep.subr.mxu0 %v9320_v34  ;;  %10064 = vmatprep.subr.mxu1 %v9353_v21  ;;  %v3457_v34 = vrot.slane %v11811_v27, 2  ;;  %v9394_v21 = vld [vmem:[%s14943_s5 + $0x4f8] sm:$0xff] }
 0x56e   : > { %10032 = vmatpush3.msra.mxu0 %v9304_v19  ;;  %10065 = vmatpush3.msra.mxu1 %v9337_v22  ;;  %v9331_v19 = vld [vmem:[%s14943_s5 + $0x300] sm:$0xff]  ;;  %v9378_v22 = vld [vmem:[%s14943_s5 + $0x478] sm:$0xff] }
 0x56f   : > { %10033 = vmatprep.subr.mxu0 %v9319_v44  ;;  %10066 = vmatprep.subr.mxu1 %v9352_v25  ;;  %v3674_v44 = vrot.slane %v11806_v10, 4  ;;  %v9393_v25 = vld [vmem:[%s14943_s5 + $0x4f0] sm:$0xff] }
 0x570   : > { %10034 = vmatpush3.msra.mxu0 %v9303_v3  ;;  %10067 = vmatpush3.msra.mxu1 %v9336_v15  ;;  %v3565_v3 = vrot.slane %v11811_v27, 3  ;;  %v9426_v15 = vld [vmem:[%s14943_s5 + $0x5f8] sm:$0xff] }
 0x571   : > { %10035 = vmatprep.subr.mxu0 %v9318_v7  ;;  %10068 = vmatprep.subr.mxu1 %v9351_v57  ;;  %v9377_v7 = vld [vmem:[%s14943_s5 + $0x470] sm:$0xff]  ;;  %v9410_v57 = vld [vmem:[%s14943_s5 + $0x578] sm:$0xff] }
 0x572   : > { %10036 = vmatpush3.msra.mxu0 %v9302_v45  ;;  %10069 = vmatpush3.msra.mxu1 %v9335_v47  ;;  %v3782_v45 = vrot.slane %v11806_v10, 5  ;;  %v9392_v47 = vld [vmem:[%s14943_s5 + $0x4e8] sm:$0xff] }
 0x573   : > { %10037 = vmatprep.subr.mxu0 %v9317_v16  ;;  %10070 = vmatprep.subr.mxu1 %v9350_v28  ;;  %v9425_v16 = vld [vmem:[%s14943_s5 + $0x5f0] sm:$0xff]  ;;  %v9376_v28 = vld [vmem:[%s14943_s5 + $0x468] sm:$0xff] }
 0x574   : > { %10038 = vmatpush3.msra.mxu0 %v9301_v33  ;;  %10071 = vmatpush3.msra.mxu1 %v9334_v37  ;;  %v9409_v33 = vld [vmem:[%s14943_s5 + $0x570] sm:$0xff]  ;;  %v9391_v37 = vld [vmem:[%s14943_s5 + $0x4e0] sm:$0xff] }
 0x575   : > { %10039 = vmatprep.subr.mxu0 %v9316_v55  ;;  %10072 = vmatprep.subr.mxu1 %v9349_v56  ;;  %v9424_v55 = vld [vmem:[%s14943_s5 + $0x5e8] sm:$0xff]  ;;  %v9375_v56 = vld [vmem:[%s14943_s5 + $0x460] sm:$0xff] }
 0x576   : > { %10040 = vmatpush3.msra.mxu0 %v9300_v41  ;;  %10073 = vmatpush3.msra.mxu1 %v9333_v51  ;;  %v9408_v41 = vld [vmem:[%s14943_s5 + $0x568] sm:$0xff]  ;;  %v9390_v51 = vld [vmem:[%s14943_s5 + $0x4d8] sm:$0xff] }
 0x577   : > { %10041 = vmatprep.subr.mxu0 %v9315_v63  ;;  %10074 = vmatprep.subr.mxu1 %v9348_v59  ;;  %v9423_v63 = vld [vmem:[%s14943_s5 + $0x5e0] sm:$0xff]  ;;  %v9374_v59 = vld [vmem:[%s14943_s5 + $0x458] sm:$0xff] }
 0x578   : > { %10042 = vmatpush3.msra.mxu0 %v9299_v23  ;;  %10075 = vmatpush3.msra.mxu1 %v9332_v42  ;;  %v9407_v23 = vld [vmem:[%s14943_s5 + $0x560] sm:$0xff]  ;;  %v9389_v42 = vld [vmem:[%s14943_s5 + $0x4d0] sm:$0xff] }
 0x579   : > { %3526 = vmatmul.mubr.f32.vlgmr.msra.gmra.mxu0 %v3457_v34  ;;  %10076 = vmatprep.subr.mxu1 %v9347_v43  ;;  %v9422_v43 = vld [vmem:[%s14943_s5 + $0x5d8] sm:$0xff]  ;;  %v9373_v34 = vld [vmem:[%s14943_s5 + $0x450] sm:$0xff] }
 0x57a   : > { %10081 = vmatprep.subr.mxu0 %v9394_v21  ;;  %10077 = vmatpush3.msra.mxu1 %v9331_v19  ;;  %v9406_v21 = vld [vmem:[%s14943_s5 + $0x558] sm:$0xff]  ;;  %v9388_v19 = vld [vmem:[%s14943_s5 + $0x4c8] sm:$0xff] }
 0x57b   : > { %10082 = vmatpush3.msra.mxu0 %v9378_v22  ;;  %3741 = vmatprep.mubr.f32.mxu0 %v3674_v44  ;;  %v9421_v22 = vld [vmem:[%s14943_s5 + $0x5d0] sm:$0xff]  ;;  %v9372_v44 = vld [vmem:[%s14943_s5 + $0x448] sm:$0xff] }
 0x57c   : > { %3634 = vmatmul.mubr.f32.vlgmr.msra.gmra.mxu1 %v3565_v3  ;;  %10083 = vmatprep.subr.mxu0 %v9393_v25  ;;  %v9405_v25 = vld [vmem:[%s14943_s5 + $0x550] sm:$0xff]  ;;  %v9387_v3 = vld [vmem:[%s14943_s5 + $0x4c0] sm:$0xff] }
 0x57d   : > { %10116 = vmatprep.subr.mxu1 %v9426_v15  ;;  %10084 = vmatpush3.msra.mxu0 %v9377_v7  ;;  %v9420_v15 = vld [vmem:[%s14943_s5 + $0x5c8] sm:$0xff]  ;;  %v9371_v7 = vld [vmem:[%s14943_s5 + $0x440] sm:$0xff] }
 0x57e   : > { %10117 = vmatpush3.msra.mxu1 %v9410_v57  ;;  %3849 = vmatprep.mubr.f32.mxu1 %v3782_v45  ;;  %v9404_v57 = vld [vmem:[%s14943_s5 + $0x548] sm:$0xff]  ;;  %v9386_v45 = vld [vmem:[%s14943_s5 + $0x4b8] sm:$0xff] }
 0x57f   : > { %10085 = vmatprep.subr.mxu0 %v9392_v47  ;;  %10118 = vmatprep.subr.mxu1 %v9425_v16  ;;  %v9419_v47 = vld [vmem:[%s14943_s5 + $0x5c0] sm:$0xff]  ;;  %v9370_v16 = vld [vmem:[%s14943_s5 + $0x438] sm:$0xff] }
 0x580   : > { %10086 = vmatpush3.msra.mxu0 %v9376_v28  ;;  %10119 = vmatpush3.msra.mxu1 %v9409_v33  ;;  %v9403_v28 = vld [vmem:[%s14943_s5 + $0x540] sm:$0xff]  ;;  %v9385_v33 = vld [vmem:[%s14943_s5 + $0x4b0] sm:$0xff] }
 0x581   : > { %10087 = vmatprep.subr.mxu0 %v9391_v37  ;;  %10120 = vmatprep.subr.mxu1 %v9424_v55  ;;  %v9418_v37 = vld [vmem:[%s14943_s5 + $0x5b8] sm:$0xff]  ;;  %v9369_v55 = vld [vmem:[%s14943_s5 + $0x430] sm:$0xff] }
 0x582   : > { %10088 = vmatpush3.msra.mxu0 %v9375_v56  ;;  %10121 = vmatpush3.msra.mxu1 %v9408_v41  ;;  %v9402_v56 = vld [vmem:[%s14943_s5 + $0x538] sm:$0xff]  ;;  %v9384_v41 = vld [vmem:[%s14943_s5 + $0x4a8] sm:$0xff] }
 0x583   : > { %10089 = vmatprep.subr.mxu0 %v9390_v51  ;;  %10122 = vmatprep.subr.mxu1 %v9423_v63  ;;  %v9417_v51 = vld [vmem:[%s14943_s5 + $0x5b0] sm:$0xff]  ;;  %v9368_v63 = vld [vmem:[%s14943_s5 + $0x428] sm:$0xff] }
 0x584   : > { %10090 = vmatpush3.msra.mxu0 %v9374_v59  ;;  %10123 = vmatpush3.msra.mxu1 %v9407_v23  ;;  %v9401_v59 = vld [vmem:[%s14943_s5 + $0x530] sm:$0xff]  ;;  %v9383_v23 = vld [vmem:[%s14943_s5 + $0x4a0] sm:$0xff] }
 0x585   : > { %10091 = vmatprep.subr.mxu0 %v9389_v42  ;;  %10124 = vmatprep.subr.mxu1 %v9422_v43  ;;  %v9416_v42 = vld [vmem:[%s14943_s5 + $0x5a8] sm:$0xff]  ;;  %v9367_v43 = vld [vmem:[%s14943_s5 + $0x420] sm:$0xff] }
 0x586   : > { %10092 = vmatpush3.msra.mxu0 %v9373_v34  ;;  %10125 = vmatpush3.msra.mxu1 %v9406_v21  ;;  %v9400_v34 = vld [vmem:[%s14943_s5 + $0x528] sm:$0xff]  ;;  %v9382_v21 = vld [vmem:[%s14943_s5 + $0x498] sm:$0xff] }
 0x587   : > { %10093 = vmatprep.subr.mxu0 %v9388_v19  ;;  %10126 = vmatprep.subr.mxu1 %v9421_v22  ;;  %v9415_v19 = vld [vmem:[%s14943_s5 + $0x5a0] sm:$0xff]  ;;  %v9366_v22 = vld [vmem:[%s14943_s5 + $0x418] sm:$0xff] }
 0x588   : > { %10094 = vmatpush3.msra.mxu0 %v9372_v44  ;;  %10127 = vmatpush3.msra.mxu1 %v9405_v25  ;;  %v9399_v44 = vld [vmem:[%s14943_s5 + $0x520] sm:$0xff]  ;;  %v9381_v25 = vld [vmem:[%s14943_s5 + $0x490] sm:$0xff] }
 0x589   : > { %10095 = vmatprep.subr.mxu0 %v9387_v3  ;;  %10128 = vmatprep.subr.mxu1 %v9420_v15  ;;  %v9414_v3 = vld [vmem:[%s14943_s5 + $0x598] sm:$0xff]  ;;  %v9365_v15 = vld [vmem:[%s14943_s5 + $0x410] sm:$0xff] }
 0x58a   : > { %10096 = vmatpush3.msra.mxu0 %v9371_v7  ;;  %10129 = vmatpush3.msra.mxu1 %v9404_v57  ;;  %v9398_v7 = vld [vmem:[%s14943_s5 + $0x518] sm:$0xff]  ;;  %v9380_v57 = vld [vmem:[%s14943_s5 + $0x488] sm:$0xff] }
 0x58b   : > { %10097 = vmatprep.subr.mxu0 %v9386_v45  ;;  %10130 = vmatprep.subr.mxu1 %v9419_v47  ;;  %v9413_v45 = vld [vmem:[%s14943_s5 + $0x590] sm:$0xff]  ;;  %v9364_v47 = vld [vmem:[%s14943_s5 + $0x408] sm:$0xff] }
 0x58c   : > { %10098 = vmatpush3.msra.mxu0 %v9370_v16  ;;  %10131 = vmatpush3.msra.mxu1 %v9403_v28  ;;  %v9397_v16 = vld [vmem:[%s14943_s5 + $0x510] sm:$0xff]  ;;  %v9379_v28 = vld [vmem:[%s14943_s5 + $0x480] sm:$0xff] }
 0x58d   : > { %10099 = vmatprep.subr.mxu0 %v9385_v33  ;;  %10132 = vmatprep.subr.mxu1 %v9418_v37  ;;  %v9412_v33 = vld [vmem:[%s14943_s5 + $0x588] sm:$0xff]  ;;  %v9363_v37 = vld [vmem:[%s14943_s5 + $0x400] sm:$0xff] }
 0x58e   : > { %10100 = vmatpush3.msra.mxu0 %v9369_v55  ;;  %10133 = vmatpush3.msra.mxu1 %v9402_v56  ;;  %v9396_v55 = vld [vmem:[%s14943_s5 + $0x508] sm:$0xff]  ;;  %v9411_v56 = vld [vmem:[%s14943_s5 + $0x580] sm:$0xff] }
 0x58f   : > { %10101 = vmatprep.subr.mxu0 %v9384_v41  ;;  %10134 = vmatprep.subr.mxu1 %v9417_v51  ;;  %v3673_v41 = vrot.slane %v11811_v27, 4  ;;  %v9458_v51 = vld [vmem:[%s14943_s5 + $0x6f8] sm:$0xff] }
 0x590   : > { %10102 = vmatpush3.msra.mxu0 %v9368_v63  ;;  %10135 = vmatpush3.msra.mxu1 %v9401_v59  ;;  %v9395_v63 = vld [vmem:[%s14943_s5 + $0x500] sm:$0xff]  ;;  %v9442_v59 = vld [vmem:[%s14943_s5 + $0x678] sm:$0xff] }
 0x591   : > { %10103 = vmatprep.subr.mxu0 %v9383_v23  ;;  %10136 = vmatprep.subr.mxu1 %v9416_v42  ;;  %v3890_v23 = vrot.slane %v11806_v10, 6  ;;  %v9457_v42 = vld [vmem:[%s14943_s5 + $0x6f0] sm:$0xff] }
 0x592   : > { %10104 = vmatpush3.msra.mxu0 %v9367_v43  ;;  %10137 = vmatpush3.msra.mxu1 %v9400_v34  ;;  %v3781_v43 = vrot.slane %v11811_v27, 5  ;;  %v9490_v34 = vld [vmem:[%s14943_s5 + $0x7f8] sm:$0xff] }
 0x593   : > { %10105 = vmatprep.subr.mxu0 %v9382_v21  ;;  %10138 = vmatprep.subr.mxu1 %v9415_v19  ;;  %v9441_v21 = vld [vmem:[%s14943_s5 + $0x670] sm:$0xff]  ;;  %v9474_v19 = vld [vmem:[%s14943_s5 + $0x778] sm:$0xff] }
 0x594   : > { %10106 = vmatpush3.msra.mxu0 %v9366_v22  ;;  %10139 = vmatpush3.msra.mxu1 %v9399_v44  ;;  %v3998_v22 = vrot.slane %v11806_v10, 7  ;;  %v9456_v44 = vld [vmem:[%s14943_s5 + $0x6e8] sm:$0xff] }
 0x595   : > { %10107 = vmatprep.subr.mxu0 %v9381_v25  ;;  %10140 = vmatprep.subr.mxu1 %v9414_v3  ;;  %v9489_v25 = vld [vmem:[%s14943_s5 + $0x7f0] sm:$0xff]  ;;  %v9440_v3 = vld [vmem:[%s14943_s5 + $0x668] sm:$0xff] }
 0x596   : > { %10108 = vmatpush3.msra.mxu0 %v9365_v15  ;;  %10141 = vmatpush3.msra.mxu1 %v9398_v7  ;;  %v9473_v15 = vld [vmem:[%s14943_s5 + $0x770] sm:$0xff]  ;;  %v9455_v7 = vld [vmem:[%s14943_s5 + $0x6e0] sm:$0xff] }
 0x597   : > { %10109 = vmatprep.subr.mxu0 %v9380_v57  ;;  %10142 = vmatprep.subr.mxu1 %v9413_v45  ;;  %v9488_v57 = vld [vmem:[%s14943_s5 + $0x7e8] sm:$0xff]  ;;  %v9439_v45 = vld [vmem:[%s14943_s5 + $0x660] sm:$0xff] }
 0x598   : > { %10110 = vmatpush3.msra.mxu0 %v9364_v47  ;;  %10143 = vmatpush3.msra.mxu1 %v9397_v16  ;;  %v9472_v47 = vld [vmem:[%s14943_s5 + $0x768] sm:$0xff]  ;;  %v9454_v16 = vld [vmem:[%s14943_s5 + $0x6d8] sm:$0xff] }
 0x599   : > { %10111 = vmatprep.subr.mxu0 %v9379_v28  ;;  %10144 = vmatprep.subr.mxu1 %v9412_v33  ;;  %v9487_v28 = vld [vmem:[%s14943_s5 + $0x7e0] sm:$0xff]  ;;  %v9438_v33 = vld [vmem:[%s14943_s5 + $0x658] sm:$0xff] }
 0x59a   : > { %10112 = vmatpush3.msra.mxu0 %v9363_v37  ;;  %10145 = vmatpush3.msra.mxu1 %v9396_v55  ;;  %v9471_v37 = vld [vmem:[%s14943_s5 + $0x760] sm:$0xff]  ;;  %v9453_v55 = vld [vmem:[%s14943_s5 + $0x6d0] sm:$0xff] }
 0x59b   : > { %3742 = vmatmul.mubr.f32.vlgmr.msra.gmra.mxu0 %v3673_v41  ;;  %10146 = vmatprep.subr.mxu1 %v9411_v56  ;;  %v9486_v56 = vld [vmem:[%s14943_s5 + $0x7d8] sm:$0xff]  ;;  %v9437_v41 = vld [vmem:[%s14943_s5 + $0x650] sm:$0xff] }
 0x59c   : > { %10151 = vmatprep.subr.mxu0 %v9458_v51  ;;  %10147 = vmatpush3.msra.mxu1 %v9395_v63  ;;  %v9470_v51 = vld [vmem:[%s14943_s5 + $0x758] sm:$0xff]  ;;  %v9452_v63 = vld [vmem:[%s14943_s5 + $0x6c8] sm:$0xff] }
 0x59d   : > { %10152 = vmatpush3.msra.mxu0 %v9442_v59  ;;  %3957 = vmatprep.mubr.f32.mxu0 %v3890_v23  ;;  %v9485_v59 = vld [vmem:[%s14943_s5 + $0x7d0] sm:$0xff]  ;;  %v9436_v23 = vld [vmem:[%s14943_s5 + $0x648] sm:$0xff] }
 0x59e   : > { %3850 = vmatmul.mubr.f32.vlgmr.msra.gmra.mxu1 %v3781_v43  ;;  %10153 = vmatprep.subr.mxu0 %v9457_v42  ;;  %v9469_v42 = vld [vmem:[%s14943_s5 + $0x750] sm:$0xff]  ;;  %v9451_v43 = vld [vmem:[%s14943_s5 + $0x6c0] sm:$0xff] }
 0x59f   : > { %10186 = vmatprep.subr.mxu1 %v9490_v34  ;;  %10154 = vmatpush3.msra.mxu0 %v9441_v21  ;;  %v9484_v34 = vld [vmem:[%s14943_s5 + $0x7c8] sm:$0xff]  ;;  %v9435_v21 = vld [vmem:[%s14943_s5 + $0x640] sm:$0xff] }
 0x5a0   : > { %10187 = vmatpush3.msra.mxu1 %v9474_v19  ;;  %4065 = vmatprep.mubr.f32.mxu1 %v3998_v22  ;;  %v9468_v19 = vld [vmem:[%s14943_s5 + $0x748] sm:$0xff]  ;;  %v9450_v22 = vld [vmem:[%s14943_s5 + $0x6b8] sm:$0xff] }
 0x5a1   : > { %10155 = vmatprep.subr.mxu0 %v9456_v44  ;;  %10188 = vmatprep.subr.mxu1 %v9489_v25  ;;  %v9483_v44 = vld [vmem:[%s14943_s5 + $0x7c0] sm:$0xff]  ;;  %v9434_v25 = vld [vmem:[%s14943_s5 + $0x638] sm:$0xff] }
 0x5a2   : > { %10156 = vmatpush3.msra.mxu0 %v9440_v3  ;;  %10189 = vmatpush3.msra.mxu1 %v9473_v15  ;;  %v9467_v3 = vld [vmem:[%s14943_s5 + $0x740] sm:$0xff]  ;;  %v9449_v15 = vld [vmem:[%s14943_s5 + $0x6b0] sm:$0xff] }
 0x5a3   : > { %10157 = vmatprep.subr.mxu0 %v9455_v7  ;;  %10190 = vmatprep.subr.mxu1 %v9488_v57  ;;  %v9482_v7 = vld [vmem:[%s14943_s5 + $0x7b8] sm:$0xff]  ;;  %v9433_v57 = vld [vmem:[%s14943_s5 + $0x630] sm:$0xff] }
 0x5a4   : > { %10158 = vmatpush3.msra.mxu0 %v9439_v45  ;;  %10191 = vmatpush3.msra.mxu1 %v9472_v47  ;;  %v9466_v45 = vld [vmem:[%s14943_s5 + $0x738] sm:$0xff]  ;;  %v9448_v47 = vld [vmem:[%s14943_s5 + $0x6a8] sm:$0xff] }
 0x5a5   : > { %10159 = vmatprep.subr.mxu0 %v9454_v16  ;;  %10192 = vmatprep.subr.mxu1 %v9487_v28  ;;  %v9481_v16 = vld [vmem:[%s14943_s5 + $0x7b0] sm:$0xff]  ;;  %v9432_v28 = vld [vmem:[%s14943_s5 + $0x628] sm:$0xff] }
 0x5a6   : > { %10160 = vmatpush3.msra.mxu0 %v9438_v33  ;;  %10193 = vmatpush3.msra.mxu1 %v9471_v37  ;;  %v9465_v33 = vld [vmem:[%s14943_s5 + $0x730] sm:$0xff]  ;;  %v9447_v37 = vld [vmem:[%s14943_s5 + $0x6a0] sm:$0xff] }
 0x5a7   : > { %10161 = vmatprep.subr.mxu0 %v9453_v55  ;;  %10194 = vmatprep.subr.mxu1 %v9486_v56  ;;  %v9480_v55 = vld [vmem:[%s14943_s5 + $0x7a8] sm:$0xff]  ;;  %v9431_v56 = vld [vmem:[%s14943_s5 + $0x620] sm:$0xff] }
 0x5a8   : > { %10162 = vmatpush3.msra.mxu0 %v9437_v41  ;;  %10195 = vmatpush3.msra.mxu1 %v9470_v51  ;;  %v9464_v41 = vld [vmem:[%s14943_s5 + $0x728] sm:$0xff]  ;;  %v9446_v51 = vld [vmem:[%s14943_s5 + $0x698] sm:$0xff] }
 0x5a9   : > { %10163 = vmatprep.subr.mxu0 %v9452_v63  ;;  %10196 = vmatprep.subr.mxu1 %v9485_v59  ;;  %v9479_v63 = vld [vmem:[%s14943_s5 + $0x7a0] sm:$0xff]  ;;  %v9430_v59 = vld [vmem:[%s14943_s5 + $0x618] sm:$0xff] }
 0x5aa   : > { %10164 = vmatpush3.msra.mxu0 %v9436_v23  ;;  %10197 = vmatpush3.msra.mxu1 %v9469_v42  ;;  %v9463_v23 = vld [vmem:[%s14943_s5 + $0x720] sm:$0xff]  ;;  %v9445_v42 = vld [vmem:[%s14943_s5 + $0x690] sm:$0xff] }
 0x5ab   : > { %10165 = vmatprep.subr.mxu0 %v9451_v43  ;;  %10198 = vmatprep.subr.mxu1 %v9484_v34  ;;  %v9478_v43 = vld [vmem:[%s14943_s5 + $0x798] sm:$0xff]  ;;  %v9429_v34 = vld [vmem:[%s14943_s5 + $0x610] sm:$0xff] }
 0x5ac   : > { %10166 = vmatpush3.msra.mxu0 %v9435_v21  ;;  %10199 = vmatpush3.msra.mxu1 %v9468_v19  ;;  %v9462_v21 = vld [vmem:[%s14943_s5 + $0x718] sm:$0xff]  ;;  %v9444_v19 = vld [vmem:[%s14943_s5 + $0x688] sm:$0xff] }
 0x5ad   : > { %10167 = vmatprep.subr.mxu0 %v9450_v22  ;;  %10200 = vmatprep.subr.mxu1 %v9483_v44  ;;  %v9477_v22 = vld [vmem:[%s14943_s5 + $0x790] sm:$0xff]  ;;  %v9428_v44 = vld [vmem:[%s14943_s5 + $0x608] sm:$0xff] }
 0x5ae   : > { %10168 = vmatpush3.msra.mxu0 %v9434_v25  ;;  %10201 = vmatpush3.msra.mxu1 %v9467_v3  ;;  %v9461_v25 = vld [vmem:[%s14943_s5 + $0x710] sm:$0xff]  ;;  %v9443_v3 = vld [vmem:[%s14943_s5 + $0x680] sm:$0xff] }
 0x5af   : > { %10169 = vmatprep.subr.mxu0 %v9449_v15  ;;  %10202 = vmatprep.subr.mxu1 %v9482_v7  ;;  %v9476_v15 = vld [vmem:[%s14943_s5 + $0x788] sm:$0xff]  ;;  %v9427_v7 = vld [vmem:[%s14943_s5 + $0x600] sm:$0xff] }
 0x5b0   : > { %10170 = vmatpush3.msra.mxu0 %v9433_v57  ;;  %10203 = vmatpush3.msra.mxu1 %v9466_v45  ;;  %v9460_v57 = vld [vmem:[%s14943_s5 + $0x708] sm:$0xff]  ;;  %v9475_v45 = vld [vmem:[%s14943_s5 + $0x780] sm:$0xff] }
 0x5b1   : > { %10171 = vmatprep.subr.mxu0 %v9448_v47  ;;  %10204 = vmatprep.subr.mxu1 %v9481_v16  ;;  %v3889_v47 = vrot.slane %v11811_v27, 6  ;;  %v9522_v16 = vld [vmem:[%s14943_s5 + $0x8f8] sm:$0xff] }
 0x5b2   : > { %10172 = vmatpush3.msra.mxu0 %v9432_v28  ;;  %10205 = vmatpush3.msra.mxu1 %v9465_v33  ;;  %v9459_v28 = vld [vmem:[%s14943_s5 + $0x700] sm:$0xff]  ;;  %v9506_v33 = vld [vmem:[%s14943_s5 + $0x878] sm:$0xff] }
 0x5b3   : > { %10173 = vmatprep.subr.mxu0 %v9447_v37  ;;  %10206 = vmatprep.subr.mxu1 %v9480_v55  ;;  %v3997_v37 = vrot.slane %v11811_v27, 7  ;;  %v9521_v55 = vld [vmem:[%s14943_s5 + $0x8f0] sm:$0xff] }
 0x5b4   : > { %10174 = vmatpush3.msra.mxu0 %v9431_v56  ;;  %10207 = vmatpush3.msra.mxu1 %v9464_v41  ;;  %v9554_v56 = vld [vmem:[%s14943_s5 + $0x9f8] sm:$0xff]  ;;  %v9505_v41 = vld [vmem:[%s14943_s5 + $0x870] sm:$0xff] }
 0x5b5   : > { %10175 = vmatprep.subr.mxu0 %v9446_v51  ;;  %10208 = vmatprep.subr.mxu1 %v9479_v63  ;;  %v9538_v51 = vld [vmem:[%s14943_s5 + $0x978] sm:$0xff]  ;;  %v9520_v63 = vld [vmem:[%s14943_s5 + $0x8e8] sm:$0xff] }
 0x5b6   : > { %10176 = vmatpush3.msra.mxu0 %v9430_v59  ;;  %10209 = vmatpush3.msra.mxu1 %v9463_v23  ;;  %v9553_v59 = vld [vmem:[%s14943_s5 + $0x9f0] sm:$0xff]  ;;  %v9504_v23 = vld [vmem:[%s14943_s5 + $0x868] sm:$0xff] }
 0x5b7   : > { %10177 = vmatprep.subr.mxu0 %v9445_v42  ;;  %10210 = vmatprep.subr.mxu1 %v9478_v43  ;;  %v9537_v42 = vld [vmem:[%s14943_s5 + $0x970] sm:$0xff]  ;;  %v9519_v43 = vld [vmem:[%s14943_s5 + $0x8e0] sm:$0xff] }
 0x5b8   : > { %10178 = vmatpush3.msra.mxu0 %v9429_v34  ;;  %10211 = vmatpush3.msra.mxu1 %v9462_v21  ;;  %v9552_v34 = vld [vmem:[%s14943_s5 + $0x9e8] sm:$0xff]  ;;  %v9503_v21 = vld [vmem:[%s14943_s5 + $0x860] sm:$0xff] }
 0x5b9   : > { %10179 = vmatprep.subr.mxu0 %v9444_v19  ;;  %10212 = vmatprep.subr.mxu1 %v9477_v22  ;;  %v9536_v19 = vld [vmem:[%s14943_s5 + $0x968] sm:$0xff]  ;;  %v9518_v22 = vld [vmem:[%s14943_s5 + $0x8d8] sm:$0xff] }
 0x5ba   : > { %10180 = vmatpush3.msra.mxu0 %v9428_v44  ;;  %10213 = vmatpush3.msra.mxu1 %v9461_v25  ;;  %v9551_v44 = vld [vmem:[%s14943_s5 + $0x9e0] sm:$0xff]  ;;  %v9502_v25 = vld [vmem:[%s14943_s5 + $0x858] sm:$0xff] }
 0x5bb   : > { %10181 = vmatprep.subr.mxu0 %v9443_v3  ;;  %10214 = vmatprep.subr.mxu1 %v9476_v15  ;;  %v9535_v3 = vld [vmem:[%s14943_s5 + $0x960] sm:$0xff]  ;;  %v9517_v15 = vld [vmem:[%s14943_s5 + $0x8d0] sm:$0xff] }
 0x5bc   : > { %10182 = vmatpush3.msra.mxu0 %v9427_v7  ;;  %10215 = vmatpush3.msra.mxu1 %v9460_v57  ;;  %v9550_v7 = vld [vmem:[%s14943_s5 + $0x9d8] sm:$0xff]  ;;  %v9501_v57 = vld [vmem:[%s14943_s5 + $0x850] sm:$0xff] }
 0x5bd   : > { %3958 = vmatmul.mubr.f32.vlgmr.msra.gmra.mxu0 %v3889_v47  ;;  %10216 = vmatprep.subr.mxu1 %v9475_v45  ;;  %v9534_v45 = vld [vmem:[%s14943_s5 + $0x958] sm:$0xff]  ;;  %v9516_v47 = vld [vmem:[%s14943_s5 + $0x8c8] sm:$0xff] }
 0x5be   : > { %10221 = vmatprep.subr.mxu0 %v9522_v16  ;;  %10217 = vmatpush3.msra.mxu1 %v9459_v28  ;;  %v9549_v16 = vld [vmem:[%s14943_s5 + $0x9d0] sm:$0xff]  ;;  %v9500_v28 = vld [vmem:[%s14943_s5 + $0x848] sm:$0xff] }
 0x5bf   : > { %10222 = vmatpush3.msra.mxu0 %v9506_v33  ;;  %4066 = vmatmul.mubr.f32.vlgmr.msra.gmra.mxu1 %v3997_v37  ;;  %v9533_v33 = vld [vmem:[%s14943_s5 + $0x950] sm:$0xff]  ;;  %v9515_v37 = vld [vmem:[%s14943_s5 + $0x8c0] sm:$0xff] }
 0x5c0   : > { %10223 = vmatprep.subr.mxu0 %v9521_v55  ;;  %10256 = vmatprep.subr.mxu1 %v9554_v56  ;;  %v9548_v55 = vld [vmem:[%s14943_s5 + $0x9c8] sm:$0xff]  ;;  %v9499_v56 = vld [vmem:[%s14943_s5 + $0x840] sm:$0xff] }
 0x5c1   : > { %10224 = vmatpush3.msra.mxu0 %v9505_v41  ;;  %10257 = vmatpush3.msra.mxu1 %v9538_v51  ;;  %v9532_v41 = vld [vmem:[%s14943_s5 + $0x948] sm:$0xff]  ;;  %v9514_v51 = vld [vmem:[%s14943_s5 + $0x8b8] sm:$0xff] }
 0x5c2   : > { %10225 = vmatprep.subr.mxu0 %v9520_v63  ;;  %10258 = vmatprep.subr.mxu1 %v9553_v59  ;;  %v9547_v63 = vld [vmem:[%s14943_s5 + $0x9c0] sm:$0xff]  ;;  %v9498_v59 = vld [vmem:[%s14943_s5 + $0x838] sm:$0xff] }
 0x5c3   : > { %10226 = vmatpush3.msra.mxu0 %v9504_v23  ;;  %10259 = vmatpush3.msra.mxu1 %v9537_v42  ;;  %v9531_v23 = vld [vmem:[%s14943_s5 + $0x940] sm:$0xff]  ;;  %v9513_v42 = vld [vmem:[%s14943_s5 + $0x8b0] sm:$0xff] }
 0x5c4   : > { %10227 = vmatprep.subr.mxu0 %v9519_v43  ;;  %10260 = vmatprep.subr.mxu1 %v9552_v34  ;;  %v9546_v43 = vld [vmem:[%s14943_s5 + $0x9b8] sm:$0xff]  ;;  %v9497_v34 = vld [vmem:[%s14943_s5 + $0x830] sm:$0xff] }
 0x5c5   : > { %10228 = vmatpush3.msra.mxu0 %v9503_v21  ;;  %10261 = vmatpush3.msra.mxu1 %v9536_v19  ;;  %v9530_v21 = vld [vmem:[%s14943_s5 + $0x938] sm:$0xff] }
 0x5c6   : > { %10229 = vmatprep.subr.mxu0 %v9518_v22  ;;  %10262 = vmatprep.subr.mxu1 %v9551_v44  ;;  %v9512_v22 = vld [vmem:[%s14943_s5 + $0x8a8] sm:$0xff]  ;;  %v9545_v44 = vld [vmem:[%s14943_s5 + $0x9b0] sm:$0xff] }
 0x5c7   : > { %10230 = vmatpush3.msra.mxu0 %v9502_v25  ;;  %10263 = vmatpush3.msra.mxu1 %v9535_v3  ;;  %v9496_v25 = vld [vmem:[%s14943_s5 + $0x828] sm:$0xff]  ;;  %v9529_v3 = vld [vmem:[%s14943_s5 + $0x930] sm:$0xff] }
 0x5c8   : > { %10231 = vmatprep.subr.mxu0 %v9517_v15  ;;  %10264 = vmatprep.subr.mxu1 %v9550_v7  ;;  %v9511_v7 = vld [vmem:[%s14943_s5 + $0x8a0] sm:$0xff] }
 0x5c9   : > { %10232 = vmatpush3.msra.mxu0 %v9501_v57  ;;  %10265 = vmatpush3.msra.mxu1 %v9534_v45  ;;  %v9544_v57 = vld [vmem:[%s14943_s5 + $0x9a8] sm:$0xff] }
 0x5ca   : > { %10233 = vmatprep.subr.mxu0 %v9516_v47  ;;  %10266 = vmatprep.subr.mxu1 %v9549_v16  ;;  %v9495_v47 = vld [vmem:[%s14943_s5 + $0x820] sm:$0xff]  ;;  %v9528_v16 = vld [vmem:[%s14943_s5 + $0x928] sm:$0xff] }
 0x5cb   : > { %10234 = vmatpush3.msra.mxu0 %v9500_v28  ;;  %10267 = vmatpush3.msra.mxu1 %v9533_v33  ;;  %v9510_v28 = vld [vmem:[%s14943_s5 + $0x898] sm:$0xff]  ;;  %v9543_v33 = vld [vmem:[%s14943_s5 + $0x9a0] sm:$0xff] }
 0x5cc   : > { %10235 = vmatprep.subr.mxu0 %v9515_v37  ;;  %10268 = vmatprep.subr.mxu1 %v9548_v55  ;;  %v9494_v55 = vld [vmem:[%s14943_s5 + $0x818] sm:$0xff] }
 0x5cd   : > { %10236 = vmatpush3.msra.mxu0 %v9499_v56  ;;  %10269 = vmatpush3.msra.mxu1 %v9532_v41  ;;  %v9527_v56 = vld [vmem:[%s14943_s5 + $0x920] sm:$0xff] }
 0x5ce   : > { %10237 = vmatprep.subr.mxu0 %v9514_v51  ;;  %10270 = vmatprep.subr.mxu1 %v9547_v63  ;;  %v2927_v19 = vpop.permute.xlu0 %2926  ;;  %v9509_v51 = vld [vmem:[%s14943_s5 + $0x890] sm:$0xff] }
 0x5cf   : > { %10238 = vmatpush3.msra.mxu0 %v9498_v59  ;;  %10271 = vmatpush3.msra.mxu1 %v9531_v23  ;;  %v9493_v63 = vld [vmem:[%s14943_s5 + $0x810] sm:$0xff]  ;;  %v9526_v59 = vld [vmem:[%s14943_s5 + $0x918] sm:$0xff] }
 0x5d0   : > { %10239 = vmatprep.subr.mxu0 %v9513_v42  ;;  %10272 = vmatprep.subr.mxu1 %v9546_v43  ;;  %v2925_v15 = vpop.permute.xlu1 %2924  ;;  %v9508_v42 = vld [vmem:[%s14943_s5 + $0x888] sm:$0xff]  ;;  %v9541_v43 = vld [vmem:[%s14943_s5 + $0x990] sm:$0xff] }
 0x5d1   : > { %10240 = vmatpush3.msra.mxu0 %v9497_v34  ;;  %10273 = vmatpush3.msra.mxu1 %v9530_v21  ;;  %v2931_v45 = vsel %vm1827_vm7, %v2925_v15, %v2927_v19  ;;  %v9492_v34 = vld [vmem:[%s14943_s5 + $0x808] sm:$0xff]  ;;  %v9525_v19 = vld [vmem:[%s14943_s5 + $0x910] sm:$0xff] }
 0x5d2   : > { %10241 = vmatprep.subr.mxu0 %v9512_v22  ;;  %10274 = vmatprep.subr.mxu1 %v9545_v44  ;;  %v12557_v37 = vmax.f32 %v11837_v49, %v2931_v45  ;;  %v9542_v49 = vld [vmem:[%s14943_s5 + $0x998] sm:$0xff]  ;;  %v9507_v44 = vld [vmem:[%s14943_s5 + $0x880] sm:$0xff] }
 0x5d3   : > { %10242 = vmatpush3.msra.mxu0 %v9496_v25  ;;  %10275 = vmatpush3.msra.mxu1 %v9529_v3  ;;  %v9540_v25 = vld [vmem:[%s14943_s5 + $0x988] sm:$0xff]  ;;  %v9491_v3 = vld [vmem:[%s14943_s5 + $0x800] sm:$0xff]  ;;  %v9570_v45 = vld [vmem:[%s14943_s5 + $0xa78] sm:$0xff] }
 0x5d4   : > { %10243 = vmatprep.subr.mxu0 %v9511_v7  ;;  %10276 = vmatprep.subr.mxu1 %v9544_v57  ;;  %v2923_v41 = vpop.permute.xlu1 %2922  ;;  %v4210_v21 = vrot.slane %v12557_v37, 1  ;;  %v9586_v7 = vld [vmem:[%s14943_s5 + $0xaf8] sm:$0xff]  ;;  %v9523_v57 = vld [vmem:[%s14943_s5 + $0x900] sm:$0xff] }
 0x5d5   : > { %10244 = vmatpush3.msra.mxu0 %v9495_v47  ;;  %10277 = vmatpush3.msra.mxu1 %v9528_v16  ;;  %v2930_v23 = vsel %vm1827_vm7, %v2923_v41, %v2925_v15  ;;  %v9539_v15 = vld [vmem:[%s14943_s5 + $0x980] sm:$0xff]  ;;  %v4318_v16 = vrot.slane %v12557_v37, 2  ;;  %v4426_v41 = vrot.slane %v12557_v37, 3 }
 0x5d6   : > { %10245 = vmatprep.subr.mxu0 %v9510_v28  ;;  %10278 = vmatprep.subr.mxu1 %v9543_v33  ;;  %v12592_v22 = vmax.f32 %v11875_v30, %v2930_v23  ;;  %v9524_v30 = vld [vmem:[%s14943_s5 + $0x908] sm:$0xff]  ;;  %v9585_v28 = vld [vmem:[%s14943_s5 + $0xaf0] sm:$0xff]  ;;  %v9618_v33 = vld [vmem:[%s14943_s5 + $0xbf8] sm:$0xff] }
 0x5d7   : > { %10246 = vmatpush3.msra.mxu0 %v9494_v55  ;;  %10279 = vmatpush3.msra.mxu1 %v9527_v56  ;;  %v9569_v55 = vld [vmem:[%s14943_s5 + $0xa70] sm:$0xff]  ;;  %v9602_v56 = vld [vmem:[%s14943_s5 + $0xb78] sm:$0xff]  ;;  %v9583_v23 = vld [vmem:[%s14943_s5 + $0xae0] sm:$0xff] }
 0x5d8   : > { %10247 = vmatprep.subr.mxu0 %v9509_v51  ;;  %10280 = vmatprep.subr.mxu1 %v9542_v49  ;;  %v4209_v47 = vrot.slane %v12592_v22, 1  ;;  %v9584_v51 = vld [vmem:[%s14943_s5 + $0xae8] sm:$0xff]  ;;  %v9617_v49 = vld [vmem:[%s14943_s5 + $0xbf0] sm:$0xff] }
 0x5d9   : > { %10248 = vmatpush3.msra.mxu0 %v9493_v63  ;;  %10281 = vmatpush3.msra.mxu1 %v9526_v59  ;;  %v9568_v63 = vld [vmem:[%s14943_s5 + $0xa68] sm:$0xff]  ;;  %v9601_v59 = vld [vmem:[%s14943_s5 + $0xb70] sm:$0xff] }
 0x5da   : > { %4169 = vmatprep.mubr.f32.mxu0 %v12557_v37  ;;  %10249 = vmatprep.subr.mxu0 %v9508_v42  ;;  %v9616_v42 = vld [vmem:[%s14943_s5 + $0xbe8] sm:$0xff] }
 0x5db   : > { %10282 = vmatprep.subr.mxu1 %v9541_v43  ;;  %10250 = vmatpush3.msra.mxu0 %v9492_v34  ;;  %v9567_v43 = vld [vmem:[%s14943_s5 + $0xa60] sm:$0xff]  ;;  %v9600_v34 = vld [vmem:[%s14943_s5 + $0xb68] sm:$0xff] }
 0x5dc   : > { %10283 = vmatpush3.msra.mxu1 %v9525_v19  ;;  %4277 = vmatprep.mubr.f32.mxu1 %v4210_v21  ;;  %v9582_v21 = vld [vmem:[%s14943_s5 + $0xad8] sm:$0xff]  ;;  %v9615_v19 = vld [vmem:[%s14943_s5 + $0xbe0] sm:$0xff] }
 0x5dd   : > { %10251 = vmatprep.subr.mxu0 %v9507_v44  ;;  %10284 = vmatprep.subr.mxu1 %v9540_v25  ;;  %v9566_v44 = vld [vmem:[%s14943_s5 + $0xa58] sm:$0xff]  ;;  %v9599_v25 = vld [vmem:[%s14943_s5 + $0xb60] sm:$0xff] }
 0x5de   : > { %10252 = vmatpush3.msra.mxu0 %v9491_v3  ;;  %10285 = vmatpush3.msra.mxu1 %v9524_v30  ;;  %v9581_v3 = vld [vmem:[%s14943_s5 + $0xad0] sm:$0xff]  ;;  %v9614_v30 = vld [vmem:[%s14943_s5 + $0xbd8] sm:$0xff] }
 0x5df   : > { %4170 = vmatmul.mubr.f32.vlgmr.msra.gmra.mxu0 %v12592_v22  ;;  %10286 = vmatprep.subr.mxu1 %v9539_v15  ;;  %v9565_v15 = vld [vmem:[%s14943_s5 + $0xa50] sm:$0xff] }
 0x5e0   : > { %10291 = vmatprep.subr.mxu0 %v9586_v7  ;;  %10287 = vmatpush3.msra.mxu1 %v9523_v57  ;;  %v9598_v7 = vld [vmem:[%s14943_s5 + $0xb58] sm:$0xff]  ;;  %v9580_v57 = vld [vmem:[%s14943_s5 + $0xac8] sm:$0xff] }
 0x5e1   : > { %10292 = vmatpush3.msra.mxu0 %v9570_v45  ;;  %4385 = vmatprep.mubr.f32.mxu0 %v4318_v16  ;;  %v9613_v45 = vld [vmem:[%s14943_s5 + $0xbd0] sm:$0xff] }
 0x5e2   : > { %4278 = vmatmul.mubr.f32.vlgmr.msra.gmra.mxu1 %v4209_v47  ;;  %10293 = vmatprep.subr.mxu0 %v9585_v28  ;;  %v9564_v47 = vld [vmem:[%s14943_s5 + $0xa48] sm:$0xff]  ;;  %v9597_v16 = vld [vmem:[%s14943_s5 + $0xb50] sm:$0xff]  ;;  %v9579_v28 = vld [vmem:[%s14943_s5 + $0xac0] sm:$0xff] }
 0x5e3   : > { %10326 = vmatprep.subr.mxu1 %v9618_v33  ;;  %10294 = vmatpush3.msra.mxu0 %v9569_v55  ;;  %v9612_v33 = vld [vmem:[%s14943_s5 + $0xbc8] sm:$0xff]  ;;  %v9563_v55 = vld [vmem:[%s14943_s5 + $0xa40] sm:$0xff] }
 0x5e4   : > { %10327 = vmatpush3.msra.mxu1 %v9602_v56  ;;  %4493 = vmatprep.mubr.f32.mxu1 %v4426_v41  ;;  %v9596_v56 = vld [vmem:[%s14943_s5 + $0xb48] sm:$0xff]  ;;  %v9578_v41 = vld [vmem:[%s14943_s5 + $0xab8] sm:$0xff] }
 0x5e5   : > { %10295 = vmatprep.subr.mxu0 %v9584_v51  ;;  %10328 = vmatprep.subr.mxu1 %v9617_v49  ;;  %v9611_v51 = vld [vmem:[%s14943_s5 + $0xbc0] sm:$0xff]  ;;  %v9562_v49 = vld [vmem:[%s14943_s5 + $0xa38] sm:$0xff] }
 0x5e6   : > { %10296 = vmatpush3.msra.mxu0 %v9568_v63  ;;  %10329 = vmatpush3.msra.mxu1 %v9601_v59  ;;  %v9595_v63 = vld [vmem:[%s14943_s5 + $0xb40] sm:$0xff]  ;;  %v9577_v59 = vld [vmem:[%s14943_s5 + $0xab0] sm:$0xff] }
 0x5e7   : > { %10297 = vmatprep.subr.mxu0 %v9583_v23  ;;  %10330 = vmatprep.subr.mxu1 %v9616_v42  ;;  %v9610_v23 = vld [vmem:[%s14943_s5 + $0xbb8] sm:$0xff]  ;;  %v9561_v42 = vld [vmem:[%s14943_s5 + $0xa30] sm:$0xff] }
 0x5e8   : > { %10298 = vmatpush3.msra.mxu0 %v9567_v43  ;;  %10331 = vmatpush3.msra.mxu1 %v9600_v34  ;;  %v9594_v43 = vld [vmem:[%s14943_s5 + $0xb38] sm:$0xff]  ;;  %v9576_v34 = vld [vmem:[%s14943_s5 + $0xaa8] sm:$0xff] }
 0x5e9   : > { %10299 = vmatprep.subr.mxu0 %v9582_v21  ;;  %10332 = vmatprep.subr.mxu1 %v9615_v19  ;;  %v9609_v21 = vld [vmem:[%s14943_s5 + $0xbb0] sm:$0xff]  ;;  %v9560_v19 = vld [vmem:[%s14943_s5 + $0xa28] sm:$0xff] }
 0x5ea   : > { %10300 = vmatpush3.msra.mxu0 %v9566_v44  ;;  %10333 = vmatpush3.msra.mxu1 %v9599_v25  ;;  %v9593_v44 = vld [vmem:[%s14943_s5 + $0xb30] sm:$0xff]  ;;  %v9575_v25 = vld [vmem:[%s14943_s5 + $0xaa0] sm:$0xff] }
 0x5eb   : > { %10301 = vmatprep.subr.mxu0 %v9581_v3  ;;  %10334 = vmatprep.subr.mxu1 %v9614_v30  ;;  %v9608_v3 = vld [vmem:[%s14943_s5 + $0xba8] sm:$0xff]  ;;  %v9559_v30 = vld [vmem:[%s14943_s5 + $0xa20] sm:$0xff] }
 0x5ec   : > { %10302 = vmatpush3.msra.mxu0 %v9565_v15  ;;  %10335 = vmatpush3.msra.mxu1 %v9598_v7  ;;  %v9592_v15 = vld [vmem:[%s14943_s5 + $0xb28] sm:$0xff]  ;;  %v9574_v7 = vld [vmem:[%s14943_s5 + $0xa98] sm:$0xff] }
 0x5ed   : > { %10303 = vmatprep.subr.mxu0 %v9580_v57  ;;  %10336 = vmatprep.subr.mxu1 %v9613_v45  ;;  %v9607_v57 = vld [vmem:[%s14943_s5 + $0xba0] sm:$0xff]  ;;  %v9558_v45 = vld [vmem:[%s14943_s5 + $0xa18] sm:$0xff] }
 0x5ee   : > { %10304 = vmatpush3.msra.mxu0 %v9564_v47  ;;  %10337 = vmatpush3.msra.mxu1 %v9597_v16  ;;  %v9591_v47 = vld [vmem:[%s14943_s5 + $0xb20] sm:$0xff]  ;;  %v9573_v16 = vld [vmem:[%s14943_s5 + $0xa90] sm:$0xff] }
 0x5ef   : > { %10305 = vmatprep.subr.mxu0 %v9579_v28  ;;  %10338 = vmatprep.subr.mxu1 %v9612_v33  ;;  %v9606_v28 = vld [vmem:[%s14943_s5 + $0xb98] sm:$0xff]  ;;  %v9557_v33 = vld [vmem:[%s14943_s5 + $0xa10] sm:$0xff] }
 0x5f0   : > { %10306 = vmatpush3.msra.mxu0 %v9563_v55  ;;  %10339 = vmatpush3.msra.mxu1 %v9596_v56  ;;  %v9590_v55 = vld [vmem:[%s14943_s5 + $0xb18] sm:$0xff]  ;;  %v9572_v56 = vld [vmem:[%s14943_s5 + $0xa88] sm:$0xff] }
 0x5f1   : > { %10307 = vmatprep.subr.mxu0 %v9578_v41  ;;  %10340 = vmatprep.subr.mxu1 %v9611_v51  ;;  %v9605_v41 = vld [vmem:[%s14943_s5 + $0xb90] sm:$0xff]  ;;  %v9556_v51 = vld [vmem:[%s14943_s5 + $0xa08] sm:$0xff] }
 0x5f2   : > { %10308 = vmatpush3.msra.mxu0 %v9562_v49  ;;  %10341 = vmatpush3.msra.mxu1 %v9595_v63  ;;  %v9589_v49 = vld [vmem:[%s14943_s5 + $0xb10] sm:$0xff]  ;;  %v9571_v63 = vld [vmem:[%s14943_s5 + $0xa80] sm:$0xff] }
 0x5f3   : > { %10309 = vmatprep.subr.mxu0 %v9577_v59  ;;  %10342 = vmatprep.subr.mxu1 %v9610_v23  ;;  %v9604_v59 = vld [vmem:[%s14943_s5 + $0xb88] sm:$0xff]  ;;  %v9555_v23 = vld [vmem:[%s14943_s5 + $0xa00] sm:$0xff] }
 0x5f4   : > { %10310 = vmatpush3.msra.mxu0 %v9561_v42  ;;  %10343 = vmatpush3.msra.mxu1 %v9594_v43  ;;  %v9588_v42 = vld [vmem:[%s14943_s5 + $0xb08] sm:$0xff]  ;;  %v9603_v43 = vld [vmem:[%s14943_s5 + $0xb80] sm:$0xff] }
 0x5f5   : > { %10311 = vmatprep.subr.mxu0 %v9576_v34  ;;  %10344 = vmatprep.subr.mxu1 %v9609_v21  ;;  %v4317_v34 = vrot.slane %v12592_v22, 2  ;;  %v9650_v21 = vld [vmem:[%s14943_s5 + $0xcf8] sm:$0xff] }
 0x5f6   : > { %10312 = vmatpush3.msra.mxu0 %v9560_v19  ;;  %10345 = vmatpush3.msra.mxu1 %v9593_v44  ;;  %v9587_v19 = vld [vmem:[%s14943_s5 + $0xb00] sm:$0xff]  ;;  %v9634_v44 = vld [vmem:[%s14943_s5 + $0xc78] sm:$0xff] }
 0x5f7   : > { %10313 = vmatprep.subr.mxu0 %v9575_v25  ;;  %10346 = vmatprep.subr.mxu1 %v9608_v3  ;;  %v4534_v25 = vrot.slane %v12557_v37, 4  ;;  %v9649_v3 = vld [vmem:[%s14943_s5 + $0xcf0] sm:$0xff] }
 0x5f8   : > { %10314 = vmatpush3.msra.mxu0 %v9559_v30  ;;  %10347 = vmatpush3.msra.mxu1 %v9592_v15  ;;  %v4425_v30 = vrot.slane %v12592_v22, 3  ;;  %v9682_v15 = vld [vmem:[%s14943_s5 + $0xdf8] sm:$0xff] }
 0x5f9   : > { %10315 = vmatprep.subr.mxu0 %v9574_v7  ;;  %10348 = vmatprep.subr.mxu1 %v9607_v57  ;;  %v9633_v7 = vld [vmem:[%s14943_s5 + $0xc70] sm:$0xff]  ;;  %v9666_v57 = vld [vmem:[%s14943_s5 + $0xd78] sm:$0xff] }
 0x5fa   : > { %10316 = vmatpush3.msra.mxu0 %v9558_v45  ;;  %10349 = vmatpush3.msra.mxu1 %v9591_v47  ;;  %v4642_v45 = vrot.slane %v12557_v37, 5  ;;  %v9648_v47 = vld [vmem:[%s14943_s5 + $0xce8] sm:$0xff] }
 0x5fb   : > { %10317 = vmatprep.subr.mxu0 %v9573_v16  ;;  %10350 = vmatprep.subr.mxu1 %v9606_v28  ;;  %v9681_v16 = vld [vmem:[%s14943_s5 + $0xdf0] sm:$0xff]  ;;  %v9632_v28 = vld [vmem:[%s14943_s5 + $0xc68] sm:$0xff] }
 0x5fc   : > { %10318 = vmatpush3.msra.mxu0 %v9557_v33  ;;  %10351 = vmatpush3.msra.mxu1 %v9590_v55  ;;  %v9665_v33 = vld [vmem:[%s14943_s5 + $0xd70] sm:$0xff]  ;;  %v9647_v55 = vld [vmem:[%s14943_s5 + $0xce0] sm:$0xff] }
 0x5fd   : > { %10319 = vmatprep.subr.mxu0 %v9572_v56  ;;  %10352 = vmatprep.subr.mxu1 %v9605_v41  ;;  %v9680_v56 = vld [vmem:[%s14943_s5 + $0xde8] sm:$0xff]  ;;  %v9631_v41 = vld [vmem:[%s14943_s5 + $0xc60] sm:$0xff] }
 0x5fe   : > { %10320 = vmatpush3.msra.mxu0 %v9556_v51  ;;  %10353 = vmatpush3.msra.mxu1 %v9589_v49  ;;  %v9664_v51 = vld [vmem:[%s14943_s5 + $0xd68] sm:$0xff]  ;;  %v9646_v49 = vld [vmem:[%s14943_s5 + $0xcd8] sm:$0xff] }
 0x5ff   : > { %10321 = vmatprep.subr.mxu0 %v9571_v63  ;;  %10354 = vmatprep.subr.mxu1 %v9604_v59  ;;  %v9679_v63 = vld [vmem:[%s14943_s5 + $0xde0] sm:$0xff]  ;;  %v9630_v59 = vld [vmem:[%s14943_s5 + $0xc58] sm:$0xff] }
 0x600   : > { %10322 = vmatpush3.msra.mxu0 %v9555_v23  ;;  %10355 = vmatpush3.msra.mxu1 %v9588_v42  ;;  %v9663_v23 = vld [vmem:[%s14943_s5 + $0xd60] sm:$0xff]  ;;  %v9645_v42 = vld [vmem:[%s14943_s5 + $0xcd0] sm:$0xff] }
 0x601   : > { %4386 = vmatmul.mubr.f32.vlgmr.msra.gmra.mxu0 %v4317_v34  ;;  %10356 = vmatprep.subr.mxu1 %v9603_v43  ;;  %v9678_v43 = vld [vmem:[%s14943_s5 + $0xdd8] sm:$0xff]  ;;  %v9629_v34 = vld [vmem:[%s14943_s5 + $0xc50] sm:$0xff] }
 0x602   : > { %10361 = vmatprep.subr.mxu0 %v9650_v21  ;;  %10357 = vmatpush3.msra.mxu1 %v9587_v19  ;;  %v9662_v21 = vld [vmem:[%s14943_s5 + $0xd58] sm:$0xff]  ;;  %v9644_v19 = vld [vmem:[%s14943_s5 + $0xcc8] sm:$0xff] }
 0x603   : > { %10362 = vmatpush3.msra.mxu0 %v9634_v44  ;;  %4601 = vmatprep.mubr.f32.mxu0 %v4534_v25  ;;  %v9677_v44 = vld [vmem:[%s14943_s5 + $0xdd0] sm:$0xff]  ;;  %v9628_v25 = vld [vmem:[%s14943_s5 + $0xc48] sm:$0xff] }
 0x604   : > { %4494 = vmatmul.mubr.f32.vlgmr.msra.gmra.mxu1 %v4425_v30  ;;  %10363 = vmatprep.subr.mxu0 %v9649_v3  ;;  %v9661_v3 = vld [vmem:[%s14943_s5 + $0xd50] sm:$0xff]  ;;  %v9643_v30 = vld [vmem:[%s14943_s5 + $0xcc0] sm:$0xff] }
 0x605   : > { %10396 = vmatprep.subr.mxu1 %v9682_v15  ;;  %10364 = vmatpush3.msra.mxu0 %v9633_v7  ;;  %v9676_v15 = vld [vmem:[%s14943_s5 + $0xdc8] sm:$0xff]  ;;  %v9627_v7 = vld [vmem:[%s14943_s5 + $0xc40] sm:$0xff] }
 0x606   : > { %10397 = vmatpush3.msra.mxu1 %v9666_v57  ;;  %4709 = vmatprep.mubr.f32.mxu1 %v4642_v45  ;;  %v9660_v57 = vld [vmem:[%s14943_s5 + $0xd48] sm:$0xff]  ;;  %v9642_v45 = vld [vmem:[%s14943_s5 + $0xcb8] sm:$0xff] }
 0x607   : > { %10365 = vmatprep.subr.mxu0 %v9648_v47  ;;  %10398 = vmatprep.subr.mxu1 %v9681_v16  ;;  %v9675_v47 = vld [vmem:[%s14943_s5 + $0xdc0] sm:$0xff]  ;;  %v9626_v16 = vld [vmem:[%s14943_s5 + $0xc38] sm:$0xff] }
 0x608   : > { %10366 = vmatpush3.msra.mxu0 %v9632_v28  ;;  %10399 = vmatpush3.msra.mxu1 %v9665_v33  ;;  %v9659_v28 = vld [vmem:[%s14943_s5 + $0xd40] sm:$0xff]  ;;  %v9641_v33 = vld [vmem:[%s14943_s5 + $0xcb0] sm:$0xff] }
 0x609   : > { %10367 = vmatprep.subr.mxu0 %v9647_v55  ;;  %10400 = vmatprep.subr.mxu1 %v9680_v56  ;;  %v9674_v55 = vld [vmem:[%s14943_s5 + $0xdb8] sm:$0xff]  ;;  %v9625_v56 = vld [vmem:[%s14943_s5 + $0xc30] sm:$0xff] }
 0x60a   : > { %10368 = vmatpush3.msra.mxu0 %v9631_v41  ;;  %10401 = vmatpush3.msra.mxu1 %v9664_v51  ;;  %v9658_v41 = vld [vmem:[%s14943_s5 + $0xd38] sm:$0xff]  ;;  %v9640_v51 = vld [vmem:[%s14943_s5 + $0xca8] sm:$0xff] }
 0x60b   : > { %10369 = vmatprep.subr.mxu0 %v9646_v49  ;;  %10402 = vmatprep.subr.mxu1 %v9679_v63  ;;  %v9673_v49 = vld [vmem:[%s14943_s5 + $0xdb0] sm:$0xff]  ;;  %v9624_v63 = vld [vmem:[%s14943_s5 + $0xc28] sm:$0xff] }
 0x60c   : > { %10370 = vmatpush3.msra.mxu0 %v9630_v59  ;;  %10403 = vmatpush3.msra.mxu1 %v9663_v23  ;;  %v9657_v59 = vld [vmem:[%s14943_s5 + $0xd30] sm:$0xff]  ;;  %v9639_v23 = vld [vmem:[%s14943_s5 + $0xca0] sm:$0xff] }
 0x60d   : > { %10371 = vmatprep.subr.mxu0 %v9645_v42  ;;  %10404 = vmatprep.subr.mxu1 %v9678_v43  ;;  %v9672_v42 = vld [vmem:[%s14943_s5 + $0xda8] sm:$0xff]  ;;  %v9623_v43 = vld [vmem:[%s14943_s5 + $0xc20] sm:$0xff] }
 0x60e   : > { %10372 = vmatpush3.msra.mxu0 %v9629_v34  ;;  %10405 = vmatpush3.msra.mxu1 %v9662_v21  ;;  %v9656_v34 = vld [vmem:[%s14943_s5 + $0xd28] sm:$0xff]  ;;  %v9638_v21 = vld [vmem:[%s14943_s5 + $0xc98] sm:$0xff] }
 0x60f   : > { %10373 = vmatprep.subr.mxu0 %v9644_v19  ;;  %10406 = vmatprep.subr.mxu1 %v9677_v44  ;;  %v9671_v19 = vld [vmem:[%s14943_s5 + $0xda0] sm:$0xff]  ;;  %v9622_v44 = vld [vmem:[%s14943_s5 + $0xc18] sm:$0xff] }
 0x610   : > { %10374 = vmatpush3.msra.mxu0 %v9628_v25  ;;  %10407 = vmatpush3.msra.mxu1 %v9661_v3  ;;  %v9655_v25 = vld [vmem:[%s14943_s5 + $0xd20] sm:$0xff]  ;;  %v9637_v3 = vld [vmem:[%s14943_s5 + $0xc90] sm:$0xff] }
 0x611   : > { %10375 = vmatprep.subr.mxu0 %v9643_v30  ;;  %10408 = vmatprep.subr.mxu1 %v9676_v15  ;;  %v9670_v30 = vld [vmem:[%s14943_s5 + $0xd98] sm:$0xff]  ;;  %v9621_v15 = vld [vmem:[%s14943_s5 + $0xc10] sm:$0xff] }
 0x612   : > { %10376 = vmatpush3.msra.mxu0 %v9627_v7  ;;  %10409 = vmatpush3.msra.mxu1 %v9660_v57  ;;  %v9654_v7 = vld [vmem:[%s14943_s5 + $0xd18] sm:$0xff]  ;;  %v9636_v57 = vld [vmem:[%s14943_s5 + $0xc88] sm:$0xff] }
 0x613   : > { %10377 = vmatprep.subr.mxu0 %v9642_v45  ;;  %10410 = vmatprep.subr.mxu1 %v9675_v47  ;;  %v9669_v45 = vld [vmem:[%s14943_s5 + $0xd90] sm:$0xff]  ;;  %v9620_v47 = vld [vmem:[%s14943_s5 + $0xc08] sm:$0xff] }
 0x614   : > { %10378 = vmatpush3.msra.mxu0 %v9626_v16  ;;  %10411 = vmatpush3.msra.mxu1 %v9659_v28  ;;  %v9653_v16 = vld [vmem:[%s14943_s5 + $0xd10] sm:$0xff]  ;;  %v9635_v28 = vld [vmem:[%s14943_s5 + $0xc80] sm:$0xff] }
 0x615   : > { %10379 = vmatprep.subr.mxu0 %v9641_v33  ;;  %10412 = vmatprep.subr.mxu1 %v9674_v55  ;;  %v9668_v33 = vld [vmem:[%s14943_s5 + $0xd88] sm:$0xff]  ;;  %v9619_v55 = vld [vmem:[%s14943_s5 + $0xc00] sm:$0xff] }
 0x616   : > { %10380 = vmatpush3.msra.mxu0 %v9625_v56  ;;  %10413 = vmatpush3.msra.mxu1 %v9658_v41  ;;  %v9652_v56 = vld [vmem:[%s14943_s5 + $0xd08] sm:$0xff]  ;;  %v9667_v41 = vld [vmem:[%s14943_s5 + $0xd80] sm:$0xff] }
 0x617   : > { %10381 = vmatprep.subr.mxu0 %v9640_v51  ;;  %10414 = vmatprep.subr.mxu1 %v9673_v49  ;;  %v4533_v51 = vrot.slane %v12592_v22, 4  ;;  %v9714_v49 = vld [vmem:[%s14943_s5 + $0xef8] sm:$0xff] }
 0x618   : > { %10382 = vmatpush3.msra.mxu0 %v9624_v63  ;;  %10415 = vmatpush3.msra.mxu1 %v9657_v59  ;;  %v9651_v63 = vld [vmem:[%s14943_s5 + $0xd00] sm:$0xff]  ;;  %v9698_v59 = vld [vmem:[%s14943_s5 + $0xe78] sm:$0xff] }
 0x619   : > { %10383 = vmatprep.subr.mxu0 %v9639_v23  ;;  %10416 = vmatprep.subr.mxu1 %v9672_v42  ;;  %v4750_v23 = vrot.slane %v12557_v37, 6  ;;  %v9713_v42 = vld [vmem:[%s14943_s5 + $0xef0] sm:$0xff] }
 0x61a   : > { %10384 = vmatpush3.msra.mxu0 %v9623_v43  ;;  %10417 = vmatpush3.msra.mxu1 %v9656_v34  ;;  %v4641_v43 = vrot.slane %v12592_v22, 5  ;;  %v9746_v34 = vld [vmem:[%s14943_s5 + $0xff8] sm:$0xff] }
 0x61b   : > { %10385 = vmatprep.subr.mxu0 %v9638_v21  ;;  %10418 = vmatprep.subr.mxu1 %v9671_v19  ;;  %v9697_v21 = vld [vmem:[%s14943_s5 + $0xe70] sm:$0xff]  ;;  %v9730_v19 = vld [vmem:[%s14943_s5 + $0xf78] sm:$0xff] }
 0x61c   : > { %10386 = vmatpush3.msra.mxu0 %v9622_v44  ;;  %10419 = vmatpush3.msra.mxu1 %v9655_v25  ;;  %v4858_v44 = vrot.slane %v12557_v37, 7  ;;  %v9712_v25 = vld [vmem:[%s14943_s5 + $0xee8] sm:$0xff] }
 0x61d   : > { %10387 = vmatprep.subr.mxu0 %v9637_v3  ;;  %10420 = vmatprep.subr.mxu1 %v9670_v30  ;;  %v9745_v3 = vld [vmem:[%s14943_s5 + $0xff0] sm:$0xff]  ;;  %v9696_v30 = vld [vmem:[%s14943_s5 + $0xe68] sm:$0xff] }
 0x61e   : > { %10388 = vmatpush3.msra.mxu0 %v9621_v15  ;;  %10421 = vmatpush3.msra.mxu1 %v9654_v7  ;;  %v9729_v15 = vld [vmem:[%s14943_s5 + $0xf70] sm:$0xff]  ;;  %v9711_v7 = vld [vmem:[%s14943_s5 + $0xee0] sm:$0xff] }
 0x61f   : > { %10389 = vmatprep.subr.mxu0 %v9636_v57  ;;  %10422 = vmatprep.subr.mxu1 %v9669_v45  ;;  %v9744_v57 = vld [vmem:[%s14943_s5 + $0xfe8] sm:$0xff]  ;;  %v9695_v45 = vld [vmem:[%s14943_s5 + $0xe60] sm:$0xff] }
 0x620   : > { %10390 = vmatpush3.msra.mxu0 %v9620_v47  ;;  %10423 = vmatpush3.msra.mxu1 %v9653_v16  ;;  %v9728_v47 = vld [vmem:[%s14943_s5 + $0xf68] sm:$0xff]  ;;  %v9710_v16 = vld [vmem:[%s14943_s5 + $0xed8] sm:$0xff] }
 0x621   : > { %10391 = vmatprep.subr.mxu0 %v9635_v28  ;;  %10424 = vmatprep.subr.mxu1 %v9668_v33  ;;  %v9743_v28 = vld [vmem:[%s14943_s5 + $0xfe0] sm:$0xff]  ;;  %v9694_v33 = vld [vmem:[%s14943_s5 + $0xe58] sm:$0xff] }
 0x622   : > { %10392 = vmatpush3.msra.mxu0 %v9619_v55  ;;  %10425 = vmatpush3.msra.mxu1 %v9652_v56  ;;  %v9727_v55 = vld [vmem:[%s14943_s5 + $0xf60] sm:$0xff]  ;;  %v9709_v56 = vld [vmem:[%s14943_s5 + $0xed0] sm:$0xff] }
 0x623   : > { %4602 = vmatmul.mubr.f32.vlgmr.msra.gmra.mxu0 %v4533_v51  ;;  %10426 = vmatprep.subr.mxu1 %v9667_v41  ;;  %v9742_v41 = vld [vmem:[%s14943_s5 + $0xfd8] sm:$0xff]  ;;  %v9693_v51 = vld [vmem:[%s14943_s5 + $0xe50] sm:$0xff] }
 0x624   : > { %10431 = vmatprep.subr.mxu0 %v9714_v49  ;;  %10427 = vmatpush3.msra.mxu1 %v9651_v63  ;;  %v9726_v49 = vld [vmem:[%s14943_s5 + $0xf58] sm:$0xff]  ;;  %v9708_v63 = vld [vmem:[%s14943_s5 + $0xec8] sm:$0xff] }
 0x625   : > { %10432 = vmatpush3.msra.mxu0 %v9698_v59  ;;  %4817 = vmatprep.mubr.f32.mxu0 %v4750_v23  ;;  %v9741_v59 = vld [vmem:[%s14943_s5 + $0xfd0] sm:$0xff]  ;;  %v9692_v23 = vld [vmem:[%s14943_s5 + $0xe48] sm:$0xff] }
 0x626   : > { %4710 = vmatmul.mubr.f32.vlgmr.msra.gmra.mxu1 %v4641_v43  ;;  %10433 = vmatprep.subr.mxu0 %v9713_v42  ;;  %v9725_v42 = vld [vmem:[%s14943_s5 + $0xf50] sm:$0xff]  ;;  %v9707_v43 = vld [vmem:[%s14943_s5 + $0xec0] sm:$0xff] }
 0x627   : > { %10466 = vmatprep.subr.mxu1 %v9746_v34  ;;  %10434 = vmatpush3.msra.mxu0 %v9697_v21  ;;  %v9740_v34 = vld [vmem:[%s14943_s5 + $0xfc8] sm:$0xff]  ;;  %v9691_v21 = vld [vmem:[%s14943_s5 + $0xe40] sm:$0xff] }
 0x628   : > { %10467 = vmatpush3.msra.mxu1 %v9730_v19  ;;  %4925 = vmatprep.mubr.f32.mxu1 %v4858_v44  ;;  %v9724_v19 = vld [vmem:[%s14943_s5 + $0xf48] sm:$0xff]  ;;  %v9706_v44 = vld [vmem:[%s14943_s5 + $0xeb8] sm:$0xff] }
 0x629   : > { %10435 = vmatprep.subr.mxu0 %v9712_v25  ;;  %10468 = vmatprep.subr.mxu1 %v9745_v3  ;;  %v9739_v25 = vld [vmem:[%s14943_s5 + $0xfc0] sm:$0xff]  ;;  %v9690_v3 = vld [vmem:[%s14943_s5 + $0xe38] sm:$0xff] }
 0x62a   : > { %10436 = vmatpush3.msra.mxu0 %v9696_v30  ;;  %10469 = vmatpush3.msra.mxu1 %v9729_v15  ;;  %v9723_v30 = vld [vmem:[%s14943_s5 + $0xf40] sm:$0xff]  ;;  %v9705_v15 = vld [vmem:[%s14943_s5 + $0xeb0] sm:$0xff] }
 0x62b   : > { %10437 = vmatprep.subr.mxu0 %v9711_v7  ;;  %10470 = vmatprep.subr.mxu1 %v9744_v57  ;;  %v9738_v7 = vld [vmem:[%s14943_s5 + $0xfb8] sm:$0xff]  ;;  %v9689_v57 = vld [vmem:[%s14943_s5 + $0xe30] sm:$0xff] }
 0x62c   : > { %10438 = vmatpush3.msra.mxu0 %v9695_v45  ;;  %10471 = vmatpush3.msra.mxu1 %v9728_v47  ;;  %v9722_v45 = vld [vmem:[%s14943_s5 + $0xf38] sm:$0xff]  ;;  %v9704_v47 = vld [vmem:[%s14943_s5 + $0xea8] sm:$0xff] }
 0x62d   : > { %10439 = vmatprep.subr.mxu0 %v9710_v16  ;;  %10472 = vmatprep.subr.mxu1 %v9743_v28  ;;  %v9737_v16 = vld [vmem:[%s14943_s5 + $0xfb0] sm:$0xff]  ;;  %v9688_v28 = vld [vmem:[%s14943_s5 + $0xe28] sm:$0xff] }
 0x62e   : > { %10440 = vmatpush3.msra.mxu0 %v9694_v33  ;;  %10473 = vmatpush3.msra.mxu1 %v9727_v55  ;;  %v9721_v33 = vld [vmem:[%s14943_s5 + $0xf30] sm:$0xff]  ;;  %v9703_v55 = vld [vmem:[%s14943_s5 + $0xea0] sm:$0xff] }
 0x62f   : > { %10441 = vmatprep.subr.mxu0 %v9709_v56  ;;  %10474 = vmatprep.subr.mxu1 %v9742_v41  ;;  %v9736_v56 = vld [vmem:[%s14943_s5 + $0xfa8] sm:$0xff]  ;;  %v9687_v41 = vld [vmem:[%s14943_s5 + $0xe20] sm:$0xff] }
 0x630   : > { %10442 = vmatpush3.msra.mxu0 %v9693_v51  ;;  %10475 = vmatpush3.msra.mxu1 %v9726_v49  ;;  %v9720_v51 = vld [vmem:[%s14943_s5 + $0xf28] sm:$0xff]  ;;  %v9702_v49 = vld [vmem:[%s14943_s5 + $0xe98] sm:$0xff] }
 0x631   : > { %10443 = vmatprep.subr.mxu0 %v9708_v63  ;;  %10476 = vmatprep.subr.mxu1 %v9741_v59  ;;  %v9735_v63 = vld [vmem:[%s14943_s5 + $0xfa0] sm:$0xff]  ;;  %v9686_v59 = vld [vmem:[%s14943_s5 + $0xe18] sm:$0xff] }
 0x632   : > { %10444 = vmatpush3.msra.mxu0 %v9692_v23  ;;  %10477 = vmatpush3.msra.mxu1 %v9725_v42  ;;  %v9719_v23 = vld [vmem:[%s14943_s5 + $0xf20] sm:$0xff]  ;;  %v9701_v42 = vld [vmem:[%s14943_s5 + $0xe90] sm:$0xff] }
 0x633   : > { %10445 = vmatprep.subr.mxu0 %v9707_v43  ;;  %10478 = vmatprep.subr.mxu1 %v9740_v34  ;;  %v9734_v43 = vld [vmem:[%s14943_s5 + $0xf98] sm:$0xff]  ;;  %v9685_v34 = vld [vmem:[%s14943_s5 + $0xe10] sm:$0xff] }
 0x634   : > { %10446 = vmatpush3.msra.mxu0 %v9691_v21  ;;  %10479 = vmatpush3.msra.mxu1 %v9724_v19  ;;  %v9718_v21 = vld [vmem:[%s14943_s5 + $0xf18] sm:$0xff]  ;;  %v9700_v19 = vld [vmem:[%s14943_s5 + $0xe88] sm:$0xff] }
 0x635   : > { %10447 = vmatprep.subr.mxu0 %v9706_v44  ;;  %10480 = vmatprep.subr.mxu1 %v9739_v25  ;;  %v9733_v44 = vld [vmem:[%s14943_s5 + $0xf90] sm:$0xff]  ;;  %v9684_v25 = vld [vmem:[%s14943_s5 + $0xe08] sm:$0xff] }
 0x636   : > { %10448 = vmatpush3.msra.mxu0 %v9690_v3  ;;  %10481 = vmatpush3.msra.mxu1 %v9723_v30  ;;  %v9717_v3 = vld [vmem:[%s14943_s5 + $0xf10] sm:$0xff]  ;;  %v9699_v30 = vld [vmem:[%s14943_s5 + $0xe80] sm:$0xff] }
 0x637   : > { %10449 = vmatprep.subr.mxu0 %v9705_v15  ;;  %10482 = vmatprep.subr.mxu1 %v9738_v7  ;;  %v9732_v15 = vld [vmem:[%s14943_s5 + $0xf88] sm:$0xff]  ;;  %v9683_v7 = vld [vmem:[%s14943_s5 + $0xe00] sm:$0xff] }
 0x638   : > { %10450 = vmatpush3.msra.mxu0 %v9689_v57  ;;  %10483 = vmatpush3.msra.mxu1 %v9722_v45  ;;  %v9716_v57 = vld [vmem:[%s14943_s5 + $0xf08] sm:$0xff]  ;;  %v9731_v45 = vld [vmem:[%s14943_s5 + $0xf80] sm:$0xff] }
 0x639   : > { %10451 = vmatprep.subr.mxu0 %v9704_v47  ;;  %10484 = vmatprep.subr.mxu1 %v9737_v16  ;;  %v4749_v47 = vrot.slane %v12592_v22, 6  ;;  %v9715_v16 = vld [vmem:[%s14943_s5 + $0xf00] sm:$0xff] }
 0x63a   : > { %10452 = vmatpush3.msra.mxu0 %v9688_v28  ;;  %10485 = vmatpush3.msra.mxu1 %v9721_v33  ;;  %v4857_v28 = vrot.slane %v12592_v22, 7  ;;  %v13203_v33 = vld [vmem:[#allocation2 + $0x30] sm:$0xff] }
 0x63b   : > { %10453 = vmatprep.subr.mxu0 %v9703_v55  ;;  %10486 = vmatprep.subr.mxu1 %v9736_v56  ;;  %v4939_v55 = vld [vmem:[%s14945_s7 + $0x18] sm:$0xff]  ;;  %v4938_v56 = vld [vmem:[%s14945_s7 + $0x10] sm:$0xff] }
 0x63c   : > { %10454 = vmatpush3.msra.mxu0 %v9687_v41  ;;  %10487 = vmatpush3.msra.mxu1 %v9720_v51  ;;  %v4937_v41 = vld [vmem:[%s14945_s7 + $0x8] sm:$0xff]  ;;  %v4936_v51 = vld [vmem:[%s14945_s7] sm:$0xff] }
 0x63d   : > { %10455 = vmatprep.subr.mxu0 %v9702_v49  ;;  %10488 = vmatprep.subr.mxu1 %v9735_v63  ;;  %v9973_v49 = vpop.f32.mrf.mxu0 }
 0x63e   : > { %10456 = vmatpush3.msra.mxu0 %v9686_v59  ;;  %10489 = vmatpush3.msra.mxu1 %v9719_v23  ;;  %v10008_v59 = vpop.f32.mrf.mxu1 }
 0x63f   : > { %10457 = vmatprep.subr.mxu0 %v9701_v42  ;;  %10490 = vmatprep.subr.mxu1 %v9734_v43  ;;  %v9974_v63 = vpop.f32.mrf.mxu0  ;;  %v3212_v43 = vld [vmem:[%s14944_s6] sm:$0x1] }
 0x640   : > { %10458 = vmatpush3.msra.mxu0 %v9685_v34  ;;  %10491 = vmatpush3.msra.mxu1 %v9718_v21  ;;  %v9975_v42 = vadd.f32 %v9974_v63, %v9973_v49  ;;  %v10009_v34 = vpop.f32.mrf.mxu1 }
 0x641   : > { %10459 = vmatprep.subr.mxu0 %v9700_v19  ;;  %10492 = vmatprep.subr.mxu1 %v9733_v44  ;;  %v10043_v23 = vpop.f32.mrf.mxu0 }
 0x642   : > { %10460 = vmatpush3.msra.mxu0 %v9684_v25  ;;  %10493 = vmatpush3.msra.mxu1 %v9717_v3  ;;  %v10078_v19 = vpop.f32.mrf.mxu1  ;;  %v3315_v44 = vadd.f32 %v9975_v42, %v3212_v43  ;;  %v10010_v25 = vadd.f32 %v10009_v34, %v10008_v59 }
 0x643   : > { %10461 = vmatprep.subr.mxu0 %v9699_v30  ;;  %10494 = vmatprep.subr.mxu1 %v9732_v15  ;;  %v10044_v21 = vpop.f32.mrf.mxu0 }
 0x644   : > { %10462 = vmatpush3.msra.mxu0 %v9683_v7  ;;  %10495 = vmatpush3.msra.mxu1 %v9716_v57  ;;  %v10045_v30 = vadd.f32 %v10044_v21, %v10043_v23  ;;  %v10079_v15 = vpop.f32.mrf.mxu1  ;;  %v3423_v7 = vadd.f32 %v10010_v25, %v3315_v44 }
 0x645   : > { %4818 = vmatmul.mubr.f32.vlgmr.msra.gmra.mxu0 %v4749_v47  ;;  %10496 = vmatprep.subr.mxu1 %v9731_v45 }
 0x646   : > { %10497 = vmatpush3.msra.mxu1 %v9715_v16  ;;  %10509 = vmatprep.subr.mxu0 %v13203_v33  ;;  %v3531_v47 = vadd.f32 %v10045_v30, %v3423_v7  ;;  %v10080_v16 = vadd.f32 %v10079_v15, %v10078_v19 }
 0x647   : > { %4926 = vmatmul.mubr.f32.vlgmr.msra.gmra.mxu1 %v4857_v28  ;;  %10520 = vmatprep.subr.mxu1 %v13203_v33 }
 0x648   : > { %10510 = vmatpush3.msra.mxu0 %v4939_v55  ;;  %10517 = vmatprep.mubr.msk.f32.mxu0 %vm10696_vm5, %v13203_v33 }
 0x649   : > { %10511 = vmatprep.subr.mxu0 %v13203_v33  ;;  %10524 = vmatprep.mubr.msk.f32.mxu1 %vm10696_vm5, %v13203_v33 }
 0x64a   : > { %10512 = vmatpush3.msra.mxu0 %v4938_v56 }
 0x64b   : > { %10513 = vmatprep.subr.mxu0 %v13203_v33 }
 0x64c   : > { %10514 = vmatpush3.msra.mxu0 %v4937_v41  ;;  %v3639_v41 = vadd.f32 %v10080_v16, %v3531_v47 }
 0x64d   : > { %10515 = vmatprep.subr.mxu0 %v13203_v33 }
 0x64e   : > { %10516 = vmatpush3.msra.mxu0 %v4936_v51 }
 0x65b   : > { %v10113_v3 = vpop.f32.mrf.mxu0 }
 0x65d   : > { %v10114_v57 = vpop.f32.mrf.mxu0 }
 0x65e   : > { %v10148_v45 = vpop.f32.mrf.mxu1  ;;  %v10115_v55 = vadd.f32 %v10114_v57, %v10113_v3 }
 0x660   : > { %v10149_v56 = vpop.f32.mrf.mxu1  ;;  %v3747_v63 = vadd.f32 %v10115_v55, %v3639_v41 }
 0x661   : > { %v10150_v48 = vadd.f32 %v10149_v56, %v10148_v45 }
 0x663   : > { %v3855_v59 = vadd.f32 %v10150_v48, %v3747_v63 }
 0x67d   : > { %v10183_v28 = vpop.f32.mrf.mxu0 }
 0x67f   : > { %v10184_v51 = vpop.f32.mrf.mxu0  ;;  %v10218_v49 = vpop.f32.mrf.mxu1 }
 0x680   : > { %v10185_v20 = vadd.f32 %v10184_v51, %v10183_v28 }
 0x681   : > { %v10219_v42 = vpop.f32.mrf.mxu1 }
 0x682   : > { %v3963_v34 = vadd.f32 %v10185_v20, %v3855_v59  ;;  %v10220_v21 = vadd.f32 %v10219_v42, %v10218_v49 }
 0x684   : > { %v4071_v19 = vadd.f32 %v10220_v21, %v3963_v34 }
 0x69f   : > { %v10253_v12 = vpop.f32.mrf.mxu0 }
 0x6a1   : > { %v10254_v43 = vpop.f32.mrf.mxu0 }
 0x6a2   : > { %v10288_v23 = vpop.f32.mrf.mxu1  ;;  %v10255_v25 = vadd.f32 %v10254_v43, %v10253_v12 }
 0x6a4   : > { %v10289_v30 = vpop.f32.mrf.mxu1  ;;  %v4175_v7 = vadd.f32 %v10255_v25, %v4071_v19 }
 0x6a5   : > { %v10290_v57 = vadd.f32 %v10289_v30, %v10288_v23 }
 0x6a7   : > { %v4283_v45 = vadd.f32 %v10290_v57, %v4175_v7 }
 0x6c1   : > { %v10323_v44 = vpop.f32.mrf.mxu0 }
 0x6c3   : > { %v10324_v15 = vpop.f32.mrf.mxu0 }
 0x6c4   : > { %v10358_v3 = vpop.f32.mrf.mxu1  ;;  %v10325_v16 = vadd.f32 %v10324_v15, %v10323_v44 }
 0x6c6   : > { %v10359_v55 = vpop.f32.mrf.mxu1  ;;  %v4391_v41 = vadd.f32 %v10325_v16, %v4283_v45  ;;  %v5018_v45 = vcvt.s32.f32 %v10782_v2  ;;  %v5026_v2 = vld [vmem:[%s14947_s9] sm:$0xff] }
 0x6c7   : > { %v10360_v48 = vadd.f32 %v10359_v55, %v10358_v3  ;;  %v4940_v3 = vld [vmem:[%s14946_s8] sm:$0x1]  ;;  %v5027_v55 = vld [vmem:[%s14947_s9 + $0x8] sm:$0x3] }
 0x6c8   : > { %10521 = vmatpush3.msk.msra.mxu1 %vm5032_vm6, %v5027_v55 }
 0x6c9   : > { %v4499_v20 = vadd.f32 %v10360_v48, %v4391_v41  ;;  %10522 = vmatprep.subr.mxu1 %v13203_v33 }
 0x6ca   : > { %10523 = vmatpush3.msra.mxu1 %v5026_v2 }
 0x6e3   : > { %v10393_v47 = vpop.f32.mrf.mxu0 }
 0x6e5   : > { %v10394_v56 = vpop.f32.mrf.mxu0 }
 0x6e6   : > { %v10428_v28 = vpop.f32.mrf.mxu1  ;;  %v10395_v51 = vadd.f32 %v10394_v56, %v10393_v47 }
 0x6e8   : > { %v10429_v63 = vpop.f32.mrf.mxu1  ;;  %v4607_v49 = vadd.f32 %v10395_v51, %v4499_v20 }
 0x6e9   : > { %v10430_v42 = vadd.f32 %v10429_v63, %v10428_v28 }
 0x6eb   : > { %v4715_v34 = vadd.f32 %v10430_v42, %v4607_v49 }
 0x705   : > { %v10463_v12 = vpop.f32.mrf.mxu0 }
 0x707   : > { %v10464_v59 = vpop.f32.mrf.mxu0  ;;  %v10498_v43 = vpop.f32.mrf.mxu1 }
 0x708   : > { %v10465_v21 = vadd.f32 %v10464_v59, %v10463_v12 }
 0x709   : > { %v10499_v25 = vpop.f32.mrf.mxu1 }
 0x70a   : > { %v4823_v23 = vadd.f32 %v10465_v21, %v4715_v34  ;;  %v10500_v30 = vadd.f32 %v10499_v25, %v10498_v43 }
 0x70c   : > { %v4931_v44 = vadd.f32 %v10500_v30, %v4823_v23 }
 0x70e   : > { %vm4932_vm13 = vcmp.gt.f32.partialorder %v4931_v44, 0.0 }
 0x70f   : > { %v13228_v19 = vsel %vm4932_vm13, 1.0, %v13203_v33 }
 0x710   : > { %v4935_v15 = vmul.f32 %v13228_v19, %v4931_v44 }
 0x712   : > { %10518 = vmatmul.mubr.msk.f32.vlgmr.msra.gmra.mxu0 %vm15049_vm4, %v4935_v15 }
 0x713   : > { %5185 = vmatprep.mubr.f32.mxu0 %v13203_v33 }
 0x7d2   : > { %v5010_v7 = vpop.f32.mrf.mxu0 }
 0x7d3   : > { %v5011_v57 = vadd.f32 %v5010_v7, %v4940_v3 }
 0x7d4   : > { %v10519_v47 = vpop.f32.mrf.mxu0 }
 0x7d5   : > { %v5015_v16 = vsel %vm5014_vm9, %v5011_v57, -inf }
 0x7d6   : > { %5016 = vmax.xlane.f32.xlu0 %v5015_v16 }
 0x7ec   : > { %2964 = vrot.lane.b32.xlu0 %v12592_v22, %s10692_s22 }
 0x7f0   : > { %2960 = vrot.lane.b32.xlu0 %v11811_v27, %s10692_s22 }
 0x7f4   : > { %3060 = vrot.lane.b32.xlu0 %v12592_v22, %s10694_s27 }
 0x7f8   : > { %3056 = vrot.lane.b32.xlu0 %v11811_v27, %s10694_s27 }
 0x85f   : > { %v5017_v56 = vpop.xlane.xlu0 %5016 }
 0x860   : > { %vm5019_vm12 = vcmp.eq.f32.partialorder %v5011_v57, %v5017_v56 }
 0x861   : > { %v5020_v28 = vsel %vm5019_vm12, %v5018_v45, 1e+09 }
 0x862   : > { %v5021_v41 = vsel %vm5014_vm9, %v5020_v28, inf }
 0x863   : > { %5022 = vmin.xlane.f32.xlu1 %v5021_v41  ;;  %v2965_v48 = vpop.permute.xlu0 %2964 }
 0x864   : > { %vm2979_vm10 = vcmp.eq.f32.partialorder %v11639_v50, %v2965_v48 }
 0x865   : > { %v13253_v51 = vsel %vm2979_vm10, 1.0, %v13203_v33 }
 0x866   : > { %v3023_v63 = vsub.f32 1.0, %v13253_v51 }
 0x867   : > { %v2961_v49 = vpop.permute.xlu0 %2960 }
 0x868   : > { %3038 = vrot.lane.b32.xlu0 %v3023_v63, %s10691_s30  ;;  %vm2976_vm9 = vcmp.eq.f32.partialorder %v11605_v53, %v2961_v49 }
 0x869   : > { %v13282_v44 = vsel %vm2976_vm9, 1.0, %v13203_v33 }
 0x86a   : > { %v3020_v7 = vsub.f32 1.0, %v13282_v44 }
 0x86b   : > { %v3061_v34 = vpop.permute.xlu0 %3060 }
 0x86c   : > { %vm3075_vm12 = vcmp.eq.f32.partialorder %v11639_v50, %v3061_v34 }
 0x86d   : > { %v13296_v16 = vsel %vm3075_vm12, 1.0, %v13203_v33 }
 0x86e   : > { %v3119_v28 = vsub.f32 1.0, %v13296_v16 }
 0x86f   : > { %v3057_v56 = vpop.permute.xlu0 %3056 }
 0x870   : > { %vm3072_vm9 = vcmp.eq.f32.partialorder %v11605_v53, %v3057_v56 }
 0x874   : > { %2966 = vrot.lane.b32.xlu1 %v12557_v37, %s10692_s22 }
 0x878   : > { %2962 = vrot.lane.b32.xlu1 %v11806_v10, %s10692_s22 }
 0x87c   : > { %3062 = vrot.lane.b32.xlu1 %v12557_v37, %s10694_s27 }
 0x880   : > { %3058 = vrot.lane.b32.xlu1 %v11806_v10, %s10694_s27 }
 0x8ec   : > { %v5023_v20 = vpop.xlane.xlu1 %5022 }
 0x8ed   : > { %vm5024_vm5 = vcmp.eq.f32.partialorder %v5018_v45, %v5023_v20 }
 0x8ee   : > { %v5025_v42 = vsel %vm5024_vm5, %v5011_v57, 0.0 }
 0x8ef   : > { %10525 = vmatmul.mubr.msk.f32.vlgmr.msra.gmra.mxu1 %vm5028_vm14, %v5025_v42 }
 0x8f0   : > { %v2967_v12 = vpop.permute.xlu1 %2966  ;;  %5283 = vmatprep.mubr.f32.mxu1 %v13203_v33 }
 0x8f1   : > { %v2969_v59 = vsel %vm15050_vm2, %v2965_v48, %v2967_v12  ;;  %vm2981_vm13 = vcmp.eq.f32.partialorder %v13203_v33, %v2967_v12  ;;  %v13322_v12 = vsel %vm3072_vm9, 1.0, %v13203_v33 }
 0x8f2   : > { %vm2980_vm6 = vcmp.eq.f32.partialorder %v11608_v62, %v2969_v59  ;;  %v13274_v43 = vsel %vm2981_vm13, 1.0, %v13203_v33 }
 0x8f3   : > { %v3025_v21 = vsub.f32 1.0, %v13274_v43  ;;  %v13278_v25 = vsel %vm2980_vm6, 1.0, %v13203_v33 }
 0x8f4   : > { %v2963_v23 = vpop.permute.xlu1 %2962  ;;  %v3024_v30 = vsub.f32 1.0, %v13278_v25 }
 0x8f5   : > { %v2968_v15 = vsel %vm15050_vm2, %v2961_v49, %v2963_v23  ;;  %3042 = vrot.lane.b32.xlu0 %v3025_v21, %s10691_s30  ;;  %vm2978_vm14 = vcmp.eq.f32.partialorder %v13203_v33, %v2963_v23 }
 0x8f6   : > { %vm2977_vm10 = vcmp.eq.f32.partialorder %v11570_v36, %v2968_v15  ;;  %3040 = vrot.lane.b32.xlu1 %v3024_v30, %s10691_s30  ;;  %v13299_v55 = vsel %vm2978_vm14, 1.0, %v13203_v33  ;;  %vm2940_vm14 = vcmp.eq.f32.partialorder %v11605_v53, %v11811_v27 }
 0x8f7   : > { %v13291_v3 = vsel %vm2977_vm10, 1.0, %v13203_v33  ;;  %v3022_v41 = vsub.f32 1.0, %v13299_v55  ;;  %vm2942_vm10 = vcmp.eq.f32.partialorder %v11639_v50, %v12592_v22 }
 0x8f8   : > { %v3021_v57 = vsub.f32 1.0, %v13291_v3  ;;  %v3063_v47 = vpop.permute.xlu1 %3062  ;;  %v13338_v30 = vsel %vm2942_vm10, 1.0, %v13203_v33 }
 0x8f9   : > { %v3065_v45 = vsel %vm15049_vm4, %v3061_v34, %v3063_v47  ;;  %vm3077_vm13 = vcmp.eq.f32.partialorder %v13203_v33, %v3063_v47  ;;  %v3116_v34 = vsub.f32 1.0, %v13322_v12  ;;  %15148 = vst [vmem:[#allocation54_spill] sm:$0xff] %v13338_v30 }
 0x8fa   : > { %vm3076_vm5 = vcmp.eq.f32.partialorder %v11608_v62, %v3065_v45  ;;  %3032 = vrot.lane.b32.xlu1 %v3020_v7, %s10691_s30  ;;  %3034 = vrot.lane.b32.xlu0 %v3021_v57, %s10691_s30  ;;  %v13312_v2 = vsel %vm3077_vm13, 1.0, %v13203_v33  ;;  %v2954_v7 = vsub.f32 1.0, %v13338_v30  ;;  %v13349_v57 = vsel %vm2940_vm14, 1.0, %v13203_v33 }
 0x8fb   : > { %v13309_v63 = vsel %vm3076_vm5, 1.0, %v13203_v33  ;;  %v3121_v42 = vsub.f32 1.0, %v13312_v2  ;;  %vm2943_vm5 = vcmp.eq.f32.partialorder %v11608_v62, %v12557_v37  ;;  %vm2941_vm13 = vcmp.eq.f32.partialorder %v11570_v36, %v11806_v10 }
 0x8fc   : > { %v3059_v48 = vpop.permute.xlu1 %3058  ;;  %v3120_v49 = vsub.f32 1.0, %v13309_v63  ;;  %v13352_v47 = vsel %vm2943_vm5, 1.0, %v13203_v33  ;;  %v2952_v45 = vsub.f32 1.0, %v13349_v57 }
 0x8fd   : > { %v3064_v20 = vsel %vm15049_vm4, %v3057_v56, %v3059_v48  ;;  %vm3074_vm12 = vcmp.eq.f32.partialorder %v13203_v33, %v3059_v48  ;;  %15149 = vst [vmem:[#allocation55_spill] sm:$0xff] %v13352_v47  ;;  %v2955_v56 = vsub.f32 1.0, %v13352_v47  ;;  %v5117_v48 = vld [vmem:[%s14948_s10 + $0x38] sm:$0xff]  ;;  %v9754_v47 = vld [vmem:[%s14948_s10 + $0x50] sm:$0xff] }
 0x8fe   : > { %vm3073_vm6 = vcmp.eq.f32.partialorder %v11570_v36, %v3064_v20  ;;  %3036 = vrot.lane.b32.xlu1 %v3022_v41, %s10691_s30  ;;  %3134 = vrot.lane.b32.xlu0 %v3119_v28, %s10688_s24  ;;  %v13335_v23 = vsel %vm3074_vm12, 1.0, %v13203_v33  ;;  %v13361_v28 = vsel %vm2941_vm13, 1.0, %v13203_v33  ;;  %v9759_v20 = vld [vmem:[%s14948_s10 + $0x78] sm:$0xff] }
 0x8ff   : > { %v13325_v59 = vsel %vm3073_vm6, 1.0, %v13203_v33  ;;  %v3118_v15 = vsub.f32 1.0, %v13335_v23  ;;  %v2953_v41 = vsub.f32 1.0, %v13361_v28  ;;  %5145 = vmatprep.subr.mxu0 %v5117_v48  ;;  %5243 = vmatprep.subr.mxu1 %v9759_v20  ;;  %v9756_v48 = vld [vmem:[%s14948_s10 + $0x60] sm:$0xff]  ;;  %v5113_v20 = vld [vmem:[%s14948_s10 + $0x18] sm:$0xff] }
 0x900   : > { %v3117_v21 = vsub.f32 1.0, %v13325_v59 }
 0x902   : > { %3138 = vrot.lane.b32.xlu0 %v3121_v42, %s10688_s24  ;;  %3136 = vrot.lane.b32.xlu1 %v3120_v49, %s10688_s24  ;;  %v5116_v49 = vld [vmem:[%s14948_s10 + $0x30] sm:$0xff] }
 0x903   : > { %v9758_v42 = vld [vmem:[%s14948_s10 + $0x70] sm:$0xff]  ;;  %5146 = vmatpush1.msra.mxu0 %v5116_v49 }
 0x904   : > { %5244 = vmatpush1.msra.mxu1 %v9758_v42  ;;  %v5112_v49 = vld [vmem:[%s14948_s10 + $0x10] sm:$0xff]  ;;  %v5111_v42 = vld [vmem:[%s14948_s10 + $0x8] sm:$0xff] }
 0x906   : > { %3128 = vrot.lane.b32.xlu1 %v3116_v34, %s10688_s24  ;;  %3130 = vrot.lane.b32.xlu0 %v3117_v21, %s10688_s24  ;;  %v5115_v34 = vld [vmem:[%s14948_s10 + $0x28] sm:$0xff] }
 0x907   : > { %v9757_v21 = vld [vmem:[%s14948_s10 + $0x68] sm:$0xff]  ;;  %5147 = vmatprep.subr.mxu0 %v5115_v34 }
 0x908   : > { %5245 = vmatprep.subr.mxu1 %v9757_v21  ;;  %v9753_v34 = vld [vmem:[%s14948_s10 + $0x48] sm:$0xff]  ;;  %v5110_v21 = vld [vmem:[%s14948_s10] sm:$0xff] }
 0x909   : > { %5246 = vmatpush1.msra.mxu1 %v9756_v48  ;;  %v3039_v48 = vpop.permute.xlu0 %3038 }
 0x90a   : > { %3132 = vrot.lane.b32.xlu1 %v3118_v15, %s10688_s24  ;;  %3002 = vrot.lane.b32.xlu0 %v2954_v7, %s10692_s22  ;;  %v5114_v15 = vld [vmem:[%s14948_s10 + $0x20] sm:$0xff] }
 0x90b   : > { %5148 = vmatpush1.msra.mxu0 %v5114_v15  ;;  %5247 = vmatprep.subr.mxu1 %v9755_v60  ;;  %v9752_v60 = vld [vmem:[%s14948_s10 + $0x40] sm:$0xff]  ;;  %v9777_v15 = vld [vmem:[%s14948_s10 + $0xf8] sm:$0xff] }
 0x90c   : > { %5149 = vmatprep.subr.mxu0 %v5113_v20  ;;  %5248 = vmatpush1.msra.mxu1 %v9754_v47  ;;  %v9768_v47 = vld [vmem:[%s14948_s10 + $0xb8] sm:$0xff] }
 0x90d   : > { %5150 = vmatpush1.msra.mxu0 %v5112_v49  ;;  %5249 = vmatprep.subr.mxu1 %v9753_v34 }
 0x90e   : > { %2998 = vrot.lane.b32.xlu0 %v2952_v45, %s10692_s22  ;;  %3004 = vrot.lane.b32.xlu1 %v2955_v56, %s10692_s22 }
 0x90f   : > { %5151 = vmatprep.subr.mxu0 %v5111_v42  ;;  %5250 = vmatpush1.msra.mxu1 %v9752_v60 }
 0x910   : > { %5152 = vmatpush1.msra.mxu0 %v5110_v21  ;;  %5447 = vmatprep.subr.mxu1 %v9777_v15 }
 0x911   : > { %5345 = vmatprep.subr.mxu0 %v9768_v47 }
 0x912   : > { %3000 = vrot.lane.b32.xlu1 %v2953_v41, %s10692_s22 }
 0x967   : > { %v3043_v20 = vpop.permute.xlu0 %3042 }
 0x968   : > { %v3041_v49 = vpop.permute.xlu1 %3040 }
 0x969   : > { %v3046_v42 = vsel %vm2157_vm15, %v3039_v48, %v3041_v49  ;;  %v3047_v34 = vsel %vm2157_vm15, %v3041_v49, %v3043_v20 }
 0x96a   : > { %v3054_v54 = vmul.f32 %v3046_v42, %v2954_v7  ;;  %v3055_v21 = vmul.f32 %v3047_v34, %v2955_v56 }
 0x96c   : > { %v3033_v60 = vpop.permute.xlu1 %3032  ;;  %3098 = vrot.lane.b32.xlu0 %v3054_v54, %s10694_s27  ;;  %v3035_v30 = vpop.permute.xlu0 %3034  ;;  %3100 = vrot.lane.b32.xlu1 %v3055_v21, %s10694_s27 }
 0x96d   : > { %v3044_v1 = vsel %vm2157_vm15, %v3033_v60, %v3035_v30 }
 0x96e   : > { %v3052_v32 = vmul.f32 %v3044_v1, %v2952_v45 }
 0x970   : > { %v3037_v47 = vpop.permute.xlu1 %3036  ;;  %3094 = vrot.lane.b32.xlu0 %v3052_v32, %s10694_s27  ;;  %v3135_v15 = vpop.permute.xlu0 %3134 }
 0x971   : > { %v3045_v39 = vsel %vm2157_vm15, %v3035_v30, %v3037_v47 }
 0x972   : > { %v3053_v48 = vmul.f32 %v3045_v39, %v2953_v41 }
 0x974   : > { %v3137_v31 = vpop.permute.xlu1 %3136  ;;  %3156 = vrot.lane.b32.xlu0 %v12592_v22, %s10695_s15  ;;  %v3139_v7 = vpop.permute.xlu0 %3138  ;;  %3096 = vrot.lane.b32.xlu1 %v3053_v48, %s10694_s27 }
 0x975   : > { %v3142_v56 = vsel %vm1827_vm7, %v3135_v15, %v3137_v31  ;;  %v3143_v39 = vsel %vm1827_vm7, %v3137_v31, %v3139_v7  ;;  %v9767_v7 = vld [vmem:[%s14948_s10 + $0xb0] sm:$0xff] }
 0x976   : > { %v3150_v45 = vmul.f32 %v3142_v56, %v3054_v54  ;;  %v3151_v22 = vmul.f32 %v3143_v39, %v3055_v21  ;;  %v9766_v56 = vld [vmem:[%s14948_s10 + $0xa8] sm:$0xff]  ;;  %v9763_v39 = vld [vmem:[%s14948_s10 + $0x90] sm:$0xff] }
 0x978   : > { %v3129_v20 = vpop.permute.xlu1 %3128  ;;  %3152 = vrot.lane.b32.xlu0 %v11811_v27, %s10695_s15  ;;  %v3131_v1 = vpop.permute.xlu0 %3130  ;;  %3158 = vrot.lane.b32.xlu1 %v12557_v37, %s10695_s15 }
 0x979   : > { %v3140_v30 = vsel %vm1827_vm7, %v3129_v20, %v3131_v1  ;;  %v9774_v20 = vld [vmem:[%s14948_s10 + $0xe0] sm:$0xff] }
 0x97a   : > { %v3148_v49 = vmul.f32 %v3140_v30, %v3052_v32  ;;  %v9772_v30 = vld [vmem:[%s14948_s10 + $0xd0] sm:$0xff] }
 0x97c   : > { %v3133_v41 = vpop.permute.xlu1 %3132  ;;  %3194 = vrot.lane.b32.xlu0 %v3150_v45, %s10695_s15  ;;  %3154 = vrot.lane.b32.xlu1 %v11806_v10, %s10695_s15  ;;  %v3003_v27 = vpop.permute.xlu0 %3002  ;;  %v9773_v45 = vld [vmem:[%s14948_s10 + $0xd8] sm:$0xff] }
 0x97d   : > { %v3141_v42 = vsel %vm1827_vm7, %v3131_v1, %v3133_v41  ;;  %v3017_v31 = vmul.f32 %v13253_v51, %v3003_v27  ;;  %v9764_v1 = vld [vmem:[%s14948_s10 + $0x98] sm:$0xff]  ;;  %v9762_v41 = vld [vmem:[%s14948_s10 + $0x88] sm:$0xff] }
 0x97e   : > { %v3149_v54 = vmul.f32 %v3141_v42, %v3053_v48  ;;  %v9770_v42 = vld [vmem:[%s14948_s10 + $0xc0] sm:$0xff] }
 0x980   : > { %3190 = vrot.lane.b32.xlu0 %v3148_v49, %s10695_s15  ;;  %v3005_v34 = vpop.permute.xlu1 %3004  ;;  %3196 = vrot.lane.b32.xlu1 %v3151_v22, %s10695_s15  ;;  %v2999_v10 = vpop.permute.xlu0 %2998  ;;  %v9771_v22 = vld [vmem:[%s14948_s10 + $0xc8] sm:$0xff]  ;;  %v9761_v49 = vld [vmem:[%s14948_s10 + $0x80] sm:$0xff] }
 0x981   : > { %v3007_v37 = vsel %vm15050_vm2, %v3003_v27, %v3005_v34  ;;  %v3019_v21 = vmul.f32 %v13274_v43, %v3005_v34  ;;  %v3014_v51 = vmul.f32 %v13282_v44, %v2999_v10  ;;  %v9776_v44 = vld [vmem:[%s14948_s10 + $0xf0] sm:$0xff]  ;;  %v9786_v27 = vld [vmem:[%s14948_s10 + $0x138] sm:$0xff] }
 0x982   : > { %v3018_v32 = vmul.f32 %v13278_v25, %v3007_v37  ;;  %v9795_v34 = vld [vmem:[%s14948_s10 + $0x178] sm:$0xff]  ;;  %v9784_v37 = vld [vmem:[%s14948_s10 + $0x128] sm:$0xff] }
 0x984   : > { %6786 = vrot.lane.b32.xlu0 %v3017_v31, %s10691_s30  ;;  %v3001_v60 = vpop.permute.xlu1 %3000  ;;  %3192 = vrot.lane.b32.xlu1 %v3149_v54, %s10695_s15  ;;  %v9785_v54 = vld [vmem:[%s14948_s10 + $0x130] sm:$0xff] }
 0x985   : > { %v3006_v47 = vsel %vm15050_vm2, %v2999_v10, %v3001_v60  ;;  %v3016_v48 = vmul.f32 %v13299_v55, %v3001_v60  ;;  %v9775_v55 = vld [vmem:[%s14948_s10 + $0xe8] sm:$0xff]  ;;  %v9794_v31 = vld [vmem:[%s14948_s10 + $0x170] sm:$0xff]  ;;  %v9783_v10 = vld [vmem:[%s14948_s10 + $0x120] sm:$0xff] }
 0x986   : > { %v3015_v15 = vmul.f32 %v13291_v3, %v3006_v47  ;;  %v9793_v60 = vld [vmem:[%s14948_s10 + $0x168] sm:$0xff]  ;;  %v9791_v47 = vld [vmem:[%s14948_s10 + $0x158] sm:$0xff] }
 0x988   : > { %6790 = vrot.lane.b32.xlu0 %v3019_v21, %s10691_s30  ;;  %6788 = vrot.lane.b32.xlu1 %v3018_v32, %s10691_s30  ;;  %v9792_v32 = vld [vmem:[%s14948_s10 + $0x160] sm:$0xff]  ;;  %v9782_v21 = vld [vmem:[%s14948_s10 + $0x118] sm:$0xff] }
 0x98c   : > { %6782 = vrot.lane.b32.xlu0 %v3015_v15, %s10691_s30  ;;  %6780 = vrot.lane.b32.xlu1 %v3014_v51, %s10691_s30  ;;  %v9781_v51 = vld [vmem:[%s14948_s10 + $0x110] sm:$0xff] }
 0x98d   : > { %v9790_v15 = vld [vmem:[%s14948_s10 + $0x150] sm:$0xff] }
 0x990   : > { %6784 = vrot.lane.b32.xlu1 %v3016_v48, %s10691_s30  ;;  %v9780_v48 = vld [vmem:[%s14948_s10 + $0x108] sm:$0xff] }
 0x9af   : > { %v5102_v25 = vpop.f32.mrf.mxu1 }
 0x9b0   : > { %v13460_v43 = vmul.f32 %v13228_v19, %v5102_v25  ;;  %v9765_v19 = vld [vmem:[%s14948_s10 + $0xa0] sm:$0xff]  ;;  %v9789_v25 = vld [vmem:[%s14948_s10 + $0x148] sm:$0xff] }
 0x9b1   : > { %v10526_v3 = vpop.f32.mrf.mxu1 }
 0x9b2   : > { %9751 = vmatmul.mubr.msk.f32.vlgmr.msra.gmra.mxu0 %vm15049_vm4, %v13460_v43  ;;  %9760 = vmatmul.mubr.msk.f32.vlgmr.msra.gmra.mxu1 %vm15049_vm4, %v13460_v43  ;;  %v9804_v3 = vld [vmem:[%s14948_s10 + $0x1b8] sm:$0xff] }
 0x9b3   : > { %5346 = vmatpush1.msra.mxu0 %v9767_v7  ;;  %5448 = vmatpush1.msra.mxu1 %v9776_v44  ;;  %v9779_v7 = vld [vmem:[%s14948_s10 + $0x100] sm:$0xff] }
 0x9b4   : > { %5347 = vmatprep.subr.mxu0 %v9766_v56  ;;  %5449 = vmatprep.subr.mxu1 %v9775_v55  ;;  %v9788_v44 = vld [vmem:[%s14948_s10 + $0x140] sm:$0xff]  ;;  %v9813_v56 = vld [vmem:[%s14948_s10 + $0x1f8] sm:$0xff]  ;;  %v9803_v55 = vld [vmem:[%s14948_s10 + $0x1b0] sm:$0xff] }
 0x9b5   : > { %5348 = vmatpush1.msra.mxu0 %v9765_v19  ;;  %5450 = vmatpush1.msra.mxu1 %v9774_v20  ;;  %v9812_v19 = vld [vmem:[%s14948_s10 + $0x1f0] sm:$0xff]  ;;  %v9802_v20 = vld [vmem:[%s14948_s10 + $0x1a8] sm:$0xff] }
 0x9b6   : > { %5349 = vmatprep.subr.mxu0 %v9764_v1  ;;  %5451 = vmatprep.subr.mxu1 %v9773_v45  ;;  %v9811_v1 = vld [vmem:[%s14948_s10 + $0x1e8] sm:$0xff]  ;;  %v9801_v45 = vld [vmem:[%s14948_s10 + $0x1a0] sm:$0xff] }
 0x9b7   : > { %5350 = vmatpush1.msra.mxu0 %v9763_v39  ;;  %5452 = vmatpush1.msra.mxu1 %v9772_v30  ;;  %v9810_v39 = vld [vmem:[%s14948_s10 + $0x1e0] sm:$0xff]  ;;  %v9800_v30 = vld [vmem:[%s14948_s10 + $0x198] sm:$0xff] }
 0x9b8   : > { %5351 = vmatprep.subr.mxu0 %v9762_v41  ;;  %5453 = vmatprep.subr.mxu1 %v9771_v22  ;;  %v9809_v41 = vld [vmem:[%s14948_s10 + $0x1d8] sm:$0xff]  ;;  %v9799_v22 = vld [vmem:[%s14948_s10 + $0x190] sm:$0xff] }
 0x9b9   : > { %5352 = vmatpush1.msra.mxu0 %v9761_v49  ;;  %5385 = vmatprep.mubr.f32.mxu0 %v13203_v33  ;;  %v9808_v49 = vld [vmem:[%s14948_s10 + $0x1d0] sm:$0xff] }
 0x9ba   : > { %5454 = vmatpush1.msra.mxu1 %v9770_v42  ;;  %5487 = vmatprep.mubr.f32.mxu1 %v13203_v33  ;;  %v9798_v42 = vld [vmem:[%s14948_s10 + $0x188] sm:$0xff] }
 0x9bb   : > { %9769 = vmatmul.mubr.msk.f32.vlgmr.msra.gmra.mxu0 %vm15049_vm4, %v13460_v43  ;;  %9778 = vmatmul.mubr.msk.f32.vlgmr.msra.gmra.mxu1 %vm15049_vm4, %v13460_v43 }
 0x9bc   : > { %5549 = vmatprep.subr.mxu0 %v9786_v27  ;;  %5651 = vmatprep.subr.mxu1 %v9795_v34  ;;  %v9807_v27 = vld [vmem:[%s14948_s10 + $0x1c8] sm:$0xff]  ;;  %v9797_v34 = vld [vmem:[%s14948_s10 + $0x180] sm:$0xff] }
 0x9bd   : > { %5550 = vmatpush1.msra.mxu0 %v9785_v54  ;;  %5652 = vmatpush1.msra.mxu1 %v9794_v31  ;;  %v9806_v54 = vld [vmem:[%s14948_s10 + $0x1c0] sm:$0xff]  ;;  %v9822_v31 = vld [vmem:[%s14948_s10 + $0x238] sm:$0xff] }
 0x9be   : > { %5551 = vmatprep.subr.mxu0 %v9784_v37  ;;  %5653 = vmatprep.subr.mxu1 %v9793_v60  ;;  %v9831_v37 = vld [vmem:[%s14948_s10 + $0x278] sm:$0xff]  ;;  %v9821_v60 = vld [vmem:[%s14948_s10 + $0x230] sm:$0xff] }
 0x9bf   : > { %5552 = vmatpush1.msra.mxu0 %v9783_v10  ;;  %5654 = vmatpush1.msra.mxu1 %v9792_v32  ;;  %v9830_v10 = vld [vmem:[%s14948_s10 + $0x270] sm:$0xff]  ;;  %v9820_v32 = vld [vmem:[%s14948_s10 + $0x228] sm:$0xff] }
 0x9c0   : > { %5553 = vmatprep.subr.mxu0 %v9782_v21  ;;  %5655 = vmatprep.subr.mxu1 %v9791_v47  ;;  %v9829_v21 = vld [vmem:[%s14948_s10 + $0x268] sm:$0xff]  ;;  %v9819_v47 = vld [vmem:[%s14948_s10 + $0x220] sm:$0xff] }
 0x9c1   : > { %5554 = vmatpush1.msra.mxu0 %v9781_v51  ;;  %5656 = vmatpush1.msra.mxu1 %v9790_v15  ;;  %v9828_v51 = vld [vmem:[%s14948_s10 + $0x260] sm:$0xff]  ;;  %v9818_v15 = vld [vmem:[%s14948_s10 + $0x218] sm:$0xff] }
 0x9c2   : > { %5555 = vmatprep.subr.mxu0 %v9780_v48  ;;  %5657 = vmatprep.subr.mxu1 %v9789_v25  ;;  %v9827_v48 = vld [vmem:[%s14948_s10 + $0x258] sm:$0xff]  ;;  %v9817_v25 = vld [vmem:[%s14948_s10 + $0x210] sm:$0xff] }
 0x9c3   : > { %5556 = vmatpush1.msra.mxu0 %v9779_v7  ;;  %5589 = vmatprep.mubr.f32.mxu0 %v13203_v33  ;;  %v9826_v7 = vld [vmem:[%s14948_s10 + $0x250] sm:$0xff] }
 0x9c4   : > { %5658 = vmatpush1.msra.mxu1 %v9788_v44  ;;  %5691 = vmatprep.mubr.f32.mxu1 %v13203_v33  ;;  %v9816_v44 = vld [vmem:[%s14948_s10 + $0x208] sm:$0xff] }
 0x9c5   : > { %9787 = vmatmul.mubr.msk.f32.vlgmr.msra.gmra.mxu0 %vm15049_vm4, %v13460_v43  ;;  %9796 = vmatmul.mubr.msk.f32.vlgmr.msra.gmra.mxu1 %vm15049_vm4, %v13460_v43 }
 0x9c6   : > { %5753 = vmatprep.subr.mxu0 %v9804_v3  ;;  %5855 = vmatprep.subr.mxu1 %v9813_v56  ;;  %v9825_v3 = vld [vmem:[%s14948_s10 + $0x248] sm:$0xff]  ;;  %v9815_v56 = vld [vmem:[%s14948_s10 + $0x200] sm:$0xff] }
 0x9c7   : > { %5754 = vmatpush1.msra.mxu0 %v9803_v55  ;;  %5856 = vmatpush1.msra.mxu1 %v9812_v19  ;;  %v9824_v55 = vld [vmem:[%s14948_s10 + $0x240] sm:$0xff]  ;;  %v9840_v19 = vld [vmem:[%s14948_s10 + $0x2b8] sm:$0xff] }
 0x9c8   : > { %5755 = vmatprep.subr.mxu0 %v9802_v20  ;;  %5857 = vmatprep.subr.mxu1 %v9811_v1  ;;  %v9849_v20 = vld [vmem:[%s14948_s10 + $0x2f8] sm:$0xff]  ;;  %v9839_v1 = vld [vmem:[%s14948_s10 + $0x2b0] sm:$0xff] }
 0x9c9   : > { %5756 = vmatpush1.msra.mxu0 %v9801_v45  ;;  %5858 = vmatpush1.msra.mxu1 %v9810_v39  ;;  %v9848_v45 = vld [vmem:[%s14948_s10 + $0x2f0] sm:$0xff]  ;;  %v9838_v39 = vld [vmem:[%s14948_s10 + $0x2a8] sm:$0xff] }
 0x9ca   : > { %5757 = vmatprep.subr.mxu0 %v9800_v30  ;;  %5859 = vmatprep.subr.mxu1 %v9809_v41  ;;  %v9847_v30 = vld [vmem:[%s14948_s10 + $0x2e8] sm:$0xff]  ;;  %v9837_v41 = vld [vmem:[%s14948_s10 + $0x2a0] sm:$0xff] }
 0x9cb   : > { %5758 = vmatpush1.msra.mxu0 %v9799_v22  ;;  %5860 = vmatpush1.msra.mxu1 %v9808_v49  ;;  %v9846_v22 = vld [vmem:[%s14948_s10 + $0x2e0] sm:$0xff]  ;;  %v9836_v49 = vld [vmem:[%s14948_s10 + $0x298] sm:$0xff] }
 0x9cc   : > { %5759 = vmatprep.subr.mxu0 %v9798_v42  ;;  %5861 = vmatprep.subr.mxu1 %v9807_v27  ;;  %v9845_v42 = vld [vmem:[%s14948_s10 + $0x2d8] sm:$0xff]  ;;  %v9835_v27 = vld [vmem:[%s14948_s10 + $0x290] sm:$0xff] }
 0x9cd   : > { %5760 = vmatpush1.msra.mxu0 %v9797_v34  ;;  %5793 = vmatprep.mubr.f32.mxu0 %v13203_v33  ;;  %v9844_v34 = vld [vmem:[%s14948_s10 + $0x2d0] sm:$0xff] }
 0x9ce   : > { %5862 = vmatpush1.msra.mxu1 %v9806_v54  ;;  %5895 = vmatprep.mubr.f32.mxu1 %v13203_v33  ;;  %v9834_v54 = vld [vmem:[%s14948_s10 + $0x288] sm:$0xff] }
 0x9cf   : > { %9805 = vmatmul.mubr.msk.f32.vlgmr.msra.gmra.mxu0 %vm15049_vm4, %v13460_v43  ;;  %9814 = vmatmul.mubr.msk.f32.vlgmr.msra.gmra.mxu1 %vm15049_vm4, %v13460_v43 }
 0x9d0   : > { %5957 = vmatprep.subr.mxu0 %v9822_v31  ;;  %6059 = vmatprep.subr.mxu1 %v9831_v37  ;;  %v9843_v31 = vld [vmem:[%s14948_s10 + $0x2c8] sm:$0xff]  ;;  %v9833_v37 = vld [vmem:[%s14948_s10 + $0x280] sm:$0xff] }
 0x9d1   : > { %5958 = vmatpush1.msra.mxu0 %v9821_v60  ;;  %6060 = vmatpush1.msra.mxu1 %v9830_v10  ;;  %v9842_v10 = vld [vmem:[%s14948_s10 + $0x2c0] sm:$0xff] }
 0x9d2   : > { %5959 = vmatprep.subr.mxu0 %v9820_v32  ;;  %6061 = vmatprep.subr.mxu1 %v9829_v21  ;;  %v9858_v32 = vld [vmem:[%s14948_s10 + $0x338] sm:$0xff] }
 0x9d3   : > { %5960 = vmatpush1.msra.mxu0 %v9819_v47  ;;  %6062 = vmatpush1.msra.mxu1 %v9828_v51  ;;  %v9867_v21 = vld [vmem:[%s14948_s10 + $0x378] sm:$0xff]  ;;  %v9857_v47 = vld [vmem:[%s14948_s10 + $0x330] sm:$0xff] }
 0x9d4   : > { %5961 = vmatprep.subr.mxu0 %v9818_v15  ;;  %6063 = vmatprep.subr.mxu1 %v9827_v48  ;;  %v9866_v51 = vld [vmem:[%s14948_s10 + $0x370] sm:$0xff]  ;;  %v9856_v48 = vld [vmem:[%s14948_s10 + $0x328] sm:$0xff] }
 0x9d5   : > { %5962 = vmatpush1.msra.mxu0 %v9817_v25  ;;  %6064 = vmatpush1.msra.mxu1 %v9826_v7  ;;  %v9865_v25 = vld [vmem:[%s14948_s10 + $0x368] sm:$0xff]  ;;  %v9855_v7 = vld [vmem:[%s14948_s10 + $0x320] sm:$0xff] }
 0x9d6   : > { %5963 = vmatprep.subr.mxu0 %v9816_v44  ;;  %6065 = vmatprep.subr.mxu1 %v9825_v3  ;;  %v9864_v44 = vld [vmem:[%s14948_s10 + $0x360] sm:$0xff] }
 0x9d7   : > { %5964 = vmatpush1.msra.mxu0 %v9815_v56  ;;  %5997 = vmatprep.mubr.f32.mxu0 %v13203_v33  ;;  %v9854_v56 = vld [vmem:[%s14948_s10 + $0x318] sm:$0xff] }
 0x9d8   : > { %6066 = vmatpush1.msra.mxu1 %v9824_v55  ;;  %6099 = vmatprep.mubr.f32.mxu1 %v13203_v33  ;;  %v9863_v55 = vld [vmem:[%s14948_s10 + $0x358] sm:$0xff] }
 0x9d9   : > { %9823 = vmatmul.mubr.msk.f32.vlgmr.msra.gmra.mxu0 %vm15049_vm4, %v13460_v43  ;;  %9832 = vmatmul.mubr.msk.f32.vlgmr.msra.gmra.mxu1 %vm15049_vm4, %v13460_v43 }
 0x9da   : > { %6161 = vmatprep.subr.mxu0 %v9840_v19  ;;  %6263 = vmatprep.subr.mxu1 %v9849_v20  ;;  %v9853_v19 = vld [vmem:[%s14948_s10 + $0x310] sm:$0xff] }
 0x9db   : > { %6162 = vmatpush1.msra.mxu0 %v9839_v1  ;;  %6264 = vmatpush1.msra.mxu1 %v9848_v45  ;;  %v9862_v20 = vld [vmem:[%s14948_s10 + $0x350] sm:$0xff]  ;;  %v9852_v45 = vld [vmem:[%s14948_s10 + $0x308] sm:$0xff] }
 0x9dc   : > { %6163 = vmatprep.subr.mxu0 %v9838_v39  ;;  %6265 = vmatprep.subr.mxu1 %v9847_v30  ;;  %v9861_v39 = vld [vmem:[%s14948_s10 + $0x348] sm:$0xff]  ;;  %v9851_v30 = vld [vmem:[%s14948_s10 + $0x300] sm:$0xff] }
 0x9dd   : > { %6164 = vmatpush1.msra.mxu0 %v9837_v41  ;;  %6266 = vmatpush1.msra.mxu1 %v9846_v22  ;;  %v9860_v22 = vld [vmem:[%s14948_s10 + $0x340] sm:$0xff] }
 0x9de   : > { %6165 = vmatprep.subr.mxu0 %v9836_v49  ;;  %6267 = vmatprep.subr.mxu1 %v9845_v42  ;;  %v3099_v60 = vpop.permute.xlu0 %3098  ;;  %v13738_v15 = vpop.permute.xlu1 %3100 }
 0x9df   : > { %6166 = vmatpush1.msra.mxu0 %v9835_v27  ;;  %6268 = vmatpush1.msra.mxu1 %v9844_v34  ;;  %v3103_v41 = vsel %vm15049_vm4, %v3099_v60, %v13738_v15  ;;  %v3113_v27 = vmul.f32 %v13296_v16, %v3099_v60  ;;  %v9876_v34 = vld [vmem:[%s14948_s10 + $0x3b8] sm:$0xff]  ;;  %v9875_v16 = vld [vmem:[%s14948_s10 + $0x3b0] sm:$0xff]  ;;  %v9883_v60 = vld [vmem:[%s14948_s10 + $0x3e8] sm:$0xff] }
 0x9e0   : > { %6167 = vmatprep.subr.mxu0 %v9834_v54  ;;  %6269 = vmatprep.subr.mxu1 %v9843_v31  ;;  %v9885_v54 = vld [vmem:[%s14948_s10 + $0x3f8] sm:$0xff]  ;;  %v3114_v31 = vmul.f32 %v13309_v63, %v3103_v41  ;;  %v9874_v63 = vld [vmem:[%s14948_s10 + $0x3a8] sm:$0xff]  ;;  %v9878_v41 = vld [vmem:[%s14948_s10 + $0x3c0] sm:$0xff] }
 0x9e1   : > { %6168 = vmatpush1.msra.mxu0 %v9833_v37  ;;  %6201 = vmatprep.mubr.f32.mxu0 %v13203_v33  ;;  %v13799_v37 = vld [vmem:[#allocation2 + $0x30] sm:$0xff] }
 0x9e2   : > { %6270 = vmatpush1.msra.mxu1 %v9842_v10  ;;  %6303 = vmatprep.mubr.f32.mxu1 %v13203_v33  ;;  %v13756_v3 = vpop.permute.xlu0 %3094 }
 0x9e3   : > { %9841 = vmatmul.mubr.msk.f32.vlgmr.msra.gmra.mxu0 %vm15049_vm4, %v13460_v43  ;;  %9850 = vmatmul.mubr.msk.f32.vlgmr.msra.gmra.mxu1 %vm15049_vm4, %v13460_v43 }
 0x9e4   : > { %6365 = vmatprep.subr.mxu0 %v9858_v32  ;;  %6467 = vmatprep.subr.mxu1 %v9867_v21  ;;  %v9873_v32 = vld [vmem:[%s14948_s10 + $0x3a0] sm:$0xff] }
 0x9e5   : > { %6366 = vmatpush1.msra.mxu0 %v9857_v47  ;;  %6468 = vmatpush1.msra.mxu1 %v9866_v51  ;;  %v9882_v21 = vld [vmem:[%s14948_s10 + $0x3e0] sm:$0xff]  ;;  %v9872_v47 = vld [vmem:[%s14948_s10 + $0x398] sm:$0xff] }
 0x9e6   : > { %6367 = vmatprep.subr.mxu0 %v9856_v48  ;;  %6469 = vmatprep.subr.mxu1 %v9865_v25  ;;  %v13770_v1 = vpop.permute.xlu1 %3096  ;;  %v13786_v49 = vpop.permute.xlu0 %3156  ;;  %v9881_v51 = vld [vmem:[%s14948_s10 + $0x3d8] sm:$0xff]  ;;  %v3110_v25 = vmul.f32 %v13322_v12, %v13756_v3 }
 0x9e7   : > { %6368 = vmatpush1.msra.mxu0 %v9855_v7  ;;  %6470 = vmatpush1.msra.mxu1 %v9864_v44  ;;  %v9871_v7 = vld [vmem:[%s14948_s10 + $0x390] sm:$0xff]  ;;  %v6740_v44 = vshra.s32 %v10786_v4, 1  ;;  %v3102_v12 = vsel %vm15049_vm4, %v13756_v3, %v13770_v1  ;;  %v9869_v3 = vld [vmem:[%s14948_s10 + $0x380] sm:$0xff]  ;;  %vm3171_vm9 = vcmp.eq.f32.partialorder %v11639_v50, %v13786_v49 }
 0x9e8   : > { %6369 = vmatprep.subr.mxu0 %v9854_v56  ;;  %6471 = vmatprep.subr.mxu1 %v9863_v55  ;;  %v3115_v56 = vmul.f32 %v13312_v2, %v13738_v15  ;;  %v9880_v55 = vld [vmem:[%s14948_s10 + $0x3d0] sm:$0xff]  ;;  %v9879_v2 = vld [vmem:[%s14948_s10 + $0x3c8] sm:$0xff] }
 0x9e9   : > { %6370 = vmatpush1.msra.mxu0 %v9853_v19  ;;  %6472 = vmatpush1.msra.mxu1 %v9862_v20  ;;  %v6744_v19 = vshra.s32 %v10789_v5, 1  ;;  %v9870_v20 = vld [vmem:[%s14948_s10 + $0x388] sm:$0xff] }
 0x9ea   : > { %6371 = vmatprep.subr.mxu0 %v9852_v45  ;;  %6473 = vmatprep.subr.mxu1 %v9861_v39  ;;  %v13788_v42 = vpop.permute.xlu1 %3158  ;;  %v13834_v48 = vpop.permute.xlu0 %3152  ;;  %v6741_v45 = vshra.s32 %v10791_v6, 1  ;;  %v6745_v39 = vshra.s32 %v10794_v8, 1 }
 0x9eb   : > { %6372 = vmatpush1.msra.mxu0 %v9851_v30  ;;  %6405 = vmatprep.mubr.f32.mxu0 %v13203_v33  ;;  %v9884_v33 = vld [vmem:[%s14948_s10 + $0x3f0] sm:$0xff]  ;;  %v3161_v15 = vsel %vm1945_vm0, %v13786_v49, %v13788_v42  ;;  %vm3173_vm10 = vcmp.eq.f32.partialorder %v13799_v37, %v13788_v42 }
 0x9ec   : > { %6474 = vmatpush1.msra.mxu1 %v9860_v22  ;;  %6507 = vmatprep.mubr.f32.mxu1 %v13799_v37  ;;  %v13872_v22 = vand.u32 1, %v6740_v44  ;;  %vm3172_vm6 = vcmp.eq.f32.partialorder %v11608_v62, %v3161_v15  ;;  %v9264_v62 = vsel %vm3171_vm9, 1.0, %v13799_v37  ;;  %vm3168_vm9 = vcmp.eq.f32.partialorder %v11605_v53, %v13834_v48 }
 0x9ed   : > { %9859 = vmatmul.mubr.msk.f32.vlgmr.msra.gmra.mxu0 %vm15049_vm4, %v13460_v43  ;;  %9868 = vmatmul.mubr.msk.f32.vlgmr.msra.gmra.mxu1 %vm15049_vm4, %v13460_v43  ;;  %v9266_v42 = vsel %vm3173_vm10, 1.0, %v13799_v37 }
 0x9ee   : > { %6569 = vmatprep.subr.mxu0 %v9876_v34  ;;  %6671 = vmatprep.subr.mxu1 %v9885_v54  ;;  %v13818_v10 = vpop.permute.xlu1 %3154  ;;  %v3112_v34 = vmul.f32 %v13335_v23, %v13770_v1  ;;  %v3195_v54 = vpop.permute.xlu0 %3194  ;;  %vm15051_vm12 = vcmp.eq.s32.totalorder %v13872_v22, 0  ;;  %vm6902_vm3 = vcmp.eq.s32.totalorder %v13872_v22, 1 }
 0x9ef   : > { %6880 = vrot.lane.b32.xlu0 %v3113_v27, %s10688_s24  ;;  %6570 = vmatpush1.msra.mxu0 %v9875_v16  ;;  %v3111_v27 = vmul.f32 %v13325_v59, %v3102_v12  ;;  %v9265_v59 = vsel %vm3172_vm6, 1.0, %v13799_v37  ;;  %v3209_v23 = vmul.f32 %v9264_v62, %v3195_v54  ;;  %v3160_v50 = vsel %vm1945_vm0, %v13834_v48, %v13818_v10 }
 0x9f0   : > { %6672 = vmatpush1.msra.mxu1 %v9884_v33  ;;  %6882 = vrot.lane.b32.xlu1 %v3114_v31, %s10688_s24  ;;  %v13878_v31 = vand.u32 1, %v6744_v19  ;;  %v13882_v33 = vand.u32 1, %v6741_v45  ;;  %vm3169_vm2 = vcmp.eq.f32.partialorder %v11570_v36, %v3160_v50  ;;  %vm3170_vm11 = vcmp.eq.f32.partialorder %v13799_v37, %v13818_v10 }
 0x9f1   : > { %6571 = vmatprep.subr.mxu0 %v9874_v63  ;;  %6673 = vmatprep.subr.mxu1 %v9883_v60  ;;  %v13884_v63 = vand.u32 1, %v6745_v39  ;;  %v9263_v44 = vsel %vm3170_vm11, 1.0, %v13799_v37 }
 0x9f2   : > { %6572 = vmatpush1.msra.mxu0 %v9873_v32  ;;  %6674 = vmatpush1.msra.mxu1 %v9882_v21  ;;  %v3197_v30 = vpop.permute.xlu1 %3196  ;;  %vm6808_vm14 = vcmp.eq.s32.totalorder %v13878_v31, 1  ;;  %vm15053_vm5 = vcmp.eq.s32.totalorder %v13882_v33, 0  ;;  %vm6758_vm6 = vcmp.eq.s32.totalorder %v13878_v31, 0  ;;  %v3191_v49 = vpop.permute.xlu0 %3190  ;;  %v9261_v21 = vsel %vm3168_vm9, 1.0, %v13799_v37 }
 0x9f3   : > { %6573 = vmatprep.subr.mxu0 %v9872_v47  ;;  %6675 = vmatprep.subr.mxu1 %v9881_v51  ;;  %v3199_v16 = vsel %vm1945_vm0, %v3195_v54, %v3197_v30  ;;  %vm6809_vm13 = vcmp.eq.s32.totalorder %v13884_v63, 1  ;;  %vm13918_vm1 = vmand %vm15051_vm12, %vm6808_vm14  ;;  %vm6759_vm8 = vcmp.eq.s32.totalorder %v13884_v63, 0  ;;  %v3211_v53 = vmul.f32 %v9266_v42, %v3197_v30 }
 0x9f4   : > { %6884 = vrot.lane.b32.xlu0 %v3115_v56, %s10688_s24  ;;  %6574 = vmatpush1.msra.mxu0 %v9871_v7  ;;  %v3210_v1 = vmul.f32 %v9265_v59, %v3199_v16  ;;  %vm13931_vm10 = vmand %vm15053_vm5, %vm6809_vm13  ;;  %v3206_v51 = vmul.f32 %v9261_v21, %v3191_v49  ;;  %v9889_v10 = vsel %vm13918_vm1, 1.0, %v13799_v37  ;;  %v15159_v32 = vlaneseq }
 0x9f5   : > { %6676 = vmatpush1.msra.mxu1 %v9880_v55  ;;  %6874 = vrot.lane.b32.xlu1 %v3110_v25, %s10688_s24  ;;  %vm13941_vm12 = vmand %vm6902_vm3, %vm6758_vm6  ;;  %v9262_v25 = vsel %vm3169_vm2, 1.0, %v13799_v37  ;;  %v9890_v56 = vsel %vm13931_vm10, 1.0, %v13799_v37  ;;  %vm15163_vm10 = vcmask 769024  }
 0x9f6   : > { %6575 = vmatprep.subr.mxu0 %v9870_v20  ;;  %6677 = vmatprep.subr.mxu1 %v9879_v2  ;;  %v9891_v55 = vsel %vm13941_vm12, 1.0, %v13799_v37  ;;  %vm6996_vm2 = vmand %vm6902_vm3, %vm6808_vm14  ;;  %v10635_v20 = vpack.i.bf16 %v9890_v56, %v9889_v10  ;;  %v14019_v21 = vshrl.u32 %v15159_v32, 7 }
 0x9f7   : > { %6576 = vmatpush1.msra.mxu0 %v9869_v3  ;;  %6609 = vmatprep.mubr.f32.mxu0 %v13799_v37  ;;  %v9893_v15 = vsel %vm6996_vm2, 1.0, %v13799_v37  ;;  %v13986_v3 = vpop.permute.xlu0 %6786  ;;  %vm15165_vm2 = vmmov %vm15163_vm10 }
 0x9f8   : > { %6678 = vmatpush1.msra.mxu1 %v9878_v41  ;;  %6711 = vmatprep.mubr.f32.mxu1 %v13799_v37  ;;  %vm5192_vm1 = vcmp.eq.s32.totalorder %v14019_v21, 0  ;;  %vm5392_vm3 = vcmp.eq.s32.totalorder %v14019_v21, 2  ;;  %vm5494_vm12 = vcmp.eq.s32.totalorder %v14019_v21, 3  ;;  %vm5596_vm14 = vcmp.eq.s32.totalorder %v14019_v21, 4 }
 0x9f9   : > { %9877 = vmatmul.mubr.msk.f32.vlgmr.msra.gmra.mxu0 %vm15049_vm4, %v13460_v43  ;;  %9886 = vmatmul.mubr.msk.f32.vlgmr.msra.gmra.mxu1 %vm15049_vm4, %v13460_v43  ;;  %v3193_v43 = vpop.permute.xlu1 %3192  ;;  %vm6903_vm4 = vcmp.eq.s32.totalorder %v13882_v33, 1  ;;  %vm5902_vm9 = vcmp.eq.s32.totalorder %v14019_v21, 7 }
 0x9fa   : > { %6876 = vrot.lane.b32.xlu0 %v3111_v27, %s10688_s24  ;;  %6878 = vrot.lane.b32.xlu1 %v3112_v34, %s10688_s24  ;;  %v3198_v47 = vsel %vm1945_vm0, %v3191_v49, %v3193_v43  ;;  %vm13951_vm5 = vmand %vm6903_vm4, %vm6759_vm8  ;;  %v3208_v12 = vmul.f32 %v9263_v44, %v3193_v43 }
 0x9fb   : > { %7176 = vmatprep.mubr.f32.mxu0 %v13799_v37  ;;  %7276 = vmatprep.mubr.f32.mxu1 %v13799_v37  ;;  %v3207_v7 = vmul.f32 %v9262_v25, %v3198_v47  ;;  %v9892_v19 = vsel %vm13951_vm5, 1.0, %v13799_v37  ;;  %vm6997_vm11 = vmand %vm6903_vm4, %vm6809_vm13  ;;  %v13990_v41 = vpop.permute.xlu0 %6790  ;;  %v14026_v25 = vsub.s32 0, %v14019_v21  ;;  %vm5290_vm4 = vcmp.eq.s32.totalorder %v14019_v21, 1 }
 0x9fc   : > { %v10640_v2 = vpack.i.bf16 %v9892_v19, %v9891_v55  ;;  %v9894_v45 = vsel %vm6997_vm11, 1.0, %v13799_v37  ;;  %vm5698_vm5 = vcmp.eq.s32.totalorder %v14019_v21, 5  ;;  %vm5800_vm13 = vcmp.eq.s32.totalorder %v14019_v21, 6  ;;  %vm15167_vm11 = vmmov %vm15165_vm2 }
 0x9fd   : > { %v10645_v39 = vpack.i.bf16 %v9894_v45, %v9893_v15  ;;  %v13988_v30 = vpop.permute.xlu1 %6788 }
 0x9fe   : > { %6974 = vrot.lane.b32.xlu0 %v3209_v23, %s15152_s28  ;;  %6976 = vrot.lane.b32.xlu1 %v3210_v1, %s15152_s28 }
 0x9ff   : > { %v13994_v34 = vpop.permute.xlu0 %6782 }
 0xa01   : > { %v13992_v27 = vpop.permute.xlu1 %6780 }
 0xa02   : > { %6978 = vrot.lane.b32.xlu0 %v3211_v53, %s15152_s28  ;;  %6968 = vrot.lane.b32.xlu1 %v3206_v51, %s15152_s28 }
 0xa05   : > { %v13996_v54 = vpop.permute.xlu1 %6784 }
 0xa06   : > { %6970 = vrot.lane.b32.xlu0 %v3207_v7, %s15152_s28  ;;  %6972 = vrot.lane.b32.xlu1 %v3208_v12, %s15152_s28 }
 0xa0a   : > { %10636 = vrot.lane.b32.xlu0 %v10635_v20, %s10691_s30  ;;  %10641 = vrot.lane.b32.xlu1 %v10640_v2, %s10688_s24 }
 0xa0e   : > { %10646 = vrot.lane.b32.xlu0 %v10645_v39, %s15152_s28 }
 0xa61   : > { %v13998_v16 = vpop.permute.xlu0 %6880 }
 0xa62   : > { %v14000_v62 = vpop.permute.xlu1 %6882 }
 0xa66   : > { %v14002_v59 = vpop.permute.xlu0 %6884 }
 0xa67   : > { %v14004_v23 = vpop.permute.xlu1 %6874 }
 0xa6c   : > { %v14006_v1 = vpop.permute.xlu0 %6876  ;;  %v14008_v50 = vpop.permute.xlu1 %6878 }
 0xa70   : > { %v14010_v43 = vpop.permute.xlu0 %6974  ;;  %v14012_v49 = vpop.permute.xlu1 %6976 }
 0xa72   : > { %v5187_v53 = vpop.f32.mrf.mxu0  ;;  %v5285_v51 = vpop.f32.mrf.mxu1 }
 0xa73   : > { %v5201_v12 = vrot.slane %v5187_v53, %v14026_v25  ;;  %v5299_v20 = vrot.slane %v5285_v51, %v14026_v25 }
 0xa74   : > { %v14014_v42 = vpop.permute.xlu0 %6978  ;;  %v14016_v60 = vpop.permute.xlu1 %6968 }
 0xa75   : > { %v5189_v48 = vpop.f32.mrf.mxu0  ;;  %v5287_v55 = vpop.f32.mrf.mxu1 }
 0xa76   : > { %v5205_v45 = vrot.slane %v5189_v48, %v14026_v25  ;;  %v5303_v39 = vrot.slane %v5287_v55, %v14026_v25  ;;  %v5206_v48 = vsel %vm5192_vm1, %v5201_v12, 0.0  ;;  %v5304_v55 = vsel %vm5290_vm4, %v5299_v20, 0.0 }
 0xa77   : > { %v5308_v5 = vadd.f32 %v5304_v55, %v5206_v48 }
 0xa78   : > { %v14021_v47 = vpop.permute.xlu0 %6970  ;;  %v14023_v36 = vpop.permute.xlu1 %6972  ;;  %v5305_v53 = vsel %vm5290_vm4, %v5303_v39, 0.0 }
 0xa7b   : > { %v5387_v7 = vpop.f32.mrf.mxu0  ;;  %v5489_v51 = vpop.f32.mrf.mxu1 }
 0xa7c   : > { %v14028_v10 = vpop.permute.xlu0 %10636  ;;  %v14030_v44 = vpop.permute.xlu1 %10641  ;;  %v5401_v19 = vrot.slane %v5387_v7, %v14026_v25  ;;  %v5503_v4 = vrot.slane %v5489_v51, %v14026_v25 }
 0xa7d   : > { %v15054_v56 = vunpack.i.l.bf16 %v14028_v10  ;;  %v5389_v15 = vpop.f32.mrf.mxu0 }
 0xa7e   : > { %v5405_v7 = vrot.slane %v5389_v15, %v14026_v25  ;;  %v5406_v6 = vsel %vm5392_vm3, %v5401_v19, 0.0  ;;  %v5508_v51 = vsel %vm5494_vm12, %v5503_v4, 0.0 }
 0xa7f   : > { %v6835_v2 = vmul.f32 %v13799_v37, %v15054_v56  ;;  %v15160_v56 = vunpack.i.l.bf16 %v14030_v44  ;;  %v5410_v19 = vadd.f32 %v5406_v6, %v5308_v5  ;;  %v7078_v5 = vmul.f32 %v13799_v37, %v11294_v13 }
 0xa80   : > { %v14043_v32 = vpop.permute.xlu0 %10646 }
 0xa81   : > { %6850 = vrot.lane.b32.xlu1 %v6835_v2, %s10692_s22  ;;  %6844 = vrot.lane.b32.xlu0 %v6835_v2, %s10692_s22  ;;  %v6929_v8 = vmul.f32 %v13799_v37, %v15160_v56  ;;  %v5207_v2 = vsel %vm5192_vm1, %v5205_v45, 0.0  ;;  %v5491_v56 = vpop.f32.mrf.mxu1  ;;  %v15161_v12 = vunpack.i.l.bf16 %v14043_v32  ;;  %v5407_v45 = vsel %vm5392_vm3, %v5405_v7, 0.0 }
 0xa82   : > { %v5309_v61 = vadd.f32 %v5305_v53, %v5207_v2  ;;  %v5507_v55 = vrot.slane %v5491_v56, %v14026_v25 }
 0xa83   : > { %v7021_v20 = vmul.f32 %v13799_v37, %v15161_v12 }
 0xa84   : > { %v5411_v9 = vadd.f32 %v5407_v45, %v5309_v61  ;;  %v5509_v53 = vsel %vm5494_vm12, %v5507_v55, 0.0 }
 0xa85   : > { %6944 = vrot.lane.b32.xlu1 %v6929_v8, %s10694_s27  ;;  %6938 = vrot.lane.b32.xlu0 %v6929_v8, %s10694_s27  ;;  %v5591_v15 = vpop.f32.mrf.mxu0  ;;  %v5693_v8 = vpop.f32.mrf.mxu1 }
 0xa86   : > { %v5605_v39 = vrot.slane %v5591_v15, %v14026_v25  ;;  %v5512_v15 = vadd.f32 %v5508_v51, %v5410_v19  ;;  %v5707_v2 = vrot.slane %v5693_v8, %v14026_v25  ;;  %v5513_v14 = vadd.f32 %v5509_v53, %v5411_v9 }
 0xa87   : > { %v5593_v48 = vpop.f32.mrf.mxu0  ;;  %v5695_v6 = vpop.f32.mrf.mxu1 }
 0xa88   : > { %v5609_v12 = vrot.slane %v5593_v48, %v14026_v25  ;;  %v5610_v7 = vsel %vm5596_vm14, %v5605_v39, 0.0  ;;  %v5711_v4 = vrot.slane %v5695_v6, %v14026_v25  ;;  %v5712_v45 = vsel %vm5698_vm5, %v5707_v2, 0.0 }
 0xa89   : > { %7036 = vrot.lane.b32.xlu1 %v7021_v20, %s10695_s15  ;;  %7030 = vrot.lane.b32.xlu0 %v7021_v20, %s10695_s15  ;;  %v5614_v56 = vadd.f32 %v5610_v7, %v5512_v15  ;;  %v14095_v15 = vunpack.i.h.bf16 %v14028_v10 }
 0xa8a   : > { %v5611_v26 = vsel %vm5596_vm14, %v5609_v12, 0.0  ;;  %v5713_v55 = vsel %vm5698_vm5, %v5711_v4, 0.0 }
 0xa8b   : > { %v5615_v61 = vadd.f32 %v5611_v26, %v5513_v14  ;;  %v5716_v9 = vadd.f32 %v5712_v45, %v5614_v56  ;;  %v6792_v56 = vsel %vm2157_vm15, %v13992_v27, %v13994_v34  ;;  %v6793_v27 = vsel %vm2157_vm15, %v13994_v34, %v13996_v54 }
 0xa8c   : > { %v14143_v54 = vunpack.i.h.bf16 %v14043_v32 }
 0xa8d   : > { %7095 = vrot.lane.b32.xlu1 %v7078_v5, %s10694_s27  ;;  %7089 = vrot.lane.b32.xlu0 %v7078_v5, %s10694_s27  ;;  %v5717_v26 = vadd.f32 %v5713_v55, %v5615_v61  ;;  %v15164_v55 = vunpack.i.l.bf16 %v14030_v44 }
 0xa8f   : > { %v5795_v20 = vpop.f32.mrf.mxu0  ;;  %v5897_v13 = vpop.f32.mrf.mxu1 }
 0xa90   : > { %v5809_v39 = vrot.slane %v5795_v20, %v14026_v25  ;;  %v5911_v19 = vrot.slane %v5897_v13, %v14026_v25  ;;  %v6886_v20 = vsel %vm1827_vm7, %v14004_v23, %v14006_v1  ;;  %v15162_v13 = vunpack.i.l.bf16 %v14028_v10 }
 0xa91   : > { %v5797_v8 = vpop.f32.mrf.mxu0  ;;  %v5899_v48 = vpop.f32.mrf.mxu1  ;;  %v6887_v10 = vsel %vm1827_vm7, %v14006_v1, %v14008_v50 }
 0xa92   : > { %v5814_v12 = vsel %vm5800_vm13, %v5809_v39, 0.0  ;;  %v5813_v14 = vrot.slane %v5797_v8, %v14026_v25  ;;  %v5915_v7 = vrot.slane %v5899_v48, %v14026_v25  ;;  %v5916_v5 = vsel %vm5902_vm9, %v5911_v19, 0.0 }
 0xa93   : > { %v5818_v51 = vadd.f32 %v5814_v12, %v5716_v9  ;;  %v14116_v45 = vsel %vm2157_vm15, %v15162_v13, %v14095_v15  ;;  %v14119_v39 = vunpack.i.h.bf16 %v14030_v44  ;;  %v6980_v48 = vsel %vm15163_vm10, %v14016_v60, %v14021_v47  ;;  %vm15168_vm10 = vmmov %vm15165_vm2 }
 0xa94   : > { %v5815_v6 = vsel %vm5800_vm13, %v5813_v14, 0.0  ;;  %v5917_v61 = vsel %vm5902_vm9, %v5915_v7, 0.0  ;;  %v6981_v60 = vsel %vm15165_vm2, %v14021_v47, %v14023_v36  ;;  %v14167_v36 = vadd.s32 8, %v14019_v21 }
 0xa95   : > { %v14101_v53 = vadd.f32 %v5916_v5, %v5818_v51  ;;  %v5819_v2 = vadd.f32 %v5815_v6, %v5717_v26  ;;  %v14140_v34 = vsel %vm1827_vm7, %v15164_v55, %v14119_v39  ;;  %v15166_v26 = vunpack.i.l.bf16 %v14043_v32 }
 0xa96   : > { %vm6005_vm1 = vcmp.eq.s32.totalorder %v14167_v36, 8  ;;  %vm6107_vm4 = vcmp.eq.s32.totalorder %v14167_v36, 9  ;;  %vm6209_vm3 = vcmp.eq.s32.totalorder %v14167_v36, 10  ;;  %vm6311_vm12 = vcmp.eq.s32.totalorder %v14167_v36, 11 }
 0xa97   : > { %v6800_v4 = vmul.f32 %v6792_v56, %v14101_v53  ;;  %v14121_v19 = vadd.f32 %v5917_v61, %v5819_v2  ;;  %v6894_v9 = vmul.f32 %v6886_v20, %v14101_v53  ;;  %v6988_v1 = vmul.f32 %v6980_v48, %v14101_v53 }
 0xa98   : > { %v14158_v51 = vsel %vm15167_vm11, %v15166_v26, %v14143_v54  ;;  %vm6413_vm14 = vcmp.eq.s32.totalorder %v14167_v36, 12  ;;  %vm6515_vm5 = vcmp.eq.s32.totalorder %v14167_v36, 13  ;;  %vm6617_vm13 = vcmp.eq.s32.totalorder %v14167_v36, 14 }
 0xa99   : > { %v6833_v8 = vmul.f32 %v14116_v45, %v6800_v4  ;;  %v6801_v23 = vmul.f32 %v6793_v27, %v14121_v19  ;;  %v6895_v12 = vmul.f32 %v6887_v10, %v14121_v19  ;;  %v6927_v50 = vmul.f32 %v14140_v34, %v6894_v9  ;;  %v5999_v44 = vpop.f32.mrf.mxu0  ;;  %v6101_v2 = vpop.f32.mrf.mxu1 }
 0xa9a   : > { %v6989_v7 = vmul.f32 %v6981_v60, %v14121_v19  ;;  %v7019_v6 = vmul.f32 %v14158_v51, %v6988_v1  ;;  %v6013_v61 = vrot.slane %v5999_v44, %v14026_v25  ;;  %v6115_v20 = vrot.slane %v6101_v2, %v14026_v25 }
 0xa9b   : > { %6846 = vrot.lane.b32.xlu1 %v6833_v8, %s10692_s22  ;;  %v6834_v14 = vmul.f32 %v14095_v15, %v6801_v23  ;;  %v6928_v5 = vmul.f32 %v14119_v39, %v6895_v12  ;;  %v6001_v56 = vpop.f32.mrf.mxu0  ;;  %v6103_v4 = vpop.f32.mrf.mxu1  ;;  %vm6719_vm9 = vcmp.eq.s32.totalorder %v14167_v36, 15  ;;  %vm15171_vm11 = vcmp.eq.s32.totalorder %v13872_v22, 0 }
 0xa9c   : > { %v7020_v47 = vmul.f32 %v14143_v54, %v6989_v7  ;;  %v6017_v27 = vrot.slane %v6001_v56, %v14026_v25  ;;  %v6119_v9 = vrot.slane %v6103_v4, %v14026_v25  ;;  %v6020_v23 = vsel %vm6005_vm1, %v6013_v61, 0.0 }
 0xa9d   : > { %6848 = vrot.lane.b32.xlu0 %v6834_v14, %s10692_s22  ;;  %v6122_v10 = vsel %vm6107_vm4, %v6115_v20, 0.0 }
 0xa9e   : > { %v6021_v12 = vsel %vm6005_vm1, %v6017_v27, 0.0  ;;  %v6123_v14 = vsel %vm6107_vm4, %v6119_v9, 0.0  ;;  %vm6760_vm1 = vmand %vm15171_vm11, %vm6758_vm6  ;;  %vm15172_vm4 = vcmp.eq.s32.totalorder %v13882_v33, 0  ;;  %vm15174_vm6 = vcmask 261120  }
 0xa9f   : > { %6940 = vrot.lane.b32.xlu1 %v6927_v50, %s10694_s27  ;;  %v6126_v50 = vadd.f32 %v6122_v10, %v6020_v23 }
 0xaa1   : > { %6942 = vrot.lane.b32.xlu0 %v6928_v5, %s10694_s27 }
 0xaa3   : > { %7032 = vrot.lane.b32.xlu1 %v7019_v6, %s10695_s15  ;;  %v6203_v32 = vpop.f32.mrf.mxu0  ;;  %v6305_v8 = vpop.f32.mrf.mxu1  ;;  %v6127_v6 = vadd.f32 %v6123_v14, %v6021_v12 }
 0xaa4   : > { %v6217_v21 = vrot.slane %v6203_v32, %v14026_v25  ;;  %v6319_v26 = vrot.slane %v6305_v8, %v14026_v25 }
 0xaa5   : > { %7034 = vrot.lane.b32.xlu0 %v7020_v47, %s10695_s15  ;;  %v6205_v13 = vpop.f32.mrf.mxu0  ;;  %v6307_v60 = vpop.f32.mrf.mxu1 }
 0xaa6   : > { %v6221_v48 = vrot.slane %v6205_v13, %v14026_v25  ;;  %v6224_v1 = vsel %vm6209_vm3, %v6217_v21, 0.0  ;;  %v6323_v47 = vrot.slane %v6307_v60, %v14026_v25  ;;  %v6326_v61 = vsel %vm6311_vm12, %v6319_v26, 0.0 }
 0xaa7   : > { %v6228_v2 = vadd.f32 %v6224_v1, %v6126_v50 }
 0xaa8   : > { %v6225_v7 = vsel %vm6209_vm3, %v6221_v48, 0.0  ;;  %v6327_v9 = vsel %vm6311_vm12, %v6323_v47, 0.0  ;;  %vm6761_vm3 = vmand %vm15172_vm4, %vm6759_vm8  ;;  %vm15173_vm12 = vcmask 15360  }
 0xaa9   : > { %v6229_v4 = vadd.f32 %v6225_v7, %v6127_v6  ;;  %v6330_v13 = vadd.f32 %v6326_v61, %v6228_v2  ;;  %vm15188_vm8 = vmmov %vm15173_vm12 }
 0xaab   : > { %v6331_v23 = vadd.f32 %v6327_v9, %v6229_v4 }
 0xaad   : > { %v6407_v55 = vpop.f32.mrf.mxu0  ;;  %v6509_v56 = vpop.f32.mrf.mxu1 }
 0xaae   : > { %v6421_v5 = vrot.slane %v6407_v55, %v14026_v25  ;;  %v6523_v21 = vrot.slane %v6509_v56, %v14026_v25 }
 0xaaf   : > { %v6409_v44 = vpop.f32.mrf.mxu0  ;;  %v6511_v27 = vpop.f32.mrf.mxu1 }
 0xab0   : > { %v6425_v32 = vrot.slane %v6409_v44, %v14026_v25  ;;  %v6428_v20 = vsel %vm6413_vm14, %v6421_v5, 0.0  ;;  %v6527_v48 = vrot.slane %v6511_v27, %v14026_v25  ;;  %v6530_v1 = vsel %vm6515_vm5, %v6523_v21, 0.0 }
 0xab1   : > { %v6432_v10 = vadd.f32 %v6428_v20, %v6330_v13  ;;  %v6794_v27 = vsel %vm2157_vm15, %v13986_v3, %v13988_v30  ;;  %v6889_v3 = vsel %vm1827_vm7, %v14000_v62, %v14002_v59 }
 0xab2   : > { %v6429_v8 = vsel %vm6413_vm14, %v6425_v32, 0.0  ;;  %v6531_v5 = vsel %vm6515_vm5, %v6527_v48, 0.0  ;;  %vm15175_vm14 = vmmov %vm15173_vm12 }
 0xab3   : > { %v6433_v55 = vadd.f32 %v6429_v8, %v6331_v23  ;;  %v6534_v44 = vadd.f32 %v6530_v1, %v6432_v10  ;;  %v6888_v8 = vsel %vm1827_vm7, %v13998_v16, %v14000_v62  ;;  %v6982_v16 = vsel %vm15168_vm10, %v14010_v43, %v14012_v49  ;;  %vm15176_vm5 = vmmov %vm15174_vm6 }
 0xab4   : > { %v6983_v62 = vsel %vm15165_vm2, %v14012_v49, %v14014_v42  ;;  %v7283_v49 = vmul.f32 %v13799_v37, %v11301_v38  ;;  %v7393_v42 = vmul.f32 %v13799_v37, %v11316_v52  ;;  %v7706_v38 = vmul.f32 %v13799_v37, %v11348_v11  ;;  %vm15192_vm10 = vmmov %vm15176_vm5 }
 0xab5   : > { %v6535_v56 = vadd.f32 %v6531_v5, %v6433_v55  ;;  %v7816_v52 = vmul.f32 %v13799_v37, %v11382_v58  ;;  %v9888_v5 = vsel %vm6761_vm3, 1.0, %v13799_v37  ;;  %vm15202_vm2 = vmmov %vm15176_vm5  ;;  %vm15206_vm3 = vcmask 130048  }
 0xab6   : > { %vm15203_vm11 = vmmov %vm15202_vm2 }
 0xab9   : > { %v6611_v12 = vpop.f32.mrf.mxu0  ;;  %v6713_v14 = vpop.f32.mrf.mxu1 }
 0xaba   : > { %v6625_v50 = vrot.slane %v6611_v12, %v14026_v25  ;;  %v6727_v60 = vrot.slane %v6713_v14, %v14026_v25 }
 0xabb   : > { %v6613_v26 = vpop.f32.mrf.mxu0  ;;  %v6715_v7 = vpop.f32.mrf.mxu1 }
 0xabc   : > { %v6632_v6 = vsel %vm6617_vm13, %v6625_v50, 0.0  ;;  %v6629_v2 = vrot.slane %v6613_v26, %v14026_v25  ;;  %v6731_v32 = vrot.slane %v6715_v7, %v14026_v25  ;;  %v6734_v4 = vsel %vm6719_vm9, %v6727_v60, 0.0 }
 0xabd   : > { %v6636_v47 = vadd.f32 %v6632_v6, %v6534_v44  ;;  %v6795_v25 = vsel %vm2157_vm15, %v13988_v30, %v13990_v41  ;;  %v6748_v50 = vmul.f32 %v13349_v57, %v14101_v53  ;;  %v9887_v44 = vsel %vm6760_vm1, 1.0, %v13799_v37  ;;  %vm15204_vm1 = vmmov %vm15202_vm2 }
 0xabe   : > { %v6633_v61 = vsel %vm6617_vm13, %v6629_v2, 0.0  ;;  %v6735_v21 = vsel %vm6719_vm9, %v6731_v32, 0.0  ;;  %v6749_v26 = vmul.f32 %v13361_v28, %v14121_v19  ;;  %vm15190_vm13 = vmmov %vm15176_vm5 }
 0xabf   : > { %v14198_v20 = vadd.f32 %v6734_v4, %v6636_v47  ;;  %v6637_v13 = vadd.f32 %v6633_v61, %v6535_v56  ;;  %v6770_v7 = vmul.f32 %v9887_v44, %v6748_v50  ;;  %vm15191_vm9 = vmmov %vm15188_vm8 }
 0xac0   : > { %v6771_v56 = vmul.f32 %v9888_v5, %v6749_v26  ;;  %vm15205_vm4 = vmmov %vm15204_vm1 }
 0xac1   : > { %v6802_v9 = vmul.f32 %v6794_v27, %v14198_v20  ;;  %v14207_v23 = vadd.f32 %v6735_v21, %v6637_v13  ;;  %v6896_v36 = vmul.f32 %v6888_v8, %v14198_v20  ;;  %v6990_v41 = vmul.f32 %v6982_v16, %v14198_v20 }
 0xac3   : > { %v6836_v10 = vmul.f32 %v14116_v45, %v6802_v9  ;;  %v6803_v48 = vmul.f32 %v6795_v25, %v14207_v23  ;;  %v6897_v55 = vmul.f32 %v6889_v3, %v14207_v23  ;;  %v6930_v45 = vmul.f32 %v14140_v34, %v6896_v36 }
 0xac4   : > { %v6991_v59 = vmul.f32 %v6983_v62, %v14207_v23  ;;  %v7022_v12 = vmul.f32 %v14158_v51, %v6990_v41  ;;  %v7068_v34 = vmul.f32 %v13799_v37, %v11299_v35  ;;  %v7596_v35 = vmul.f32 %v13799_v37, %v11359_v29  ;;  %v15181_v41 = vld [vmem:[#allocation42_spill] sm:$0xff]  ;;  %v15182_v62 = vld [vmem:[#allocation43_spill] sm:$0xff] }
 0xac5   : > { %6852 = vrot.lane.b32.xlu0 %v6836_v10, %s10692_s22  ;;  %v6837_v30 = vmul.f32 %v14095_v15, %v6803_v48  ;;  %v6931_v43 = vmul.f32 %v14119_v39, %v6897_v55  ;;  %v14264_v29 = vmul.f32 %v13799_v37, %v11413_v0  ;;  %v15178_v48 = vld [vmem:[#allocation41_spill] sm:$0xff]  ;;  %v15180_v55 = vld [vmem:[#allocation44_spill] sm:$0xff] }
 0xac6   : > { %v7023_v15 = vmul.f32 %v14143_v54, %v6991_v59 }
 0xac7   : > { %6854 = vrot.lane.b32.xlu1 %v6837_v30, %s10692_s22 }
 0xac9   : > { %6946 = vrot.lane.b32.xlu0 %v6930_v45, %s10694_s27 }
 0xacb   : > { %6948 = vrot.lane.b32.xlu1 %v6931_v43, %s10694_s27  ;;  %v15183_v43 = vld [vmem:[#allocation46_spill] sm:$0xff] }
 0xacd   : > { %7038 = vrot.lane.b32.xlu0 %v7022_v12, %s10695_s15 }
 0xacf   : > { %7040 = vrot.lane.b32.xlu1 %v7023_v15, %s10695_s15  ;;  %v15184_v15 = vld [vmem:[#allocation47_spill] sm:$0xff] }
 0xad1   : > { %7189 = vrot.lane.b32.xlu0 %v7068_v34, %s10695_s15 }
 0xad3   : > { %7195 = vrot.lane.b32.xlu1 %v7068_v34, %s10695_s15 }
 0xad5   : > { %7297 = vrot.lane.b32.xlu0 %v7283_v49, %s15169_s23 }
 0xad7   : > { %7303 = vrot.lane.b32.xlu1 %v7283_v49, %s15169_s23  ;;  %v15185_v49 = vld [vmem:[#allocation54_spill] sm:$0xff] }
 0xad9   : > { %7407 = vrot.lane.b32.xlu0 %v7393_v42, %s10692_s22 }
 0xadb   : > { %7413 = vrot.lane.b32.xlu1 %v7393_v42, %s10692_s22  ;;  %v6750_v42 = vmul.f32 %v15185_v49, %v14198_v20 }
 0xadd   : > { %7615 = vrot.lane.b32.xlu0 %v7596_v35, %s10691_s30 }
 0xadf   : > { %7609 = vrot.lane.b32.xlu1 %v7596_v35, %s10691_s30 }
 0xae3   : > { %7725 = vrot.lane.b32.xlu1 %v7706_v38, %s15170_s16 }
 0xae7   : > { %7719 = vrot.lane.b32.xlu1 %v7706_v38, %s15170_s16  ;;  %v15186_v38 = vld [vmem:[#allocation45_spill] sm:$0xff] }
 0xaeb   : > { %7835 = vrot.lane.b32.xlu1 %v7816_v52, %s10688_s24 }
 0xaef   : > { %7829 = vrot.lane.b32.xlu1 %v7816_v52, %s10688_s24 }
 0xaf3   : > { %7945 = vrot.lane.b32.xlu1 %v14264_v29, %s15152_s28  ;;  %v14268_v39 = vpop.permute.xlu1 %6850  ;;  %v6845_v11 = vpop.permute.xlu0 %6844 }
 0xaf7   : > { %v14270_v54 = vpop.permute.xlu1 %6944  ;;  %v6939_v51 = vpop.permute.xlu0 %6938 }
 0xafb   : > { %v14272_v14 = vpop.permute.xlu1 %7036  ;;  %v7031_v58 = vpop.permute.xlu0 %7030 }
 0xaff   : > { %v14274_v1 = vpop.permute.xlu1 %7095  ;;  %v14280_v0 = vpop.permute.xlu0 %7089 }
 0xb0d   : > { %v6847_v60 = vpop.permute.xlu1 %6846 }
 0xb0e   : > { %v6856_v31 = vsel %vm15173_vm12, %v6845_v11, %v6847_v60  ;;  %v15187_v11 = vld [vmem:[#allocation55_spill] sm:$0xff]  ;;  %vm15207_vm12 = vcmask 244736  }
 0xb0f   : > { %v6849_v22 = vpop.permute.xlu0 %6848  ;;  %v6864_v53 = vadd.f32 %v6856_v31, %v6770_v7  ;;  %v15189_v31 = vld [vmem:[#allocation48_spill] sm:$0xff] }
 0xb10   : > { %v6857_v2 = vsel %vm15175_vm14, %v6847_v60, %v6849_v22  ;;  %v6772_v60 = vmul.f32 %v9887_v44, %v6750_v42  ;;  %vm15209_vm14 = vmmov %vm15206_vm3 }
 0xb11   : > { %v6941_v6 = vpop.permute.xlu1 %6940  ;;  %v6865_v4 = vadd.f32 %v6857_v2, %v6771_v56  ;;  %v15193_v56 = vld [vmem:[#allocation49_spill] sm:$0xff] }
 0xb12   : > { %v6950_v57 = vsel %vm15174_vm6, %v6939_v51, %v6941_v6  ;;  %v6751_v51 = vmul.f32 %v15187_v11, %v14207_v23  ;;  %vm15208_vm6 = vmmov %vm15207_vm12 }
 0xb13   : > { %v6943_v63 = vpop.permute.xlu0 %6942  ;;  %v6958_v47 = vadd.f32 %v6950_v57, %v6864_v53 }
 0xb14   : > { %v6951_v33 = vsel %vm15176_vm5, %v6941_v6, %v6943_v63  ;;  %v6773_v57 = vmul.f32 %v9888_v5, %v6751_v51  ;;  %vm15210_vm5 = vmmov %vm15208_vm6 }
 0xb15   : > { %v7033_v32 = vpop.permute.xlu1 %7032  ;;  %v6959_v61 = vadd.f32 %v6951_v33, %v6865_v4  ;;  %v15194_v4 = vld [vmem:[#allocation53_spill] sm:$0xff] }
 0xb16   : > { %v7042_v28 = vsel %vm1945_vm0, %v7031_v58, %v7033_v32 }
 0xb17   : > { %v7050_v19 = vadd.f32 %v7042_v28, %v6958_v47  ;;  %v7035_v13 = vpop.permute.xlu0 %7034 }
 0xb18   : > { %v7043_v27 = vsel %vm1945_vm0, %v7033_v32, %v7035_v13 }
 0xb19   : > { %v14298_v37 = vmul.f32 %v11582_v18, %v7050_v19  ;;  %v7051_v9 = vadd.f32 %v7043_v27, %v6959_v61  ;;  %v15177_v18 = vld [vmem:[#allocation39_spill] sm:$0xff]  ;;  %v15195_v27 = vld [vmem:[#allocation52_spill] sm:$0xff] }
 0xb1b   : > { %v7076_v21 = vmul.f32 %v14298_v37, %v11311_v46  ;;  %v14304_v8 = vmul.f32 %v11567_v40, %v7051_v9  ;;  %v7069_v36 = vmul.f32 %v14298_v37, %v11339_v24  ;;  %v7284_v3 = vmul.f32 %v14298_v37, %v15178_v48  ;;  %v15179_v40 = vld [vmem:[#allocation40_spill] sm:$0xff] }
 0xb1c   : > { %v7394_v30 = vmul.f32 %v14298_v37, %v15180_v55  ;;  %v7591_v59 = vmul.f32 %v15182_v62, %v14298_v37  ;;  %v7701_v12 = vmul.f32 %v15183_v43, %v14298_v37  ;;  %v7811_v34 = vmul.f32 %v15184_v15, %v14298_v37 }
 0xb1d   : > { %7091 = vrot.lane.b32.xlu0 %v7076_v21, %s10694_s27  ;;  %v7077_v25 = vmul.f32 %v11297_v17, %v14304_v8  ;;  %v7070_v10 = vmul.f32 %v15177_v18, %v14304_v8  ;;  %v7285_v16 = vmul.f32 %v15179_v40, %v14304_v8  ;;  %v7395_v45 = vmul.f32 %v15181_v41, %v14304_v8 }
 0xb1e   : > { %v7592_v52 = vmul.f32 %v14304_v8, %v15186_v38  ;;  %v7702_v22 = vmul.f32 %v14304_v8, %v15189_v31  ;;  %v7812_v44 = vmul.f32 %v14304_v8, %v15193_v56 }
 0xb1f   : > { %7093 = vrot.lane.b32.xlu1 %v7077_v25, %s10694_s27 }
 0xb21   : > { %7191 = vrot.lane.b32.xlu0 %v7069_v36, %s10695_s15 }
 0xb23   : > { %7193 = vrot.lane.b32.xlu1 %v7070_v10, %s10695_s15 }
 0xb25   : > { %7299 = vrot.lane.b32.xlu0 %v7284_v3, %s15169_s23 }
 0xb27   : > { %7301 = vrot.lane.b32.xlu1 %v7285_v16, %s15169_s23 }
 0xb29   : > { %7409 = vrot.lane.b32.xlu0 %v7394_v30, %s10692_s22 }
 0xb2b   : > { %7411 = vrot.lane.b32.xlu1 %v7395_v45, %s10692_s22  ;;  %v15197_v45 = vld [vmem:[#allocation50_spill] sm:$0xff] }
 0xb2d   : > { %7605 = vrot.lane.b32.xlu0 %v7591_v59, %s10691_s30  ;;  %v15199_v59 = vld [vmem:[#allocation38_spill] sm:$0xff] }
 0xb31   : > { %7715 = vrot.lane.b32.xlu0 %v7701_v12, %s15170_s16  ;;  %v15200_v12 = vld [vmem:[#allocation37_spill] sm:$0xff] }
 0xb35   : > { %7825 = vrot.lane.b32.xlu0 %v7811_v34, %s10688_s24 }
 0xb37   : > { %v6853_v35 = vpop.permute.xlu0 %6852 }
 0xb38   : > { %v6858_v58 = vsel %vm15188_vm8, %v14268_v39, %v6853_v35  ;;  %vm15211_vm8 = vmmov %vm15210_vm5 }
 0xb39   : > { %7607 = vrot.lane.b32.xlu0 %v7592_v52, %s10691_s30  ;;  %v6855_v50 = vpop.permute.xlu1 %6854  ;;  %v6866_v7 = vadd.f32 %v6858_v58, %v6772_v60 }
 0xb3a   : > { %v6859_v6 = vsel %vm15191_vm9, %v6853_v35, %v6855_v50 }
 0xb3b   : > { %v6947_v26 = vpop.permute.xlu0 %6946  ;;  %v6867_v63 = vadd.f32 %v6859_v6, %v6773_v57 }
 0xb3c   : > { %v6952_v20 = vsel %vm15190_vm13, %v14270_v54, %v6947_v26 }
 0xb3d   : > { %7717 = vrot.lane.b32.xlu0 %v7702_v22, %s15170_s16  ;;  %v6949_v53 = vpop.permute.xlu1 %6948  ;;  %v6960_v23 = vadd.f32 %v6952_v20, %v6866_v7 }
 0xb3e   : > { %v6953_v2 = vsel %vm15192_vm10, %v6947_v26, %v6949_v53  ;;  %vm15217_vm10 = vmmov %vm15206_vm3 }
 0xb3f   : > { %v7039_v39 = vpop.permute.xlu0 %7038  ;;  %v6961_v54 = vadd.f32 %v6953_v2, %v6867_v63 }
 0xb40   : > { %v7044_v47 = vsel %vm1945_vm0, %v14272_v14, %v7039_v39 }
 0xb41   : > { %v7052_v33 = vadd.f32 %v7044_v47, %v6960_v23  ;;  %7827 = vrot.lane.b32.xlu0 %v7812_v44, %s10688_s24  ;;  %v7041_v32 = vpop.permute.xlu1 %7040 }
 0xb42   : > { %v7045_v5 = vsel %vm1945_vm0, %v7039_v39, %v7041_v32 }
 0xb43   : > { %v14359_v28 = vmul.f32 %v15194_v4, %v7052_v33  ;;  %v7053_v19 = vadd.f32 %v7045_v5, %v6961_v54  ;;  %v7190_v34 = vpop.permute.xlu0 %7189 }
 0xb45   : > { %v7079_v61 = vmul.f32 %v14359_v28, %v11311_v46  ;;  %v7072_v13 = vmul.f32 %v14359_v28, %v11339_v24  ;;  %v14367_v9 = vmul.f32 %v15195_v27, %v7053_v19  ;;  %v7594_v14 = vmul.f32 %v15182_v62, %v14359_v28 }
 0xb46   : > { %v7287_v21 = vmul.f32 %v14359_v28, %v15178_v48  ;;  %v7704_v46 = vmul.f32 %v15183_v43, %v14359_v28  ;;  %v7397_v24 = vmul.f32 %v14359_v28, %v15180_v55  ;;  %v7814_v25 = vmul.f32 %v15184_v15, %v14359_v28  ;;  %v15196_v48 = vld [vmem:[#allocation51_spill] sm:$0xff]  ;;  %v7196_v43 = vpop.permute.xlu1 %7195 }
 0xb47   : > { %7097 = vrot.lane.b32.xlu1 %v7079_v61, %s10694_s27  ;;  %7197 = vrot.lane.b32.xlu0 %v7072_v13, %s10695_s15  ;;  %v7080_v36 = vmul.f32 %v11297_v17, %v14367_v9  ;;  %v7073_v10 = vmul.f32 %v15177_v18, %v14367_v9  ;;  %v7922_v3 = vmul.f32 %v14304_v8, %v15196_v48  ;;  %v14431_v42 = vpop.permute.xlu0 %7297 }
 0xb48   : > { %v7288_v16 = vmul.f32 %v15179_v40, %v14367_v9  ;;  %v7705_v17 = vmul.f32 %v14367_v9, %v15189_v31  ;;  %v7398_v18 = vmul.f32 %v15181_v41, %v14367_v9  ;;  %v7815_v55 = vmul.f32 %v14367_v9, %v15193_v56 }
 0xb49   : > { %v7595_v40 = vmul.f32 %v14367_v9, %v15186_v38  ;;  %v7925_v30 = vmul.f32 %v14367_v9, %v15196_v48  ;;  %v7924_v41 = vmul.f32 %v15197_v45, %v14359_v28  ;;  %v7921_v62 = vmul.f32 %v15197_v45, %v14298_v37  ;;  %v14485_v48 = vld [vmem:[#allocation2 + $0x30] sm:$0xff]  ;;  %v15212_v45 = vld [vmem:[#allocation31_spill] sm:$0xff] }
 0xb4a   : > { %v7304_v15 = vpop.permute.xlu1 %7303 }
 0xb4b   : > { %7611 = vrot.lane.b32.xlu1 %v7594_v14, %s10691_s30  ;;  %7305 = vrot.lane.b32.xlu0 %v7287_v21, %s15169_s23  ;;  %v14435_v35 = vpop.permute.xlu0 %7407  ;;  %v9895_v14 = vld [vmem:[%s14949_s11 + $0x8] sm:$0xff] }
 0xb4e   : > { %v14429_v49 = vpop.permute.xlu1 %7413 }
 0xb4f   : > { %7721 = vrot.lane.b32.xlu1 %v7704_v46, %s15170_s16  ;;  %7415 = vrot.lane.b32.xlu0 %v7397_v24, %s10692_s22  ;;  %v14439_v52 = vpop.permute.xlu0 %7615 }
 0xb53   : > { %7831 = vrot.lane.b32.xlu1 %v7814_v25, %s10688_s24  ;;  %7099 = vrot.lane.b32.xlu0 %v7080_v36, %s10694_s27  ;;  %s15198_s27 = smov 1  }
 0xb57   : > { %7199 = vrot.lane.b32.xlu1 %v7073_v10, %s10695_s15  ;;  %7937 = vrot.lane.b32.xlu0 %v7922_v3, %s15152_s28  ;;  %s15201_s15 = smov 16   ;;  %v7074_v10 = vld [vmem:[%s14949_s11] sm:$0xff] }
 0xb5b   : > { %7307 = vrot.lane.b32.xlu1 %v7288_v16, %s15169_s23  ;;  %7723 = vrot.lane.b32.xlu0 %v7705_v17, %s15170_s16  ;;  %s15337_s16 = sshll.u32 %s15339_s26, 3 }
 0xb5f   : > { %7417 = vrot.lane.b32.xlu1 %v7398_v18, %s10692_s22  ;;  %7833 = vrot.lane.b32.xlu0 %v7815_v55, %s10688_s24  ;;  %s440_s22 = scalar_lea.vmem %s14951_s13, %s15337_s16 }
 0xb63   : > { %7613 = vrot.lane.b32.xlu1 %v7595_v40, %s10691_s30  ;;  %7943 = vrot.lane.b32.xlu0 %v7925_v30, %s15152_s28 }
 0xb67   : > { %7941 = vrot.lane.b32.xlu1 %v7924_v41, %s15152_s28  ;;  %7935 = vrot.lane.b32.xlu0 %v7921_v62, %s15152_s28  ;;  %v7506_v41 = vmul.f32 %v15212_v45, %v14367_v9  ;;  %v9898_v62 = vld [vmem:[%s14949_s11 + $0x10] sm:$0xff] }
 0xb6b   : > { %7939 = vrot.lane.b32.xlu1 %v14264_v29, %s15152_s28  ;;  %1674 = vrot.lane.b32.xlu0 %v15199_v59, %s15198_s27  ;;  %v14433_v29 = vpop.permute.xlu1 %7609  ;;  %s15283_s28 = smov 113  }
 0xb6f   : > { %1672 = vrot.lane.b32.xlu1 %v15200_v12, %s15198_s27  ;;  %1722 = vrot.lane.b32.xlu0 %v15199_v59, %s15201_s15  ;;  %v14437_v38 = vpop.permute.xlu1 %7725 }
 0xb73   : > { %1720 = vrot.lane.b32.xlu1 %v15200_v12, %s15201_s15  ;;  %v14441_v11 = vpop.permute.xlu1 %7719 }
 0xb77   : > { %v14443_v58 = vpop.permute.xlu1 %7835 }
 0xb7b   : > { %v14445_v26 = vpop.permute.xlu1 %7829 }
 0xb7f   : > { %v14449_v22 = vpop.permute.xlu1 %7945 }
 0xb8f   : > { %v7092_v51 = vpop.permute.xlu0 %7091 }
 0xb90   : > { %v7101_v24 = vsel %vm15205_vm4, %v14280_v0, %v7092_v51  ;;  %vm15222_vm4 = vmmov %vm15206_vm3 }
 0xb91   : > { %v7094_v7 = vpop.permute.xlu1 %7093 }
 0xb92   : > { %v7102_v27 = vsel %vm15204_vm1, %v7092_v51, %v7094_v7 }
 0xb93   : > { %v7192_v50 = vpop.permute.xlu0 %7191 }
 0xb94   : > { %v7201_v0 = vsel %vm1945_vm0, %v7190_v34, %v7192_v50 }
 0xb95   : > { %v7194_v53 = vpop.permute.xlu1 %7193 }
 0xb96   : > { %v7202_v36 = vsel %vm1945_vm0, %v7192_v50, %v7194_v53  ;;  %v9900_v50 = vld [vmem:[%s14949_s11 + $0x18] sm:$0xff] }
 0xb97   : > { %v7300_v60 = vpop.permute.xlu0 %7299 }
 0xb98   : > { %v7309_v40 = vsel %vm15211_vm8, %v14431_v42, %v7300_v60  ;;  %v15215_v42 = vld [vmem:[#allocation32_spill] sm:$0xff] }
 0xb99   : > { %v7302_v2 = vpop.permute.xlu1 %7301  ;;  %v7505_v51 = vmul.f32 %v15215_v42, %v14359_v28 }
 0xb9a   : > { %v7310_v55 = vsel %vm15210_vm5, %v7300_v60, %v7302_v2  ;;  %v7504_v60 = vmul.f32 %v15212_v45, %v14304_v8 }
 0xb9b   : > { %v14447_v31 = vpop.permute.xlu0 %7409 }
 0xb9d   : > { %v7412_v44 = vpop.permute.xlu1 %7411 }
 0xb9f   : > { %v14451_v20 = vpop.permute.xlu0 %7605 }
 0xba3   : > { %v14453_v6 = vpop.permute.xlu0 %7715 }
 0xba7   : > { %v14455_v57 = vpop.permute.xlu0 %7825 }
 0xbab   : > { %v14457_v23 = vpop.permute.xlu0 %7607 }
 0xbac   : > { %v7618_v8 = vsel %vm2157_vm15, %v14457_v23, %v14433_v29  ;;  %v9904_v29 = vld [vmem:[%s14949_s11 + $0x28] sm:$0xff] }
 0xbaf   : > { %v14459_v39 = vpop.permute.xlu0 %7717 }
 0xbb3   : > { %v14461_v56 = vpop.permute.xlu0 %7827 }
 0xbb9   : > { %v7098_v63 = vpop.permute.xlu1 %7097  ;;  %v7198_v47 = vpop.permute.xlu0 %7197 }
 0xbba   : > { %v7103_v13 = vsel %vm15203_vm11, %v14274_v1, %v7098_v63  ;;  %v7203_v1 = vsel %vm1945_vm0, %v7196_v43, %v7198_v47  ;;  %vm15219_vm11 = vmmov %vm15206_vm3 }
 0xbbd   : > { %v7612_v33 = vpop.permute.xlu1 %7611  ;;  %v7306_v54 = vpop.permute.xlu0 %7305 }
 0xbbe   : > { %v7311_v18 = vsel %vm15208_vm6, %v7304_v15, %v7306_v54  ;;  %vm15224_vm6 = vcmask 769024  }
 0xbbf   : > { %vm15226_vm5 = vmmov %vm15224_vm6 }
 0xbc1   : > { %v14463_v32 = vpop.permute.xlu1 %7721  ;;  %v7416_v4 = vpop.permute.xlu0 %7415 }
 0xbc5   : > { %v14465_v5 = vpop.permute.xlu1 %7831  ;;  %v7100_v19 = vpop.permute.xlu0 %7099 }
 0xbc6   : > { %v7104_v61 = vsel %vm15202_vm2, %v7098_v63, %v7100_v19  ;;  %v9910_v19 = vld [vmem:[%s14949_s11 + $0x40] sm:$0xff] }
 0xbc7   : > { %7140 = vmatprep.subr.mxu0 %v7104_v61 }
 0xbc8   : > { %7141 = vmatpush1.msra.mxu0 %v7103_v13 }
 0xbc9   : > { %v7200_v21 = vpop.permute.xlu1 %7199  ;;  %v14474_v46 = vpop.permute.xlu0 %7937  ;;  %7142 = vmatprep.subr.mxu0 %v7102_v27  ;;  %v15233_v27 = vld [vmem:[#allocation36_spill] sm:$0xff] }
 0xbca   : > { %v7204_v25 = vsel %vm1945_vm0, %v7198_v47, %v7200_v21  ;;  %7143 = vmatpush1.msra.mxu0 %v7101_v24  ;;  %vm15213_vm0 = vmmov %vm15191_vm9 }
 0xbcb   : > { %7240 = vmatprep.subr.mxu1 %v7204_v25  ;;  %9896 = vmatmul.mubr.msk.f32.vlgmr.msra.gmra.mxu0 %vm15206_vm3, %v9895_v14  ;;  %vm15214_vm13 = vmmov %vm15213_vm0 }
 0xbcc   : > { %7241 = vmatpush1.msra.mxu1 %v7203_v1  ;;  %7384 = vmatprep.mubr.f32.mxu0 %v14485_v48  ;;  %v7421_v34 = vsel %vm15214_vm13, %v14429_v49, %v7416_v4  ;;  %vm15216_vm9 = vmmov %vm15213_vm0 }
 0xbcd   : > { %7242 = vmatprep.subr.mxu1 %v7202_v36  ;;  %v7308_v3 = vpop.permute.xlu1 %7307  ;;  %v7724_v16 = vpop.permute.xlu0 %7723  ;;  %v7420_v9 = vsel %vm15216_vm9, %v14447_v31, %v7412_v44  ;;  %vm15218_vm2 = vmmov %vm15213_vm0  ;;  %v7503_v44 = vmul.f32 %v15215_v42, %v14298_v37  ;;  %v9902_v37 = vld [vmem:[%s14949_s11 + $0x20] sm:$0xff] }
 0xbce   : > { %7243 = vmatpush1.msra.mxu1 %v7201_v0  ;;  %v7312_v17 = vsel %vm15207_vm12, %v7306_v54, %v7308_v3  ;;  %v7419_v49 = vsel %vm15218_vm2, %v14435_v35, %v14447_v31  ;;  %vm15232_vm2 = vcmask 7168  }
 0xbcf   : > { %7348 = vmatprep.subr.mxu0 %v7312_v17  ;;  %9897 = vmatmul.mubr.msk.f32.vlgmr.msra.gmra.mxu1 %vm15209_vm14, %v7074_v10 }
 0xbd0   : > { %7349 = vmatpush1.msra.mxu0 %v7311_v18  ;;  %7494 = vmatprep.mubr.f32.mxu1 %v14485_v48 }
 0xbd1   : > { %v7418_v30 = vpop.permute.xlu1 %7417  ;;  %7350 = vmatprep.subr.mxu0 %v7310_v55  ;;  %v7834_v43 = vpop.permute.xlu0 %7833 }
 0xbd2   : > { %v7422_v15 = vsel %vm15213_vm0, %v7416_v4, %v7418_v30  ;;  %7351 = vmatpush1.msra.mxu0 %v7309_v40  ;;  %v7840_v35 = vsel %vm1827_vm7, %v7834_v43, %v14443_v58  ;;  %v7839_v58 = vsel %vm1827_vm7, %v14465_v5, %v7834_v43  ;;  %v7837_v5 = vsel %vm1827_vm7, %v14455_v57, %v14461_v56  ;;  %vm15228_vm0 = vmmov %vm15226_vm5  ;;  %v15238_v43 = vld [vmem:[#allocation3_spill] sm:$0xff] }
 0xbd3   : > { %7458 = vmatprep.subr.mxu1 %v7422_v15  ;;  %7540 = vmatprep.subr.mxu0 %v7506_v41  ;;  %vm15229_vm13 = vmmov %vm15228_vm0  ;;  %v8031_v15 = vand.u32 1, %v15238_v43 }
 0xbd4   : > { %7459 = vmatpush1.msra.mxu1 %v7421_v34  ;;  %9899 = vmatmul.mubr.msk.f32.vlgmr.msra.gmra.mxu0 %vm15217_vm10, %v9898_v62  ;;  %vm15231_vm10 = vmmov %vm15206_vm3  ;;  %v15239_v34 = vld [vmem:[#allocation4_spill] sm:$0xff] }
 0xbd5   : > { %7460 = vmatprep.subr.mxu1 %v7420_v9  ;;  %v7614_v7 = vpop.permute.xlu1 %7613  ;;  %7541 = vmatpush1.msra.mxu0 %v7505_v51  ;;  %v7944_v28 = vpop.permute.xlu0 %7943  ;;  %v8033_v51 = vand.u32 1, %v15239_v34  ;;  %v15240_v9 = vld [vmem:[#allocation5_spill] sm:$0xff] }
 0xbd6   : > { %v7619_v53 = vsel %vm2157_vm15, %v7612_v33, %v7614_v7  ;;  %7461 = vmatpush1.msra.mxu1 %v7419_v49  ;;  %v7620_v2 = vsel %vm2157_vm15, %v7614_v7, %v14439_v52  ;;  %7542 = vmatprep.subr.mxu0 %v7504_v60  ;;  %v7617_v52 = vsel %vm2157_vm15, %v14451_v20, %v14457_v23  ;;  %vm15220_vm15 = vcmask 801792   ;;  %v15241_v60 = vld [vmem:[#allocation6_spill] sm:$0xff] }
 0xbd7   : > { %7656 = vmatprep.subr.mxu1 %v7620_v2  ;;  %9901 = vmatmul.mubr.msk.f32.vlgmr.msra.gmra.mxu1 %vm15219_vm11, %v9900_v50  ;;  %v7730_v20 = vsel %vm15220_vm15, %v7724_v16, %v14437_v38  ;;  %vm15221_vm1 = vmmov %vm15220_vm15  ;;  %v7838_v33 = vsel %vm1827_vm7, %v14461_v56, %v14445_v26  ;;  %v7950_v54 = vsel %vm15224_vm6, %v7944_v28, %v14449_v22  ;;  %v9908_v22 = vld [vmem:[%s14949_s11 + $0x38] sm:$0xff]  ;;  %v8032_v50 = vand.u32 1, %v15240_v9 }
 0xbd8   : > { %7657 = vmatpush1.msra.mxu1 %v7619_v53  ;;  %7543 = vmatpush1.msra.mxu0 %v7503_v44  ;;  %v7729_v23 = vsel %vm15221_vm1, %v14463_v32, %v7724_v16  ;;  %vm15223_vm12 = vmmov %vm15221_vm1  ;;  %v15230_v56 = vld [vmem:[#allocation34_spill] sm:$0xff]  ;;  %v8034_v49 = vand.u32 1, %v15241_v60 }
 0xbd9   : > { %7658 = vmatprep.subr.mxu1 %v7618_v8  ;;  %v7942_v31 = vpop.permute.xlu1 %7941  ;;  %7576 = vmatprep.mubr.f32.mxu0 %v14485_v48  ;;  %v7936_v63 = vpop.permute.xlu0 %7935  ;;  %v7728_v47 = vsel %vm15223_vm12, %v14459_v39, %v14441_v11  ;;  %vm15225_vm14 = vmmov %vm15221_vm1  ;;  %v9906_v11 = vld [vmem:[%s14949_s11 + $0x30] sm:$0xff]  ;;  %vm1662_vm6 = vcmp.eq.f32.partialorder %v15230_v56, %v15200_v12 }
 0xbda   : > { %7659 = vmatpush1.msra.mxu1 %v7617_v52  ;;  %7692 = vmatprep.mubr.f32.mxu1 %v14485_v48  ;;  %v7727_v32 = vsel %vm15225_vm14, %v14453_v6, %v14459_v39  ;;  %v7949_v26 = vsel %vm15226_vm5, %v7942_v31, %v7944_v28  ;;  %vm15227_vm7 = vmmov %vm15206_vm3  ;;  %v7947_v6 = vsel %vm15228_vm0, %v7936_v63, %v14474_v46  ;;  %v14618_v40 = vsel %vm1662_vm6, 1.0, %v14485_v48 }
 0xbdb   : > { %7766 = vmatprep.subr.mxu0 %v7730_v20  ;;  %7876 = vmatprep.subr.mxu1 %v7840_v35  ;;  %vm15234_vm15 = vmmov %vm15206_vm3  ;;  %vm1663_vm14 = vcmp.eq.f32.partialorder %v15233_v27, %v15199_v59  ;;  %v1668_v41 = vsub.f32 1.0, %v14618_v40  ;;  %vm14633_vm5 = vcmp.eq.s32.totalorder %v8031_v15, 0  ;;  %vm14645_vm0 = vcmp.eq.s32.totalorder %v8032_v50, 0 }
 0xbdc   : > { %9903 = vmatmul.mubr.msk.f32.vlgmr.msra.gmra.mxu0 %vm15222_vm4, %v9902_v37  ;;  %9905 = vmatmul.mubr.msk.f32.vlgmr.msra.gmra.mxu1 %vm15206_vm3, %v9904_v29  ;;  %vm15236_vm4 = vmmov %vm15206_vm3  ;;  %v14622_v30 = vsel %vm1663_vm14, 1.0, %v14485_v48  ;;  %vm14688_vm14 = vcmp.eq.s32.totalorder %v8031_v15, 1 }
 0xbdd   : > { %7767 = vmatpush1.msra.mxu0 %v7729_v23  ;;  %7877 = vmatpush1.msra.mxu1 %v7839_v58  ;;  %v7940_v38 = vpop.permute.xlu1 %7939  ;;  %v1675_v4 = vpop.permute.xlu0 %1674  ;;  %v1669_v62 = vsub.f32 1.0, %v14622_v30 }
 0xbde   : > { %7768 = vmatprep.subr.mxu0 %v7728_v47  ;;  %7878 = vmatprep.subr.mxu1 %v7838_v33  ;;  %vm1682_vm8 = vcmp.eq.f32.partialorder %v14485_v48, %v1675_v4  ;;  %v7948_v39 = vsel %vm15229_vm13, %v14474_v46, %v7940_v38  ;;  %vm14649_vm13 = vcmp.eq.s32.totalorder %v8034_v49, 0 }
 0xbdf   : > { %7769 = vmatpush1.msra.mxu0 %v7727_v32  ;;  %7879 = vmatpush1.msra.mxu1 %v7837_v5  ;;  %v14588_v14 = vsel %vm1682_vm8, 1.0, %v14485_v48  ;;  %vm14637_vm8 = vcmp.eq.s32.totalorder %v8033_v51, 0 }
 0xbe0   : > { %7802 = vmatprep.mubr.f32.mxu0 %v14485_v48  ;;  %7986 = vmatprep.subr.mxu0 %v7950_v54  ;;  %v1704_v36 = vsub.f32 1.0, %v14588_v14 }
 0xbe1   : > { %9907 = vmatmul.mubr.msk.f32.vlgmr.msra.gmra.mxu0 %vm15227_vm7, %v9906_v11  ;;  %7912 = vmatprep.mubr.f32.mxu1 %v14485_v48  ;;  %v1673_v57 = vpop.permute.xlu1 %1672  ;;  %v1723_v21 = vpop.permute.xlu0 %1722 }
 0xbe2   : > { %7987 = vmatpush1.msra.mxu0 %v7949_v26  ;;  %vm1680_vm9 = vcmp.eq.f32.partialorder %v15230_v56, %v1673_v57  ;;  %9909 = vmatmul.mubr.msk.f32.vlgmr.msra.gmra.mxu1 %vm15231_vm10, %v9908_v22  ;;  %v1676_v61 = vsel %vm15232_vm2, %v1673_v57, %v1675_v4  ;;  %vm1730_vm12 = vcmp.eq.f32.partialorder %v14485_v48, %v1723_v21  ;;  %vm15250_vm10 = vcmask 1039360  }
 0xbe3   : > { %7988 = vmatprep.subr.mxu0 %v7948_v39  ;;  %v14583_v13 = vsel %vm1680_vm9, 1.0, %v14485_v48  ;;  %8022 = vmatprep.mubr.f32.mxu0 %v14485_v48  ;;  %vm1681_vm11 = vcmp.eq.f32.partialorder %v15233_v27, %v1676_v61  ;;  %v9203_v17 = vsel %vm1730_vm12, 1.0, %v14485_v48  ;;  %vm15251_vm2 = vmmov %vm15250_vm10  ;;  %vm14682_vm12 = vcmp.eq.s32.totalorder %v8034_v49, 1 }
 0xbe4   : > { %v1702_v46 = vsub.f32 1.0, %v14583_v13  ;;  %7989 = vmatpush1.msra.mxu0 %v7947_v6  ;;  %v14592_v24 = vsel %vm1681_vm11, 1.0, %v14485_v48  ;;  %8315 = vmatprep.mubr.f32.mxu1 %v14485_v48  ;;  %v1752_v55 = vsub.f32 1.0, %v9203_v17  ;;  %vm15252_vm11 = vcmask 916480  }
 0xbe5   : > { %9911 = vmatmul.mubr.msk.f32.vlgmr.msra.gmra.mxu0 %vm15234_vm15, %v9910_v19  ;;  %v1703_v25 = vsub.f32 1.0, %v14592_v24  ;;  %v1721_v1 = vpop.permute.xlu1 %1720  ;;  %vm15254_vm15 = vmmov %vm15252_vm11 }
 0xbe6   : > { %vm1728_vm1 = vcmp.eq.f32.partialorder %v15230_v56, %v1721_v1  ;;  %1708 = vrot.lane.b32.xlu1 %v1702_v46, %s15235_s20  ;;  %v1724_v10 = vsel %vm15236_vm4, %v1721_v1, %v1723_v21  ;;  %8402 = vmatprep.mubr.f32.mxu0 %v14485_v48  ;;  %vm14677_vm4 = vcmp.eq.s32.totalorder %v8033_v51, 1 }
 0xbe7   : > { %v9201_v0 = vsel %vm1728_vm1, 1.0, %v14485_v48  ;;  %vm1729_vm3 = vcmp.eq.f32.partialorder %v15233_v27, %v1724_v10  ;;  %1710 = vrot.lane.b32.xlu0 %v1703_v25, %s15235_s20  ;;  %vm15255_vm1 = vcmask 7168  }
 0xbe8   : > { %v14607_v3 = vsel %vm1729_vm3, 1.0, %v14485_v48  ;;  %v1750_v16 = vsub.f32 1.0, %v9201_v0  ;;  %vm15258_vm3 = vmmov %vm15227_vm7 }
 0xbe9   : > { %v1751_v18 = vsub.f32 1.0, %v14607_v3 }
 0xbea   : > { %1712 = vrot.lane.b32.xlu1 %v1704_v36, %s15235_s20 }
 0xbeb   : > { %1756 = vrot.lane.b32.xlu0 %v1750_v16, %s15237_s14 }
 0xbee   : > { %1758 = vrot.lane.b32.xlu1 %v1751_v18, %s15237_s14 }
 0xbef   : > { %1760 = vrot.lane.b32.xlu0 %v1752_v55, %s15237_s14 }
 0xbf2   : > { %1691 = vrot.lane.b32.xlu1 %v1668_v41, %s15198_s27 }
 0xbf3   : > { %1693 = vrot.lane.b32.xlu0 %v1669_v62, %s15198_s27 }
 0xc58   : > { %v1709_v44 = vpop.permute.xlu1 %1708 }
 0xc59   : > { %v1711_v8 = vpop.permute.xlu0 %1710 }
 0xc5a   : > { %v1714_v35 = vsel %vm15250_vm10, %v1709_v44, %v1711_v8  ;;  %vm8072_vm10 = vmand %vm14633_vm5, %vm14677_vm4 }
 0xc5b   : > { %v1718_v52 = vmul.f32 %v1714_v35, %v1668_v41  ;;  %v9914_v10 = vsel %vm8072_vm10, 1.0, %v14485_v48 }
 0xc5c   : > { %v1713_v31 = vpop.permute.xlu1 %1712 }
 0xc5d   : > { %v1715_v37 = vsel %vm15251_vm2, %v1711_v8, %v1713_v31  ;;  %v1757_v29 = vpop.permute.xlu0 %1756  ;;  %1739 = vrot.lane.b32.xlu1 %v1718_v52, %s15201_s15  ;;  %vm14696_vm2 = vcmp.eq.s32.totalorder %v8032_v50, 1 }
 0xc5e   : > { %v1719_v63 = vmul.f32 %v1715_v37, %v1669_v62  ;;  %vm8129_vm7 = vmand %vm14696_vm2, %vm14649_vm13 }
 0xc5f   : > { %v9917_v18 = vsel %vm8129_vm7, 1.0, %v14485_v48  ;;  %vm8183_vm10 = vmand %vm14696_vm2, %vm14682_vm12  ;;  %vm15268_vm7 = vcmask 1039360   ;;  %vm15273_vm2 = vcmask 908288  }
 0xc60   : > { %1741 = vrot.lane.b32.xlu0 %v1719_v63, %s15201_s15  ;;  %v1759_v58 = vpop.permute.xlu1 %1758  ;;  %v9919_v34 = vsel %vm8183_vm10, 1.0, %v14485_v48  ;;  %vm15287_vm10 = vmand %vm14645_vm0, %vm14649_vm13 }
 0xc61   : > { %v1762_v20 = vsel %vm15252_vm11, %v1757_v29, %v1759_v58  ;;  %v1761_v23 = vpop.permute.xlu0 %1760  ;;  %1768 = vrot.lane.b32.xlu1 %v15200_v12, %s15253_s21  ;;  %vm8073_vm11 = vmand %vm14645_vm0, %vm14682_vm12  ;;  %vm15271_vm12 = vcmask 916480  }
 0xc62   : > { %v1763_v47 = vsel %vm15254_vm15, %v1759_v58, %v1761_v23  ;;  %v1766_v33 = vmul.f32 %v1762_v20, %v1718_v52  ;;  %vm15265_vm15 = vcmask 138240  }
 0xc63   : > { %v1767_v38 = vmul.f32 %v1763_v47, %v1719_v63 }
 0xc64   : > { %1770 = vrot.lane.b32.xlu0 %v15199_v59, %s15253_s21  ;;  %v1692_v54 = vpop.permute.xlu1 %1691 }
 0xc65   : > { %v1694_v4 = vpop.permute.xlu0 %1693  ;;  %1787 = vrot.lane.b32.xlu1 %v1766_v33, %s15253_s21  ;;  %v1699_v5 = vmul.f32 %v14583_v13, %v1692_v54 }
 0xc66   : > { %v1695_v32 = vsel %vm15255_vm1, %v1692_v54, %v1694_v4  ;;  %v1701_v12 = vmul.f32 %v14588_v14, %v1694_v4  ;;  %vm8128_vm1 = vmand %vm14688_vm14, %vm14637_vm8 }
 0xc67   : > { %v1700_v11 = vmul.f32 %v14592_v24, %v1695_v32 }
 0xc68   : > { %1789 = vrot.lane.b32.xlu0 %v1767_v38, %s15253_s21 }
 0xc69   : > { %8056 = vrot.lane.b32.xlu1 %v1699_v5, %s15235_s20 }
 0xc6c   : > { %8058 = vrot.lane.b32.xlu0 %v1700_v11, %s15235_s20 }
 0xc6d   : > { %8060 = vrot.lane.b32.xlu1 %v1701_v12, %s15235_s20 }
 0xc8b   : > { %v7178_v9 = vpop.f32.mrf.mxu0 }
 0xc8d   : > { %v7180_v50 = vpop.f32.mrf.mxu0 }
 0xc8f   : > { %v7278_v60 = vpop.f32.mrf.mxu1 }
 0xc90   : > { %v7279_v8 = vadd.f32 %v7278_v60, %v7178_v9 }
 0xc91   : > { %v7280_v49 = vpop.f32.mrf.mxu1 }
 0xc92   : > { %v7281_v52 = vadd.f32 %v7280_v49, %v7180_v50 }
 0xc94   : > { %v7386_v44 = vpop.f32.mrf.mxu0 }
 0xc95   : > { %v7391_v29 = vadd.f32 %v7386_v44, %v7279_v8 }
 0xc96   : > { %v7388_v31 = vpop.f32.mrf.mxu0 }
 0xc97   : > { %v7496_v37 = vpop.f32.mrf.mxu1  ;;  %v7392_v58 = vadd.f32 %v7388_v31, %v7281_v52 }
 0xc98   : > { %v7501_v47 = vadd.f32 %v7496_v37, %v7391_v29 }
 0xc99   : > { %v7498_v20 = vpop.f32.mrf.mxu1 }
 0xc9a   : > { %v7502_v54 = vadd.f32 %v7498_v20, %v7392_v58 }
 0xc9c   : > { %v7578_v23 = vpop.f32.mrf.mxu0  ;;  %v7694_v32 = vpop.f32.mrf.mxu1 }
 0xc9d   : > { %v7583_v5 = vadd.f32 %v7578_v23, %v7501_v47 }
 0xc9e   : > { %v7580_v4 = vpop.f32.mrf.mxu0 }
 0xc9f   : > { %v7699_v6 = vadd.f32 %v7694_v32, %v7583_v5  ;;  %v15277_v5 = vld [vmem:[#allocation7_spill] sm:$0xff] }
 0xccf   : > { %v1740_v59 = vpop.permute.xlu1 %1739 }
 0xcd0   : > { %v1747_v26 = vmul.f32 %v9201_v0, %v1740_v59  ;;  %v9915_v0 = vsel %vm8073_vm11, 1.0, %v14485_v48  ;;  %vm15274_vm11 = vmmov %vm15271_vm12 }
 0xcd1   : > { %v10650_v62 = vpack.i.bf16 %v9915_v0, %v9914_v10 }
 0xcd2   : > { %v1742_v22 = vpop.permute.xlu0 %1741  ;;  %8112 = vrot.lane.b32.xlu0 %v1747_v26, %s15237_s14  ;;  %v7696_v26 = vpop.f32.mrf.mxu1 }
 0xcd3   : > { %v1743_v57 = vsel %vm15258_vm3, %v1740_v59, %v1742_v22  ;;  %v1769_v39 = vpop.permute.xlu1 %1768  ;;  %v1749_v61 = vmul.f32 %v9203_v17, %v1742_v22  ;;  %v7584_v59 = vadd.f32 %v7580_v4, %v7502_v54  ;;  %v7804_v22 = vpop.f32.mrf.mxu0 }
 0xcd4   : > { %v1748_v13 = vmul.f32 %v14607_v3, %v1743_v57  ;;  %vm1776_vm6 = vcmp.eq.f32.partialorder %v15230_v56, %v1769_v39 }
 0xcd5   : > { %v9204_v24 = vsel %vm1776_vm6, 1.0, %v14485_v48  ;;  %vm15267_vm6 = vmmov %vm15265_vm15  ;;  %v7806_v19 = vpop.f32.mrf.mxu0 }
 0xcd6   : > { %v1771_v46 = vpop.permute.xlu0 %1770  ;;  %8114 = vrot.lane.b32.xlu1 %v1748_v13, %s15237_s14  ;;  %8116 = vrot.lane.b32.xlu0 %v1749_v61, %s15237_s14  ;;  %v7914_v61 = vpop.f32.mrf.mxu1  ;;  %v7809_v13 = vadd.f32 %v7804_v22, %v7699_v6  ;;  %v15281_v6 = vld [vmem:[#allocation8_spill] sm:$0xff] }
 0xcd7   : > { %v1772_v56 = vsel %vm15265_vm15, %v1769_v39, %v1771_v46  ;;  %v1788_v25 = vpop.permute.xlu1 %1787  ;;  %vm1778_vm3 = vcmp.eq.f32.partialorder %v14485_v48, %v1771_v46  ;;  %vm8182_vm15 = vmand %vm14688_vm14, %vm14677_vm4  ;;  %v7700_v39 = vadd.f32 %v7696_v26, %v7584_v59  ;;  %v15279_v26 = vld [vmem:[#allocation11_spill] sm:$0xff] }
 0xcd8   : > { %vm1777_vm9 = vcmp.eq.f32.partialorder %v15233_v27, %v1772_v56  ;;  %v1795_v1 = vmul.f32 %v9204_v24, %v1788_v25  ;;  %v9916_v27 = vsel %vm8128_vm1, 1.0, %v14485_v48  ;;  %v9206_v3 = vsel %vm1778_vm3, 1.0, %v14485_v48  ;;  %v7916_v56 = vpop.f32.mrf.mxu1  ;;  %v8024_v24 = vpop.f32.mrf.mxu0  ;;  %vm15270_vm4 = vmmov %vm15268_vm7 }
 0xcd9   : > { %v9205_v16 = vsel %vm1777_vm9, 1.0, %v14485_v48  ;;  %v10655_v43 = vpack.i.bf16 %v9917_v18, %v9916_v27  ;;  %v9918_v15 = vsel %vm8182_vm15, 1.0, %v14485_v48  ;;  %v7810_v46 = vadd.f32 %v7806_v19, %v7700_v39  ;;  %vm15269_vm9 = vmmov %vm15268_vm7  ;;  %v15282_v39 = vld [vmem:[#allocation21_spill] sm:$0xff] }
 0xcda   : > { %v1790_v36 = vpop.permute.xlu0 %1789  ;;  %8168 = vrot.lane.b32.xlu1 %v1795_v1, %s15266_s18  ;;  %v10660_v51 = vpack.i.bf16 %v9919_v34, %v9918_v15  ;;  %vm15272_vm14 = vmmov %vm15271_vm12  ;;  %v8409_v22 = vmul.f32 %v14485_v48, %v15279_v26  ;;  %v8776_v19 = vmul.f32 %v14485_v48, %v15282_v39  ;;  %vm15286_vm15 = vcmask 7168   ;;  %v15306_v26 = vld [vmem:[#allocation13_spill] sm:$0xff]  ;;  %v15308_v39 = vld [vmem:[#allocation19_spill] sm:$0xff] }
 0xcdb   : > { %v1791_v17 = vsel %vm15267_vm6, %v1788_v25, %v1790_v36  ;;  %v1797_v55 = vmul.f32 %v9206_v3, %v1790_v36  ;;  %v8057_v35 = vpop.permute.xlu1 %8056  ;;  %v7919_v25 = vadd.f32 %v7914_v61, %v7809_v13  ;;  %v7920_v3 = vadd.f32 %v7916_v56, %v7810_v46  ;;  %vm15275_vm1 = vmmov %vm15273_vm2  ;;  %v15284_v61 = vld [vmem:[#allocation16_spill] sm:$0xff] }
 0xcdc   : > { %v1796_v41 = vmul.f32 %v9205_v16, %v1791_v17  ;;  %vm15276_vm3 = vmmov %vm15275_vm1  ;;  %v8682_v13 = vmul.f32 %v14485_v48, %v15284_v61  ;;  %v15309_v61 = vld [vmem:[#allocation30_spill] sm:$0xff] }
 0xcdd   : > { %v8029_v18 = vadd.f32 %v8024_v24, %v7919_v25  ;;  %vm15285_vm6 = vmand %vm14633_vm5, %vm14637_vm8  ;;  %vm15289_vm5 = vcmask 130048  }
 0xcde   : > { %8170 = vrot.lane.b32.xlu0 %v1796_v41, %s15266_s18  ;;  %8172 = vrot.lane.b32.xlu1 %v1797_v55, %s15266_s18  ;;  %v8059_v63 = vpop.permute.xlu0 %8058  ;;  %v8026_v55 = vpop.f32.mrf.mxu0  ;;  %v9912_v25 = vsel %vm15285_vm6, 1.0, %v14485_v48  ;;  %vm15290_vm8 = vmmov %vm15289_vm5 }
 0xcdf   : > { %v8061_v33 = vpop.permute.xlu1 %8060  ;;  %v8062_v16 = vsel %vm15268_vm7, %v8057_v35, %v8059_v63  ;;  %v8030_v9 = vadd.f32 %v8026_v55, %v7920_v3  ;;  %v8035_v24 = vmul.f32 %v14618_v40, %v8029_v18  ;;  %vm15288_vm7 = vmmov %vm15286_vm15 }
 0xce0   : > { %v8066_v34 = vmul.f32 %v8062_v16, %v8029_v18  ;;  %vm15313_vm13 = vmmov %vm15289_vm5 }
 0xce2   : > { %10651 = vrot.lane.b32.xlu0 %v10650_v62, %s15235_s20  ;;  %10656 = vrot.lane.b32.xlu1 %v10655_v43, %s15237_s14 }
 0xce6   : > { %10661 = vrot.lane.b32.xlu0 %v10660_v51, %s15266_s18  ;;  %v8063_v51 = vsel %vm15270_vm4, %v8059_v63, %v8061_v33 }
 0xce7   : > { %v8067_v8 = vmul.f32 %v8063_v51, %v8030_v9 }
 0xd44   : > { %v8113_v38 = vpop.permute.xlu0 %8112 }
 0xd48   : > { %v8115_v11 = vpop.permute.xlu1 %8114  ;;  %v8117_v12 = vpop.permute.xlu0 %8116 }
 0xd49   : > { %v8119_v50 = vsel %vm15271_vm12, %v8115_v11, %v8117_v12  ;;  %v8118_v52 = vsel %vm15272_vm14, %v8113_v38, %v8115_v11  ;;  %v8230_v11 = vmul.f32 %v14485_v48, %v15277_v5  ;;  %v15278_v12 = vld [vmem:[#allocation9_spill] sm:$0xff]  ;;  %v15304_v5 = vld [vmem:[#allocation24_spill] sm:$0xff]  ;;  %vm15315_vm12 = vmmov %vm15289_vm5 }
 0xd4a   : > { %v8123_v31 = vmul.f32 %v8119_v50, %v8030_v9  ;;  %v8122_v20 = vmul.f32 %v8118_v52, %v8029_v18  ;;  %v8226_v59 = vmul.f32 %v14485_v48, %v15278_v12  ;;  %v15294_v50 = vld [vmem:[#allocation35_spill] sm:$0xff]  ;;  %v15297_v52 = vld [vmem:[#allocation25_spill] sm:$0xff] }
 0xd4b   : > { %v15305_v12 = vld [vmem:[#allocation23_spill] sm:$0xff] }
 0xd4c   : > { %v8169_v57 = vpop.permute.xlu1 %8168 }
 0xd50   : > { %v8171_v14 = vpop.permute.xlu0 %8170  ;;  %v8173_v21 = vpop.permute.xlu1 %8172 }
 0xd51   : > { %v8174_v37 = vsel %vm15273_vm2, %v8169_v57, %v8171_v14  ;;  %v8175_v33 = vsel %vm15276_vm3, %v8171_v14, %v8173_v21  ;;  %v8503_v57 = vmul.f32 %v14485_v48, %v15281_v6  ;;  %v15307_v6 = vld [vmem:[#allocation29_spill] sm:$0xff]  ;;  %vm15317_vm2 = vcmask 64512  }
 0xd52   : > { %v8178_v47 = vmul.f32 %v8174_v37, %v8029_v18  ;;  %v8179_v4 = vmul.f32 %v8175_v33, %v8030_v9  ;;  %v15298_v37 = vld [vmem:[#allocation20_spill] sm:$0xff]  ;;  %vm15321_vm6 = vmmov %vm15317_vm2 }
 0xd54   : > { %v10652_v1 = vpop.permute.xlu0 %10651  ;;  %v10657_v36 = vpop.permute.xlu1 %10656 }
 0xd55   : > { %v10654_v10 = vunpack.i.h.bf16 %v10652_v1  ;;  %v10653_v0 = vunpack.i.l.bf16 %v10652_v1  ;;  %v10658_v27 = vunpack.i.l.bf16 %v10657_v36  ;;  %v10659_v44 = vunpack.i.h.bf16 %v10657_v36 }
 0xd56   : > { %v8036_v1 = vmul.f32 %v14622_v30, %v8030_v9 }
 0xd57   : > { %v8091_v17 = vmul.f32 %v14485_v48, %v10653_v0  ;;  %v8147_v41 = vmul.f32 %v14485_v48, %v10658_v27  ;;  %v8087_v43 = vsel %vm15269_vm9, %v10653_v0, %v10654_v10  ;;  %v8093_v29 = vmul.f32 %v10654_v10, %v8067_v8  ;;  %v15296_v8 = vld [vmem:[#allocation22_spill] sm:$0xff] }
 0xd58   : > { %v10662_v62 = vpop.permute.xlu0 %10661  ;;  %v8092_v49 = vmul.f32 %v8087_v43, %v8066_v34  ;;  %v8149_v63 = vmul.f32 %v10659_v44, %v8123_v31  ;;  %v8143_v58 = vsel %vm15274_vm11, %v10658_v27, %v10659_v44  ;;  %v9913_v0 = vsel %vm15287_vm10, 1.0, %v14485_v48  ;;  %v15293_v34 = vld [vmem:[#allocation33_spill] sm:$0xff]  ;;  %vm15318_vm11 = vmmov %vm15317_vm2 }
 0xd59   : > { %v10663_v15 = vunpack.i.l.bf16 %v10662_v62  ;;  %8097 = vrot.lane.b32.xlu1 %v8091_v17, %s15198_s27  ;;  %8153 = vrot.lane.b32.xlu0 %v8147_v41, %s15201_s15  ;;  %v10664_v35 = vunpack.i.h.bf16 %v10662_v62  ;;  %v8148_v38 = vmul.f32 %v8143_v58, %v8122_v20  ;;  %v8051_v27 = vmul.f32 %v9912_v25, %v8035_v24  ;;  %v15300_v20 = vld [vmem:[#allocation12_spill] sm:$0xff]  ;;  %v15312_v24 = vld [vmem:[#allocation26_spill] sm:$0xff]  ;;  %vm15323_vm10 = vmmov %vm15288_vm7 }
 0xd5a   : > { %v8052_v28 = vmul.f32 %v9913_v0, %v8036_v1  ;;  %vm15291_vm9 = vcmask 138240   ;;  %v8964_v25 = vmul.f32 %v14485_v48, %v15312_v24 }
 0xd5b   : > { %v8201_v60 = vmul.f32 %v14485_v48, %v10663_v15  ;;  %v8197_v23 = vsel %vm15275_vm1, %v10663_v15, %v10664_v35  ;;  %v8203_v32 = vmul.f32 %v10664_v35, %v8179_v4  ;;  %vm15292_vm0 = vmmov %vm15291_vm9  ;;  %v15303_v4 = vld [vmem:[#allocation18_spill] sm:$0xff]  ;;  %vm15319_vm1 = vcmask 121856  }
 0xd5c   : > { %v8202_v54 = vmul.f32 %v8197_v23, %v8178_v47  ;;  %v15301_v47 = vld [vmem:[#allocation14_spill] sm:$0xff]  ;;  %vm15314_vm4 = vmmov %vm15292_vm0 }
 0xd5d   : > { %8207 = vrot.lane.b32.xlu1 %v8201_v60, %s15253_s21  ;;  %8099 = vrot.lane.b32.xlu0 %v8092_v49, %s15198_s27  ;;  %v15295_v49 = vld [vmem:[#allocation15_spill] sm:$0xff]  ;;  %vm15316_vm14 = vmmov %vm15292_vm0 }
 0xd5e   : > { %vm15320_vm3 = vmmov %vm15319_vm1 }
 0xd61   : > { %8101 = vrot.lane.b32.xlu1 %v8093_v29, %s15198_s27  ;;  %8157 = vrot.lane.b32.xlu0 %v8149_v63, %s15201_s15  ;;  %v15299_v63 = vld [vmem:[#allocation10_spill] sm:$0xff] }
 0xd65   : > { %8155 = vrot.lane.b32.xlu1 %v8148_v38, %s15201_s15  ;;  %8209 = vrot.lane.b32.xlu0 %v8202_v54, %s15253_s21  ;;  %v15302_v38 = vld [vmem:[#allocation17_spill] sm:$0xff] }
 0xd69   : > { %8211 = vrot.lane.b32.xlu1 %v8203_v32, %s15253_s21  ;;  %8238 = vrot.lane.b32.xlu0 %v8230_v11, %s15201_s15 }
 0xd6d   : > { %8325 = vrot.lane.b32.xlu1 %v8226_v59, %s15253_s21  ;;  %8417 = vrot.lane.b32.xlu0 %v8409_v22, %s15280_s29  ;;  %v8870_v59 = vmul.f32 %v14485_v48, %v15305_v12 }
 0xd71   : > { %8511 = vrot.lane.b32.xlu1 %v8503_v57, %s15198_s27  ;;  %8786 = vrot.lane.b32.xlu0 %v8776_v19, %s15283_s28 }
 0xd75   : > { %8692 = vrot.lane.b32.xlu1 %v8682_v13, %s15235_s20 }
 0xdcb   : > { %v8098_v14 = vpop.permute.xlu1 %8097  ;;  %v8154_v21 = vpop.permute.xlu0 %8153 }
 0xdcf   : > { %v8208_v46 = vpop.permute.xlu1 %8207  ;;  %v8100_v56 = vpop.permute.xlu0 %8099 }
 0xdd0   : > { %v8103_v10 = vsel %vm15286_vm15, %v8098_v14, %v8100_v56  ;;  %v15310_v14 = vld [vmem:[#allocation28_spill] sm:$0xff]  ;;  %vm15322_vm15 = vmmov %vm15288_vm7 }
 0xdd1   : > { %v8107_v3 = vadd.f32 %v8103_v10, %v8051_v27 }
 0xdd3   : > { %v8102_v36 = vpop.permute.xlu1 %8101  ;;  %v8158_v40 = vpop.permute.xlu0 %8157 }
 0xdd4   : > { %v8104_v7 = vsel %vm15288_vm7, %v8100_v56, %v8102_v36  ;;  %vm15324_vm7 = vmmov %vm15317_vm2 }
 0xdd5   : > { %v8108_v55 = vadd.f32 %v8104_v7, %v8052_v28 }
 0xdd7   : > { %v8156_v16 = vpop.permute.xlu1 %8155  ;;  %v8210_v18 = vpop.permute.xlu0 %8209 }
 0xdd8   : > { %v8159_v17 = vsel %vm15289_vm5, %v8154_v21, %v8156_v16  ;;  %v8160_v30 = vsel %vm15290_vm8, %v8156_v16, %v8158_v40  ;;  %v8213_v53 = vsel %vm15291_vm9, %v8208_v46, %v8210_v18  ;;  %v15311_v46 = vld [vmem:[#allocation27_spill] sm:$0xff]  ;;  %vm15325_vm5 = vmmov %vm15317_vm2  ;;  %vm15326_vm8 = vcmask 1039360  }
 0xdd9   : > { %v8163_v41 = vadd.f32 %v8159_v17, %v8107_v3  ;;  %v8164_v62 = vadd.f32 %v8160_v30, %v8108_v55  ;;  %vm15327_vm9 = vcmask 924672  }
 0xddb   : > { %v8217_v2 = vadd.f32 %v8213_v53, %v8163_v41  ;;  %v8212_v43 = vpop.permute.xlu1 %8211  ;;  %v8239_v1 = vpop.permute.xlu0 %8238 }
 0xddc   : > { %v8214_v15 = vsel %vm15292_vm0, %v8210_v18, %v8212_v43  ;;  %vm15328_vm0 = vmmov %vm15326_vm8 }
 0xddd   : > { %v14806_v51 = vmul.f32 %v15293_v34, %v8217_v2  ;;  %v8218_v9 = vadd.f32 %v8214_v15, %v8164_v62  ;;  %v9920_v62 = vld [vmem:[%s14950_s12 + $0x4] sm:$0xf]  ;;  %v8229_v2 = vld [vmem:[%s14950_s12] sm:$0xf] }
 0xddf   : > { %8221 = vst [vmem:[#allocation2] sm:$0xff] %v14806_v51  ;;  %v14810_v60 = vmul.f32 %v15294_v50, %v8218_v9  ;;  %v8231_v44 = vmul.f32 %v14806_v51, %v15295_v49  ;;  %v8227_v35 = vmul.f32 %v14806_v51, %v15296_v8  ;;  %v8410_v31 = vmul.f32 %v14806_v51, %v15297_v52  ;;  %v8326_v36 = vpop.permute.xlu1 %8325  ;;  %v8418_v10 = vpop.permute.xlu0 %8417  ;;  %v9923_v49 = vld [vmem:[%s14950_s12 + $0x8] sm:$0xf] }
 0xde0   : > { %v8504_v29 = vmul.f32 %v14806_v51, %v15298_v37  ;;  %v8680_v58 = vmul.f32 %v15299_v63, %v14806_v51  ;;  %v8774_v23 = vmul.f32 %v15300_v20, %v14806_v51  ;;  %v8868_v11 = vmul.f32 %v15304_v5, %v14806_v51  ;;  %v9933_v5 = vld [vmem:[%s14950_s12 + $0x1c] sm:$0xf] }
 0xde1   : > { %8222 = vst [vmem:[#allocation2 + $0x18] sm:$0xff] %v14810_v60  ;;  %8240 = vrot.lane.b32.xlu0 %v8231_v44, %s15201_s15  ;;  %8327 = vrot.lane.b32.xlu1 %v8227_v35, %s15253_s21  ;;  %v8232_v33 = vmul.f32 %v15301_v47, %v14810_v60  ;;  %v8228_v54 = vmul.f32 %v15302_v38, %v14810_v60  ;;  %v9929_v47 = vld [vmem:[%s14950_s12 + $0x14] sm:$0xf] }
 0xde2   : > { %v8411_v32 = vmul.f32 %v15303_v4, %v14810_v60  ;;  %v8505_v22 = vmul.f32 %v15306_v26, %v14810_v60  ;;  %v8775_v57 = vmul.f32 %v14810_v60, %v15307_v6  ;;  %v8681_v19 = vmul.f32 %v14810_v60, %v15308_v39 }
 0xde3   : > { %v8963_v13 = vmul.f32 %v14810_v60, %v15309_v61  ;;  %v8869_v21 = vmul.f32 %v14810_v60, %v15310_v14  ;;  %v8962_v56 = vmul.f32 %v15311_v46, %v14806_v51  ;;  %v8512_v0 = vpop.permute.xlu1 %8511  ;;  %v8787_v40 = vpop.permute.xlu0 %8786  ;;  %v8598_v8 = vmul.f32 %v15212_v45, %v14810_v60  ;;  %v9927_v45 = vld [vmem:[%s14950_s12 + $0x10] sm:$0xf] }
 0xde4   : > { %v8597_v35 = vmul.f32 %v15215_v42, %v14806_v51 }
 0xde5   : > { %8419 = vrot.lane.b32.xlu0 %v8410_v31, %s15280_s29  ;;  %8513 = vrot.lane.b32.xlu1 %v8504_v29, %s15198_s27  ;;  %v9925_v29 = vld [vmem:[%s14950_s12 + $0xc] sm:$0xf] }
 0xde7   : > { %v8693_v27 = vpop.permute.xlu1 %8692 }
 0xde9   : > { %8688 = vrot.lane.b32.xlu0 %v8680_v58, %s15235_s20  ;;  %8782 = vrot.lane.b32.xlu1 %v8774_v23, %s15283_s28 }
 0xded   : > { %8242 = vrot.lane.b32.xlu1 %v8232_v33, %s15201_s15  ;;  %8329 = vrot.lane.b32.xlu0 %v8228_v54, %s15253_s21  ;;  %v9931_v33 = vld [vmem:[%s14950_s12 + $0x18] sm:$0xf] }
 0xdf1   : > { %8421 = vrot.lane.b32.xlu1 %v8411_v32, %s15280_s29  ;;  %8876 = vrot.lane.b32.xlu0 %v8868_v11, %s15237_s14 }
 0xdf5   : > { %8880 = vrot.lane.b32.xlu1 %v8870_v59, %s15237_s14  ;;  %8515 = vrot.lane.b32.xlu0 %v8505_v22, %s15198_s27  ;;  %v9935_v22 = vld [vmem:[%s14950_s12 + $0x20] sm:$0xf] }
 0xdf9   : > { %8784 = vrot.lane.b32.xlu1 %v8775_v57, %s15283_s28  ;;  %8690 = vrot.lane.b32.xlu0 %v8681_v19, %s15235_s20 }
 0xdfd   : > { %8972 = vrot.lane.b32.xlu1 %v8963_v13, %s15266_s18  ;;  %8878 = vrot.lane.b32.xlu0 %v8869_v21, %s15237_s14 }
 0xe01   : > { %8970 = vrot.lane.b32.xlu1 %v8962_v56, %s15266_s18  ;;  %8974 = vrot.lane.b32.xlu0 %v8964_v25, %s15266_s18 }
 0xe53   : > { %v8241_v7 = vpop.permute.xlu0 %8240  ;;  %v8328_v3 = vpop.permute.xlu1 %8327 }
 0xe54   : > { %v8244_v43 = vsel %vm15315_vm12, %v8239_v1, %v8241_v7  ;;  %v8331_v15 = vsel %vm15316_vm14, %v8326_v36, %v8328_v3  ;;  %vm15331_vm12 = vcmask 916480  }
 0xe55   : > { %vm15332_vm14 = vmmov %vm15331_vm12 }
 0xe57   : > { %v8420_v28 = vpop.permute.xlu0 %8419  ;;  %v8514_v16 = vpop.permute.xlu1 %8513 }
 0xe58   : > { %v8423_v44 = vsel %vm15320_vm3, %v8418_v10, %v8420_v28  ;;  %v8517_v42 = vsel %vm15323_vm10, %v8512_v0, %v8514_v16 }
 0xe5b   : > { %v8689_v17 = vpop.permute.xlu0 %8688  ;;  %v8783_v30 = vpop.permute.xlu1 %8782 }
 0xe5f   : > { %v8330_v18 = vpop.permute.xlu0 %8329  ;;  %v8243_v55 = vpop.permute.xlu1 %8242 }
 0xe60   : > { %v8245_v41 = vsel %vm15313_vm13, %v8241_v7, %v8243_v55  ;;  %v8332_v53 = vsel %vm15314_vm4, %v8328_v3, %v8330_v18  ;;  %vm15329_vm13 = vmmov %vm15327_vm9 }
 0xe61   : > { %8281 = vmatprep.subr.mxu1 %v8245_v41  ;;  %8368 = vmatprep.subr.mxu0 %v8332_v53  ;;  %vm15330_vm4 = vmmov %vm15317_vm2 }
 0xe62   : > { %8282 = vmatpush1.msra.mxu1 %v8244_v43  ;;  %8369 = vmatpush1.msra.mxu0 %v8331_v15 }
 0xe63   : > { %v8877_v34 = vpop.permute.xlu0 %8876  ;;  %v8422_v9 = vpop.permute.xlu1 %8421  ;;  %9921 = vmatmul.mubr.msk.f32.vlgmr.msra.gmra.mxu1 %vm15317_vm2, %v9920_v62  ;;  %9922 = vmatmul.mubr.msk.f32.vlgmr.msra.gmra.mxu0 %vm15318_vm11, %v8229_v2  ;;  %vm15333_vm11 = vmmov %vm15317_vm2 }
 0xe64   : > { %v8424_v50 = vsel %vm15319_vm1, %v8420_v28, %v8422_v9  ;;  %8494 = vmatprep.mubr.f32.mxu1 %v14485_v48  ;;  %8588 = vmatprep.mubr.f32.mxu0 %v14485_v48  ;;  %vm15334_vm1 = vcmask 908288  }
 0xe65   : > { %8460 = vmatprep.subr.mxu1 %v8424_v50  ;;  %vm15335_vm3 = vmmov %vm15334_vm1 }
 0xe66   : > { %8461 = vmatpush1.msra.mxu1 %v8423_v44 }
 0xe67   : > { %v8516_v52 = vpop.permute.xlu0 %8515  ;;  %8634 = vmatprep.subr.mxu1 %v8598_v8  ;;  %v8881_v31 = vpop.permute.xlu1 %8880  ;;  %9924 = vmatmul.mubr.msk.f32.vlgmr.msra.gmra.mxu1 %vm15321_vm6, %v9923_v49  ;;  %vm15336_vm6 = vmmov %vm15317_vm2 }
 0xe68   : > { %8635 = vmatpush1.msra.mxu1 %v8597_v35  ;;  %v8518_v37 = vsel %vm15322_vm15, %v8514_v16, %v8516_v52  ;;  %8668 = vmatprep.mubr.f32.mxu1 %v14485_v48 }
 0xe69   : > { %8554 = vmatprep.subr.mxu0 %v8518_v37 }
 0xe6a   : > { %8555 = vmatpush1.msra.mxu0 %v8517_v42 }
 0xe6b   : > { %v8691_v51 = vpop.permute.xlu0 %8690  ;;  %v8785_v60 = vpop.permute.xlu1 %8784  ;;  %9926 = vmatmul.mubr.msk.f32.vlgmr.msra.gmra.mxu0 %vm15324_vm7, %v9925_v29  ;;  %9928 = vmatmul.mubr.msk.f32.vlgmr.msra.gmra.mxu1 %vm15325_vm5, %v9927_v45 }
 0xe6c   : > { %v8694_v63 = vsel %vm15326_vm8, %v8689_v17, %v8691_v51  ;;  %v8788_v58 = vsel %vm15327_vm9, %v8783_v30, %v8785_v60  ;;  %v8695_v20 = vsel %vm15328_vm0, %v8691_v51, %v8693_v27  ;;  %v8789_v23 = vsel %vm15329_vm13, %v8785_v60, %v8787_v40  ;;  %8765 = vmatprep.mubr.f32.mxu0 %v14485_v48 }
 0xe6d   : > { %8731 = vmatprep.subr.mxu0 %v8695_v20  ;;  %8825 = vmatprep.subr.mxu1 %v8789_v23 }
 0xe6e   : > { %8732 = vmatpush1.msra.mxu0 %v8694_v63  ;;  %8826 = vmatpush1.msra.mxu1 %v8788_v58 }
 0xe6f   : > { %v8879_v38 = vpop.permute.xlu0 %8878  ;;  %v8973_v54 = vpop.permute.xlu1 %8972  ;;  %9930 = vmatmul.mubr.msk.f32.vlgmr.msra.gmra.mxu0 %vm15330_vm4, %v9929_v47  ;;  %8859 = vmatprep.mubr.f32.mxu1 %v14485_v48 }
 0xe70   : > { %v8882_v4 = vsel %vm15331_vm12, %v8877_v34, %v8879_v38  ;;  %v8883_v32 = vsel %vm15332_vm14, %v8879_v38, %v8881_v31  ;;  %9932 = vmatmul.mubr.msk.f32.vlgmr.msra.gmra.mxu1 %vm15317_vm2, %v9931_v33  ;;  %8953 = vmatprep.mubr.f32.mxu0 %v14485_v48 }
 0xe71   : > { %8919 = vmatprep.subr.mxu0 %v8883_v32  ;;  %9047 = vmatprep.mubr.f32.mxu1 %v14485_v48 }
 0xe72   : > { %8920 = vmatpush1.msra.mxu0 %v8882_v4 }
 0xe73   : > { %v8975_v11 = vpop.permute.xlu0 %8974  ;;  %v8971_v12 = vpop.permute.xlu1 %8970  ;;  %9934 = vmatmul.mubr.msk.f32.vlgmr.msra.gmra.mxu0 %vm15333_vm11, %v9933_v5 }
 0xe74   : > { %v8976_v59 = vsel %vm15334_vm1, %v8971_v12, %v8973_v54  ;;  %v8977_v26 = vsel %vm15335_vm3, %v8973_v54, %v8975_v11 }
 0xe75   : > { %9013 = vmatprep.subr.mxu1 %v8977_v26 }
 0xe76   : > { %9014 = vmatpush1.msra.mxu1 %v8976_v59 }
 0xe77   : > { %9936 = vmatmul.mubr.msk.f32.vlgmr.msra.gmra.mxu1 %vm15336_vm6, %v9935_v22 }
 0xf23   : > { %v8317_v6 = vpop.f32.mrf.mxu1  ;;  %v8404_v57 = vpop.f32.mrf.mxu0 }
 0xf24   : > { %v8405_v48 = vadd.f32 %v8404_v57, %v8317_v6 }
 0xf25   : > { %v8319_v39 = vpop.f32.mrf.mxu1  ;;  %v8406_v19 = vpop.f32.mrf.mxu0 }
 0xf26   : > { %v8407_v13 = vadd.f32 %v8406_v19, %v8319_v39 }
 0xf27   : > { %v8496_v61 = vpop.f32.mrf.mxu1 }
 0xf28   : > { %v8501_v14 = vadd.f32 %v8496_v61, %v8405_v48 }
 0xf29   : > { %v8498_v21 = vpop.f32.mrf.mxu1 }
 0xf2a   : > { %v8502_v24 = vadd.f32 %v8498_v21, %v8407_v13 }
 0xf2b   : > { %v8590_v46 = vpop.f32.mrf.mxu0  ;;  %v8670_v56 = vpop.f32.mrf.mxu1 }
 0xf2c   : > { %v8595_v25 = vadd.f32 %v8590_v46, %v8501_v14 }
 0xf2d   : > { %v8592_v1 = vpop.f32.mrf.mxu0  ;;  %v8672_v36 = vpop.f32.mrf.mxu1 }
 0xf2e   : > { %v8596_v10 = vadd.f32 %v8592_v1, %v8502_v24  ;;  %v8675_v0 = vadd.f32 %v8670_v56, %v8595_v25 }
 0xf2f   : > { %v8767_v40 = vpop.f32.mrf.mxu0 }
 0xf30   : > { %v8676_v27 = vadd.f32 %v8672_v36, %v8596_v10  ;;  %v8772_v7 = vadd.f32 %v8767_v40, %v8675_v0  ;;  %v8861_v3 = vpop.f32.mrf.mxu1 }
 0xf31   : > { %v8769_v28 = vpop.f32.mrf.mxu0 }
 0xf32   : > { %v8773_v16 = vadd.f32 %v8769_v28, %v8676_v27  ;;  %v8863_v17 = vpop.f32.mrf.mxu1  ;;  %v8866_v18 = vadd.f32 %v8861_v3, %v8772_v7 }
 0xf33   : > { %v8955_v30 = vpop.f32.mrf.mxu0 }
 0xf34   : > { %v8867_v55 = vadd.f32 %v8863_v17, %v8773_v16  ;;  %v8960_v62 = vadd.f32 %v8955_v30, %v8866_v18 }
 0xf35   : > { %v8957_v41 = vpop.f32.mrf.mxu0 }
 0xf36   : > { %v8961_v2 = vadd.f32 %v8957_v41, %v8867_v55 }
 0xf37   : > { %v9049_v53 = vpop.f32.mrf.mxu1 }
 0xf38   : > { %v9054_v15 = vadd.f32 %v9049_v53, %v8960_v62 }
 0xf39   : > { %v9051_v43 = vpop.f32.mrf.mxu1 }
 0xf3a   : > { %v9055_v34 = vadd.f32 %v9051_v43, %v8961_v2 }
 0xf3c   : > { %v9058_v9 = vcombine.low %v9054_v15, %v9055_v34 }
 0xf3e   : > { %9060 = vst [vmem:[%s440_s22] sm:$0xff] %v9058_v9 }
 0xf3f PF: > { %s23_s25 = sadd.s32 1, %s10676_s25  }
 0xf40   : > { %p20_p4 = scmp.ge.s32.totalorder %s23_s25, 4  }
 0xf42   :  { %22 = sbr.rel (!%p20_p4) target bundleno = 1 (0x1), region = 164 }

</bundles_post_ra>
